<compile_context>
chip_gen: v5e
topology: v5e:2x2
jax: 0.10.0
libtpu: 0.0.40
codegen_flags: <defaults>
</compile_context>

<pallas_src>
import functools

import jax
import jax.numpy as jnp
from jax import lax
from jax.experimental import pallas as pl
from jax.experimental.pallas import tpu as pltpu


# -----------------------------------------------------------------------------
# Fused Pallas kernel: embedding projection + all LSTM layers + final Linear
# -----------------------------------------------------------------------------
def fused_lstm_fc_kernel(S, B, H, L,
                         emb_ref, wih0_ref, b0_ref, wih_ref, whh_ref, brest_ref,
                         wfc_ref, bfc_ref,
                         logits_ref, hn_ref, cn_ref,
                         gates_scr, hseq_scr):
    """All layers of the LSTM plus the final FC in one kernel.

    emb_ref   : (S*B, E) bf16   gathered embeddings, time-major flattened
    wih0_ref  : (E, 4H) bf16    layer-0 input->gates weights
    b0_ref    : (1, 4H) f32     layer-0 combined bias (b_ih + b_hh)
    wih_ref   : (max(L-1,1), H, 4H) bf16   input->gates weights for layers 1..L-1
    whh_ref   : (L, H, 4H) bf16            hidden->gates weights, all layers
    brest_ref : (max(L-1,1), 1, 4H) f32    combined biases for layers 1..L-1
    wfc_ref   : (H, V) bf16, bfc_ref : (1, V) f32
    logits_ref: (B, V) f32
    hn_ref    : (L, B, H) f32   final hidden states (PyTorch h_n)
    cn_ref    : (L, B, H) f32   final cell states  (PyTorch c_n)
    gates_scr : (S*B, 4H) f32   VMEM scratch: hoisted per-layer input projection (+ bias)
    hseq_scr  : (S*B, H)  f32   VMEM scratch: current layer's full hidden sequence
    """

    def run_layer(l, write_seq):
        w_hh = whh_ref[l]                                    # (H, 4H) bf16, hoisted

        def step(t, carry):
            h, c = carry                                     # f32 (B, H) in registers
            row = pl.multiple_of(t * B, B)
            g = (gates_scr[pl.ds(row, B), :]
                 + jnp.dot(h.astype(jnp.bfloat16), w_hh,
                           preferred_element_type=jnp.float32))       # (B, 4H) f32
            i = jax.nn.sigmoid(g[:, 0 * H:1 * H])
            f = jax.nn.sigmoid(g[:, 1 * H:2 * H])
            gg = jnp.tanh(g[:, 2 * H:3 * H])
            o = jax.nn.sigmoid(g[:, 3 * H:4 * H])
            c_new = f * c + i * gg
            h_new = o * jnp.tanh(c_new)
            if write_seq:                                    # static; last layer skips it
                hseq_scr[pl.ds(row, B), :] = h_new
            return (h_new, c_new)

        zeros = jnp.zeros((B, H), jnp.float32)
        h_f, c_f = lax.fori_loop(0, S, step, (zeros, zeros), unroll=True)
        hn_ref[l] = h_f
        cn_ref[l] = c_f
        return h_f

    # Layer 0: hoisted input projection from the gathered embeddings (+ bias).
    gates_scr[...] = (jnp.dot(emb_ref[...], wih0_ref[...],
                              preferred_element_type=jnp.float32)
                      + b0_ref[...])
    h_last = run_layer(0, write_seq=(L > 1))

    # Layers 1..L-1: hoist the input projection to a single (S*B, H) @ (H, 4H) matmul.
    for l in range(1, L):
        gates_scr[...] = (jnp.dot(hseq_scr[...].astype(jnp.bfloat16), wih_ref[l - 1],
                                  preferred_element_type=jnp.float32)
                          + brest_ref[l - 1])
        h_last = run_layer(l, write_seq=(l < L - 1))

    # Fused final Linear on the last timestep of the last layer (out[:, -1, :] @ W^T + b).
    logits_ref[...] = (jnp.dot(h_last.astype(jnp.bfloat16), wfc_ref[...],
                               preferred_element_type=jnp.float32)
                       + bfc_ref[...])


# -----------------------------------------------------------------------------
# Wrapper
# -----------------------------------------------------------------------------
@functools.partial(jax.jit, static_argnames=("num_layers",))
def joke_rnn_forward(x_tokens, params, num_layers):
    """Equivalent of JokeRNNMethod.forward(x, hidden=None) for rnn_type='lstm'.

    Returns (logits (B, vocab), (h_n (L, B, H), c_n (L, B, H))).
    """
    B, S = x_tokens.shape
    H = params["w_hh_t"][0].shape[0]
    E = params["embedding"].shape[1]
    V = params["w_fc_t"].shape[1]

    # --- glue: embedding-row gather only (projection happens inside the kernel) ---
    # TODO(synk): the gather itself stays in XLA (no clean small-scale Pallas gather).
    emb = jnp.take(params["embedding"], x_tokens, axis=0)             # (B, S, E) f32
    emb = (jnp.transpose(emb, (1, 0, 2))                              # time-major
           .reshape(S * B, E)
           .astype(jnp.bfloat16))

    wih0 = params["w_ih_t"][0].astype(jnp.bfloat16)                   # (E, 4H)
    b0 = params["b_rnn"][0]                                           # (1, 4H) f32
    whh = jnp.stack([w.astype(jnp.bfloat16) for w in params["w_hh_t"]], axis=0)   # (L,H,4H)
    if num_layers > 1:
        wih = jnp.stack([params["w_ih_t"][l].astype(jnp.bfloat16)
                         for l in range(1, num_layers)], axis=0)                  # (L-1,H,4H)
        brest = jnp.stack([params["b_rnn"][l] for l in range(1, num_layers)], 0)  # (L-1,1,4H)
    else:  # dummies (never read; layer loop is static)
        wih = jnp.zeros((1, H, 4 * H), jnp.bfloat16)
        brest = jnp.zeros((1, 1, 4 * H), jnp.float32)
    wfc = params["w_fc_t"].astype(jnp.bfloat16)
    bfc = params["b_fc"]

    full = lambda shape: pl.BlockSpec(shape, lambda: (0,) * len(shape))
    kern = functools.partial(fused_lstm_fc_kernel, S, B, H, num_layers)

    logits, h_n, c_n = pl.pallas_call(
        kern,
        out_shape=(
            jax.ShapeDtypeStruct((B, V), jnp.float32),
            jax.ShapeDtypeStruct((num_layers, B, H), jnp.float32),
            jax.ShapeDtypeStruct((num_layers, B, H), jnp.float32),
        ),
        in_specs=[
            full((S * B, E)),
            full((E, 4 * H)),
            full((1, 4 * H)),
            full(tuple(wih.shape)),
            full(tuple(whh.shape)),
            full(tuple(brest.shape)),
            full((H, V)),
            full((1, V)),
        ],
        out_specs=(
            full((B, V)),
            full((num_layers, B, H)),
            full((num_layers, B, H)),
        ),
        scratch_shapes=[
            pltpu.VMEM((S * B, 4 * H), jnp.float32),
            pltpu.VMEM((S * B, H), jnp.float32),
        ],
    )(emb, wih0, b0, wih, whh, brest, wfc, bfc)

    return logits, (h_n, c_n)


# -----------------------------------------------------------------------------
# Pure-JAX references (for correctness checks)
# -----------------------------------------------------------------------------
def reference_forward(x_tokens, params, num_layers, matmul_dtype=jnp.bfloat16):
    """Standard gather -> per-layer LSTM -> fc, with matmul operands cast to matmul_dtype
    (f32 accumulation). matmul_dtype=bf16 matches the kernel's MXU math exactly;
    matmul_dtype=f32 is the full-precision semantic reference."""
    emb = jnp.take(params["embedding"], x_tokens, axis=0)            # (B, S, E)
    x_seq = jnp.transpose(emb, (1, 0, 2)).astype(jnp.float32)        # (S, B, E)
    S, B = x_seq.shape[0], x_seq.shape[1]
    H = params["w_hh_t"][0].shape[0]

    layer_in = x_seq
    h_fs, c_fs = [], []
    for l in range(num_layers):
        w_ih = params["w_ih_t"][l].astype(matmul_dtype)
        w_hh = params["w_hh_t"][l].astype(matmul_dtype)
        b = params["b_rnn"][l]
        E_l = layer_in.shape[-1]
        gx = (jnp.dot(layer_in.astype(matmul_dtype).reshape(S * B, E_l), w_ih,
                      preferred_element_type=jnp.float32).reshape(S, B, 4 * H) + b)

        def cell(carry, gx_t):
            h, c = carry
            g = gx_t + jnp.dot(h.astype(matmul_dtype), w_hh,
                               preferred_element_type=jnp.float32)
            i = jax.nn.sigmoid(g[:, 0 * H:1 * H])
            f = jax.nn.sigmoid(g[:, 1 * H:2 * H])
            gg = jnp.tanh(g[:, 2 * H:3 * H])
            o = jax.nn.sigmoid(g[:, 3 * H:4 * H])
            c_new = f * c + i * gg
            h_new = o * jnp.tanh(c_new)
            return (h_new, c_new), h_new

        init = (jnp.zeros((B, H), jnp.float32), jnp.zeros((B, H), jnp.float32))
        (h_f, c_f), h_seq = lax.scan(cell, init, gx)
        layer_in = h_seq
        h_fs.append(h_f)
        c_fs.append(c_f)

    logits = (jnp.dot(layer_in[-1].astype(matmul_dtype),
                      params["w_fc_t"].astype(matmul_dtype),
                      preferred_element_type=jnp.float32) + params["b_fc"])
    return logits, (jnp.stack(h_fs, 0), jnp.stack(c_fs, 0))


# -----------------------------------------------------------------------------
# Deterministic parameter init (PyTorch-style uniform(-1/sqrt(H), 1/sqrt(H)))
# -----------------------------------------------------------------------------
def init_params(key, vocab_size, embed_size, rnn_size, num_layers):
    keys = jax.random.split(key, 3 + 3 * num_layers)
    bound = 1.0 / jnp.sqrt(rnn_size)

    params = {
        "embedding": jax.random.normal(keys[0], (vocab_size, embed_size), jnp.float32),
        "w_fc_t": jax.random.uniform(keys[1], (rnn_size, vocab_size), jnp.float32,
                                     -bound, bound),
        "b_fc": jax.random.uniform(keys[2], (1, vocab_size), jnp.float32,
                                   -bound, bound),
        "w_ih_t": [], "w_hh_t": [], "b_rnn": [],
    }
    for l in range(num_layers):
        in_dim = embed_size if l == 0 else rnn_size
        k_ih, k_hh, k_b = keys[3 + 3 * l: 6 + 3 * l]
        params["w_ih_t"].append(
            jax.random.uniform(k_ih, (in_dim, 4 * rnn_size), jnp.float32, -bound, bound))
        params["w_hh_t"].append(
            jax.random.uniform(k_hh, (rnn_size, 4 * rnn_size), jnp.float32, -bound, bound))
        # combined b_ih + b_hh
        params["b_rnn"].append(
            jax.random.uniform(k_b, (1, 4 * rnn_size), jnp.float32, -2 * bound, 2 * bound))
    return params


# -----------------------------------------------------------------------------
if __name__ == "__main__":
    # Small shapes consistent with the module (vocab, embed, rnn_size scaled down so that
    # B is a multiple of 8 and E/H/V are multiples of 128 for the (8,128) tiling).
    BATCH = 8
    SEQ_LEN = 8
    VOCAB = 128
    EMBED = 128
    HIDDEN = 128
    NUM_LAYERS = 3

    key = jax.random.PRNGKey(0)
    k_params, k_tokens = jax.random.split(key)

    params = init_params(k_params, VOCAB, EMBED, HIDDEN, NUM_LAYERS)
    x_tokens = jax.random.randint(k_tokens, (BATCH, SEQ_LEN), 0, VOCAB, dtype=jnp.int32)

    logits, (h_n, c_n) = joke_rnn_forward(x_tokens, params, NUM_LAYERS)
    jax.block_until_ready(logits)
    jax.block_until_ready(h_n)
    jax.block_until_ready(c_n)

    assert logits.shape == (BATCH, VOCAB)
    assert h_n.shape == (NUM_LAYERS, BATCH, HIDDEN)
    assert c_n.shape == (NUM_LAYERS, BATCH, HIDDEN)

    # 1) Strict check against a reference using the same bf16 MXU operands / f32 accumulation.
    ref_logits, (ref_h, ref_c) = reference_forward(x_tokens, params, NUM_LAYERS,
                                                   matmul_dtype=jnp.bfloat16)
    assert jnp.allclose(logits, ref_logits, rtol=2e-3, atol=2e-3), (
        float(jnp.max(jnp.abs(logits - ref_logits))))
    assert jnp.allclose(h_n, ref_h, rtol=2e-3, atol=2e-3), (
        float(jnp.max(jnp.abs(h_n - ref_h))))
    assert jnp.allclose(c_n, ref_c, rtol=2e-3, atol=2e-3), (
        float(jnp.max(jnp.abs(c_n - ref_c))))

    # 2) Loose semantic check against the full-f32 reference (bf16 quantization only).
    f32_logits, _ = reference_forward(x_tokens, params, NUM_LAYERS, matmul_dtype=jnp.float32)
    assert jnp.allclose(logits, f32_logits, atol=5e-2), (
        float(jnp.max(jnp.abs(logits - f32_logits))))

    print("KERNEL_OK")
</pallas_src>

<mosaic_0001>
module attributes {stable_mosaic.version = 11 : i64} {
  func.func @fused_lstm_fc_kernel(%arg0: memref<64x128xbf16, #tpu.memory_space<vmem>>, %arg1: memref<128x512xbf16, #tpu.memory_space<vmem>>, %arg2: memref<1x512xf32, #tpu.memory_space<vmem>>, %arg3: memref<2x128x512xbf16, #tpu.memory_space<vmem>>, %arg4: memref<3x128x512xbf16, #tpu.memory_space<vmem>>, %arg5: memref<2x1x512xf32, #tpu.memory_space<vmem>>, %arg6: memref<128x128xbf16, #tpu.memory_space<vmem>>, %arg7: memref<1x128xf32, #tpu.memory_space<vmem>>, %arg8: memref<8x128xf32, #tpu.memory_space<vmem>>, %arg9: memref<3x8x128xf32, #tpu.memory_space<vmem>>, %arg10: memref<3x8x128xf32, #tpu.memory_space<vmem>>, %arg11: memref<64x512xf32, #tpu.memory_space<vmem>>, %arg12: memref<64x128xf32, #tpu.memory_space<vmem>>) attributes {dimension_semantics = [], scalar_prefetch = 0 : i64, scratch_operands = 2 : i64, tpu.core_type = #tpu.core_type<tc>} {
    %c0 = arith.constant 0 : index
    %c0_0 = arith.constant 0 : index
    %0 = vector.load %arg0[%c0, %c0_0] : memref<64x128xbf16, #tpu.memory_space<vmem>>, vector<64x128xbf16>
    %c0_1 = arith.constant 0 : index
    %c0_2 = arith.constant 0 : index
    %1 = vector.load %arg1[%c0_1, %c0_2] : memref<128x512xbf16, #tpu.memory_space<vmem>>, vector<128x512xbf16>
    %cst = arith.constant dense<0.000000e+00> : vector<64x512xf32>
    %2 = tpu.matmul %0, %1, %cst {dimension_numbers = #tpu.dot_dimension_numbers<[1], [0], [0], [1], [0, 0, 1, 1], [], []>} : vector<64x128xbf16>, vector<128x512xbf16>, vector<64x512xf32> -> vector<64x512xf32>
    %c0_3 = arith.constant 0 : index
    %c0_4 = arith.constant 0 : index
    %3 = vector.load %arg2[%c0_3, %c0_4] : memref<1x512xf32, #tpu.memory_space<vmem>>, vector<1x512xf32>
    %4 = vector.broadcast %3 : vector<1x512xf32> to vector<64x512xf32>
    %5 = arith.addf %2, %4 : vector<64x512xf32>
    %c0_5 = arith.constant 0 : index
    %c0_6 = arith.constant 0 : index
    %6 = vector.load %arg11[%c0_5, %c0_6] : memref<64x512xf32, #tpu.memory_space<vmem>>, vector<64x512xf32>
    tpu.vector_store %arg11[%c0_5, %c0_6], %5 {strides = array<i32>} : memref<64x512xf32, #tpu.memory_space<vmem>>, vector<64x512xf32>,
    %c0_7 = arith.constant 0 : index
    %c0_8 = arith.constant 0 : index
    %c0_9 = arith.constant 0 : index
    %7 = vector.load %arg4[%c0_7, %c0_8, %c0_9] : memref<3x128x512xbf16, #tpu.memory_space<vmem>>, vector<1x128x512xbf16>
    %8 = vector.shape_cast %7 : vector<1x128x512xbf16> to vector<128x512xbf16>
    %cst_10 = arith.constant 0.000000e+00 : f32
    %9 = vector.broadcast %cst_10 : f32 to vector<8x128xf32>
    %c0_i32 = arith.constant 0 : i32
    %c8_i32 = arith.constant 8 : i32
    %10 = arith.muli %c0_i32, %c8_i32 : i32
    %11 = tpu.assume_multiple %10, 8 : i32
    %12 = arith.index_cast %11 : i32 to index
    %c0_11 = arith.constant 0 : index
    %13 = vector.load %arg11[%12, %c0_11] : memref<64x512xf32, #tpu.memory_space<vmem>>, vector<8x512xf32>
    %14 = arith.truncf %9 : vector<8x128xf32> to vector<8x128xbf16>
    %cst_12 = arith.constant dense<0.000000e+00> : vector<8x512xf32>
    %15 = tpu.matmul %14, %8, %cst_12 {dimension_numbers = #tpu.dot_dimension_numbers<[1], [0], [0], [1], [0, 0, 1, 1], [], []>} : vector<8x128xbf16>, vector<128x512xbf16>, vector<8x512xf32> -> vector<8x512xf32>
    %16 = arith.addf %13, %15 : vector<8x512xf32>
    %17 = vector.extract_strided_slice %16 {offsets = [0, 0], sizes = [8, 128], strides = [1, 1]} : vector<8x512xf32> to vector<8x128xf32>
    %18 = arith.negf %17 : vector<8x128xf32>
    %19 = math.exp %18 : vector<8x128xf32>
    %cst_13 = arith.constant 1.000000e+00 : f32
    %20 = vector.broadcast %cst_13 : f32 to vector<8x128xf32>
    %21 = arith.addf %20, %19 : vector<8x128xf32>
    %22 = arith.divf %20, %21 : vector<8x128xf32>
    %23 = vector.extract_strided_slice %16 {offsets = [0, 128], sizes = [8, 128], strides = [1, 1]} : vector<8x512xf32> to vector<8x128xf32>
    %24 = arith.negf %23 : vector<8x128xf32>
    %25 = math.exp %24 : vector<8x128xf32>
    %cst_14 = arith.constant 1.000000e+00 : f32
    %26 = vector.broadcast %cst_14 : f32 to vector<8x128xf32>
    %27 = arith.addf %26, %25 : vector<8x128xf32>
    %28 = arith.divf %26, %27 : vector<8x128xf32>
    %29 = vector.extract_strided_slice %16 {offsets = [0, 256], sizes = [8, 128], strides = [1, 1]} : vector<8x512xf32> to vector<8x128xf32>
    %30 = math.tanh %29 : vector<8x128xf32>
    %31 = vector.extract_strided_slice %16 {offsets = [0, 384], sizes = [8, 128], strides = [1, 1]} : vector<8x512xf32> to vector<8x128xf32>
    %32 = arith.negf %31 : vector<8x128xf32>
    %33 = math.exp %32 : vector<8x128xf32>
    %cst_15 = arith.constant 1.000000e+00 : f32
    %34 = vector.broadcast %cst_15 : f32 to vector<8x128xf32>
    %35 = arith.addf %34, %33 : vector<8x128xf32>
    %36 = arith.divf %34, %35 : vector<8x128xf32>
    %37 = arith.mulf %28, %9 : vector<8x128xf32>
    %38 = arith.mulf %22, %30 : vector<8x128xf32>
    %39 = arith.addf %37, %38 : vector<8x128xf32>
    %40 = math.tanh %39 : vector<8x128xf32>
    %41 = arith.mulf %36, %40 : vector<8x128xf32>
    %42 = arith.index_cast %11 : i32 to index
    %c0_16 = arith.constant 0 : index
    %43 = vector.load %arg12[%42, %c0_16] : memref<64x128xf32, #tpu.memory_space<vmem>>, vector<8x128xf32>
    tpu.vector_store %arg12[%42, %c0_16], %41 {strides = array<i32>} : memref<64x128xf32, #tpu.memory_space<vmem>>, vector<8x128xf32>,
    %c1_i32 = arith.constant 1 : i32
    %c8_i32_17 = arith.constant 8 : i32
    %44 = arith.muli %c1_i32, %c8_i32_17 : i32
    %45 = tpu.assume_multiple %44, 8 : i32
    %46 = arith.index_cast %45 : i32 to index
    %c0_18 = arith.constant 0 : index
    %47 = vector.load %arg11[%46, %c0_18] : memref<64x512xf32, #tpu.memory_space<vmem>>, vector<8x512xf32>
    %48 = arith.truncf %41 : vector<8x128xf32> to vector<8x128xbf16>
    %cst_19 = arith.constant dense<0.000000e+00> : vector<8x512xf32>
    %49 = tpu.matmul %48, %8, %cst_19 {dimension_numbers = #tpu.dot_dimension_numbers<[1], [0], [0], [1], [0, 0, 1, 1], [], []>} : vector<8x128xbf16>, vector<128x512xbf16>, vector<8x512xf32> -> vector<8x512xf32>
    %50 = arith.addf %47, %49 : vector<8x512xf32>
    %51 = vector.extract_strided_slice %50 {offsets = [0, 0], sizes = [8, 128], strides = [1, 1]} : vector<8x512xf32> to vector<8x128xf32>
    %52 = arith.negf %51 : vector<8x128xf32>
    %53 = math.exp %52 : vector<8x128xf32>
    %cst_20 = arith.constant 1.000000e+00 : f32
    %54 = vector.broadcast %cst_20 : f32 to vector<8x128xf32>
    %55 = arith.addf %54, %53 : vector<8x128xf32>
    %56 = arith.divf %54, %55 : vector<8x128xf32>
    %57 = vector.extract_strided_slice %50 {offsets = [0, 128], sizes = [8, 128], strides = [1, 1]} : vector<8x512xf32> to vector<8x128xf32>
    %58 = arith.negf %57 : vector<8x128xf32>
    %59 = math.exp %58 : vector<8x128xf32>
    %cst_21 = arith.constant 1.000000e+00 : f32
    %60 = vector.broadcast %cst_21 : f32 to vector<8x128xf32>
    %61 = arith.addf %60, %59 : vector<8x128xf32>
    %62 = arith.divf %60, %61 : vector<8x128xf32>
    %63 = vector.extract_strided_slice %50 {offsets = [0, 256], sizes = [8, 128], strides = [1, 1]} : vector<8x512xf32> to vector<8x128xf32>
    %64 = math.tanh %63 : vector<8x128xf32>
    %65 = vector.extract_strided_slice %50 {offsets = [0, 384], sizes = [8, 128], strides = [1, 1]} : vector<8x512xf32> to vector<8x128xf32>
    %66 = arith.negf %65 : vector<8x128xf32>
    %67 = math.exp %66 : vector<8x128xf32>
    %cst_22 = arith.constant 1.000000e+00 : f32
    %68 = vector.broadcast %cst_22 : f32 to vector<8x128xf32>
    %69 = arith.addf %68, %67 : vector<8x128xf32>
    %70 = arith.divf %68, %69 : vector<8x128xf32>
    %71 = arith.mulf %62, %39 : vector<8x128xf32>
    %72 = arith.mulf %56, %64 : vector<8x128xf32>
    %73 = arith.addf %71, %72 : vector<8x128xf32>
    %74 = math.tanh %73 : vector<8x128xf32>
    %75 = arith.mulf %70, %74 : vector<8x128xf32>
    %76 = arith.index_cast %45 : i32 to index
    %c0_23 = arith.constant 0 : index
    %77 = vector.load %arg12[%76, %c0_23] : memref<64x128xf32, #tpu.memory_space<vmem>>, vector<8x128xf32>
    tpu.vector_store %arg12[%76, %c0_23], %75 {strides = array<i32>} : memref<64x128xf32, #tpu.memory_space<vmem>>, vector<8x128xf32>,
    %c2_i32 = arith.constant 2 : i32
    %c8_i32_24 = arith.constant 8 : i32
    %78 = arith.muli %c2_i32, %c8_i32_24 : i32
    %79 = tpu.assume_multiple %78, 8 : i32
    %80 = arith.index_cast %79 : i32 to index
    %c0_25 = arith.constant 0 : index
    %81 = vector.load %arg11[%80, %c0_25] : memref<64x512xf32, #tpu.memory_space<vmem>>, vector<8x512xf32>
    %82 = arith.truncf %75 : vector<8x128xf32> to vector<8x128xbf16>
    %cst_26 = arith.constant dense<0.000000e+00> : vector<8x512xf32>
    %83 = tpu.matmul %82, %8, %cst_26 {dimension_numbers = #tpu.dot_dimension_numbers<[1], [0], [0], [1], [0, 0, 1, 1], [], []>} : vector<8x128xbf16>, vector<128x512xbf16>, vector<8x512xf32> -> vector<8x512xf32>
    %84 = arith.addf %81, %83 : vector<8x512xf32>
    %85 = vector.extract_strided_slice %84 {offsets = [0, 0], sizes = [8, 128], strides = [1, 1]} : vector<8x512xf32> to vector<8x128xf32>
    %86 = arith.negf %85 : vector<8x128xf32>
    %87 = math.exp %86 : vector<8x128xf32>
    %cst_27 = arith.constant 1.000000e+00 : f32
    %88 = vector.broadcast %cst_27 : f32 to vector<8x128xf32>
    %89 = arith.addf %88, %87 : vector<8x128xf32>
    %90 = arith.divf %88, %89 : vector<8x128xf32>
    %91 = vector.extract_strided_slice %84 {offsets = [0, 128], sizes = [8, 128], strides = [1, 1]} : vector<8x512xf32> to vector<8x128xf32>
    %92 = arith.negf %91 : vector<8x128xf32>
    %93 = math.exp %92 : vector<8x128xf32>
    %cst_28 = arith.constant 1.000000e+00 : f32
    %94 = vector.broadcast %cst_28 : f32 to vector<8x128xf32>
    %95 = arith.addf %94, %93 : vector<8x128xf32>
    %96 = arith.divf %94, %95 : vector<8x128xf32>
    %97 = vector.extract_strided_slice %84 {offsets = [0, 256], sizes = [8, 128], strides = [1, 1]} : vector<8x512xf32> to vector<8x128xf32>
    %98 = math.tanh %97 : vector<8x128xf32>
    %99 = vector.extract_strided_slice %84 {offsets = [0, 384], sizes = [8, 128], strides = [1, 1]} : vector<8x512xf32> to vector<8x128xf32>
    %100 = arith.negf %99 : vector<8x128xf32>
    %101 = math.exp %100 : vector<8x128xf32>
    %cst_29 = arith.constant 1.000000e+00 : f32
    %102 = vector.broadcast %cst_29 : f32 to vector<8x128xf32>
    %103 = arith.addf %102, %101 : vector<8x128xf32>
    %104 = arith.divf %102, %103 : vector<8x128xf32>
    %105 = arith.mulf %96, %73 : vector<8x128xf32>
    %106 = arith.mulf %90, %98 : vector<8x128xf32>
    %107 = arith.addf %105, %106 : vector<8x128xf32>
    %108 = math.tanh %107 : vector<8x128xf32>
    %109 = arith.mulf %104, %108 : vector<8x128xf32>
    %110 = arith.index_cast %79 : i32 to index
    %c0_30 = arith.constant 0 : index
    %111 = vector.load %arg12[%110, %c0_30] : memref<64x128xf32, #tpu.memory_space<vmem>>, vector<8x128xf32>
    tpu.vector_store %arg12[%110, %c0_30], %109 {strides = array<i32>} : memref<64x128xf32, #tpu.memory_space<vmem>>, vector<8x128xf32>,
    %c3_i32 = arith.constant 3 : i32
    %c8_i32_31 = arith.constant 8 : i32
    %112 = arith.muli %c3_i32, %c8_i32_31 : i32
    %113 = tpu.assume_multiple %112, 8 : i32
    %114 = arith.index_cast %113 : i32 to index
    %c0_32 = arith.constant 0 : index
    %115 = vector.load %arg11[%114, %c0_32] : memref<64x512xf32, #tpu.memory_space<vmem>>, vector<8x512xf32>
    %116 = arith.truncf %109 : vector<8x128xf32> to vector<8x128xbf16>
    %cst_33 = arith.constant dense<0.000000e+00> : vector<8x512xf32>
    %117 = tpu.matmul %116, %8, %cst_33 {dimension_numbers = #tpu.dot_dimension_numbers<[1], [0], [0], [1], [0, 0, 1, 1], [], []>} : vector<8x128xbf16>, vector<128x512xbf16>, vector<8x512xf32> -> vector<8x512xf32>
    %118 = arith.addf %115, %117 : vector<8x512xf32>
    %119 = vector.extract_strided_slice %118 {offsets = [0, 0], sizes = [8, 128], strides = [1, 1]} : vector<8x512xf32> to vector<8x128xf32>
    %120 = arith.negf %119 : vector<8x128xf32>
    %121 = math.exp %120 : vector<8x128xf32>
    %cst_34 = arith.constant 1.000000e+00 : f32
    %122 = vector.broadcast %cst_34 : f32 to vector<8x128xf32>
    %123 = arith.addf %122, %121 : vector<8x128xf32>
    %124 = arith.divf %122, %123 : vector<8x128xf32>
    %125 = vector.extract_strided_slice %118 {offsets = [0, 128], sizes = [8, 128], strides = [1, 1]} : vector<8x512xf32> to vector<8x128xf32>
    %126 = arith.negf %125 : vector<8x128xf32>
    %127 = math.exp %126 : vector<8x128xf32>
    %cst_35 = arith.constant 1.000000e+00 : f32
    %128 = vector.broadcast %cst_35 : f32 to vector<8x128xf32>
    %129 = arith.addf %128, %127 : vector<8x128xf32>
    %130 = arith.divf %128, %129 : vector<8x128xf32>
    %131 = vector.extract_strided_slice %118 {offsets = [0, 256], sizes = [8, 128], strides = [1, 1]} : vector<8x512xf32> to vector<8x128xf32>
    %132 = math.tanh %131 : vector<8x128xf32>
    %133 = vector.extract_strided_slice %118 {offsets = [0, 384], sizes = [8, 128], strides = [1, 1]} : vector<8x512xf32> to vector<8x128xf32>
    %134 = arith.negf %133 : vector<8x128xf32>
    %135 = math.exp %134 : vector<8x128xf32>
    %cst_36 = arith.constant 1.000000e+00 : f32
    %136 = vector.broadcast %cst_36 : f32 to vector<8x128xf32>
    %137 = arith.addf %136, %135 : vector<8x128xf32>
    %138 = arith.divf %136, %137 : vector<8x128xf32>
    %139 = arith.mulf %130, %107 : vector<8x128xf32>
    %140 = arith.mulf %124, %132 : vector<8x128xf32>
    %141 = arith.addf %139, %140 : vector<8x128xf32>
    %142 = math.tanh %141 : vector<8x128xf32>
    %143 = arith.mulf %138, %142 : vector<8x128xf32>
    %144 = arith.index_cast %113 : i32 to index
    %c0_37 = arith.constant 0 : index
    %145 = vector.load %arg12[%144, %c0_37] : memref<64x128xf32, #tpu.memory_space<vmem>>, vector<8x128xf32>
    tpu.vector_store %arg12[%144, %c0_37], %143 {strides = array<i32>} : memref<64x128xf32, #tpu.memory_space<vmem>>, vector<8x128xf32>,
    %c4_i32 = arith.constant 4 : i32
    %c8_i32_38 = arith.constant 8 : i32
    %146 = arith.muli %c4_i32, %c8_i32_38 : i32
    %147 = tpu.assume_multiple %146, 8 : i32
    %148 = arith.index_cast %147 : i32 to index
    %c0_39 = arith.constant 0 : index
    %149 = vector.load %arg11[%148, %c0_39] : memref<64x512xf32, #tpu.memory_space<vmem>>, vector<8x512xf32>
    %150 = arith.truncf %143 : vector<8x128xf32> to vector<8x128xbf16>
    %cst_40 = arith.constant dense<0.000000e+00> : vector<8x512xf32>
    %151 = tpu.matmul %150, %8, %cst_40 {dimension_numbers = #tpu.dot_dimension_numbers<[1], [0], [0], [1], [0, 0, 1, 1], [], []>} : vector<8x128xbf16>, vector<128x512xbf16>, vector<8x512xf32> -> vector<8x512xf32>
    %152 = arith.addf %149, %151 : vector<8x512xf32>
    %153 = vector.extract_strided_slice %152 {offsets = [0, 0], sizes = [8, 128], strides = [1, 1]} : vector<8x512xf32> to vector<8x128xf32>
    %154 = arith.negf %153 : vector<8x128xf32>
    %155 = math.exp %154 : vector<8x128xf32>
    %cst_41 = arith.constant 1.000000e+00 : f32
    %156 = vector.broadcast %cst_41 : f32 to vector<8x128xf32>
    %157 = arith.addf %156, %155 : vector<8x128xf32>
    %158 = arith.divf %156, %157 : vector<8x128xf32>
    %159 = vector.extract_strided_slice %152 {offsets = [0, 128], sizes = [8, 128], strides = [1, 1]} : vector<8x512xf32> to vector<8x128xf32>
    %160 = arith.negf %159 : vector<8x128xf32>
    %161 = math.exp %160 : vector<8x128xf32>
    %cst_42 = arith.constant 1.000000e+00 : f32
    %162 = vector.broadcast %cst_42 : f32 to vector<8x128xf32>
    %163 = arith.addf %162, %161 : vector<8x128xf32>
    %164 = arith.divf %162, %163 : vector<8x128xf32>
    %165 = vector.extract_strided_slice %152 {offsets = [0, 256], sizes = [8, 128], strides = [1, 1]} : vector<8x512xf32> to vector<8x128xf32>
    %166 = math.tanh %165 : vector<8x128xf32>
    %167 = vector.extract_strided_slice %152 {offsets = [0, 384], sizes = [8, 128], strides = [1, 1]} : vector<8x512xf32> to vector<8x128xf32>
    %168 = arith.negf %167 : vector<8x128xf32>
    %169 = math.exp %168 : vector<8x128xf32>
    %cst_43 = arith.constant 1.000000e+00 : f32
    %170 = vector.broadcast %cst_43 : f32 to vector<8x128xf32>
    %171 = arith.addf %170, %169 : vector<8x128xf32>
    %172 = arith.divf %170, %171 : vector<8x128xf32>
    %173 = arith.mulf %164, %141 : vector<8x128xf32>
    %174 = arith.mulf %158, %166 : vector<8x128xf32>
    %175 = arith.addf %173, %174 : vector<8x128xf32>
    %176 = math.tanh %175 : vector<8x128xf32>
    %177 = arith.mulf %172, %176 : vector<8x128xf32>
    %178 = arith.index_cast %147 : i32 to index
    %c0_44 = arith.constant 0 : index
    %179 = vector.load %arg12[%178, %c0_44] : memref<64x128xf32, #tpu.memory_space<vmem>>, vector<8x128xf32>
    tpu.vector_store %arg12[%178, %c0_44], %177 {strides = array<i32>} : memref<64x128xf32, #tpu.memory_space<vmem>>, vector<8x128xf32>,
    %c5_i32 = arith.constant 5 : i32
    %c8_i32_45 = arith.constant 8 : i32
    %180 = arith.muli %c5_i32, %c8_i32_45 : i32
    %181 = tpu.assume_multiple %180, 8 : i32
    %182 = arith.index_cast %181 : i32 to index
    %c0_46 = arith.constant 0 : index
    %183 = vector.load %arg11[%182, %c0_46] : memref<64x512xf32, #tpu.memory_space<vmem>>, vector<8x512xf32>
    %184 = arith.truncf %177 : vector<8x128xf32> to vector<8x128xbf16>
    %cst_47 = arith.constant dense<0.000000e+00> : vector<8x512xf32>
    %185 = tpu.matmul %184, %8, %cst_47 {dimension_numbers = #tpu.dot_dimension_numbers<[1], [0], [0], [1], [0, 0, 1, 1], [], []>} : vector<8x128xbf16>, vector<128x512xbf16>, vector<8x512xf32> -> vector<8x512xf32>
    %186 = arith.addf %183, %185 : vector<8x512xf32>
    %187 = vector.extract_strided_slice %186 {offsets = [0, 0], sizes = [8, 128], strides = [1, 1]} : vector<8x512xf32> to vector<8x128xf32>
    %188 = arith.negf %187 : vector<8x128xf32>
    %189 = math.exp %188 : vector<8x128xf32>
    %cst_48 = arith.constant 1.000000e+00 : f32
    %190 = vector.broadcast %cst_48 : f32 to vector<8x128xf32>
    %191 = arith.addf %190, %189 : vector<8x128xf32>
    %192 = arith.divf %190, %191 : vector<8x128xf32>
    %193 = vector.extract_strided_slice %186 {offsets = [0, 128], sizes = [8, 128], strides = [1, 1]} : vector<8x512xf32> to vector<8x128xf32>
    %194 = arith.negf %193 : vector<8x128xf32>
    %195 = math.exp %194 : vector<8x128xf32>
    %cst_49 = arith.constant 1.000000e+00 : f32
    %196 = vector.broadcast %cst_49 : f32 to vector<8x128xf32>
    %197 = arith.addf %196, %195 : vector<8x128xf32>
    %198 = arith.divf %196, %197 : vector<8x128xf32>
    %199 = vector.extract_strided_slice %186 {offsets = [0, 256], sizes = [8, 128], strides = [1, 1]} : vector<8x512xf32> to vector<8x128xf32>
    %200 = math.tanh %199 : vector<8x128xf32>
    %201 = vector.extract_strided_slice %186 {offsets = [0, 384], sizes = [8, 128], strides = [1, 1]} : vector<8x512xf32> to vector<8x128xf32>
    %202 = arith.negf %201 : vector<8x128xf32>
    %203 = math.exp %202 : vector<8x128xf32>
    %cst_50 = arith.constant 1.000000e+00 : f32
    %204 = vector.broadcast %cst_50 : f32 to vector<8x128xf32>
    %205 = arith.addf %204, %203 : vector<8x128xf32>
    %206 = arith.divf %204, %205 : vector<8x128xf32>
    %207 = arith.mulf %198, %175 : vector<8x128xf32>
    %208 = arith.mulf %192, %200 : vector<8x128xf32>
    %209 = arith.addf %207, %208 : vector<8x128xf32>
    %210 = math.tanh %209 : vector<8x128xf32>
    %211 = arith.mulf %206, %210 : vector<8x128xf32>
    %212 = arith.index_cast %181 : i32 to index
    %c0_51 = arith.constant 0 : index
    %213 = vector.load %arg12[%212, %c0_51] : memref<64x128xf32, #tpu.memory_space<vmem>>, vector<8x128xf32>
    tpu.vector_store %arg12[%212, %c0_51], %211 {strides = array<i32>} : memref<64x128xf32, #tpu.memory_space<vmem>>, vector<8x128xf32>,
    %c6_i32 = arith.constant 6 : i32
    %c8_i32_52 = arith.constant 8 : i32
    %214 = arith.muli %c6_i32, %c8_i32_52 : i32
    %215 = tpu.assume_multiple %214, 8 : i32
    %216 = arith.index_cast %215 : i32 to index
    %c0_53 = arith.constant 0 : index
    %217 = vector.load %arg11[%216, %c0_53] : memref<64x512xf32, #tpu.memory_space<vmem>>, vector<8x512xf32>
    %218 = arith.truncf %211 : vector<8x128xf32> to vector<8x128xbf16>
    %cst_54 = arith.constant dense<0.000000e+00> : vector<8x512xf32>
    %219 = tpu.matmul %218, %8, %cst_54 {dimension_numbers = #tpu.dot_dimension_numbers<[1], [0], [0], [1], [0, 0, 1, 1], [], []>} : vector<8x128xbf16>, vector<128x512xbf16>, vector<8x512xf32> -> vector<8x512xf32>
    %220 = arith.addf %217, %219 : vector<8x512xf32>
    %221 = vector.extract_strided_slice %220 {offsets = [0, 0], sizes = [8, 128], strides = [1, 1]} : vector<8x512xf32> to vector<8x128xf32>
    %222 = arith.negf %221 : vector<8x128xf32>
    %223 = math.exp %222 : vector<8x128xf32>
    %cst_55 = arith.constant 1.000000e+00 : f32
    %224 = vector.broadcast %cst_55 : f32 to vector<8x128xf32>
    %225 = arith.addf %224, %223 : vector<8x128xf32>
    %226 = arith.divf %224, %225 : vector<8x128xf32>
    %227 = vector.extract_strided_slice %220 {offsets = [0, 128], sizes = [8, 128], strides = [1, 1]} : vector<8x512xf32> to vector<8x128xf32>
    %228 = arith.negf %227 : vector<8x128xf32>
    %229 = math.exp %228 : vector<8x128xf32>
    %cst_56 = arith.constant 1.000000e+00 : f32
    %230 = vector.broadcast %cst_56 : f32 to vector<8x128xf32>
    %231 = arith.addf %230, %229 : vector<8x128xf32>
    %232 = arith.divf %230, %231 : vector<8x128xf32>
    %233 = vector.extract_strided_slice %220 {offsets = [0, 256], sizes = [8, 128], strides = [1, 1]} : vector<8x512xf32> to vector<8x128xf32>
    %234 = math.tanh %233 : vector<8x128xf32>
    %235 = vector.extract_strided_slice %220 {offsets = [0, 384], sizes = [8, 128], strides = [1, 1]} : vector<8x512xf32> to vector<8x128xf32>
    %236 = arith.negf %235 : vector<8x128xf32>
    %237 = math.exp %236 : vector<8x128xf32>
    %cst_57 = arith.constant 1.000000e+00 : f32
    %238 = vector.broadcast %cst_57 : f32 to vector<8x128xf32>
    %239 = arith.addf %238, %237 : vector<8x128xf32>
    %240 = arith.divf %238, %239 : vector<8x128xf32>
    %241 = arith.mulf %232, %209 : vector<8x128xf32>
    %242 = arith.mulf %226, %234 : vector<8x128xf32>
    %243 = arith.addf %241, %242 : vector<8x128xf32>
    %244 = math.tanh %243 : vector<8x128xf32>
    %245 = arith.mulf %240, %244 : vector<8x128xf32>
    %246 = arith.index_cast %215 : i32 to index
    %c0_58 = arith.constant 0 : index
    %247 = vector.load %arg12[%246, %c0_58] : memref<64x128xf32, #tpu.memory_space<vmem>>, vector<8x128xf32>
    tpu.vector_store %arg12[%246, %c0_58], %245 {strides = array<i32>} : memref<64x128xf32, #tpu.memory_space<vmem>>, vector<8x128xf32>,
    %c7_i32 = arith.constant 7 : i32
    %c8_i32_59 = arith.constant 8 : i32
    %248 = arith.muli %c7_i32, %c8_i32_59 : i32
    %249 = tpu.assume_multiple %248, 8 : i32
    %250 = arith.index_cast %249 : i32 to index
    %c0_60 = arith.constant 0 : index
    %251 = vector.load %arg11[%250, %c0_60] : memref<64x512xf32, #tpu.memory_space<vmem>>, vector<8x512xf32>
    %252 = arith.truncf %245 : vector<8x128xf32> to vector<8x128xbf16>
    %cst_61 = arith.constant dense<0.000000e+00> : vector<8x512xf32>
    %253 = tpu.matmul %252, %8, %cst_61 {dimension_numbers = #tpu.dot_dimension_numbers<[1], [0], [0], [1], [0, 0, 1, 1], [], []>} : vector<8x128xbf16>, vector<128x512xbf16>, vector<8x512xf32> -> vector<8x512xf32>
    %254 = arith.addf %251, %253 : vector<8x512xf32>
    %255 = vector.extract_strided_slice %254 {offsets = [0, 0], sizes = [8, 128], strides = [1, 1]} : vector<8x512xf32> to vector<8x128xf32>
    %256 = arith.negf %255 : vector<8x128xf32>
    %257 = math.exp %256 : vector<8x128xf32>
    %cst_62 = arith.constant 1.000000e+00 : f32
    %258 = vector.broadcast %cst_62 : f32 to vector<8x128xf32>
    %259 = arith.addf %258, %257 : vector<8x128xf32>
    %260 = arith.divf %258, %259 : vector<8x128xf32>
    %261 = vector.extract_strided_slice %254 {offsets = [0, 128], sizes = [8, 128], strides = [1, 1]} : vector<8x512xf32> to vector<8x128xf32>
    %262 = arith.negf %261 : vector<8x128xf32>
    %263 = math.exp %262 : vector<8x128xf32>
    %cst_63 = arith.constant 1.000000e+00 : f32
    %264 = vector.broadcast %cst_63 : f32 to vector<8x128xf32>
    %265 = arith.addf %264, %263 : vector<8x128xf32>
    %266 = arith.divf %264, %265 : vector<8x128xf32>
    %267 = vector.extract_strided_slice %254 {offsets = [0, 256], sizes = [8, 128], strides = [1, 1]} : vector<8x512xf32> to vector<8x128xf32>
    %268 = math.tanh %267 : vector<8x128xf32>
    %269 = vector.extract_strided_slice %254 {offsets = [0, 384], sizes = [8, 128], strides = [1, 1]} : vector<8x512xf32> to vector<8x128xf32>
    %270 = arith.negf %269 : vector<8x128xf32>
    %271 = math.exp %270 : vector<8x128xf32>
    %cst_64 = arith.constant 1.000000e+00 : f32
    %272 = vector.broadcast %cst_64 : f32 to vector<8x128xf32>
    %273 = arith.addf %272, %271 : vector<8x128xf32>
    %274 = arith.divf %272, %273 : vector<8x128xf32>
    %275 = arith.mulf %266, %243 : vector<8x128xf32>
    %276 = arith.mulf %260, %268 : vector<8x128xf32>
    %277 = arith.addf %275, %276 : vector<8x128xf32>
    %278 = math.tanh %277 : vector<8x128xf32>
    %279 = arith.mulf %274, %278 : vector<8x128xf32>
    %280 = arith.index_cast %249 : i32 to index
    %c0_65 = arith.constant 0 : index
    %281 = vector.load %arg12[%280, %c0_65] : memref<64x128xf32, #tpu.memory_space<vmem>>, vector<8x128xf32>
    tpu.vector_store %arg12[%280, %c0_65], %279 {strides = array<i32>} : memref<64x128xf32, #tpu.memory_space<vmem>>, vector<8x128xf32>,
    %c8_i32_66 = arith.constant 8 : i32
    %c0_67 = arith.constant 0 : index
    %c0_68 = arith.constant 0 : index
    %c0_69 = arith.constant 0 : index
    %282 = vector.load %arg9[%c0_67, %c0_68, %c0_69] : memref<3x8x128xf32, #tpu.memory_space<vmem>>, vector<1x8x128xf32>
    %283 = vector.shape_cast %282 : vector<1x8x128xf32> to vector<8x128xf32>
    %284 = vector.shape_cast %279 : vector<8x128xf32> to vector<1x8x128xf32>
    tpu.vector_store %arg9[%c0_67, %c0_68, %c0_69], %284 {strides = array<i32>} : memref<3x8x128xf32, #tpu.memory_space<vmem>>, vector<1x8x128xf32>,
    %c0_70 = arith.constant 0 : index
    %c0_71 = arith.constant 0 : index
    %c0_72 = arith.constant 0 : index
    %285 = vector.load %arg10[%c0_70, %c0_71, %c0_72] : memref<3x8x128xf32, #tpu.memory_space<vmem>>, vector<1x8x128xf32>
    %286 = vector.shape_cast %285 : vector<1x8x128xf32> to vector<8x128xf32>
    %287 = vector.shape_cast %277 : vector<8x128xf32> to vector<1x8x128xf32>
    tpu.vector_store %arg10[%c0_70, %c0_71, %c0_72], %287 {strides = array<i32>} : memref<3x8x128xf32, #tpu.memory_space<vmem>>, vector<1x8x128xf32>,
    %c0_73 = arith.constant 0 : index
    %c0_74 = arith.constant 0 : index
    %288 = vector.load %arg12[%c0_73, %c0_74] : memref<64x128xf32, #tpu.memory_space<vmem>>, vector<64x128xf32>
    %289 = arith.truncf %288 : vector<64x128xf32> to vector<64x128xbf16>
    %c0_75 = arith.constant 0 : index
    %c0_76 = arith.constant 0 : index
    %c0_77 = arith.constant 0 : index
    %290 = vector.load %arg3[%c0_75, %c0_76, %c0_77] : memref<2x128x512xbf16, #tpu.memory_space<vmem>>, vector<1x128x512xbf16>
    %291 = vector.shape_cast %290 : vector<1x128x512xbf16> to vector<128x512xbf16>
    %cst_78 = arith.constant dense<0.000000e+00> : vector<64x512xf32>
    %292 = tpu.matmul %289, %291, %cst_78 {dimension_numbers = #tpu.dot_dimension_numbers<[1], [0], [0], [1], [0, 0, 1, 1], [], []>} : vector<64x128xbf16>, vector<128x512xbf16>, vector<64x512xf32> -> vector<64x512xf32>
    %c0_79 = arith.constant 0 : index
    %c0_80 = arith.constant 0 : index
    %c0_81 = arith.constant 0 : index
    %293 = vector.load %arg5[%c0_79, %c0_80, %c0_81] : memref<2x1x512xf32, #tpu.memory_space<vmem>>, vector<1x1x512xf32>
    %294 = vector.shape_cast %293 : vector<1x1x512xf32> to vector<1x512xf32>
    %295 = vector.broadcast %294 : vector<1x512xf32> to vector<64x512xf32>
    %296 = arith.addf %292, %295 : vector<64x512xf32>
    %c0_82 = arith.constant 0 : index
    %c0_83 = arith.constant 0 : index
    %297 = vector.load %arg11[%c0_82, %c0_83] : memref<64x512xf32, #tpu.memory_space<vmem>>, vector<64x512xf32>
    tpu.vector_store %arg11[%c0_82, %c0_83], %296 {strides = array<i32>} : memref<64x512xf32, #tpu.memory_space<vmem>>, vector<64x512xf32>,
    %c1 = arith.constant 1 : index
    %c0_84 = arith.constant 0 : index
    %c0_85 = arith.constant 0 : index
    %298 = vector.load %arg4[%c1, %c0_84, %c0_85] : memref<3x128x512xbf16, #tpu.memory_space<vmem>>, vector<1x128x512xbf16>
    %299 = vector.shape_cast %298 : vector<1x128x512xbf16> to vector<128x512xbf16>
    %cst_86 = arith.constant 0.000000e+00 : f32
    %300 = vector.broadcast %cst_86 : f32 to vector<8x128xf32>
    %c0_i32_87 = arith.constant 0 : i32
    %c8_i32_88 = arith.constant 8 : i32
    %301 = arith.muli %c0_i32_87, %c8_i32_88 : i32
    %302 = tpu.assume_multiple %301, 8 : i32
    %303 = arith.index_cast %302 : i32 to index
    %c0_89 = arith.constant 0 : index
    %304 = vector.load %arg11[%303, %c0_89] : memref<64x512xf32, #tpu.memory_space<vmem>>, vector<8x512xf32>
    %305 = arith.truncf %300 : vector<8x128xf32> to vector<8x128xbf16>
    %cst_90 = arith.constant dense<0.000000e+00> : vector<8x512xf32>
    %306 = tpu.matmul %305, %299, %cst_90 {dimension_numbers = #tpu.dot_dimension_numbers<[1], [0], [0], [1], [0, 0, 1, 1], [], []>} : vector<8x128xbf16>, vector<128x512xbf16>, vector<8x512xf32> -> vector<8x512xf32>
    %307 = arith.addf %304, %306 : vector<8x512xf32>
    %308 = vector.extract_strided_slice %307 {offsets = [0, 0], sizes = [8, 128], strides = [1, 1]} : vector<8x512xf32> to vector<8x128xf32>
    %309 = arith.negf %308 : vector<8x128xf32>
    %310 = math.exp %309 : vector<8x128xf32>
    %cst_91 = arith.constant 1.000000e+00 : f32
    %311 = vector.broadcast %cst_91 : f32 to vector<8x128xf32>
    %312 = arith.addf %311, %310 : vector<8x128xf32>
    %313 = arith.divf %311, %312 : vector<8x128xf32>
    %314 = vector.extract_strided_slice %307 {offsets = [0, 128], sizes = [8, 128], strides = [1, 1]} : vector<8x512xf32> to vector<8x128xf32>
    %315 = arith.negf %314 : vector<8x128xf32>
    %316 = math.exp %315 : vector<8x128xf32>
    %cst_92 = arith.constant 1.000000e+00 : f32
    %317 = vector.broadcast %cst_92 : f32 to vector<8x128xf32>
    %318 = arith.addf %317, %316 : vector<8x128xf32>
    %319 = arith.divf %317, %318 : vector<8x128xf32>
    %320 = vector.extract_strided_slice %307 {offsets = [0, 256], sizes = [8, 128], strides = [1, 1]} : vector<8x512xf32> to vector<8x128xf32>
    %321 = math.tanh %320 : vector<8x128xf32>
    %322 = vector.extract_strided_slice %307 {offsets = [0, 384], sizes = [8, 128], strides = [1, 1]} : vector<8x512xf32> to vector<8x128xf32>
    %323 = arith.negf %322 : vector<8x128xf32>
    %324 = math.exp %323 : vector<8x128xf32>
    %cst_93 = arith.constant 1.000000e+00 : f32
    %325 = vector.broadcast %cst_93 : f32 to vector<8x128xf32>
    %326 = arith.addf %325, %324 : vector<8x128xf32>
    %327 = arith.divf %325, %326 : vector<8x128xf32>
    %328 = arith.mulf %319, %300 : vector<8x128xf32>
    %329 = arith.mulf %313, %321 : vector<8x128xf32>
    %330 = arith.addf %328, %329 : vector<8x128xf32>
    %331 = math.tanh %330 : vector<8x128xf32>
    %332 = arith.mulf %327, %331 : vector<8x128xf32>
    %333 = arith.index_cast %302 : i32 to index
    %c0_94 = arith.constant 0 : index
    %334 = vector.load %arg12[%333, %c0_94] : memref<64x128xf32, #tpu.memory_space<vmem>>, vector<8x128xf32>
    tpu.vector_store %arg12[%333, %c0_94], %332 {strides = array<i32>} : memref<64x128xf32, #tpu.memory_space<vmem>>, vector<8x128xf32>,
    %c1_i32_95 = arith.constant 1 : i32
    %c8_i32_96 = arith.constant 8 : i32
    %335 = arith.muli %c1_i32_95, %c8_i32_96 : i32
    %336 = tpu.assume_multiple %335, 8 : i32
    %337 = arith.index_cast %336 : i32 to index
    %c0_97 = arith.constant 0 : index
    %338 = vector.load %arg11[%337, %c0_97] : memref<64x512xf32, #tpu.memory_space<vmem>>, vector<8x512xf32>
    %339 = arith.truncf %332 : vector<8x128xf32> to vector<8x128xbf16>
    %cst_98 = arith.constant dense<0.000000e+00> : vector<8x512xf32>
    %340 = tpu.matmul %339, %299, %cst_98 {dimension_numbers = #tpu.dot_dimension_numbers<[1], [0], [0], [1], [0, 0, 1, 1], [], []>} : vector<8x128xbf16>, vector<128x512xbf16>, vector<8x512xf32> -> vector<8x512xf32>
    %341 = arith.addf %338, %340 : vector<8x512xf32>
    %342 = vector.extract_strided_slice %341 {offsets = [0, 0], sizes = [8, 128], strides = [1, 1]} : vector<8x512xf32> to vector<8x128xf32>
    %343 = arith.negf %342 : vector<8x128xf32>
    %344 = math.exp %343 : vector<8x128xf32>
    %cst_99 = arith.constant 1.000000e+00 : f32
    %345 = vector.broadcast %cst_99 : f32 to vector<8x128xf32>
    %346 = arith.addf %345, %344 : vector<8x128xf32>
    %347 = arith.divf %345, %346 : vector<8x128xf32>
    %348 = vector.extract_strided_slice %341 {offsets = [0, 128], sizes = [8, 128], strides = [1, 1]} : vector<8x512xf32> to vector<8x128xf32>
    %349 = arith.negf %348 : vector<8x128xf32>
    %350 = math.exp %349 : vector<8x128xf32>
    %cst_100 = arith.constant 1.000000e+00 : f32
    %351 = vector.broadcast %cst_100 : f32 to vector<8x128xf32>
    %352 = arith.addf %351, %350 : vector<8x128xf32>
    %353 = arith.divf %351, %352 : vector<8x128xf32>
    %354 = vector.extract_strided_slice %341 {offsets = [0, 256], sizes = [8, 128], strides = [1, 1]} : vector<8x512xf32> to vector<8x128xf32>
    %355 = math.tanh %354 : vector<8x128xf32>
    %356 = vector.extract_strided_slice %341 {offsets = [0, 384], sizes = [8, 128], strides = [1, 1]} : vector<8x512xf32> to vector<8x128xf32>
    %357 = arith.negf %356 : vector<8x128xf32>
    %358 = math.exp %357 : vector<8x128xf32>
    %cst_101 = arith.constant 1.000000e+00 : f32
    %359 = vector.broadcast %cst_101 : f32 to vector<8x128xf32>
    %360 = arith.addf %359, %358 : vector<8x128xf32>
    %361 = arith.divf %359, %360 : vector<8x128xf32>
    %362 = arith.mulf %353, %330 : vector<8x128xf32>
    %363 = arith.mulf %347, %355 : vector<8x128xf32>
    %364 = arith.addf %362, %363 : vector<8x128xf32>
    %365 = math.tanh %364 : vector<8x128xf32>
    %366 = arith.mulf %361, %365 : vector<8x128xf32>
    %367 = arith.index_cast %336 : i32 to index
    %c0_102 = arith.constant 0 : index
    %368 = vector.load %arg12[%367, %c0_102] : memref<64x128xf32, #tpu.memory_space<vmem>>, vector<8x128xf32>
    tpu.vector_store %arg12[%367, %c0_102], %366 {strides = array<i32>} : memref<64x128xf32, #tpu.memory_space<vmem>>, vector<8x128xf32>,
    %c2_i32_103 = arith.constant 2 : i32
    %c8_i32_104 = arith.constant 8 : i32
    %369 = arith.muli %c2_i32_103, %c8_i32_104 : i32
    %370 = tpu.assume_multiple %369, 8 : i32
    %371 = arith.index_cast %370 : i32 to index
    %c0_105 = arith.constant 0 : index
    %372 = vector.load %arg11[%371, %c0_105] : memref<64x512xf32, #tpu.memory_space<vmem>>, vector<8x512xf32>
    %373 = arith.truncf %366 : vector<8x128xf32> to vector<8x128xbf16>
    %cst_106 = arith.constant dense<0.000000e+00> : vector<8x512xf32>
    %374 = tpu.matmul %373, %299, %cst_106 {dimension_numbers = #tpu.dot_dimension_numbers<[1], [0], [0], [1], [0, 0, 1, 1], [], []>} : vector<8x128xbf16>, vector<128x512xbf16>, vector<8x512xf32> -> vector<8x512xf32>
    %375 = arith.addf %372, %374 : vector<8x512xf32>
    %376 = vector.extract_strided_slice %375 {offsets = [0, 0], sizes = [8, 128], strides = [1, 1]} : vector<8x512xf32> to vector<8x128xf32>
    %377 = arith.negf %376 : vector<8x128xf32>
    %378 = math.exp %377 : vector<8x128xf32>
    %cst_107 = arith.constant 1.000000e+00 : f32
    %379 = vector.broadcast %cst_107 : f32 to vector<8x128xf32>
    %380 = arith.addf %379, %378 : vector<8x128xf32>
    %381 = arith.divf %379, %380 : vector<8x128xf32>
    %382 = vector.extract_strided_slice %375 {offsets = [0, 128], sizes = [8, 128], strides = [1, 1]} : vector<8x512xf32> to vector<8x128xf32>
    %383 = arith.negf %382 : vector<8x128xf32>
    %384 = math.exp %383 : vector<8x128xf32>
    %cst_108 = arith.constant 1.000000e+00 : f32
    %385 = vector.broadcast %cst_108 : f32 to vector<8x128xf32>
    %386 = arith.addf %385, %384 : vector<8x128xf32>
    %387 = arith.divf %385, %386 : vector<8x128xf32>
    %388 = vector.extract_strided_slice %375 {offsets = [0, 256], sizes = [8, 128], strides = [1, 1]} : vector<8x512xf32> to vector<8x128xf32>
    %389 = math.tanh %388 : vector<8x128xf32>
    %390 = vector.extract_strided_slice %375 {offsets = [0, 384], sizes = [8, 128], strides = [1, 1]} : vector<8x512xf32> to vector<8x128xf32>
    %391 = arith.negf %390 : vector<8x128xf32>
    %392 = math.exp %391 : vector<8x128xf32>
    %cst_109 = arith.constant 1.000000e+00 : f32
    %393 = vector.broadcast %cst_109 : f32 to vector<8x128xf32>
    %394 = arith.addf %393, %392 : vector<8x128xf32>
    %395 = arith.divf %393, %394 : vector<8x128xf32>
    %396 = arith.mulf %387, %364 : vector<8x128xf32>
    %397 = arith.mulf %381, %389 : vector<8x128xf32>
    %398 = arith.addf %396, %397 : vector<8x128xf32>
    %399 = math.tanh %398 : vector<8x128xf32>
    %400 = arith.mulf %395, %399 : vector<8x128xf32>
    %401 = arith.index_cast %370 : i32 to index
    %c0_110 = arith.constant 0 : index
    %402 = vector.load %arg12[%401, %c0_110] : memref<64x128xf32, #tpu.memory_space<vmem>>, vector<8x128xf32>
    tpu.vector_store %arg12[%401, %c0_110], %400 {strides = array<i32>} : memref<64x128xf32, #tpu.memory_space<vmem>>, vector<8x128xf32>,
    %c3_i32_111 = arith.constant 3 : i32
    %c8_i32_112 = arith.constant 8 : i32
    %403 = arith.muli %c3_i32_111, %c8_i32_112 : i32
    %404 = tpu.assume_multiple %403, 8 : i32
    %405 = arith.index_cast %404 : i32 to index
    %c0_113 = arith.constant 0 : index
    %406 = vector.load %arg11[%405, %c0_113] : memref<64x512xf32, #tpu.memory_space<vmem>>, vector<8x512xf32>
    %407 = arith.truncf %400 : vector<8x128xf32> to vector<8x128xbf16>
    %cst_114 = arith.constant dense<0.000000e+00> : vector<8x512xf32>
    %408 = tpu.matmul %407, %299, %cst_114 {dimension_numbers = #tpu.dot_dimension_numbers<[1], [0], [0], [1], [0, 0, 1, 1], [], []>} : vector<8x128xbf16>, vector<128x512xbf16>, vector<8x512xf32> -> vector<8x512xf32>
    %409 = arith.addf %406, %408 : vector<8x512xf32>
    %410 = vector.extract_strided_slice %409 {offsets = [0, 0], sizes = [8, 128], strides = [1, 1]} : vector<8x512xf32> to vector<8x128xf32>
    %411 = arith.negf %410 : vector<8x128xf32>
    %412 = math.exp %411 : vector<8x128xf32>
    %cst_115 = arith.constant 1.000000e+00 : f32
    %413 = vector.broadcast %cst_115 : f32 to vector<8x128xf32>
    %414 = arith.addf %413, %412 : vector<8x128xf32>
    %415 = arith.divf %413, %414 : vector<8x128xf32>
    %416 = vector.extract_strided_slice %409 {offsets = [0, 128], sizes = [8, 128], strides = [1, 1]} : vector<8x512xf32> to vector<8x128xf32>
    %417 = arith.negf %416 : vector<8x128xf32>
    %418 = math.exp %417 : vector<8x128xf32>
    %cst_116 = arith.constant 1.000000e+00 : f32
    %419 = vector.broadcast %cst_116 : f32 to vector<8x128xf32>
    %420 = arith.addf %419, %418 : vector<8x128xf32>
    %421 = arith.divf %419, %420 : vector<8x128xf32>
    %422 = vector.extract_strided_slice %409 {offsets = [0, 256], sizes = [8, 128], strides = [1, 1]} : vector<8x512xf32> to vector<8x128xf32>
    %423 = math.tanh %422 : vector<8x128xf32>
    %424 = vector.extract_strided_slice %409 {offsets = [0, 384], sizes = [8, 128], strides = [1, 1]} : vector<8x512xf32> to vector<8x128xf32>
    %425 = arith.negf %424 : vector<8x128xf32>
    %426 = math.exp %425 : vector<8x128xf32>
    %cst_117 = arith.constant 1.000000e+00 : f32
    %427 = vector.broadcast %cst_117 : f32 to vector<8x128xf32>
    %428 = arith.addf %427, %426 : vector<8x128xf32>
    %429 = arith.divf %427, %428 : vector<8x128xf32>
    %430 = arith.mulf %421, %398 : vector<8x128xf32>
    %431 = arith.mulf %415, %423 : vector<8x128xf32>
    %432 = arith.addf %430, %431 : vector<8x128xf32>
    %433 = math.tanh %432 : vector<8x128xf32>
    %434 = arith.mulf %429, %433 : vector<8x128xf32>
    %435 = arith.index_cast %404 : i32 to index
    %c0_118 = arith.constant 0 : index
    %436 = vector.load %arg12[%435, %c0_118] : memref<64x128xf32, #tpu.memory_space<vmem>>, vector<8x128xf32>
    tpu.vector_store %arg12[%435, %c0_118], %434 {strides = array<i32>} : memref<64x128xf32, #tpu.memory_space<vmem>>, vector<8x128xf32>,
    %c4_i32_119 = arith.constant 4 : i32
    %c8_i32_120 = arith.constant 8 : i32
    %437 = arith.muli %c4_i32_119, %c8_i32_120 : i32
    %438 = tpu.assume_multiple %437, 8 : i32
    %439 = arith.index_cast %438 : i32 to index
    %c0_121 = arith.constant 0 : index
    %440 = vector.load %arg11[%439, %c0_121] : memref<64x512xf32, #tpu.memory_space<vmem>>, vector<8x512xf32>
    %441 = arith.truncf %434 : vector<8x128xf32> to vector<8x128xbf16>
    %cst_122 = arith.constant dense<0.000000e+00> : vector<8x512xf32>
    %442 = tpu.matmul %441, %299, %cst_122 {dimension_numbers = #tpu.dot_dimension_numbers<[1], [0], [0], [1], [0, 0, 1, 1], [], []>} : vector<8x128xbf16>, vector<128x512xbf16>, vector<8x512xf32> -> vector<8x512xf32>
    %443 = arith.addf %440, %442 : vector<8x512xf32>
    %444 = vector.extract_strided_slice %443 {offsets = [0, 0], sizes = [8, 128], strides = [1, 1]} : vector<8x512xf32> to vector<8x128xf32>
    %445 = arith.negf %444 : vector<8x128xf32>
    %446 = math.exp %445 : vector<8x128xf32>
    %cst_123 = arith.constant 1.000000e+00 : f32
    %447 = vector.broadcast %cst_123 : f32 to vector<8x128xf32>
    %448 = arith.addf %447, %446 : vector<8x128xf32>
    %449 = arith.divf %447, %448 : vector<8x128xf32>
    %450 = vector.extract_strided_slice %443 {offsets = [0, 128], sizes = [8, 128], strides = [1, 1]} : vector<8x512xf32> to vector<8x128xf32>
    %451 = arith.negf %450 : vector<8x128xf32>
    %452 = math.exp %451 : vector<8x128xf32>
    %cst_124 = arith.constant 1.000000e+00 : f32
    %453 = vector.broadcast %cst_124 : f32 to vector<8x128xf32>
    %454 = arith.addf %453, %452 : vector<8x128xf32>
    %455 = arith.divf %453, %454 : vector<8x128xf32>
    %456 = vector.extract_strided_slice %443 {offsets = [0, 256], sizes = [8, 128], strides = [1, 1]} : vector<8x512xf32> to vector<8x128xf32>
    %457 = math.tanh %456 : vector<8x128xf32>
    %458 = vector.extract_strided_slice %443 {offsets = [0, 384], sizes = [8, 128], strides = [1, 1]} : vector<8x512xf32> to vector<8x128xf32>
    %459 = arith.negf %458 : vector<8x128xf32>
    %460 = math.exp %459 : vector<8x128xf32>
    %cst_125 = arith.constant 1.000000e+00 : f32
    %461 = vector.broadcast %cst_125 : f32 to vector<8x128xf32>
    %462 = arith.addf %461, %460 : vector<8x128xf32>
    %463 = arith.divf %461, %462 : vector<8x128xf32>
    %464 = arith.mulf %455, %432 : vector<8x128xf32>
    %465 = arith.mulf %449, %457 : vector<8x128xf32>
    %466 = arith.addf %464, %465 : vector<8x128xf32>
    %467 = math.tanh %466 : vector<8x128xf32>
    %468 = arith.mulf %463, %467 : vector<8x128xf32>
    %469 = arith.index_cast %438 : i32 to index
    %c0_126 = arith.constant 0 : index
    %470 = vector.load %arg12[%469, %c0_126] : memref<64x128xf32, #tpu.memory_space<vmem>>, vector<8x128xf32>
    tpu.vector_store %arg12[%469, %c0_126], %468 {strides = array<i32>} : memref<64x128xf32, #tpu.memory_space<vmem>>, vector<8x128xf32>,
    %c5_i32_127 = arith.constant 5 : i32
    %c8_i32_128 = arith.constant 8 : i32
    %471 = arith.muli %c5_i32_127, %c8_i32_128 : i32
    %472 = tpu.assume_multiple %471, 8 : i32
    %473 = arith.index_cast %472 : i32 to index
    %c0_129 = arith.constant 0 : index
    %474 = vector.load %arg11[%473, %c0_129] : memref<64x512xf32, #tpu.memory_space<vmem>>, vector<8x512xf32>
    %475 = arith.truncf %468 : vector<8x128xf32> to vector<8x128xbf16>
    %cst_130 = arith.constant dense<0.000000e+00> : vector<8x512xf32>
    %476 = tpu.matmul %475, %299, %cst_130 {dimension_numbers = #tpu.dot_dimension_numbers<[1], [0], [0], [1], [0, 0, 1, 1], [], []>} : vector<8x128xbf16>, vector<128x512xbf16>, vector<8x512xf32> -> vector<8x512xf32>
    %477 = arith.addf %474, %476 : vector<8x512xf32>
    %478 = vector.extract_strided_slice %477 {offsets = [0, 0], sizes = [8, 128], strides = [1, 1]} : vector<8x512xf32> to vector<8x128xf32>
    %479 = arith.negf %478 : vector<8x128xf32>
    %480 = math.exp %479 : vector<8x128xf32>
    %cst_131 = arith.constant 1.000000e+00 : f32
    %481 = vector.broadcast %cst_131 : f32 to vector<8x128xf32>
    %482 = arith.addf %481, %480 : vector<8x128xf32>
    %483 = arith.divf %481, %482 : vector<8x128xf32>
    %484 = vector.extract_strided_slice %477 {offsets = [0, 128], sizes = [8, 128], strides = [1, 1]} : vector<8x512xf32> to vector<8x128xf32>
    %485 = arith.negf %484 : vector<8x128xf32>
    %486 = math.exp %485 : vector<8x128xf32>
    %cst_132 = arith.constant 1.000000e+00 : f32
    %487 = vector.broadcast %cst_132 : f32 to vector<8x128xf32>
    %488 = arith.addf %487, %486 : vector<8x128xf32>
    %489 = arith.divf %487, %488 : vector<8x128xf32>
    %490 = vector.extract_strided_slice %477 {offsets = [0, 256], sizes = [8, 128], strides = [1, 1]} : vector<8x512xf32> to vector<8x128xf32>
    %491 = math.tanh %490 : vector<8x128xf32>
    %492 = vector.extract_strided_slice %477 {offsets = [0, 384], sizes = [8, 128], strides = [1, 1]} : vector<8x512xf32> to vector<8x128xf32>
    %493 = arith.negf %492 : vector<8x128xf32>
    %494 = math.exp %493 : vector<8x128xf32>
    %cst_133 = arith.constant 1.000000e+00 : f32
    %495 = vector.broadcast %cst_133 : f32 to vector<8x128xf32>
    %496 = arith.addf %495, %494 : vector<8x128xf32>
    %497 = arith.divf %495, %496 : vector<8x128xf32>
    %498 = arith.mulf %489, %466 : vector<8x128xf32>
    %499 = arith.mulf %483, %491 : vector<8x128xf32>
    %500 = arith.addf %498, %499 : vector<8x128xf32>
    %501 = math.tanh %500 : vector<8x128xf32>
    %502 = arith.mulf %497, %501 : vector<8x128xf32>
    %503 = arith.index_cast %472 : i32 to index
    %c0_134 = arith.constant 0 : index
    %504 = vector.load %arg12[%503, %c0_134] : memref<64x128xf32, #tpu.memory_space<vmem>>, vector<8x128xf32>
    tpu.vector_store %arg12[%503, %c0_134], %502 {strides = array<i32>} : memref<64x128xf32, #tpu.memory_space<vmem>>, vector<8x128xf32>,
    %c6_i32_135 = arith.constant 6 : i32
    %c8_i32_136 = arith.constant 8 : i32
    %505 = arith.muli %c6_i32_135, %c8_i32_136 : i32
    %506 = tpu.assume_multiple %505, 8 : i32
    %507 = arith.index_cast %506 : i32 to index
    %c0_137 = arith.constant 0 : index
    %508 = vector.load %arg11[%507, %c0_137] : memref<64x512xf32, #tpu.memory_space<vmem>>, vector<8x512xf32>
    %509 = arith.truncf %502 : vector<8x128xf32> to vector<8x128xbf16>
    %cst_138 = arith.constant dense<0.000000e+00> : vector<8x512xf32>
    %510 = tpu.matmul %509, %299, %cst_138 {dimension_numbers = #tpu.dot_dimension_numbers<[1], [0], [0], [1], [0, 0, 1, 1], [], []>} : vector<8x128xbf16>, vector<128x512xbf16>, vector<8x512xf32> -> vector<8x512xf32>
    %511 = arith.addf %508, %510 : vector<8x512xf32>
    %512 = vector.extract_strided_slice %511 {offsets = [0, 0], sizes = [8, 128], strides = [1, 1]} : vector<8x512xf32> to vector<8x128xf32>
    %513 = arith.negf %512 : vector<8x128xf32>
    %514 = math.exp %513 : vector<8x128xf32>
    %cst_139 = arith.constant 1.000000e+00 : f32
    %515 = vector.broadcast %cst_139 : f32 to vector<8x128xf32>
    %516 = arith.addf %515, %514 : vector<8x128xf32>
    %517 = arith.divf %515, %516 : vector<8x128xf32>
    %518 = vector.extract_strided_slice %511 {offsets = [0, 128], sizes = [8, 128], strides = [1, 1]} : vector<8x512xf32> to vector<8x128xf32>
    %519 = arith.negf %518 : vector<8x128xf32>
    %520 = math.exp %519 : vector<8x128xf32>
    %cst_140 = arith.constant 1.000000e+00 : f32
    %521 = vector.broadcast %cst_140 : f32 to vector<8x128xf32>
    %522 = arith.addf %521, %520 : vector<8x128xf32>
    %523 = arith.divf %521, %522 : vector<8x128xf32>
    %524 = vector.extract_strided_slice %511 {offsets = [0, 256], sizes = [8, 128], strides = [1, 1]} : vector<8x512xf32> to vector<8x128xf32>
    %525 = math.tanh %524 : vector<8x128xf32>
    %526 = vector.extract_strided_slice %511 {offsets = [0, 384], sizes = [8, 128], strides = [1, 1]} : vector<8x512xf32> to vector<8x128xf32>
    %527 = arith.negf %526 : vector<8x128xf32>
    %528 = math.exp %527 : vector<8x128xf32>
    %cst_141 = arith.constant 1.000000e+00 : f32
    %529 = vector.broadcast %cst_141 : f32 to vector<8x128xf32>
    %530 = arith.addf %529, %528 : vector<8x128xf32>
    %531 = arith.divf %529, %530 : vector<8x128xf32>
    %532 = arith.mulf %523, %500 : vector<8x128xf32>
    %533 = arith.mulf %517, %525 : vector<8x128xf32>
    %534 = arith.addf %532, %533 : vector<8x128xf32>
    %535 = math.tanh %534 : vector<8x128xf32>
    %536 = arith.mulf %531, %535 : vector<8x128xf32>
    %537 = arith.index_cast %506 : i32 to index
    %c0_142 = arith.constant 0 : index
    %538 = vector.load %arg12[%537, %c0_142] : memref<64x128xf32, #tpu.memory_space<vmem>>, vector<8x128xf32>
    tpu.vector_store %arg12[%537, %c0_142], %536 {strides = array<i32>} : memref<64x128xf32, #tpu.memory_space<vmem>>, vector<8x128xf32>,
    %c7_i32_143 = arith.constant 7 : i32
    %c8_i32_144 = arith.constant 8 : i32
    %539 = arith.muli %c7_i32_143, %c8_i32_144 : i32
    %540 = tpu.assume_multiple %539, 8 : i32
    %541 = arith.index_cast %540 : i32 to index
    %c0_145 = arith.constant 0 : index
    %542 = vector.load %arg11[%541, %c0_145] : memref<64x512xf32, #tpu.memory_space<vmem>>, vector<8x512xf32>
    %543 = arith.truncf %536 : vector<8x128xf32> to vector<8x128xbf16>
    %cst_146 = arith.constant dense<0.000000e+00> : vector<8x512xf32>
    %544 = tpu.matmul %543, %299, %cst_146 {dimension_numbers = #tpu.dot_dimension_numbers<[1], [0], [0], [1], [0, 0, 1, 1], [], []>} : vector<8x128xbf16>, vector<128x512xbf16>, vector<8x512xf32> -> vector<8x512xf32>
    %545 = arith.addf %542, %544 : vector<8x512xf32>
    %546 = vector.extract_strided_slice %545 {offsets = [0, 0], sizes = [8, 128], strides = [1, 1]} : vector<8x512xf32> to vector<8x128xf32>
    %547 = arith.negf %546 : vector<8x128xf32>
    %548 = math.exp %547 : vector<8x128xf32>
    %cst_147 = arith.constant 1.000000e+00 : f32
    %549 = vector.broadcast %cst_147 : f32 to vector<8x128xf32>
    %550 = arith.addf %549, %548 : vector<8x128xf32>
    %551 = arith.divf %549, %550 : vector<8x128xf32>
    %552 = vector.extract_strided_slice %545 {offsets = [0, 128], sizes = [8, 128], strides = [1, 1]} : vector<8x512xf32> to vector<8x128xf32>
    %553 = arith.negf %552 : vector<8x128xf32>
    %554 = math.exp %553 : vector<8x128xf32>
    %cst_148 = arith.constant 1.000000e+00 : f32
    %555 = vector.broadcast %cst_148 : f32 to vector<8x128xf32>
    %556 = arith.addf %555, %554 : vector<8x128xf32>
    %557 = arith.divf %555, %556 : vector<8x128xf32>
    %558 = vector.extract_strided_slice %545 {offsets = [0, 256], sizes = [8, 128], strides = [1, 1]} : vector<8x512xf32> to vector<8x128xf32>
    %559 = math.tanh %558 : vector<8x128xf32>
    %560 = vector.extract_strided_slice %545 {offsets = [0, 384], sizes = [8, 128], strides = [1, 1]} : vector<8x512xf32> to vector<8x128xf32>
    %561 = arith.negf %560 : vector<8x128xf32>
    %562 = math.exp %561 : vector<8x128xf32>
    %cst_149 = arith.constant 1.000000e+00 : f32
    %563 = vector.broadcast %cst_149 : f32 to vector<8x128xf32>
    %564 = arith.addf %563, %562 : vector<8x128xf32>
    %565 = arith.divf %563, %564 : vector<8x128xf32>
    %566 = arith.mulf %557, %534 : vector<8x128xf32>
    %567 = arith.mulf %551, %559 : vector<8x128xf32>
    %568 = arith.addf %566, %567 : vector<8x128xf32>
    %569 = math.tanh %568 : vector<8x128xf32>
    %570 = arith.mulf %565, %569 : vector<8x128xf32>
    %571 = arith.index_cast %540 : i32 to index
    %c0_150 = arith.constant 0 : index
    %572 = vector.load %arg12[%571, %c0_150] : memref<64x128xf32, #tpu.memory_space<vmem>>, vector<8x128xf32>
    tpu.vector_store %arg12[%571, %c0_150], %570 {strides = array<i32>} : memref<64x128xf32, #tpu.memory_space<vmem>>, vector<8x128xf32>,
    %c8_i32_151 = arith.constant 8 : i32
    %c1_152 = arith.constant 1 : index
    %c0_153 = arith.constant 0 : index
    %c0_154 = arith.constant 0 : index
    %573 = vector.load %arg9[%c1_152, %c0_153, %c0_154] : memref<3x8x128xf32, #tpu.memory_space<vmem>>, vector<1x8x128xf32>
    %574 = vector.shape_cast %573 : vector<1x8x128xf32> to vector<8x128xf32>
    %575 = vector.shape_cast %570 : vector<8x128xf32> to vector<1x8x128xf32>
    tpu.vector_store %arg9[%c1_152, %c0_153, %c0_154], %575 {strides = array<i32>} : memref<3x8x128xf32, #tpu.memory_space<vmem>>, vector<1x8x128xf32>,
    %c1_155 = arith.constant 1 : index
    %c0_156 = arith.constant 0 : index
    %c0_157 = arith.constant 0 : index
    %576 = vector.load %arg10[%c1_155, %c0_156, %c0_157] : memref<3x8x128xf32, #tpu.memory_space<vmem>>, vector<1x8x128xf32>
    %577 = vector.shape_cast %576 : vector<1x8x128xf32> to vector<8x128xf32>
    %578 = vector.shape_cast %568 : vector<8x128xf32> to vector<1x8x128xf32>
    tpu.vector_store %arg10[%c1_155, %c0_156, %c0_157], %578 {strides = array<i32>} : memref<3x8x128xf32, #tpu.memory_space<vmem>>, vector<1x8x128xf32>,
    %c0_158 = arith.constant 0 : index
    %c0_159 = arith.constant 0 : index
    %579 = vector.load %arg12[%c0_158, %c0_159] : memref<64x128xf32, #tpu.memory_space<vmem>>, vector<64x128xf32>
    %580 = arith.truncf %579 : vector<64x128xf32> to vector<64x128xbf16>
    %c1_160 = arith.constant 1 : index
    %c0_161 = arith.constant 0 : index
    %c0_162 = arith.constant 0 : index
    %581 = vector.load %arg3[%c1_160, %c0_161, %c0_162] : memref<2x128x512xbf16, #tpu.memory_space<vmem>>, vector<1x128x512xbf16>
    %582 = vector.shape_cast %581 : vector<1x128x512xbf16> to vector<128x512xbf16>
    %cst_163 = arith.constant dense<0.000000e+00> : vector<64x512xf32>
    %583 = tpu.matmul %580, %582, %cst_163 {dimension_numbers = #tpu.dot_dimension_numbers<[1], [0], [0], [1], [0, 0, 1, 1], [], []>} : vector<64x128xbf16>, vector<128x512xbf16>, vector<64x512xf32> -> vector<64x512xf32>
    %c1_164 = arith.constant 1 : index
    %c0_165 = arith.constant 0 : index
    %c0_166 = arith.constant 0 : index
    %584 = vector.load %arg5[%c1_164, %c0_165, %c0_166] : memref<2x1x512xf32, #tpu.memory_space<vmem>>, vector<1x1x512xf32>
    %585 = vector.shape_cast %584 : vector<1x1x512xf32> to vector<1x512xf32>
    %586 = vector.broadcast %585 : vector<1x512xf32> to vector<64x512xf32>
    %587 = arith.addf %583, %586 : vector<64x512xf32>
    %c0_167 = arith.constant 0 : index
    %c0_168 = arith.constant 0 : index
    %588 = vector.load %arg11[%c0_167, %c0_168] : memref<64x512xf32, #tpu.memory_space<vmem>>, vector<64x512xf32>
    tpu.vector_store %arg11[%c0_167, %c0_168], %587 {strides = array<i32>} : memref<64x512xf32, #tpu.memory_space<vmem>>, vector<64x512xf32>,
    %c2 = arith.constant 2 : index
    %c0_169 = arith.constant 0 : index
    %c0_170 = arith.constant 0 : index
    %589 = vector.load %arg4[%c2, %c0_169, %c0_170] : memref<3x128x512xbf16, #tpu.memory_space<vmem>>, vector<1x128x512xbf16>
    %590 = vector.shape_cast %589 : vector<1x128x512xbf16> to vector<128x512xbf16>
    %cst_171 = arith.constant 0.000000e+00 : f32
    %591 = vector.broadcast %cst_171 : f32 to vector<8x128xf32>
    %c0_i32_172 = arith.constant 0 : i32
    %c8_i32_173 = arith.constant 8 : i32
    %592 = arith.muli %c0_i32_172, %c8_i32_173 : i32
    %593 = tpu.assume_multiple %592, 8 : i32
    %594 = arith.index_cast %593 : i32 to index
    %c0_174 = arith.constant 0 : index
    %595 = vector.load %arg11[%594, %c0_174] : memref<64x512xf32, #tpu.memory_space<vmem>>, vector<8x512xf32>
    %596 = arith.truncf %591 : vector<8x128xf32> to vector<8x128xbf16>
    %cst_175 = arith.constant dense<0.000000e+00> : vector<8x512xf32>
    %597 = tpu.matmul %596, %590, %cst_175 {dimension_numbers = #tpu.dot_dimension_numbers<[1], [0], [0], [1], [0, 0, 1, 1], [], []>} : vector<8x128xbf16>, vector<128x512xbf16>, vector<8x512xf32> -> vector<8x512xf32>
    %598 = arith.addf %595, %597 : vector<8x512xf32>
    %599 = vector.extract_strided_slice %598 {offsets = [0, 0], sizes = [8, 128], strides = [1, 1]} : vector<8x512xf32> to vector<8x128xf32>
    %600 = arith.negf %599 : vector<8x128xf32>
    %601 = math.exp %600 : vector<8x128xf32>
    %cst_176 = arith.constant 1.000000e+00 : f32
    %602 = vector.broadcast %cst_176 : f32 to vector<8x128xf32>
    %603 = arith.addf %602, %601 : vector<8x128xf32>
    %604 = arith.divf %602, %603 : vector<8x128xf32>
    %605 = vector.extract_strided_slice %598 {offsets = [0, 128], sizes = [8, 128], strides = [1, 1]} : vector<8x512xf32> to vector<8x128xf32>
    %606 = arith.negf %605 : vector<8x128xf32>
    %607 = math.exp %606 : vector<8x128xf32>
    %cst_177 = arith.constant 1.000000e+00 : f32
    %608 = vector.broadcast %cst_177 : f32 to vector<8x128xf32>
    %609 = arith.addf %608, %607 : vector<8x128xf32>
    %610 = arith.divf %608, %609 : vector<8x128xf32>
    %611 = vector.extract_strided_slice %598 {offsets = [0, 256], sizes = [8, 128], strides = [1, 1]} : vector<8x512xf32> to vector<8x128xf32>
    %612 = math.tanh %611 : vector<8x128xf32>
    %613 = vector.extract_strided_slice %598 {offsets = [0, 384], sizes = [8, 128], strides = [1, 1]} : vector<8x512xf32> to vector<8x128xf32>
    %614 = arith.negf %613 : vector<8x128xf32>
    %615 = math.exp %614 : vector<8x128xf32>
    %cst_178 = arith.constant 1.000000e+00 : f32
    %616 = vector.broadcast %cst_178 : f32 to vector<8x128xf32>
    %617 = arith.addf %616, %615 : vector<8x128xf32>
    %618 = arith.divf %616, %617 : vector<8x128xf32>
    %619 = arith.mulf %610, %591 : vector<8x128xf32>
    %620 = arith.mulf %604, %612 : vector<8x128xf32>
    %621 = arith.addf %619, %620 : vector<8x128xf32>
    %622 = math.tanh %621 : vector<8x128xf32>
    %623 = arith.mulf %618, %622 : vector<8x128xf32>
    %c1_i32_179 = arith.constant 1 : i32
    %c8_i32_180 = arith.constant 8 : i32
    %624 = arith.muli %c1_i32_179, %c8_i32_180 : i32
    %625 = tpu.assume_multiple %624, 8 : i32
    %626 = arith.index_cast %625 : i32 to index
    %c0_181 = arith.constant 0 : index
    %627 = vector.load %arg11[%626, %c0_181] : memref<64x512xf32, #tpu.memory_space<vmem>>, vector<8x512xf32>
    %628 = arith.truncf %623 : vector<8x128xf32> to vector<8x128xbf16>
    %cst_182 = arith.constant dense<0.000000e+00> : vector<8x512xf32>
    %629 = tpu.matmul %628, %590, %cst_182 {dimension_numbers = #tpu.dot_dimension_numbers<[1], [0], [0], [1], [0, 0, 1, 1], [], []>} : vector<8x128xbf16>, vector<128x512xbf16>, vector<8x512xf32> -> vector<8x512xf32>
    %630 = arith.addf %627, %629 : vector<8x512xf32>
    %631 = vector.extract_strided_slice %630 {offsets = [0, 0], sizes = [8, 128], strides = [1, 1]} : vector<8x512xf32> to vector<8x128xf32>
    %632 = arith.negf %631 : vector<8x128xf32>
    %633 = math.exp %632 : vector<8x128xf32>
    %cst_183 = arith.constant 1.000000e+00 : f32
    %634 = vector.broadcast %cst_183 : f32 to vector<8x128xf32>
    %635 = arith.addf %634, %633 : vector<8x128xf32>
    %636 = arith.divf %634, %635 : vector<8x128xf32>
    %637 = vector.extract_strided_slice %630 {offsets = [0, 128], sizes = [8, 128], strides = [1, 1]} : vector<8x512xf32> to vector<8x128xf32>
    %638 = arith.negf %637 : vector<8x128xf32>
    %639 = math.exp %638 : vector<8x128xf32>
    %cst_184 = arith.constant 1.000000e+00 : f32
    %640 = vector.broadcast %cst_184 : f32 to vector<8x128xf32>
    %641 = arith.addf %640, %639 : vector<8x128xf32>
    %642 = arith.divf %640, %641 : vector<8x128xf32>
    %643 = vector.extract_strided_slice %630 {offsets = [0, 256], sizes = [8, 128], strides = [1, 1]} : vector<8x512xf32> to vector<8x128xf32>
    %644 = math.tanh %643 : vector<8x128xf32>
    %645 = vector.extract_strided_slice %630 {offsets = [0, 384], sizes = [8, 128], strides = [1, 1]} : vector<8x512xf32> to vector<8x128xf32>
    %646 = arith.negf %645 : vector<8x128xf32>
    %647 = math.exp %646 : vector<8x128xf32>
    %cst_185 = arith.constant 1.000000e+00 : f32
    %648 = vector.broadcast %cst_185 : f32 to vector<8x128xf32>
    %649 = arith.addf %648, %647 : vector<8x128xf32>
    %650 = arith.divf %648, %649 : vector<8x128xf32>
    %651 = arith.mulf %642, %621 : vector<8x128xf32>
    %652 = arith.mulf %636, %644 : vector<8x128xf32>
    %653 = arith.addf %651, %652 : vector<8x128xf32>
    %654 = math.tanh %653 : vector<8x128xf32>
    %655 = arith.mulf %650, %654 : vector<8x128xf32>
    %c2_i32_186 = arith.constant 2 : i32
    %c8_i32_187 = arith.constant 8 : i32
    %656 = arith.muli %c2_i32_186, %c8_i32_187 : i32
    %657 = tpu.assume_multiple %656, 8 : i32
    %658 = arith.index_cast %657 : i32 to index
    %c0_188 = arith.constant 0 : index
    %659 = vector.load %arg11[%658, %c0_188] : memref<64x512xf32, #tpu.memory_space<vmem>>, vector<8x512xf32>
    %660 = arith.truncf %655 : vector<8x128xf32> to vector<8x128xbf16>
    %cst_189 = arith.constant dense<0.000000e+00> : vector<8x512xf32>
    %661 = tpu.matmul %660, %590, %cst_189 {dimension_numbers = #tpu.dot_dimension_numbers<[1], [0], [0], [1], [0, 0, 1, 1], [], []>} : vector<8x128xbf16>, vector<128x512xbf16>, vector<8x512xf32> -> vector<8x512xf32>
    %662 = arith.addf %659, %661 : vector<8x512xf32>
    %663 = vector.extract_strided_slice %662 {offsets = [0, 0], sizes = [8, 128], strides = [1, 1]} : vector<8x512xf32> to vector<8x128xf32>
    %664 = arith.negf %663 : vector<8x128xf32>
    %665 = math.exp %664 : vector<8x128xf32>
    %cst_190 = arith.constant 1.000000e+00 : f32
    %666 = vector.broadcast %cst_190 : f32 to vector<8x128xf32>
    %667 = arith.addf %666, %665 : vector<8x128xf32>
    %668 = arith.divf %666, %667 : vector<8x128xf32>
    %669 = vector.extract_strided_slice %662 {offsets = [0, 128], sizes = [8, 128], strides = [1, 1]} : vector<8x512xf32> to vector<8x128xf32>
    %670 = arith.negf %669 : vector<8x128xf32>
    %671 = math.exp %670 : vector<8x128xf32>
    %cst_191 = arith.constant 1.000000e+00 : f32
    %672 = vector.broadcast %cst_191 : f32 to vector<8x128xf32>
    %673 = arith.addf %672, %671 : vector<8x128xf32>
    %674 = arith.divf %672, %673 : vector<8x128xf32>
    %675 = vector.extract_strided_slice %662 {offsets = [0, 256], sizes = [8, 128], strides = [1, 1]} : vector<8x512xf32> to vector<8x128xf32>
    %676 = math.tanh %675 : vector<8x128xf32>
    %677 = vector.extract_strided_slice %662 {offsets = [0, 384], sizes = [8, 128], strides = [1, 1]} : vector<8x512xf32> to vector<8x128xf32>
    %678 = arith.negf %677 : vector<8x128xf32>
    %679 = math.exp %678 : vector<8x128xf32>
    %cst_192 = arith.constant 1.000000e+00 : f32
    %680 = vector.broadcast %cst_192 : f32 to vector<8x128xf32>
    %681 = arith.addf %680, %679 : vector<8x128xf32>
    %682 = arith.divf %680, %681 : vector<8x128xf32>
    %683 = arith.mulf %674, %653 : vector<8x128xf32>
    %684 = arith.mulf %668, %676 : vector<8x128xf32>
    %685 = arith.addf %683, %684 : vector<8x128xf32>
    %686 = math.tanh %685 : vector<8x128xf32>
    %687 = arith.mulf %682, %686 : vector<8x128xf32>
    %c3_i32_193 = arith.constant 3 : i32
    %c8_i32_194 = arith.constant 8 : i32
    %688 = arith.muli %c3_i32_193, %c8_i32_194 : i32
    %689 = tpu.assume_multiple %688, 8 : i32
    %690 = arith.index_cast %689 : i32 to index
    %c0_195 = arith.constant 0 : index
    %691 = vector.load %arg11[%690, %c0_195] : memref<64x512xf32, #tpu.memory_space<vmem>>, vector<8x512xf32>
    %692 = arith.truncf %687 : vector<8x128xf32> to vector<8x128xbf16>
    %cst_196 = arith.constant dense<0.000000e+00> : vector<8x512xf32>
    %693 = tpu.matmul %692, %590, %cst_196 {dimension_numbers = #tpu.dot_dimension_numbers<[1], [0], [0], [1], [0, 0, 1, 1], [], []>} : vector<8x128xbf16>, vector<128x512xbf16>, vector<8x512xf32> -> vector<8x512xf32>
    %694 = arith.addf %691, %693 : vector<8x512xf32>
    %695 = vector.extract_strided_slice %694 {offsets = [0, 0], sizes = [8, 128], strides = [1, 1]} : vector<8x512xf32> to vector<8x128xf32>
    %696 = arith.negf %695 : vector<8x128xf32>
    %697 = math.exp %696 : vector<8x128xf32>
    %cst_197 = arith.constant 1.000000e+00 : f32
    %698 = vector.broadcast %cst_197 : f32 to vector<8x128xf32>
    %699 = arith.addf %698, %697 : vector<8x128xf32>
    %700 = arith.divf %698, %699 : vector<8x128xf32>
    %701 = vector.extract_strided_slice %694 {offsets = [0, 128], sizes = [8, 128], strides = [1, 1]} : vector<8x512xf32> to vector<8x128xf32>
    %702 = arith.negf %701 : vector<8x128xf32>
    %703 = math.exp %702 : vector<8x128xf32>
    %cst_198 = arith.constant 1.000000e+00 : f32
    %704 = vector.broadcast %cst_198 : f32 to vector<8x128xf32>
    %705 = arith.addf %704, %703 : vector<8x128xf32>
    %706 = arith.divf %704, %705 : vector<8x128xf32>
    %707 = vector.extract_strided_slice %694 {offsets = [0, 256], sizes = [8, 128], strides = [1, 1]} : vector<8x512xf32> to vector<8x128xf32>
    %708 = math.tanh %707 : vector<8x128xf32>
    %709 = vector.extract_strided_slice %694 {offsets = [0, 384], sizes = [8, 128], strides = [1, 1]} : vector<8x512xf32> to vector<8x128xf32>
    %710 = arith.negf %709 : vector<8x128xf32>
    %711 = math.exp %710 : vector<8x128xf32>
    %cst_199 = arith.constant 1.000000e+00 : f32
    %712 = vector.broadcast %cst_199 : f32 to vector<8x128xf32>
    %713 = arith.addf %712, %711 : vector<8x128xf32>
    %714 = arith.divf %712, %713 : vector<8x128xf32>
    %715 = arith.mulf %706, %685 : vector<8x128xf32>
    %716 = arith.mulf %700, %708 : vector<8x128xf32>
    %717 = arith.addf %715, %716 : vector<8x128xf32>
    %718 = math.tanh %717 : vector<8x128xf32>
    %719 = arith.mulf %714, %718 : vector<8x128xf32>
    %c4_i32_200 = arith.constant 4 : i32
    %c8_i32_201 = arith.constant 8 : i32
    %720 = arith.muli %c4_i32_200, %c8_i32_201 : i32
    %721 = tpu.assume_multiple %720, 8 : i32
    %722 = arith.index_cast %721 : i32 to index
    %c0_202 = arith.constant 0 : index
    %723 = vector.load %arg11[%722, %c0_202] : memref<64x512xf32, #tpu.memory_space<vmem>>, vector<8x512xf32>
    %724 = arith.truncf %719 : vector<8x128xf32> to vector<8x128xbf16>
    %cst_203 = arith.constant dense<0.000000e+00> : vector<8x512xf32>
    %725 = tpu.matmul %724, %590, %cst_203 {dimension_numbers = #tpu.dot_dimension_numbers<[1], [0], [0], [1], [0, 0, 1, 1], [], []>} : vector<8x128xbf16>, vector<128x512xbf16>, vector<8x512xf32> -> vector<8x512xf32>
    %726 = arith.addf %723, %725 : vector<8x512xf32>
    %727 = vector.extract_strided_slice %726 {offsets = [0, 0], sizes = [8, 128], strides = [1, 1]} : vector<8x512xf32> to vector<8x128xf32>
    %728 = arith.negf %727 : vector<8x128xf32>
    %729 = math.exp %728 : vector<8x128xf32>
    %cst_204 = arith.constant 1.000000e+00 : f32
    %730 = vector.broadcast %cst_204 : f32 to vector<8x128xf32>
    %731 = arith.addf %730, %729 : vector<8x128xf32>
    %732 = arith.divf %730, %731 : vector<8x128xf32>
    %733 = vector.extract_strided_slice %726 {offsets = [0, 128], sizes = [8, 128], strides = [1, 1]} : vector<8x512xf32> to vector<8x128xf32>
    %734 = arith.negf %733 : vector<8x128xf32>
    %735 = math.exp %734 : vector<8x128xf32>
    %cst_205 = arith.constant 1.000000e+00 : f32
    %736 = vector.broadcast %cst_205 : f32 to vector<8x128xf32>
    %737 = arith.addf %736, %735 : vector<8x128xf32>
    %738 = arith.divf %736, %737 : vector<8x128xf32>
    %739 = vector.extract_strided_slice %726 {offsets = [0, 256], sizes = [8, 128], strides = [1, 1]} : vector<8x512xf32> to vector<8x128xf32>
    %740 = math.tanh %739 : vector<8x128xf32>
    %741 = vector.extract_strided_slice %726 {offsets = [0, 384], sizes = [8, 128], strides = [1, 1]} : vector<8x512xf32> to vector<8x128xf32>
    %742 = arith.negf %741 : vector<8x128xf32>
    %743 = math.exp %742 : vector<8x128xf32>
    %cst_206 = arith.constant 1.000000e+00 : f32
    %744 = vector.broadcast %cst_206 : f32 to vector<8x128xf32>
    %745 = arith.addf %744, %743 : vector<8x128xf32>
    %746 = arith.divf %744, %745 : vector<8x128xf32>
    %747 = arith.mulf %738, %717 : vector<8x128xf32>
    %748 = arith.mulf %732, %740 : vector<8x128xf32>
    %749 = arith.addf %747, %748 : vector<8x128xf32>
    %750 = math.tanh %749 : vector<8x128xf32>
    %751 = arith.mulf %746, %750 : vector<8x128xf32>
    %c5_i32_207 = arith.constant 5 : i32
    %c8_i32_208 = arith.constant 8 : i32
    %752 = arith.muli %c5_i32_207, %c8_i32_208 : i32
    %753 = tpu.assume_multiple %752, 8 : i32
    %754 = arith.index_cast %753 : i32 to index
    %c0_209 = arith.constant 0 : index
    %755 = vector.load %arg11[%754, %c0_209] : memref<64x512xf32, #tpu.memory_space<vmem>>, vector<8x512xf32>
    %756 = arith.truncf %751 : vector<8x128xf32> to vector<8x128xbf16>
    %cst_210 = arith.constant dense<0.000000e+00> : vector<8x512xf32>
    %757 = tpu.matmul %756, %590, %cst_210 {dimension_numbers = #tpu.dot_dimension_numbers<[1], [0], [0], [1], [0, 0, 1, 1], [], []>} : vector<8x128xbf16>, vector<128x512xbf16>, vector<8x512xf32> -> vector<8x512xf32>
    %758 = arith.addf %755, %757 : vector<8x512xf32>
    %759 = vector.extract_strided_slice %758 {offsets = [0, 0], sizes = [8, 128], strides = [1, 1]} : vector<8x512xf32> to vector<8x128xf32>
    %760 = arith.negf %759 : vector<8x128xf32>
    %761 = math.exp %760 : vector<8x128xf32>
    %cst_211 = arith.constant 1.000000e+00 : f32
    %762 = vector.broadcast %cst_211 : f32 to vector<8x128xf32>
    %763 = arith.addf %762, %761 : vector<8x128xf32>
    %764 = arith.divf %762, %763 : vector<8x128xf32>
    %765 = vector.extract_strided_slice %758 {offsets = [0, 128], sizes = [8, 128], strides = [1, 1]} : vector<8x512xf32> to vector<8x128xf32>
    %766 = arith.negf %765 : vector<8x128xf32>
    %767 = math.exp %766 : vector<8x128xf32>
    %cst_212 = arith.constant 1.000000e+00 : f32
    %768 = vector.broadcast %cst_212 : f32 to vector<8x128xf32>
    %769 = arith.addf %768, %767 : vector<8x128xf32>
    %770 = arith.divf %768, %769 : vector<8x128xf32>
    %771 = vector.extract_strided_slice %758 {offsets = [0, 256], sizes = [8, 128], strides = [1, 1]} : vector<8x512xf32> to vector<8x128xf32>
    %772 = math.tanh %771 : vector<8x128xf32>
    %773 = vector.extract_strided_slice %758 {offsets = [0, 384], sizes = [8, 128], strides = [1, 1]} : vector<8x512xf32> to vector<8x128xf32>
    %774 = arith.negf %773 : vector<8x128xf32>
    %775 = math.exp %774 : vector<8x128xf32>
    %cst_213 = arith.constant 1.000000e+00 : f32
    %776 = vector.broadcast %cst_213 : f32 to vector<8x128xf32>
    %777 = arith.addf %776, %775 : vector<8x128xf32>
    %778 = arith.divf %776, %777 : vector<8x128xf32>
    %779 = arith.mulf %770, %749 : vector<8x128xf32>
    %780 = arith.mulf %764, %772 : vector<8x128xf32>
    %781 = arith.addf %779, %780 : vector<8x128xf32>
    %782 = math.tanh %781 : vector<8x128xf32>
    %783 = arith.mulf %778, %782 : vector<8x128xf32>
    %c6_i32_214 = arith.constant 6 : i32
    %c8_i32_215 = arith.constant 8 : i32
    %784 = arith.muli %c6_i32_214, %c8_i32_215 : i32
    %785 = tpu.assume_multiple %784, 8 : i32
    %786 = arith.index_cast %785 : i32 to index
    %c0_216 = arith.constant 0 : index
    %787 = vector.load %arg11[%786, %c0_216] : memref<64x512xf32, #tpu.memory_space<vmem>>, vector<8x512xf32>
    %788 = arith.truncf %783 : vector<8x128xf32> to vector<8x128xbf16>
    %cst_217 = arith.constant dense<0.000000e+00> : vector<8x512xf32>
    %789 = tpu.matmul %788, %590, %cst_217 {dimension_numbers = #tpu.dot_dimension_numbers<[1], [0], [0], [1], [0, 0, 1, 1], [], []>} : vector<8x128xbf16>, vector<128x512xbf16>, vector<8x512xf32> -> vector<8x512xf32>
    %790 = arith.addf %787, %789 : vector<8x512xf32>
    %791 = vector.extract_strided_slice %790 {offsets = [0, 0], sizes = [8, 128], strides = [1, 1]} : vector<8x512xf32> to vector<8x128xf32>
    %792 = arith.negf %791 : vector<8x128xf32>
    %793 = math.exp %792 : vector<8x128xf32>
    %cst_218 = arith.constant 1.000000e+00 : f32
    %794 = vector.broadcast %cst_218 : f32 to vector<8x128xf32>
    %795 = arith.addf %794, %793 : vector<8x128xf32>
    %796 = arith.divf %794, %795 : vector<8x128xf32>
    %797 = vector.extract_strided_slice %790 {offsets = [0, 128], sizes = [8, 128], strides = [1, 1]} : vector<8x512xf32> to vector<8x128xf32>
    %798 = arith.negf %797 : vector<8x128xf32>
    %799 = math.exp %798 : vector<8x128xf32>
    %cst_219 = arith.constant 1.000000e+00 : f32
    %800 = vector.broadcast %cst_219 : f32 to vector<8x128xf32>
    %801 = arith.addf %800, %799 : vector<8x128xf32>
    %802 = arith.divf %800, %801 : vector<8x128xf32>
    %803 = vector.extract_strided_slice %790 {offsets = [0, 256], sizes = [8, 128], strides = [1, 1]} : vector<8x512xf32> to vector<8x128xf32>
    %804 = math.tanh %803 : vector<8x128xf32>
    %805 = vector.extract_strided_slice %790 {offsets = [0, 384], sizes = [8, 128], strides = [1, 1]} : vector<8x512xf32> to vector<8x128xf32>
    %806 = arith.negf %805 : vector<8x128xf32>
    %807 = math.exp %806 : vector<8x128xf32>
    %cst_220 = arith.constant 1.000000e+00 : f32
    %808 = vector.broadcast %cst_220 : f32 to vector<8x128xf32>
    %809 = arith.addf %808, %807 : vector<8x128xf32>
    %810 = arith.divf %808, %809 : vector<8x128xf32>
    %811 = arith.mulf %802, %781 : vector<8x128xf32>
    %812 = arith.mulf %796, %804 : vector<8x128xf32>
    %813 = arith.addf %811, %812 : vector<8x128xf32>
    %814 = math.tanh %813 : vector<8x128xf32>
    %815 = arith.mulf %810, %814 : vector<8x128xf32>
    %c7_i32_221 = arith.constant 7 : i32
    %c8_i32_222 = arith.constant 8 : i32
    %816 = arith.muli %c7_i32_221, %c8_i32_222 : i32
    %817 = tpu.assume_multiple %816, 8 : i32
    %818 = arith.index_cast %817 : i32 to index
    %c0_223 = arith.constant 0 : index
    %819 = vector.load %arg11[%818, %c0_223] : memref<64x512xf32, #tpu.memory_space<vmem>>, vector<8x512xf32>
    %820 = arith.truncf %815 : vector<8x128xf32> to vector<8x128xbf16>
    %cst_224 = arith.constant dense<0.000000e+00> : vector<8x512xf32>
    %821 = tpu.matmul %820, %590, %cst_224 {dimension_numbers = #tpu.dot_dimension_numbers<[1], [0], [0], [1], [0, 0, 1, 1], [], []>} : vector<8x128xbf16>, vector<128x512xbf16>, vector<8x512xf32> -> vector<8x512xf32>
    %822 = arith.addf %819, %821 : vector<8x512xf32>
    %823 = vector.extract_strided_slice %822 {offsets = [0, 0], sizes = [8, 128], strides = [1, 1]} : vector<8x512xf32> to vector<8x128xf32>
    %824 = arith.negf %823 : vector<8x128xf32>
    %825 = math.exp %824 : vector<8x128xf32>
    %cst_225 = arith.constant 1.000000e+00 : f32
    %826 = vector.broadcast %cst_225 : f32 to vector<8x128xf32>
    %827 = arith.addf %826, %825 : vector<8x128xf32>
    %828 = arith.divf %826, %827 : vector<8x128xf32>
    %829 = vector.extract_strided_slice %822 {offsets = [0, 128], sizes = [8, 128], strides = [1, 1]} : vector<8x512xf32> to vector<8x128xf32>
    %830 = arith.negf %829 : vector<8x128xf32>
    %831 = math.exp %830 : vector<8x128xf32>
    %cst_226 = arith.constant 1.000000e+00 : f32
    %832 = vector.broadcast %cst_226 : f32 to vector<8x128xf32>
    %833 = arith.addf %832, %831 : vector<8x128xf32>
    %834 = arith.divf %832, %833 : vector<8x128xf32>
    %835 = vector.extract_strided_slice %822 {offsets = [0, 256], sizes = [8, 128], strides = [1, 1]} : vector<8x512xf32> to vector<8x128xf32>
    %836 = math.tanh %835 : vector<8x128xf32>
    %837 = vector.extract_strided_slice %822 {offsets = [0, 384], sizes = [8, 128], strides = [1, 1]} : vector<8x512xf32> to vector<8x128xf32>
    %838 = arith.negf %837 : vector<8x128xf32>
    %839 = math.exp %838 : vector<8x128xf32>
    %cst_227 = arith.constant 1.000000e+00 : f32
    %840 = vector.broadcast %cst_227 : f32 to vector<8x128xf32>
    %841 = arith.addf %840, %839 : vector<8x128xf32>
    %842 = arith.divf %840, %841 : vector<8x128xf32>
    %843 = arith.mulf %834, %813 : vector<8x128xf32>
    %844 = arith.mulf %828, %836 : vector<8x128xf32>
    %845 = arith.addf %843, %844 : vector<8x128xf32>
    %846 = math.tanh %845 : vector<8x128xf32>
    %847 = arith.mulf %842, %846 : vector<8x128xf32>
    %c8_i32_228 = arith.constant 8 : i32
    %c2_229 = arith.constant 2 : index
    %c0_230 = arith.constant 0 : index
    %c0_231 = arith.constant 0 : index
    %848 = vector.load %arg9[%c2_229, %c0_230, %c0_231] : memref<3x8x128xf32, #tpu.memory_space<vmem>>, vector<1x8x128xf32>
    %849 = vector.shape_cast %848 : vector<1x8x128xf32> to vector<8x128xf32>
    %850 = vector.shape_cast %847 : vector<8x128xf32> to vector<1x8x128xf32>
    tpu.vector_store %arg9[%c2_229, %c0_230, %c0_231], %850 {strides = array<i32>} : memref<3x8x128xf32, #tpu.memory_space<vmem>>, vector<1x8x128xf32>,
    %c2_232 = arith.constant 2 : index
    %c0_233 = arith.constant 0 : index
    %c0_234 = arith.constant 0 : index
    %851 = vector.load %arg10[%c2_232, %c0_233, %c0_234] : memref<3x8x128xf32, #tpu.memory_space<vmem>>, vector<1x8x128xf32>
    %852 = vector.shape_cast %851 : vector<1x8x128xf32> to vector<8x128xf32>
    %853 = vector.shape_cast %845 : vector<8x128xf32> to vector<1x8x128xf32>
    tpu.vector_store %arg10[%c2_232, %c0_233, %c0_234], %853 {strides = array<i32>} : memref<3x8x128xf32, #tpu.memory_space<vmem>>, vector<1x8x128xf32>,
    %854 = arith.truncf %847 : vector<8x128xf32> to vector<8x128xbf16>
    %c0_235 = arith.constant 0 : index
    %c0_236 = arith.constant 0 : index
    %855 = vector.load %arg6[%c0_235, %c0_236] : memref<128x128xbf16, #tpu.memory_space<vmem>>, vector<128x128xbf16>
    %cst_237 = arith.constant dense<0.000000e+00> : vector<8x128xf32>
    %856 = tpu.matmul %854, %855, %cst_237 {dimension_numbers = #tpu.dot_dimension_numbers<[1], [0], [0], [1], [0, 0, 1, 1], [], []>} : vector<8x128xbf16>, vector<128x128xbf16>, vector<8x128xf32> -> vector<8x128xf32>
    %c0_238 = arith.constant 0 : index
    %c0_239 = arith.constant 0 : index
    %857 = vector.load %arg7[%c0_238, %c0_239] : memref<1x128xf32, #tpu.memory_space<vmem>>, vector<1x128xf32>
    %858 = vector.broadcast %857 : vector<1x128xf32> to vector<8x128xf32>
    %859 = arith.addf %856, %858 : vector<8x128xf32>
    %c0_240 = arith.constant 0 : index
    %c0_241 = arith.constant 0 : index
    %860 = vector.load %arg8[%c0_240, %c0_241] : memref<8x128xf32, #tpu.memory_space<vmem>>, vector<8x128xf32>
    tpu.vector_store %arg8[%c0_240, %c0_241], %859 {strides = array<i32>} : memref<8x128xf32, #tpu.memory_space<vmem>>, vector<8x128xf32>,
    return
  }
}

</mosaic_0001>

<bundles_post_ra>
// kernel: joke_rnn_forward.1
= control target key start
LH: loop header
LB: loop body
LE: loop exit
PB: predicated region body
PF: predicated region fallthrough
CT: control target
= control target key end

     0   :  { %16 = vsyncpa [#allocation5], 0  ;;  %s9497_s0 = inlined_call_operand.vmem [shape: bf16[64,128], index: 0, kind: input, shape index: {}]   ;;  %s9498_s1 = inlined_call_operand.vmem [shape: bf16[128,512], index: 1, kind: input, shape index: {}]   ;;  %s9499_s2 = inlined_call_operand.vmem [shape: f32[1,512], index: 2, kind: input, shape index: {}]   ;;  %s9500_s3 = inlined_call_operand.vmem [shape: bf16[2,128,512], index: 3, kind: input, shape index: {}]   ;;  %s9501_s4 = inlined_call_operand.vmem [shape: bf16[3,128,512], index: 4, kind: input, shape index: {}]   ;;  %s9502_s5 = inlined_call_operand.vmem [shape: f32[2,1,512], index: 5, kind: input, shape index: {}]   ;;  %s9503_s6 = inlined_call_operand.vmem [shape: bf16[128,128], index: 6, kind: input, shape index: {}]   ;;  %s9504_s7 = inlined_call_operand.vmem [shape: f32[1,128], index: 7, kind: input, shape index: {}]   ;;  %s9505_s8 = inlined_call_operand.hbm [shape: f32[8,128], index: 8, kind: output, shape index: {0}]   ;;  %s9506_s9 = inlined_call_operand.hbm [shape: f32[3,8,128], index: 9, kind: output, shape index: {1}]   ;;  %s9507_s10 = inlined_call_operand.hbm [shape: f32[3,8,128], index: 10, kind: output, shape index: {2}]  }
   0x1   :  { %v5022_v0 = vld [vmem:[%s9498_s1 + $0xe0] sm:$0xf]  ;;  %v5911_v1 = vld [vmem:[%s9498_s1 + $0xec] sm:$0xf0]  ;;  %v5909_v2 = vld [vmem:[%s9498_s1 + $0xe4] sm:$0xf] }
   0x2   :  { %v5023_v3 = vor.u32 %v5911_v1, %v5022_v0  ;;  %v5024_v4 = vld [vmem:[%s9498_s1 + $0xf0] sm:$0xf0]  ;;  %v5030_v5 = vld [vmem:[%s9498_s1 + $0xe8] sm:$0xf]  ;;  %v5912_v6 = vld [vmem:[%s9498_s1 + $0xf4] sm:$0xf0] }
   0x3   :  { %v5027_v7 = vor.u32 %v5909_v2, %v5024_v4  ;;  %v5031_v8 = vor.u32 %v5912_v6, %v5030_v5  ;;  %v5910_v9 = vld [vmem:[%s9498_s1 + $0xec] sm:$0xf]  ;;  %v5032_v10 = vld [vmem:[%s9498_s1 + $0xf8] sm:$0xf0]  ;;  %v5006_v11 = vld [vmem:[%s9498_s1 + $0xc0] sm:$0xf] }
   0x4   :  { %269 = vmatpush.bf16.msra.mxu0 %v5023_v3  ;;  %v5035_v12 = vor.u32 %v5910_v9, %v5032_v10  ;;  %v5907_v13 = vld [vmem:[%s9498_s1 + $0xcc] sm:$0xf0]  ;;  %v5905_v14 = vld [vmem:[%s9498_s1 + $0xc4] sm:$0xf]  ;;  %v5008_v15 = vld [vmem:[%s9498_s1 + $0xd0] sm:$0xf0] }
   0x5   :  { %298 = vmatpush.bf16.msra.mxu1 %v5027_v7  ;;  %327 = vmatpush.bf16.msra.mxu2 %v5031_v8  ;;  %v5007_v16 = vor.u32 %v5907_v13, %v5006_v11  ;;  %v5011_v17 = vor.u32 %v5905_v14, %v5008_v15  ;;  %v5014_v18 = vld [vmem:[%s9498_s1 + $0xc8] sm:$0xf]  ;;  %v5908_v19 = vld [vmem:[%s9498_s1 + $0xd4] sm:$0xf0]  ;;  %v5906_v20 = vld [vmem:[%s9498_s1 + $0xcc] sm:$0xf] }
   0x6   :  { %356 = vmatpush.bf16.msra.mxu3 %v5035_v12  ;;  %v5015_v21 = vor.u32 %v5908_v19, %v5014_v18  ;;  %v5016_v22 = vld [vmem:[%s9498_s1 + $0xd8] sm:$0xf0]  ;;  %v4990_v23 = vld [vmem:[%s9498_s1 + $0xa0] sm:$0xf]  ;;  %v5903_v24 = vld [vmem:[%s9498_s1 + $0xac] sm:$0xf0] }
   0x7   :  { %v5019_v25 = vor.u32 %v5906_v20, %v5016_v22  ;;  %v5901_v26 = vld [vmem:[%s9498_s1 + $0xa4] sm:$0xf]  ;;  %v4992_v27 = vld [vmem:[%s9498_s1 + $0xb0] sm:$0xf0]  ;;  %v4998_v28 = vld [vmem:[%s9498_s1 + $0xa8] sm:$0xf]  ;;  %v4991_v29 = vor.u32 %v5903_v24, %v4990_v23 }
   0x8   :  { %270 = vmatpush.bf16.msra.mxu0 %v5007_v16  ;;  %v5904_v30 = vld [vmem:[%s9498_s1 + $0xb4] sm:$0xf0]  ;;  %v5902_v31 = vld [vmem:[%s9498_s1 + $0xac] sm:$0xf]  ;;  %v5000_v32 = vld [vmem:[%s9498_s1 + $0xb8] sm:$0xf0]  ;;  %v4995_v33 = vor.u32 %v5901_v26, %v4992_v27 }
   0x9   :  { %299 = vmatpush.bf16.msra.mxu1 %v5011_v17  ;;  %328 = vmatpush.bf16.msra.mxu2 %v5015_v21  ;;  %v4999_v34 = vor.u32 %v5904_v30, %v4998_v28  ;;  %v4974_v35 = vld [vmem:[%s9498_s1 + $0x80] sm:$0xf]  ;;  %v5899_v36 = vld [vmem:[%s9498_s1 + $0x8c] sm:$0xf0]  ;;  %v5897_v37 = vld [vmem:[%s9498_s1 + $0x84] sm:$0xf]  ;;  %v5003_v38 = vor.u32 %v5902_v31, %v5000_v32 }
   0xa   :  { %357 = vmatpush.bf16.msra.mxu3 %v5019_v25  ;;  %v4976_v39 = vld [vmem:[%s9498_s1 + $0x90] sm:$0xf0]  ;;  %v4982_v40 = vld [vmem:[%s9498_s1 + $0x88] sm:$0xf]  ;;  %v5900_v41 = vld [vmem:[%s9498_s1 + $0x94] sm:$0xf0]  ;;  %v4975_v44 = vor.u32 %v5899_v36, %v4974_v35 }
   0xb   :  { %v5898_v42 = vld [vmem:[%s9498_s1 + $0x8c] sm:$0xf]  ;;  %v4984_v43 = vld [vmem:[%s9498_s1 + $0x98] sm:$0xf0]  ;;  %v4979_v45 = vor.u32 %v5897_v37, %v4976_v39  ;;  %v4983_v46 = vor.u32 %v5900_v41, %v4982_v40  ;;  %v4958_v47 = vld [vmem:[%s9498_s1 + $0x60] sm:$0xf] }
   0xc   :  { %271 = vmatpush.bf16.msra.mxu0 %v4991_v29  ;;  %v5895_v48 = vld [vmem:[%s9498_s1 + $0x6c] sm:$0xf0]  ;;  %v5893_v49 = vld [vmem:[%s9498_s1 + $0x64] sm:$0xf]  ;;  %v4987_v50 = vor.u32 %v5898_v42, %v4984_v43  ;;  %v4960_v51 = vld [vmem:[%s9498_s1 + $0x70] sm:$0xf0] }
   0xd   :  { %300 = vmatpush.bf16.msra.mxu1 %v4995_v33  ;;  %329 = vmatpush.bf16.msra.mxu2 %v4999_v34  ;;  %v4966_v52 = vld [vmem:[%s9498_s1 + $0x68] sm:$0xf]  ;;  %v5896_v53 = vld [vmem:[%s9498_s1 + $0x74] sm:$0xf0]  ;;  %v5894_v54 = vld [vmem:[%s9498_s1 + $0x6c] sm:$0xf]  ;;  %v4959_v56 = vor.u32 %v5895_v48, %v4958_v47  ;;  %v4963_v57 = vor.u32 %v5893_v49, %v4960_v51 }
   0xe   :  { %358 = vmatpush.bf16.msra.mxu3 %v5003_v38  ;;  %v4968_v55 = vld [vmem:[%s9498_s1 + $0x78] sm:$0xf0]  ;;  %v4967_v58 = vor.u32 %v5896_v53, %v4966_v52  ;;  %v4942_v59 = vld [vmem:[%s9498_s1 + $0x40] sm:$0xf]  ;;  %v5891_v60 = vld [vmem:[%s9498_s1 + $0x4c] sm:$0xf0] }
   0xf   :  { %v5889_v61 = vld [vmem:[%s9498_s1 + $0x44] sm:$0xf]  ;;  %v4971_v62 = vor.u32 %v5894_v54, %v4968_v55  ;;  %v4944_v63 = vld [vmem:[%s9498_s1 + $0x50] sm:$0xf0]  ;;  %v4950_v0 = vld [vmem:[%s9498_s1 + $0x48] sm:$0xf]  ;;  %v4943_v4 = vor.u32 %v5891_v60, %v4942_v59 }
  0x10   :  { %272 = vmatpush.bf16.msra.mxu0 %v4975_v44  ;;  %v5892_v1 = vld [vmem:[%s9498_s1 + $0x54] sm:$0xf0]  ;;  %v5890_v2 = vld [vmem:[%s9498_s1 + $0x4c] sm:$0xf]  ;;  %v4952_v3 = vld [vmem:[%s9498_s1 + $0x58] sm:$0xf0]  ;;  %v4947_v5 = vor.u32 %v5889_v61, %v4944_v63 }
  0x11   :  { %301 = vmatpush.bf16.msra.mxu1 %v4979_v45  ;;  %330 = vmatpush.bf16.msra.mxu2 %v4983_v46  ;;  %v4951_v6 = vor.u32 %v5892_v1, %v4950_v0  ;;  %v4926_v7 = vld [vmem:[%s9498_s1 + $0x20] sm:$0xf]  ;;  %v5887_v8 = vld [vmem:[%s9498_s1 + $0x2c] sm:$0xf0]  ;;  %v5885_v9 = vld [vmem:[%s9498_s1 + $0x24] sm:$0xf]  ;;  %v4955_v10 = vor.u32 %v5890_v2, %v4952_v3 }
  0x12   :  { %359 = vmatpush.bf16.msra.mxu3 %v4987_v50  ;;  %v4928_v11 = vld [vmem:[%s9498_s1 + $0x30] sm:$0xf0]  ;;  %v4934_v12 = vld [vmem:[%s9498_s1 + $0x28] sm:$0xf]  ;;  %v5888_v13 = vld [vmem:[%s9498_s1 + $0x34] sm:$0xf0]  ;;  %v4927_v16 = vor.u32 %v5887_v8, %v4926_v7 }
  0x13   :  { %v5886_v14 = vld [vmem:[%s9498_s1 + $0x2c] sm:$0xf]  ;;  %v4936_v15 = vld [vmem:[%s9498_s1 + $0x38] sm:$0xf0]  ;;  %v4910_v17 = vld [vmem:[%s9498_s1] sm:$0xf]  ;;  %v4931_v18 = vor.u32 %v5885_v9, %v4928_v11  ;;  %v4935_v19 = vor.u32 %v5888_v13, %v4934_v12 }
  0x14   :  { %273 = vmatpush.bf16.msra.mxu0 %v4959_v56  ;;  %v5883_v20 = vld [vmem:[%s9498_s1 + $0xc] sm:$0xf0]  ;;  %v5881_v21 = vld [vmem:[%s9498_s1 + $0x4] sm:$0xf]  ;;  %v4912_v22 = vld [vmem:[%s9498_s1 + $0x10] sm:$0xf0]  ;;  %v4939_v23 = vor.u32 %v5886_v14, %v4936_v15 }
  0x15   :  { %302 = vmatpush.bf16.msra.mxu1 %v4963_v57  ;;  %331 = vmatpush.bf16.msra.mxu2 %v4967_v58  ;;  %v4918_v24 = vld [vmem:[%s9498_s1 + $0x8] sm:$0xf]  ;;  %v5884_v25 = vld [vmem:[%s9498_s1 + $0x14] sm:$0xf0]  ;;  %v5882_v26 = vld [vmem:[%s9498_s1 + $0xc] sm:$0xf]  ;;  %v4911_v30 = vor.u32 %v5883_v20, %v4910_v17  ;;  %v4915_v33 = vor.u32 %v5881_v21, %v4912_v22 }
  0x16   :  { %360 = vmatpush.bf16.msra.mxu3 %v4971_v62  ;;  %v4920_v27 = vld [vmem:[%s9498_s1 + $0x18] sm:$0xf0]  ;;  %v5150_v28 = vld [vmem:[%s9501_s4 + $0xe0] sm:$0xf]  ;;  %v5943_v29 = vld [vmem:[%s9501_s4 + $0xec] sm:$0xf0]  ;;  %v4919_v34 = vor.u32 %v5884_v25, %v4918_v24 }
  0x17   :  { %v5941_v31 = vld [vmem:[%s9501_s4 + $0xe4] sm:$0xf]  ;;  %v5152_v32 = vld [vmem:[%s9501_s4 + $0xf0] sm:$0xf0]  ;;  %v4923_v36 = vor.u32 %v5882_v26, %v4920_v27  ;;  %v6816_v37 = vor.u32 %v5943_v29, %v5150_v28  ;;  %v5942_v38 = vld [vmem:[%s9501_s4 + $0xec] sm:$0xf] }
  0x18   :  { %274 = vmatpush.bf16.msra.mxu0 %v4943_v4  ;;  %v5877_v35 = vld [vmem:[%s9497_s0] sm:$0xff]  ;;  %v5158_v39 = vld [vmem:[%s9501_s4 + $0xe8] sm:$0xf]  ;;  %v5944_v40 = vld [vmem:[%s9501_s4 + $0xf4] sm:$0xf0]  ;;  %v6827_v41 = vor.u32 %v5941_v31, %v5152_v32 }
  0x19   :  { %303 = vmatpush.bf16.msra.mxu1 %v4947_v5  ;;  %332 = vmatpush.bf16.msra.mxu2 %v4951_v6  ;;  %v5160_v42 = vld [vmem:[%s9501_s4 + $0xf8] sm:$0xf0]  ;;  %v5134_v43 = vld [vmem:[%s9501_s4 + $0xc0] sm:$0xf]  ;;  %v5939_v44 = vld [vmem:[%s9501_s4 + $0xcc] sm:$0xf0]  ;;  %v6844_v47 = vor.u32 %v5944_v40, %v5158_v39 }
  0x1a   :  { %361 = vmatpush.bf16.msra.mxu3 %v4955_v10  ;;  %v5937_v45 = vld [vmem:[%s9501_s4 + $0xc4] sm:$0xf]  ;;  %v5136_v46 = vld [vmem:[%s9501_s4 + $0xd0] sm:$0xf0] }
  0x1c   :  { %275 = vmatpush.bf16.msra.mxu0 %v4927_v16 }
  0x1d   :  { %304 = vmatpush.bf16.msra.mxu1 %v4931_v18  ;;  %333 = vmatpush.bf16.msra.mxu2 %v4935_v19 }
  0x1e   :  { %362 = vmatpush.bf16.msra.mxu3 %v4939_v23 }
  0x20   :  { %276 = vmatpush.bf16.msra.mxu0 %v4911_v30 }
  0x21   :  { %305 = vmatpush.bf16.msra.mxu1 %v4915_v33  ;;  %334 = vmatpush.bf16.msra.mxu2 %v4919_v34 }
  0x22   :  { %17 = vsyncpa [#allocation7], 0  ;;  %363 = vmatpush.bf16.msra.mxu3 %v4923_v36  ;;  %v6847_v48 = vor.u32 %v5942_v38, %v5160_v42  ;;  %v6849_v49 = vor.u32 %v5939_v44, %v5134_v43  ;;  %v5938_v50 = vld [vmem:[%s9501_s4 + $0xcc] sm:$0xf]  ;;  %v5142_v51 = vld [vmem:[%s9501_s4 + $0xc8] sm:$0xf]  ;;  %v6861_v53 = vor.u32 %v5937_v45, %v5136_v46 }
  0x23   :  { %v5940_v52 = vld [vmem:[%s9501_s4 + $0xd4] sm:$0xf0]  ;;  %277 = vmatmul.bf16.vlgmr.msra.gmra.mxu0 %v5877_v35  ;;  %v5144_v54 = vld [vmem:[%s9501_s4 + $0xd8] sm:$0xf0]  ;;  %v5118_v55 = vld [vmem:[%s9501_s4 + $0xa0] sm:$0xf] }
  0x24   :  { %616 = vmatpush.bf16.msrb.mxu0 %v6816_v37  ;;  %v5935_v56 = vld [vmem:[%s9501_s4 + $0xac] sm:$0xf0]  ;;  %306 = vmatmul.bf16.vlgmr.msra.gmra.mxu1 %v5877_v35  ;;  %v5933_v57 = vld [vmem:[%s9501_s4 + $0xa4] sm:$0xf]  ;;  %v5120_v58 = vld [vmem:[%s9501_s4 + $0xb0] sm:$0xf0]  ;;  %v6879_v59 = vor.u32 %v5940_v52, %v5142_v51  ;;  %v6883_v60 = vor.u32 %v5938_v50, %v5144_v54 }
  0x25   :  { %629 = vmatpush.bf16.msrb.mxu1 %v6827_v41  ;;  %335 = vmatmul.bf16.vlgmr.msra.gmra.mxu2 %v5877_v35  ;;  %v6885_v61 = vor.u32 %v5935_v56, %v5118_v55  ;;  %v5934_v62 = vld [vmem:[%s9501_s4 + $0xac] sm:$0xf]  ;;  %v5126_v63 = vld [vmem:[%s9501_s4 + $0xa8] sm:$0xf]  ;;  %v5936_v0 = vld [vmem:[%s9501_s4 + $0xb4] sm:$0xf0]  ;;  %v6897_v1 = vor.u32 %v5933_v57, %v5120_v58 }
  0x26   :  { %364 = vmatmul.bf16.vlgmr.msra.gmra.mxu3 %v5877_v35  ;;  %642 = vmatpush.bf16.msrb.mxu2 %v6844_v47  ;;  %v5128_v2 = vld [vmem:[%s9501_s4 + $0xb8] sm:$0xf0]  ;;  %v5102_v3 = vld [vmem:[%s9501_s4 + $0x80] sm:$0xf]  ;;  %v5931_v4 = vld [vmem:[%s9501_s4 + $0x8c] sm:$0xf0]  ;;  %v6915_v7 = vor.u32 %v5936_v0, %v5126_v63 }
  0x27   :  { %655 = vmatpush.bf16.msrb.mxu3 %v6847_v48  ;;  %v5929_v5 = vld [vmem:[%s9501_s4 + $0x84] sm:$0xf]  ;;  %v5104_v6 = vld [vmem:[%s9501_s4 + $0x90] sm:$0xf0]  ;;  %v6919_v8 = vor.u32 %v5934_v62, %v5128_v2  ;;  %v6921_v9 = vor.u32 %v5931_v4, %v5102_v3  ;;  %v5930_v10 = vld [vmem:[%s9501_s4 + $0x8c] sm:$0xf] }
  0x28   :  { %617 = vmatpush.bf16.msrb.mxu0 %v6849_v49  ;;  %v5110_v11 = vld [vmem:[%s9501_s4 + $0x88] sm:$0xf]  ;;  %v5932_v12 = vld [vmem:[%s9501_s4 + $0x94] sm:$0xf0]  ;;  %v6933_v13 = vor.u32 %v5929_v5, %v5104_v6  ;;  %v5112_v14 = vld [vmem:[%s9501_s4 + $0x98] sm:$0xf0] }
  0x29   :  { %630 = vmatpush.bf16.msrb.mxu1 %v6861_v53  ;;  %v5086_v15 = vld [vmem:[%s9501_s4 + $0x60] sm:$0xf]  ;;  %v5927_v16 = vld [vmem:[%s9501_s4 + $0x6c] sm:$0xf0]  ;;  %v5925_v17 = vld [vmem:[%s9501_s4 + $0x64] sm:$0xf]  ;;  %v6954_v20 = vor.u32 %v5932_v12, %v5110_v11  ;;  %v6958_v21 = vor.u32 %v5930_v10, %v5112_v14 }
  0x2a   :  { %643 = vmatpush.bf16.msrb.mxu2 %v6879_v59  ;;  %v5088_v18 = vld [vmem:[%s9501_s4 + $0x70] sm:$0xf0]  ;;  %v5878_v19 = vld [vmem:[%s9497_s0 + $0x8] sm:$0xff]  ;;  %v6960_v22 = vor.u32 %v5927_v16, %v5086_v15  ;;  %v5928_v25 = vld [vmem:[%s9501_s4 + $0x74] sm:$0xf0]  ;;  %s4851_s28 = sshll.u32 %s9506_s9, 4  ;;  %s4852_s28 = int_to_ptr.hbm [resolvable:$true] %s4851_s28 }
  0x2b   :  { %656 = vmatpush.bf16.msrb.mxu3 %v6883_v60  ;;  %v5926_v23 = vld [vmem:[%s9501_s4 + $0x6c] sm:$0xf]  ;;  %v5094_v24 = vld [vmem:[%s9501_s4 + $0x68] sm:$0xf]  ;;  %v6972_v26 = vor.u32 %v5925_v17, %v5088_v18  ;;  %v5096_v27 = vld [vmem:[%s9501_s4 + $0x78] sm:$0xf0] }
  0x2c   :  { %618 = vmatpush.bf16.msrb.mxu0 %v6885_v61  ;;  %v5070_v28 = vld [vmem:[%s9501_s4 + $0x40] sm:$0xf]  ;;  %v5923_v29 = vld [vmem:[%s9501_s4 + $0x4c] sm:$0xf0]  ;;  %v5921_v30 = vld [vmem:[%s9501_s4 + $0x44] sm:$0xf]  ;;  %v6990_v32 = vor.u32 %v5928_v25, %v5094_v24  ;;  %v6994_v33 = vor.u32 %v5926_v23, %v5096_v27 }
  0x2d   :  { %631 = vmatpush.bf16.msrb.mxu1 %v6897_v1  ;;  %v5072_v31 = vld [vmem:[%s9501_s4 + $0x50] sm:$0xf0]  ;;  %v6996_v34 = vor.u32 %v5923_v29, %v5070_v28  ;;  %v5922_v36 = vld [vmem:[%s9501_s4 + $0x4c] sm:$0xf]  ;;  %v5080_v38 = vld [vmem:[%s9501_s4 + $0x58] sm:$0xf0] }
  0x2e   :  { %644 = vmatpush.bf16.msrb.mxu2 %v6915_v7  ;;  %v6999_v35 = vor.u32 %v5921_v30, %v5072_v31  ;;  %v5054_v39 = vld [vmem:[%s9501_s4 + $0x20] sm:$0xf]  ;;  %v5919_v40 = vld [vmem:[%s9501_s4 + $0x2c] sm:$0xf0]  ;;  %v5917_v42 = vld [vmem:[%s9501_s4 + $0x24] sm:$0xf]  ;;  %v7019_v43 = vor.u32 %v5922_v36, %v5080_v38 }
  0x2f   :  { %657 = vmatpush.bf16.msrb.mxu3 %v6919_v8  ;;  %v7021_v44 = vor.u32 %v5919_v40, %v5054_v39  ;;  %v5056_v45 = vld [vmem:[%s9501_s4 + $0x30] sm:$0xf0]  ;;  %v5078_v46 = vld [vmem:[%s9501_s4 + $0x48] sm:$0xf]  ;;  %v5924_v50 = vld [vmem:[%s9501_s4 + $0x54] sm:$0xf0] }
  0x30   :  { %619 = vmatpush.bf16.msrb.mxu0 %v6921_v9  ;;  %v7033_v51 = vor.u32 %v5917_v42, %v5056_v45  ;;  %v7035_v52 = vor.u32 %v5924_v50, %v5078_v46  ;;  %v5918_v54 = vld [vmem:[%s9501_s4 + $0x2c] sm:$0xf]  ;;  %v5064_v55 = vld [vmem:[%s9501_s4 + $0x38] sm:$0xf0]  ;;  %v5038_v56 = vld [vmem:[%s9501_s4] sm:$0xf] }
  0x31   :  { %632 = vmatpush.bf16.msrb.mxu1 %v6933_v13  ;;  %v5915_v57 = vld [vmem:[%s9501_s4 + $0xc] sm:$0xf0]  ;;  %v5913_v58 = vld [vmem:[%s9501_s4 + $0x4] sm:$0xf]  ;;  %v5040_v62 = vld [vmem:[%s9501_s4 + $0x10] sm:$0xf0]  ;;  %v7064_v2 = vor.u32 %v5918_v54, %v5064_v55 }
  0x32   :  { %645 = vmatpush.bf16.msrb.mxu2 %v6954_v20  ;;  %v5062_v63 = vld [vmem:[%s9501_s4 + $0x28] sm:$0xf]  ;;  %v5920_v0 = vld [vmem:[%s9501_s4 + $0x34] sm:$0xf0]  ;;  %v7066_v3 = vor.u32 %v5915_v57, %v5038_v56  ;;  %v7077_v10 = vor.u32 %v5913_v58, %v5040_v62  ;;  %v5914_v11 = vld [vmem:[%s9501_s4 + $0xc] sm:$0xf] }
  0x33   :  { %658 = vmatpush.bf16.msrb.mxu3 %v6958_v21  ;;  %282 = vmatmul.bf16.gmra.mxu0 %v5878_v19  ;;  %v7068_v4 = vor.u32 %v5920_v0, %v5062_v63  ;;  %v5046_v5 = vld [vmem:[%s9501_s4 + $0x8] sm:$0xf]  ;;  %v5916_v6 = vld [vmem:[%s9501_s4 + $0x14] sm:$0xf0]  ;;  %v5048_v12 = vld [vmem:[%s9501_s4 + $0x18] sm:$0xf0] }
  0x34   :  { %620 = vmatpush.bf16.msrb.mxu0 %v6960_v22  ;;  %311 = vmatmul.bf16.gmra.mxu1 %v5878_v19  ;;  %v7086_v14 = vor.u32 %v5916_v6, %v5046_v5  ;;  %v7090_v15 = vor.u32 %v5914_v11, %v5048_v12  ;;  %v5879_v16 = vld [vmem:[%s9497_s0 + $0x10] sm:$0xff]  ;;  %v5880_v17 = vld [vmem:[%s9497_s0 + $0x18] sm:$0xff]  ;;  %v9508_v18 = vmov 0   ;;  %v75_v29 = vld [vmem:[%s9499_s2] sm:$0xf]  ;;  %s6549_s1 = smov [#allocation6]  }
  0x35   :  { %633 = vmatpush.bf16.msrb.mxu1 %v6972_v26  ;;  %340 = vmatmul.bf16.gmra.mxu2 %v5878_v19  ;;  %v7178_v30 = vperm.slane %v75_v29, 0  ;;  %v7182_v36 = vperm.slane %v75_v29, 1  ;;  %v7192_v46 = vperm.slane %v75_v29, 2  ;;  %v7194_v50 = vperm.slane %v75_v29, 3  ;;  %s4849_s29 = sshll.u32 %s6549_s1, 4  ;;  %s6550_s0 = smov 128   ;;  %s4850_s29 = int_to_ptr.vmem [resolvable:$true] %s4849_s29 }
  0x36   :  { %369 = vmatmul.bf16.gmra.mxu3 %v5878_v19  ;;  %646 = vmatpush.bf16.msrb.mxu2 %v6990_v32  ;;  %s6551_s30 = smov 8   ;;  %s6552_s12 = smov [#allocation8]  }
  0x37   :  { %659 = vmatpush.bf16.msrb.mxu3 %v6994_v33  ;;  %s6553_s9 = smov [#allocation4]   ;;  %s4841_s18 = sshll.u32 %s9505_s8, 4  ;;  %s4842_s18 = int_to_ptr.hbm [resolvable:$true] %s4841_s18 }
  0x38   :  { %621 = vmatpush.bf16.msrb.mxu0 %v6996_v34  ;;  %s4839_s15 = sshll.u32 %s6553_s9, 4  ;;  %s4840_s15 = int_to_ptr.vmem [resolvable:$true] %s4839_s15 }
  0x39   :  { %634 = vmatpush.bf16.msrb.mxu1 %v6999_v35 }
  0x3a   :  { %647 = vmatpush.bf16.msrb.mxu2 %v7035_v52 }
  0x3b   :  { %660 = vmatpush.bf16.msrb.mxu3 %v7019_v43 }
  0x3c   :  { %622 = vmatpush.bf16.msrb.mxu0 %v7021_v44 }
  0x3d   :  { %635 = vmatpush.bf16.msrb.mxu1 %v7033_v51 }
  0x3e   :  { %648 = vmatpush.bf16.msrb.mxu2 %v7068_v4 }
  0x3f   :  { %661 = vmatpush.bf16.msrb.mxu3 %v7064_v2 }
  0x40   :  { %623 = vmatpush.bf16.msrb.mxu0 %v7066_v3 }
  0x41   :  { %636 = vmatpush.bf16.msrb.mxu1 %v7077_v10 }
  0x42   :  { %649 = vmatpush.bf16.msrb.mxu2 %v7086_v14 }
  0x43   :  { %662 = vmatpush.bf16.msrb.mxu3 %v7090_v15  ;;  %287 = vmatmul.bf16.gmra.mxu0 %v5879_v16 }
  0x44   :  { %744 = vmatpush.bf16.msra.mxu0 %v6816_v37  ;;  %316 = vmatmul.bf16.gmra.mxu1 %v5879_v16 }
  0x45   :  { %757 = vmatpush.bf16.msra.mxu1 %v6827_v41  ;;  %345 = vmatmul.bf16.gmra.mxu2 %v5879_v16 }
  0x46   :  { %770 = vmatpush.bf16.msra.mxu2 %v6844_v47  ;;  %374 = vmatmul.bf16.gmra.mxu3 %v5879_v16 }
  0x47   :  { %783 = vmatpush.bf16.msra.mxu3 %v6847_v48 }
  0x48   :  { %745 = vmatpush.bf16.msra.mxu0 %v6849_v49 }
  0x49   :  { %758 = vmatpush.bf16.msra.mxu1 %v6861_v53 }
  0x4a   :  { %771 = vmatpush.bf16.msra.mxu2 %v6879_v59 }
  0x4b   :  { %784 = vmatpush.bf16.msra.mxu3 %v6883_v60 }
  0x4c   :  { %746 = vmatpush.bf16.msra.mxu0 %v6885_v61 }
  0x4d   :  { %759 = vmatpush.bf16.msra.mxu1 %v6897_v1 }
  0x4e   :  { %772 = vmatpush.bf16.msra.mxu2 %v6915_v7 }
  0x4f   :  { %785 = vmatpush.bf16.msra.mxu3 %v6919_v8 }
  0x50   :  { %747 = vmatpush.bf16.msra.mxu0 %v6921_v9 }
  0x51   :  { %760 = vmatpush.bf16.msra.mxu1 %v6933_v13 }
  0x52   :  { %773 = vmatpush.bf16.msra.mxu2 %v6954_v20 }
  0x53   :  { %786 = vmatpush.bf16.msra.mxu3 %v6958_v21  ;;  %292 = vmatmul.bf16.gmra.mxu0 %v5880_v17 }
  0x54   :  { %748 = vmatpush.bf16.msra.mxu0 %v6960_v22  ;;  %321 = vmatmul.bf16.gmra.mxu1 %v5880_v17 }
  0x55   :  { %761 = vmatpush.bf16.msra.mxu1 %v6972_v26  ;;  %350 = vmatmul.bf16.gmra.mxu2 %v5880_v17 }
  0x56   :  { %774 = vmatpush.bf16.msra.mxu2 %v6990_v32  ;;  %379 = vmatmul.bf16.gmra.mxu3 %v5880_v17 }
  0x57   :  { %787 = vmatpush.bf16.msra.mxu3 %v6994_v33 }
  0x58   :  { %749 = vmatpush.bf16.msra.mxu0 %v6996_v34 }
  0x59   :  { %762 = vmatpush.bf16.msra.mxu1 %v6999_v35 }
  0x5a   :  { %775 = vmatpush.bf16.msra.mxu2 %v7035_v52 }
  0x5b   :  { %788 = vmatpush.bf16.msra.mxu3 %v7019_v43 }
  0x5c   :  { %750 = vmatpush.bf16.msra.mxu0 %v7021_v44 }
  0x5d   :  { %763 = vmatpush.bf16.msra.mxu1 %v7033_v51 }
  0x5e   :  { %776 = vmatpush.bf16.msra.mxu2 %v7068_v4 }
  0x5f   :  { %789 = vmatpush.bf16.msra.mxu3 %v7064_v2 }
  0x60   :  { %751 = vmatpush.bf16.msra.mxu0 %v7066_v3 }
  0x61   :  { %764 = vmatpush.bf16.msra.mxu1 %v7077_v10 }
  0x62   :  { %777 = vmatpush.bf16.msra.mxu2 %v7086_v14 }
  0x63   :  { %790 = vmatpush.bf16.msra.mxu3 %v7090_v15  ;;  %624 = vmatmul.bf16.vlgmr.msrb.gmra.mxu0 %v9508_v18 }
  0x64   :  { %637 = vmatmul.bf16.vlgmr.msrb.gmra.mxu1 %v9508_v18  ;;  %873 = vmatpush.bf16.msrb.mxu0 %v6816_v37 }
  0x65   :  { %650 = vmatmul.bf16.vlgmr.msrb.gmra.mxu2 %v9508_v18  ;;  %886 = vmatpush.bf16.msrb.mxu1 %v6827_v41 }
  0x66   :  { %663 = vmatmul.bf16.vlgmr.msrb.gmra.mxu3 %v9508_v18  ;;  %899 = vmatpush.bf16.msrb.mxu2 %v6844_v47 }
  0x67   :  { %912 = vmatpush.bf16.msrb.mxu3 %v6847_v48 }
  0x68   :  { %874 = vmatpush.bf16.msrb.mxu0 %v6849_v49 }
  0x69   :  { %887 = vmatpush.bf16.msrb.mxu1 %v6861_v53 }
  0x6a   :  { %900 = vmatpush.bf16.msrb.mxu2 %v6879_v59 }
  0x6b   :  { %913 = vmatpush.bf16.msrb.mxu3 %v6883_v60 }
  0x6c   :  { %875 = vmatpush.bf16.msrb.mxu0 %v6885_v61 }
  0x6d   :  { %888 = vmatpush.bf16.msrb.mxu1 %v6897_v1 }
  0x6e   :  { %901 = vmatpush.bf16.msrb.mxu2 %v6915_v7 }
  0x6f   :  { %914 = vmatpush.bf16.msrb.mxu3 %v6919_v8 }
  0x70   :  { %876 = vmatpush.bf16.msrb.mxu0 %v6921_v9 }
  0x71   :  { %889 = vmatpush.bf16.msrb.mxu1 %v6933_v13 }
  0x72   :  { %902 = vmatpush.bf16.msrb.mxu2 %v6954_v20 }
  0x73   :  { %915 = vmatpush.bf16.msrb.mxu3 %v6958_v21 }
  0x74   :  { %877 = vmatpush.bf16.msrb.mxu0 %v6960_v22 }
  0x75   :  { %890 = vmatpush.bf16.msrb.mxu1 %v6972_v26 }
  0x76   :  { %903 = vmatpush.bf16.msrb.mxu2 %v6990_v32 }
  0x77   :  { %916 = vmatpush.bf16.msrb.mxu3 %v6994_v33 }
  0x78   :  { %878 = vmatpush.bf16.msrb.mxu0 %v6996_v34 }
  0x79   :  { %891 = vmatpush.bf16.msrb.mxu1 %v6999_v35 }
  0x7a   :  { %904 = vmatpush.bf16.msrb.mxu2 %v7035_v52 }
  0x7b   :  { %917 = vmatpush.bf16.msrb.mxu3 %v7019_v43 }
  0x7c   :  { %879 = vmatpush.bf16.msrb.mxu0 %v7021_v44 }
  0x7d   :  { %892 = vmatpush.bf16.msrb.mxu1 %v7033_v51 }
  0x7e   :  { %905 = vmatpush.bf16.msrb.mxu2 %v7068_v4 }
  0x7f   :  { %918 = vmatpush.bf16.msrb.mxu3 %v7064_v2 }
  0x80   :  { %880 = vmatpush.bf16.msrb.mxu0 %v7066_v3 }
  0x81   :  { %893 = vmatpush.bf16.msrb.mxu1 %v7077_v10 }
  0x82   :  { %906 = vmatpush.bf16.msrb.mxu2 %v7086_v14 }
  0x83   :  { %919 = vmatpush.bf16.msrb.mxu3 %v7090_v15 }
  0xa0   :  { %v278_v19 = vpop.f32.mrf.mxu0 }
  0xa1   :  { %v307_v23 = vpop.f32.mrf.mxu1 }
  0xa8   :  { %v7169_v24 = vpop.f32.mrf.mxu2  ;;  %v7171_v27 = vpop.f32.mrf.mxu0 }
  0xa9   :  { %v365_v25 = vpop.f32.mrf.mxu3  ;;  %v7173_v28 = vpop.f32.mrf.mxu1 }
  0xb0   :  { %v7180_v31 = vpop.f32.mrf.mxu2  ;;  %v283_v39 = vpop.f32.mrf.mxu0 }
  0xb1   :  { %9519 = vst [vmem:[#allocation11_spill] sm:$0xff] %v7180_v31  ;;  %v7184_v38 = vpop.f32.mrf.mxu3  ;;  %v7187_v40 = vadd.f32 %v283_v39, %v7178_v30  ;;  %v312_v42 = vpop.f32.mrf.mxu1 }
  0xb2   :  { %v7190_v45 = vadd.f32 %v312_v42, %v7182_v36 }
  0xb3   :  { %9520 = vst [vmem:[#allocation12_spill] sm:$0xff] %v7187_v40 }
  0xb4   :  { %9521 = vst [vmem:[#allocation13_spill] sm:$0xff] %v7190_v45 }
  0xb8   :  { %v341_v54 = vpop.f32.mrf.mxu2  ;;  %v7199_v57 = vpop.f32.mrf.mxu0 }
  0xb9   :  { %v7197_v55 = vadd.f32 %v341_v54, %v7192_v46  ;;  %v370_v56 = vpop.f32.mrf.mxu3  ;;  %9523 = vst [vmem:[#allocation15_spill] sm:$0xff] %v7199_v57  ;;  %v7204_v62 = vpop.f32.mrf.mxu1 }
  0xba   :  { %v7202_v58 = vadd.f32 %v370_v56, %v7194_v50  ;;  %9525 = vst [vmem:[#allocation17_spill] sm:$0xff] %v7204_v62 }
  0xbb   :  { %9522 = vst [vmem:[#allocation14_spill] sm:$0xff] %v7197_v55 }
  0xbc   :  { %9524 = vst [vmem:[#allocation16_spill] sm:$0xff] %v7202_v58 }
  0xc0   :  { %v7206_v63 = vpop.f32.mrf.mxu2  ;;  %v288_v5 = vpop.f32.mrf.mxu0 }
  0xc1   :  { %9526 = vst [vmem:[#allocation18_spill] sm:$0xff] %v7206_v63  ;;  %v7208_v0 = vpop.f32.mrf.mxu3  ;;  %v7211_v6 = vadd.f32 %v288_v5, %v7178_v30  ;;  %v317_v11 = vpop.f32.mrf.mxu1 }
  0xc2   :  { %9527 = vst [vmem:[#allocation19_spill] sm:$0xff] %v7208_v0  ;;  %v7214_v12 = vadd.f32 %v317_v11, %v7182_v36 }
  0xc3   :  { %9528 = vst [vmem:[#allocation20_spill] sm:$0xff] %v7211_v6 }
  0xc4   :  { %9529 = vst [vmem:[#allocation21_spill] sm:$0xff] %v7214_v12 }
  0xc8   :  { %v346_v16 = vpop.f32.mrf.mxu2  ;;  %v7219_v39 = vpop.f32.mrf.mxu0 }
  0xc9   :  { %v7217_v17 = vadd.f32 %v346_v16, %v7192_v46  ;;  %v375_v29 = vpop.f32.mrf.mxu3  ;;  %9531 = vst [vmem:[#allocation23_spill] sm:$0xff] %v7219_v39  ;;  %v7224_v54 = vpop.f32.mrf.mxu1 }
  0xca   :  { %v7222_v42 = vadd.f32 %v375_v29, %v7194_v50  ;;  %9533 = vst [vmem:[#allocation25_spill] sm:$0xff] %v7224_v54 }
  0xcb   :  { %9530 = vst [vmem:[#allocation22_spill] sm:$0xff] %v7217_v17 }
  0xcc   :  { %9532 = vst [vmem:[#allocation24_spill] sm:$0xff] %v7222_v42 }
  0xd0   :  { %v7226_v56 = vpop.f32.mrf.mxu2  ;;  %v293_v18 = vpop.f32.mrf.mxu0 }
  0xd1   :  { %9534 = vst [vmem:[#allocation26_spill] sm:$0xff] %v7226_v56  ;;  %v7228_v5 = vpop.f32.mrf.mxu3  ;;  %v7231_v11 = vadd.f32 %v293_v18, %v7178_v30  ;;  %v322_v12 = vpop.f32.mrf.mxu1 }
  0xd2   :  { %9535 = vst [vmem:[#allocation27_spill] sm:$0xff] %v7228_v5  ;;  %v7234_v16 = vadd.f32 %v322_v12, %v7182_v36  ;;  %v279_v5 = vadd.f32 %v278_v19, %v7178_v30 }
  0xd3   :  { %9536 = vst [vmem:[#allocation28_spill] sm:$0xff] %v7231_v11  ;;  %v308_v11 = vadd.f32 %v307_v23, %v7182_v36 }
  0xd4   :  { %9537 = vst [vmem:[#allocation29_spill] sm:$0xff] %v7234_v16 }
  0xd8   :  { %v351_v17 = vpop.f32.mrf.mxu2  ;;  %v7239_v42 = vpop.f32.mrf.mxu0 }
  0xd9   :  { %v7237_v39 = vadd.f32 %v351_v17, %v7192_v46  ;;  %v380_v29 = vpop.f32.mrf.mxu3  ;;  %9539 = vst [vmem:[#allocation31_spill] sm:$0xff] %v7239_v42  ;;  %v7244_v56 = vpop.f32.mrf.mxu1 }
  0xda   :  { %v7242_v54 = vadd.f32 %v380_v29, %v7194_v50  ;;  %9541 = vst [vmem:[#allocation33_spill] sm:$0xff] %v7244_v56  ;;  %v366_v29 = vadd.f32 %v365_v25, %v7194_v50 }
  0xdb   :  { %9538 = vst [vmem:[#allocation30_spill] sm:$0xff] %v7237_v39 }
  0xdc   :  { %9540 = vst [vmem:[#allocation32_spill] sm:$0xff] %v7242_v54 }
  0xe0   :  { %v7247_v18 = vpop.f32.mrf.mxu2  ;;  %v625_v16 = vpop.f32.mrf.mxu0 }
  0xe1   :  { %9542 = vst [vmem:[#allocation34_spill] sm:$0xff] %v7247_v18  ;;  %v7250_v12 = vpop.f32.mrf.mxu3  ;;  %v668_v6 = vadd.f32 %v625_v16, %v279_v5  ;;  %v638_v17 = vpop.f32.mrf.mxu1 }
  0xe2   :  { %9543 = vst [vmem:[#allocation35_spill] sm:$0xff] %v7250_v12  ;;  %v669_v39 = vadd.f32 %v638_v17, %v308_v11 }
  0xe3   :  { %v5164_v63 = vmul.f32 -1.442695, %v668_v6 }
  0xe4   :  { %v5165_v0 = vmul.f32 -1.442695, %v669_v39 }
  0xe5   :  { %6088 = vpow2.f32 %v5164_v63  ;;  %v337_v63 = vadd.f32 %v7169_v24, %v7192_v46 }
  0xe6   :  { %6090 = vpow2.f32 %v5165_v0 }
  0xe8   :  { %v651_v42 = vpop.f32.mrf.mxu2  ;;  %v627_v54 = vpop.f32.mrf.mxu0 }
  0xe9   :  { %v664_v56 = vpop.f32.mrf.mxu3  ;;  %v640_v62 = vpop.f32.mrf.mxu1  ;;  %v670_v39 = vadd.f32 %v651_v42, %v337_v63 }
  0xea   :  { %v671_v19 = vadd.f32 %v664_v56, %v366_v29 }
  0xeb   :  { %v6089_v18 = vpop.eup %6088 }
  0xec   :  { %v5166_v57 = vmul.f32 -1.442695, %v671_v19  ;;  %v6091_v23 = vpop.eup %6090  ;;  %v675_v55 = vadd.f32 1.0, %v6089_v18 }
  0xed   :  { %v694_v12 = vadd.f32 1.0, %v6091_v23 }
  0xee   :  { %6092 = vpow2.f32 %v5166_v57  ;;  %v687_v18 = vand.u32 2147483648, %v675_v55  ;;  %v685_v19 = vand.u32 2147483647, %v675_v55  ;;  %vm681_vm2 = vweird.f32 %v675_v55 }
  0xef   :  { %6094 = vrcp.f32 %v675_v55  ;;  %v706_v57 = vand.u32 2147483648, %v694_v12  ;;  %vm700_vm3 = vweird.f32 %v694_v12 }
  0xf0   :  { %6096 = vrcp.f32 %v694_v12  ;;  %v653_v5 = vpop.f32.mrf.mxu2  ;;  %v688_v42 = vor.u32 1.1754944e-38, %v687_v18  ;;  %vm686_vm5 = vcmp.eq.f32.partialorder %v685_v19, 8.507059e+37 }
  0xf1   :  { %v666_v6 = vpop.f32.mrf.mxu3  ;;  %v704_v5 = vand.u32 2147483647, %v694_v12 }
  0xf3   :  { %vm705_vm7 = vcmp.eq.f32.partialorder %v704_v5, 8.507059e+37 }
  0xf4   :  { %v6093_v0 = vpop.eup %6092 }
  0xf5   :  { %v6095_v25 = vpop.eup %6094  ;;  %v714_v11 = vadd.f32 1.0, %v6093_v0  ;;  %v707_v0 = vor.u32 1.1754944e-38, %v706_v57 }
  0xf6   :  { %v6097_v54 = vpop.eup %6096  ;;  %v677_v56 = vmul.f32 %v6095_v25, %v675_v55  ;;  %vm682_vm0 = vweird.f32 %v6095_v25 }
  0xf7   :  { %v696_v62 = vmul.f32 %v6097_v54, %v694_v12  ;;  %6098 = vrcp.f32 %v714_v11  ;;  %vm701_vm1 = vweird.f32 %v6097_v54  ;;  %vm683_vm4 = vmor %vm681_vm2, %vm682_vm0  ;;  %v726_v18 = vand.u32 2147483648, %v714_v11 }
  0xf8   :  { %v678_v16 = vsub.f32 1.0, %v677_v56  ;;  %6100 = vtanh.f32 %v670_v39  ;;  %vm702_vm6 = vmor %vm700_vm3, %vm701_vm1  ;;  %vm720_vm9 = vweird.f32 %v714_v11 }
  0xf9   :  { %v697_v17 = vsub.f32 1.0, %v696_v62  ;;  %v727_v19 = vor.u32 1.1754944e-38, %v726_v18 }
  0xfa   :  { %v679_v29 = vmul.f32 %v6095_v25, %v678_v16 }
  0xfb   :  { %v698_v23 = vmul.f32 %v6097_v54, %v697_v17 }
  0xfc   :  { %v680_v24 = vadd.f32 %v6095_v25, %v679_v29 }
  0xfd   :  { %v6099_v6 = vpop.eup %6098  ;;  %v699_v63 = vadd.f32 %v6097_v54, %v698_v23 }
  0xfe   :  { %v684_v58 = vsel %vm683_vm4, %v6095_v25, %v680_v24  ;;  %v716_v56 = vmul.f32 %v6099_v6, %v714_v11  ;;  %v6101_v39 = vpop.eup %6100  ;;  %vm721_vm8 = vweird.f32 %v6099_v6  ;;  %v724_v25 = vand.u32 2147483647, %v714_v11 }
  0xff   :  { %v689_v62 = vsel %vm686_vm5, %v688_v42, %v684_v58  ;;  %v703_v16 = vsel %vm702_vm6, %v6097_v54, %v699_v63  ;;  %vm722_vm10 = vmor %vm720_vm9, %vm721_vm8 }
 0x100   :  { %v708_v45 = vsel %vm705_vm7, %v707_v0, %v703_v16  ;;  %v731_v17 = vmul.f32 %v6101_v39, %v689_v62  ;;  %v717_v40 = vsub.f32 1.0, %v716_v56  ;;  %vm725_vm11 = vcmp.eq.f32.partialorder %v724_v25, 8.507059e+37 }
 0x101   :  { %v730_v31 = vmul.f32 0.0, %v708_v45  ;;  %v310_v45 = vadd.f32 %v7173_v28, %v7182_v36  ;;  %v368_v0 = vadd.f32 %v7184_v38, %v7194_v50 }
 0x102   :  { %v718_v29 = vmul.f32 %v6099_v6, %v717_v40 }
 0x103   :  { %v7255_v55 = vadd.f32 %v731_v17, %v730_v31  ;;  %v281_v31 = vadd.f32 %v7171_v27, %v7178_v30 }
 0x104   :  { %v719_v12 = vadd.f32 %v6099_v6, %v718_v29 }
 0x105   :  { %6102 = vtanh.f32 %v7255_v55 }
 0x106   :  { %v723_v57 = vsel %vm722_vm10, %v6099_v6, %v719_v12 }
 0x107   :  { %v728_v54 = vsel %vm725_vm11, %v727_v19, %v723_v57 }
 0x10b   :  { %v6103_v58 = vpop.eup %6102 }
 0x10c   :  { %v7258_v23 = vmul.f32 %v6103_v58, %v728_v54  ;;  %v9544_v58 = vld [vmem:[#allocation11_spill] sm:$0xff] }
 0x10d   :  { %v339_v38 = vadd.f32 %v9544_v58, %v7192_v46 }
 0x10e   :  { %v743_v40 = vpack.c.bf16 %v7258_v23, %v7258_v23 }
 0x110   :  { %752 = vmatmul.bf16.vlgmr.msra.gmra.mxu0 %v743_v40  ;;  %765 = vmatmul.bf16.vlgmr.msra.gmra.mxu1 %v743_v40 }
 0x111   :  { %778 = vmatmul.bf16.vlgmr.msra.gmra.mxu2 %v743_v40  ;;  %791 = vmatmul.bf16.vlgmr.msra.gmra.mxu3 %v743_v40 }
 0x112   :  { %1002 = vmatpush.bf16.msra.mxu0 %v6816_v37  ;;  %1015 = vmatpush.bf16.msra.mxu1 %v6827_v41 }
 0x113   :  { %1028 = vmatpush.bf16.msra.mxu2 %v6844_v47  ;;  %1041 = vmatpush.bf16.msra.mxu3 %v6847_v48 }
 0x116   :  { %1003 = vmatpush.bf16.msra.mxu0 %v6849_v49  ;;  %1016 = vmatpush.bf16.msra.mxu1 %v6861_v53 }
 0x117   :  { %1029 = vmatpush.bf16.msra.mxu2 %v6879_v59  ;;  %1042 = vmatpush.bf16.msra.mxu3 %v6883_v60 }
 0x11a   :  { %1004 = vmatpush.bf16.msra.mxu0 %v6885_v61  ;;  %1017 = vmatpush.bf16.msra.mxu1 %v6897_v1 }
 0x11b   :  { %1030 = vmatpush.bf16.msra.mxu2 %v6915_v7  ;;  %1043 = vmatpush.bf16.msra.mxu3 %v6919_v8 }
 0x11e   :  { %1005 = vmatpush.bf16.msra.mxu0 %v6921_v9  ;;  %1018 = vmatpush.bf16.msra.mxu1 %v6933_v13 }
 0x11f   :  { %1031 = vmatpush.bf16.msra.mxu2 %v6954_v20  ;;  %1044 = vmatpush.bf16.msra.mxu3 %v6958_v21 }
 0x122   :  { %1006 = vmatpush.bf16.msra.mxu0 %v6960_v22  ;;  %1019 = vmatpush.bf16.msra.mxu1 %v6972_v26 }
 0x123   :  { %1032 = vmatpush.bf16.msra.mxu2 %v6990_v32  ;;  %1045 = vmatpush.bf16.msra.mxu3 %v6994_v33 }
 0x126   :  { %1007 = vmatpush.bf16.msra.mxu0 %v6996_v34  ;;  %1020 = vmatpush.bf16.msra.mxu1 %v6999_v35 }
 0x127   :  { %1033 = vmatpush.bf16.msra.mxu2 %v7035_v52  ;;  %1046 = vmatpush.bf16.msra.mxu3 %v7019_v43 }
 0x12a   :  { %1008 = vmatpush.bf16.msra.mxu0 %v7021_v44  ;;  %1021 = vmatpush.bf16.msra.mxu1 %v7033_v51 }
 0x12b   :  { %1034 = vmatpush.bf16.msra.mxu2 %v7068_v4  ;;  %1047 = vmatpush.bf16.msra.mxu3 %v7064_v2 }
 0x12e   :  { %1009 = vmatpush.bf16.msra.mxu0 %v7066_v3  ;;  %1022 = vmatpush.bf16.msra.mxu1 %v7077_v10 }
 0x12f   :  { %1035 = vmatpush.bf16.msra.mxu2 %v7086_v14  ;;  %1048 = vmatpush.bf16.msra.mxu3 %v7090_v15 }
 0x18d   :  { %v753_v11 = vpop.f32.mrf.mxu0  ;;  %v766_v5 = vpop.f32.mrf.mxu1 }
 0x18e   :  { %v796_v24 = vadd.f32 %v753_v11, %v281_v31  ;;  %v797_v6 = vadd.f32 %v766_v5, %v310_v45 }
 0x190   :  { %v5167_v42 = vmul.f32 -1.442695, %v796_v24  ;;  %v5168_v63 = vmul.f32 -1.442695, %v797_v6 }
 0x192   :  { %6104 = vpow2.f32 %v5167_v42 }
 0x193   :  { %6106 = vpow2.f32 %v5168_v63 }
 0x194   :  { %v779_v56 = vpop.f32.mrf.mxu2  ;;  %v792_v39 = vpop.f32.mrf.mxu3 }
 0x195   :  { %v799_v62 = vadd.f32 %v792_v39, %v368_v0  ;;  %v755_v16 = vpop.f32.mrf.mxu0  ;;  %v768_v17 = vpop.f32.mrf.mxu1  ;;  %v798_v31 = vadd.f32 %v779_v56, %v339_v38 }
 0x197   :  { %v5169_v27 = vmul.f32 -1.442695, %v799_v62 }
 0x198   :  { %v6105_v29 = vpop.eup %6104 }
 0x199   :  { %v6107_v12 = vpop.eup %6106  ;;  %v803_v28 = vadd.f32 1.0, %v6105_v29  ;;  %6108 = vpow2.f32 %v5169_v27 }
 0x19a   :  { %v822_v18 = vadd.f32 1.0, %v6107_v12 }
 0x19b   :  { %6110 = vrcp.f32 %v803_v28  ;;  %v815_v42 = vand.u32 2147483648, %v803_v28  ;;  %v813_v39 = vand.u32 2147483647, %v803_v28  ;;  %vm809_vm14 = vweird.f32 %v803_v28 }
 0x19c   :  { %6112 = vrcp.f32 %v822_v18  ;;  %v781_v25 = vpop.f32.mrf.mxu2  ;;  %v794_v57 = vpop.f32.mrf.mxu3  ;;  %v834_v63 = vand.u32 2147483648, %v822_v18  ;;  %v832_v16 = vand.u32 2147483647, %v822_v18  ;;  %vm828_vm15 = vweird.f32 %v822_v18 }
 0x19d   :  { %v816_v56 = vor.u32 1.1754944e-38, %v815_v42  ;;  %vm814_vm2 = vcmp.eq.f32.partialorder %v813_v39, 8.507059e+37 }
 0x19e   :  { %v835_v25 = vor.u32 1.1754944e-38, %v834_v63  ;;  %vm833_vm3 = vcmp.eq.f32.partialorder %v832_v16, 8.507059e+37 }
 0x19f   :  { %v6109_v19 = vpop.eup %6108 }
 0x1a0   :  { %v842_v54 = vadd.f32 1.0, %v6109_v19 }
 0x1a1   :  { %v6111_v40 = vpop.eup %6110 }
 0x1a2   :  { %v6113_v45 = vpop.eup %6112  ;;  %v805_v11 = vmul.f32 %v6111_v40, %v803_v28  ;;  %6114 = vrcp.f32 %v842_v54  ;;  %vm810_vm12 = vweird.f32 %v6111_v40  ;;  %v854_v42 = vand.u32 2147483648, %v842_v54 }
 0x1a3   :  { %v824_v5 = vmul.f32 %v6113_v45, %v822_v18  ;;  %6116 = vtanh.f32 %v798_v31  ;;  %vm829_vm13 = vweird.f32 %v6113_v45  ;;  %vm811_vm0 = vmor %vm809_vm14, %vm810_vm12  ;;  %vm848_vm5 = vweird.f32 %v842_v54 }
 0x1a4   :  { %v806_v24 = vsub.f32 1.0, %v805_v11  ;;  %vm830_vm1 = vmor %vm828_vm15, %vm829_vm13 }
 0x1a5   :  { %v825_v6 = vsub.f32 1.0, %v824_v5 }
 0x1a6   :  { %v807_v0 = vmul.f32 %v6111_v40, %v806_v24 }
 0x1a7   :  { %v826_v62 = vmul.f32 %v6113_v45, %v825_v6 }
 0x1a8   :  { %v6115_v17 = vpop.eup %6114  ;;  %v808_v27 = vadd.f32 %v6111_v40, %v807_v0  ;;  %v855_v0 = vor.u32 1.1754944e-38, %v854_v42 }
 0x1a9   :  { %v827_v29 = vadd.f32 %v6113_v45, %v826_v62  ;;  %v844_v12 = vmul.f32 %v6115_v17, %v842_v54  ;;  %v6117_v19 = vpop.eup %6116  ;;  %vm849_vm4 = vweird.f32 %v6115_v17 }
 0x1aa   :  { %v812_v57 = vsel %vm811_vm0, %v6111_v40, %v808_v27  ;;  %v852_v40 = vand.u32 2147483647, %v842_v54  ;;  %vm850_vm6 = vmor %vm848_vm5, %vm849_vm4 }
 0x1ab   :  { %v817_v58 = vsel %vm814_vm2, %v816_v56, %v812_v57  ;;  %v831_v38 = vsel %vm830_vm1, %v6113_v45, %v827_v29  ;;  %v845_v31 = vsub.f32 1.0, %v844_v12  ;;  %v9546_v56 = vld [vmem:[#allocation13_spill] sm:$0xff] }
 0x1ac   :  { %v836_v11 = vsel %vm833_vm3, %v835_v25, %v831_v38  ;;  %v859_v5 = vmul.f32 %v6117_v19, %v817_v58  ;;  %vm853_vm7 = vcmp.eq.f32.partialorder %v852_v40, 8.507059e+37  ;;  %v9547_v58 = vld [vmem:[#allocation16_spill] sm:$0xff] }
 0x1ad   :  { %v858_v24 = vmul.f32 %v836_v11, %v7255_v55  ;;  %v846_v6 = vmul.f32 %v6115_v17, %v845_v31 }
 0x1af   :  { %v7303_v28 = vadd.f32 %v859_v5, %v858_v24  ;;  %v847_v18 = vadd.f32 %v6115_v17, %v846_v6 }
 0x1b1   :  { %6118 = vtanh.f32 %v7303_v28  ;;  %v851_v63 = vsel %vm850_vm6, %v6115_v17, %v847_v18  ;;  %v9545_v17 = vld [vmem:[#allocation12_spill] sm:$0xff] }
 0x1b2   :  { %v856_v39 = vsel %vm853_vm7, %v855_v0, %v851_v63 }
 0x1b7   :  { %v6119_v45 = vpop.eup %6118 }
 0x1b8   :  { %v7306_v62 = vmul.f32 %v6119_v45, %v856_v39 }
 0x1ba   :  { %v872_v55 = vpack.c.bf16 %v7306_v62, %v7306_v62 }
 0x1bc   :  { %881 = vmatmul.bf16.vlgmr.msrb.gmra.mxu0 %v872_v55  ;;  %894 = vmatmul.bf16.vlgmr.msrb.gmra.mxu1 %v872_v55 }
 0x1bd   :  { %907 = vmatmul.bf16.vlgmr.msrb.gmra.mxu2 %v872_v55  ;;  %920 = vmatmul.bf16.vlgmr.msrb.gmra.mxu3 %v872_v55  ;;  %v9548_v55 = vld [vmem:[#allocation14_spill] sm:$0xff] }
 0x1be   :  { %1131 = vmatpush.bf16.msrb.mxu0 %v6816_v37  ;;  %1144 = vmatpush.bf16.msrb.mxu1 %v6827_v41 }
 0x1bf   :  { %1157 = vmatpush.bf16.msrb.mxu2 %v6844_v47  ;;  %1170 = vmatpush.bf16.msrb.mxu3 %v6847_v48 }
 0x1c2   :  { %1132 = vmatpush.bf16.msrb.mxu0 %v6849_v49  ;;  %1145 = vmatpush.bf16.msrb.mxu1 %v6861_v53 }
 0x1c3   :  { %1158 = vmatpush.bf16.msrb.mxu2 %v6879_v59  ;;  %1171 = vmatpush.bf16.msrb.mxu3 %v6883_v60 }
 0x1c6   :  { %1133 = vmatpush.bf16.msrb.mxu0 %v6885_v61  ;;  %1146 = vmatpush.bf16.msrb.mxu1 %v6897_v1 }
 0x1c7   :  { %1159 = vmatpush.bf16.msrb.mxu2 %v6915_v7  ;;  %1172 = vmatpush.bf16.msrb.mxu3 %v6919_v8 }
 0x1ca   :  { %1134 = vmatpush.bf16.msrb.mxu0 %v6921_v9  ;;  %1147 = vmatpush.bf16.msrb.mxu1 %v6933_v13 }
 0x1cb   :  { %1160 = vmatpush.bf16.msrb.mxu2 %v6954_v20  ;;  %1173 = vmatpush.bf16.msrb.mxu3 %v6958_v21 }
 0x1ce   :  { %1135 = vmatpush.bf16.msrb.mxu0 %v6960_v22  ;;  %1148 = vmatpush.bf16.msrb.mxu1 %v6972_v26 }
 0x1cf   :  { %1161 = vmatpush.bf16.msrb.mxu2 %v6990_v32  ;;  %1174 = vmatpush.bf16.msrb.mxu3 %v6994_v33 }
 0x1d2   :  { %1136 = vmatpush.bf16.msrb.mxu0 %v6996_v34  ;;  %1149 = vmatpush.bf16.msrb.mxu1 %v6999_v35 }
 0x1d3   :  { %1162 = vmatpush.bf16.msrb.mxu2 %v7035_v52  ;;  %1175 = vmatpush.bf16.msrb.mxu3 %v7019_v43 }
 0x1d6   :  { %1137 = vmatpush.bf16.msrb.mxu0 %v7021_v44  ;;  %1150 = vmatpush.bf16.msrb.mxu1 %v7033_v51 }
 0x1d7   :  { %1163 = vmatpush.bf16.msrb.mxu2 %v7068_v4  ;;  %1176 = vmatpush.bf16.msrb.mxu3 %v7064_v2 }
 0x1da   :  { %1138 = vmatpush.bf16.msrb.mxu0 %v7066_v3  ;;  %1151 = vmatpush.bf16.msrb.mxu1 %v7077_v10 }
 0x1db   :  { %1164 = vmatpush.bf16.msrb.mxu2 %v7086_v14  ;;  %1177 = vmatpush.bf16.msrb.mxu3 %v7090_v15 }
 0x239   :  { %v882_v54 = vpop.f32.mrf.mxu0  ;;  %v895_v16 = vpop.f32.mrf.mxu1 }
 0x23a   :  { %v925_v27 = vadd.f32 %v882_v54, %v9545_v17  ;;  %v926_v29 = vadd.f32 %v895_v16, %v9546_v56 }
 0x23c   :  { %v5170_v12 = vmul.f32 -1.442695, %v925_v27  ;;  %v5171_v25 = vmul.f32 -1.442695, %v926_v29 }
 0x23e   :  { %6120 = vpow2.f32 %v5170_v12 }
 0x23f   :  { %6122 = vpow2.f32 %v5171_v25 }
 0x240   :  { %v908_v57 = vpop.f32.mrf.mxu2  ;;  %v921_v19 = vpop.f32.mrf.mxu3 }
 0x241   :  { %v928_v38 = vadd.f32 %v921_v19, %v9547_v58  ;;  %v884_v31 = vpop.f32.mrf.mxu0  ;;  %v897_v11 = vpop.f32.mrf.mxu1  ;;  %v927_v54 = vadd.f32 %v908_v57, %v9548_v55 }
 0x243   :  { %v5172_v5 = vmul.f32 -1.442695, %v928_v38 }
 0x244   :  { %v6121_v24 = vpop.eup %6120 }
 0x245   :  { %v6123_v6 = vpop.eup %6122  ;;  %v932_v18 = vadd.f32 1.0, %v6121_v24  ;;  %6124 = vpow2.f32 %v5172_v5 }
 0x246   :  { %v951_v42 = vadd.f32 1.0, %v6123_v6 }
 0x247   :  { %6126 = vrcp.f32 %v932_v18  ;;  %v944_v12 = vand.u32 2147483648, %v932_v18  ;;  %v942_v58 = vand.u32 2147483647, %v932_v18  ;;  %vm938_vm10 = vweird.f32 %v932_v18 }
 0x248   :  { %6128 = vrcp.f32 %v951_v42  ;;  %v910_v40 = vpop.f32.mrf.mxu2  ;;  %v923_v63 = vpop.f32.mrf.mxu3  ;;  %v963_v25 = vand.u32 2147483648, %v951_v42  ;;  %v961_v31 = vand.u32 2147483647, %v951_v42  ;;  %vm957_vm11 = vweird.f32 %v951_v42 }
 0x249   :  { %v945_v57 = vor.u32 1.1754944e-38, %v944_v12  ;;  %vm943_vm14 = vcmp.eq.f32.partialorder %v942_v58, 8.507059e+37 }
 0x24a   :  { %v964_v40 = vor.u32 1.1754944e-38, %v963_v25  ;;  %vm962_vm15 = vcmp.eq.f32.partialorder %v961_v31, 8.507059e+37 }
 0x24b   :  { %v6125_v0 = vpop.eup %6124 }
 0x24c   :  { %v971_v45 = vadd.f32 1.0, %v6125_v0 }
 0x24d   :  { %v6127_v39 = vpop.eup %6126 }
 0x24e   :  { %v6129_v16 = vpop.eup %6128  ;;  %v934_v17 = vmul.f32 %v6127_v39, %v932_v18  ;;  %6130 = vrcp.f32 %v971_v45  ;;  %vm939_vm8 = vweird.f32 %v6127_v39  ;;  %v983_v12 = vand.u32 2147483648, %v971_v45 }
 0x24f   :  { %v953_v27 = vmul.f32 %v6129_v16, %v951_v42  ;;  %6132 = vtanh.f32 %v927_v54  ;;  %vm958_vm9 = vweird.f32 %v6129_v16  ;;  %vm940_vm12 = vmor %vm938_vm10, %vm939_vm8  ;;  %vm977_vm1 = vweird.f32 %v971_v45 }
 0x250   :  { %v935_v56 = vsub.f32 1.0, %v934_v17  ;;  %vm959_vm13 = vmor %vm957_vm11, %vm958_vm9  ;;  %v984_v58 = vor.u32 1.1754944e-38, %v983_v12 }
 0x251   :  { %v954_v29 = vsub.f32 1.0, %v953_v27 }
 0x252   :  { %v936_v19 = vmul.f32 %v6127_v39, %v935_v56 }
 0x253   :  { %v955_v38 = vmul.f32 %v6129_v16, %v954_v29 }
 0x254   :  { %v6131_v11 = vpop.eup %6130  ;;  %v937_v5 = vadd.f32 %v6127_v39, %v936_v19 }
 0x255   :  { %v956_v24 = vadd.f32 %v6129_v16, %v955_v38  ;;  %v973_v6 = vmul.f32 %v6131_v11, %v971_v45  ;;  %v6133_v0 = vpop.eup %6132  ;;  %vm978_vm0 = vweird.f32 %v6131_v11 }
 0x256   :  { %v941_v63 = vsel %vm940_vm12, %v6127_v39, %v937_v5  ;;  %v981_v39 = vand.u32 2147483647, %v971_v45  ;;  %vm979_vm2 = vmor %vm977_vm1, %vm978_vm0  ;;  %v9550_v45 = vld [vmem:[#allocation15_spill] sm:$0xff]  ;;  %v9551_v5 = vld [vmem:[#allocation17_spill] sm:$0xff] }
 0x257   :  { %v946_v55 = vsel %vm943_vm14, %v945_v57, %v941_v63  ;;  %v960_v54 = vsel %vm959_vm13, %v6129_v16, %v956_v24  ;;  %v974_v17 = vsub.f32 1.0, %v973_v6  ;;  %v315_v57 = vadd.f32 %v9551_v5, %v7182_v36 }
 0x258   :  { %v965_v27 = vsel %vm962_vm15, %v964_v40, %v960_v54  ;;  %v988_v56 = vmul.f32 %v6133_v0, %v946_v55  ;;  %vm982_vm3 = vcmp.eq.f32.partialorder %v981_v39, 8.507059e+37  ;;  %v9552_v54 = vld [vmem:[#allocation19_spill] sm:$0xff] }
 0x259   :  { %v987_v29 = vmul.f32 %v965_v27, %v7303_v28  ;;  %v975_v19 = vmul.f32 %v6131_v11, %v974_v17  ;;  %v373_v17 = vadd.f32 %v9552_v54, %v7194_v50 }
 0x25b   :  { %v7347_v18 = vadd.f32 %v988_v56, %v987_v29  ;;  %v976_v42 = vadd.f32 %v6131_v11, %v975_v19 }
 0x25d   :  { %6134 = vtanh.f32 %v7347_v18  ;;  %v980_v25 = vsel %vm979_vm2, %v6131_v11, %v976_v42  ;;  %v286_v11 = vadd.f32 %v9550_v45, %v7178_v30 }
 0x25e   :  { %v985_v38 = vsel %vm982_vm3, %v984_v58, %v980_v25 }
 0x263   :  { %v6135_v16 = vpop.eup %6134 }
 0x264   :  { %v7350_v31 = vmul.f32 %v6135_v16, %v985_v38 }
 0x266   :  { %9549 = vst [vmem:[#allocation11_spill] sm:$0xff] %v7350_v31  ;;  %v1001_v28 = vpack.c.bf16 %v7350_v31, %v7350_v31 }
 0x268   :  { %1010 = vmatmul.bf16.vlgmr.msra.gmra.mxu0 %v1001_v28  ;;  %1023 = vmatmul.bf16.vlgmr.msra.gmra.mxu1 %v1001_v28 }
 0x269   :  { %1036 = vmatmul.bf16.vlgmr.msra.gmra.mxu2 %v1001_v28  ;;  %1049 = vmatmul.bf16.vlgmr.msra.gmra.mxu3 %v1001_v28 }
 0x26a   :  { %1260 = vmatpush.bf16.msra.mxu0 %v6816_v37  ;;  %1273 = vmatpush.bf16.msra.mxu1 %v6827_v41 }
 0x26b   :  { %1286 = vmatpush.bf16.msra.mxu2 %v6844_v47  ;;  %1299 = vmatpush.bf16.msra.mxu3 %v6847_v48 }
 0x26e   :  { %1261 = vmatpush.bf16.msra.mxu0 %v6849_v49  ;;  %1274 = vmatpush.bf16.msra.mxu1 %v6861_v53 }
 0x26f   :  { %1287 = vmatpush.bf16.msra.mxu2 %v6879_v59  ;;  %1300 = vmatpush.bf16.msra.mxu3 %v6883_v60 }
 0x272   :  { %1262 = vmatpush.bf16.msra.mxu0 %v6885_v61  ;;  %1275 = vmatpush.bf16.msra.mxu1 %v6897_v1 }
 0x273   :  { %1288 = vmatpush.bf16.msra.mxu2 %v6915_v7  ;;  %1301 = vmatpush.bf16.msra.mxu3 %v6919_v8 }
 0x276   :  { %1263 = vmatpush.bf16.msra.mxu0 %v6921_v9  ;;  %1276 = vmatpush.bf16.msra.mxu1 %v6933_v13 }
 0x277   :  { %1289 = vmatpush.bf16.msra.mxu2 %v6954_v20  ;;  %1302 = vmatpush.bf16.msra.mxu3 %v6958_v21 }
 0x27a   :  { %1264 = vmatpush.bf16.msra.mxu0 %v6960_v22  ;;  %1277 = vmatpush.bf16.msra.mxu1 %v6972_v26 }
 0x27b   :  { %1290 = vmatpush.bf16.msra.mxu2 %v6990_v32  ;;  %1303 = vmatpush.bf16.msra.mxu3 %v6994_v33 }
 0x27e   :  { %1265 = vmatpush.bf16.msra.mxu0 %v6996_v34  ;;  %1278 = vmatpush.bf16.msra.mxu1 %v6999_v35 }
 0x27f   :  { %1291 = vmatpush.bf16.msra.mxu2 %v7035_v52  ;;  %1304 = vmatpush.bf16.msra.mxu3 %v7019_v43 }
 0x282   :  { %1266 = vmatpush.bf16.msra.mxu0 %v7021_v44  ;;  %1279 = vmatpush.bf16.msra.mxu1 %v7033_v51 }
 0x283   :  { %1292 = vmatpush.bf16.msra.mxu2 %v7068_v4  ;;  %1305 = vmatpush.bf16.msra.mxu3 %v7064_v2 }
 0x286   :  { %1267 = vmatpush.bf16.msra.mxu0 %v7066_v3  ;;  %1280 = vmatpush.bf16.msra.mxu1 %v7077_v10 }
 0x287   :  { %1293 = vmatpush.bf16.msra.mxu2 %v7086_v14  ;;  %1306 = vmatpush.bf16.msra.mxu3 %v7090_v15 }
 0x2e5   :  { %v1011_v24 = vpop.f32.mrf.mxu0  ;;  %v1024_v6 = vpop.f32.mrf.mxu1 }
 0x2e6   :  { %v1054_v40 = vadd.f32 %v1011_v24, %v286_v11  ;;  %v1055_v63 = vadd.f32 %v1024_v6, %v315_v57  ;;  %v9553_v11 = vld [vmem:[#allocation18_spill] sm:$0xff] }
 0x2e7   :  { %v344_v5 = vadd.f32 %v9553_v11, %v7192_v46 }
 0x2e8   :  { %v5173_v0 = vmul.f32 -1.442695, %v1054_v40  ;;  %v5174_v55 = vmul.f32 -1.442695, %v1055_v63 }
 0x2ea   :  { %6136 = vpow2.f32 %v5173_v0 }
 0x2eb   :  { %6138 = vpow2.f32 %v5174_v55 }
 0x2ec   :  { %v1037_v27 = vpop.f32.mrf.mxu2  ;;  %v1050_v56 = vpop.f32.mrf.mxu3 }
 0x2ed   :  { %v1057_v29 = vadd.f32 %v1050_v56, %v373_v17  ;;  %v1013_v19 = vpop.f32.mrf.mxu0  ;;  %v1026_v42 = vpop.f32.mrf.mxu1  ;;  %v1056_v6 = vadd.f32 %v1037_v27, %v344_v5 }
 0x2ef   :  { %v5175_v12 = vmul.f32 -1.442695, %v1057_v29 }
 0x2f0   :  { %v6137_v39 = vpop.eup %6136 }
 0x2f1   :  { %v6139_v25 = vpop.eup %6138  ;;  %v1061_v58 = vadd.f32 1.0, %v6137_v39  ;;  %6140 = vpow2.f32 %v5175_v12 }
 0x2f2   :  { %v1080_v16 = vadd.f32 1.0, %v6139_v25 }
 0x2f3   :  { %6142 = vrcp.f32 %v1061_v58  ;;  %v1073_v17 = vand.u32 2147483648, %v1061_v58  ;;  %v1071_v19 = vand.u32 2147483647, %v1061_v58  ;;  %vm1067_vm6 = vweird.f32 %v1061_v58 }
 0x2f4   :  { %6144 = vrcp.f32 %v1080_v16  ;;  %v1039_v38 = vpop.f32.mrf.mxu2  ;;  %v1052_v28 = vpop.f32.mrf.mxu3  ;;  %v1092_v56 = vand.u32 2147483648, %v1080_v16  ;;  %v1090_v12 = vand.u32 2147483647, %v1080_v16  ;;  %vm1086_vm7 = vweird.f32 %v1080_v16 }
 0x2f5   :  { %v1074_v27 = vor.u32 1.1754944e-38, %v1073_v17  ;;  %vm1072_vm10 = vcmp.eq.f32.partialorder %v1071_v19, 8.507059e+37 }
 0x2f6   :  { %vm1091_vm11 = vcmp.eq.f32.partialorder %v1090_v12, 8.507059e+37 }
 0x2f7   :  { %v6141_v45 = vpop.eup %6140 }
 0x2f8   :  { %v1100_v57 = vadd.f32 1.0, %v6141_v45  ;;  %v1093_v45 = vor.u32 1.1754944e-38, %v1092_v56 }
 0x2f9   :  { %v6143_v24 = vpop.eup %6142 }
 0x2fa   :  { %v6145_v40 = vpop.eup %6144  ;;  %v1063_v63 = vmul.f32 %v6143_v24, %v1061_v58  ;;  %6146 = vrcp.f32 %v1100_v57  ;;  %vm1068_vm4 = vweird.f32 %v6143_v24  ;;  %v1112_v17 = vand.u32 2147483648, %v1100_v57 }
 0x2fb   :  { %v1082_v0 = vmul.f32 %v6145_v40, %v1080_v16  ;;  %6148 = vtanh.f32 %v1056_v6  ;;  %vm1087_vm5 = vweird.f32 %v6145_v40  ;;  %vm1069_vm8 = vmor %vm1067_vm6, %vm1068_vm4  ;;  %vm1106_vm13 = vweird.f32 %v1100_v57 }
 0x2fc   :  { %v1064_v55 = vsub.f32 1.0, %v1063_v63  ;;  %vm1088_vm9 = vmor %vm1086_vm7, %vm1087_vm5  ;;  %v1113_v19 = vor.u32 1.1754944e-38, %v1112_v17 }
 0x2fd   :  { %v1083_v54 = vsub.f32 1.0, %v1082_v0 }
 0x2fe   :  { %v1065_v29 = vmul.f32 %v6143_v24, %v1064_v55 }
 0x2ff   :  { %v1084_v42 = vmul.f32 %v6145_v40, %v1083_v54 }
 0x300   :  { %v6147_v39 = vpop.eup %6146  ;;  %v1066_v25 = vadd.f32 %v6143_v24, %v1065_v29 }
 0x301   :  { %v1085_v38 = vadd.f32 %v6145_v40, %v1084_v42  ;;  %v1102_v28 = vmul.f32 %v6147_v39, %v1100_v57  ;;  %v6149_v5 = vpop.eup %6148  ;;  %vm1107_vm12 = vweird.f32 %v6147_v39 }
 0x302   :  { %v1070_v11 = vsel %vm1069_vm8, %v6143_v24, %v1066_v25  ;;  %v1110_v24 = vand.u32 2147483647, %v1100_v57  ;;  %vm1108_vm14 = vmor %vm1106_vm13, %vm1107_vm12 }
 0x303   :  { %v1075_v6 = vsel %vm1072_vm10, %v1074_v27, %v1070_v11  ;;  %v1089_v63 = vsel %vm1088_vm9, %v6145_v40, %v1085_v38  ;;  %v1103_v0 = vsub.f32 1.0, %v1102_v28  ;;  %v9556_v27 = vld [vmem:[#allocation21_spill] sm:$0xff] }
 0x304   :  { %v1094_v55 = vsel %vm1091_vm11, %v1093_v45, %v1089_v63  ;;  %v1117_v54 = vmul.f32 %v6149_v5, %v1075_v6  ;;  %vm1111_vm15 = vcmp.eq.f32.partialorder %v1110_v24, 8.507059e+37  ;;  %v9557_v6 = vld [vmem:[#allocation24_spill] sm:$0xff] }
 0x305   :  { %v1116_v31 = vmul.f32 %v1094_v55, %v7347_v18  ;;  %v1104_v29 = vmul.f32 %v6147_v39, %v1103_v0 }
 0x307   :  { %v7395_v58 = vadd.f32 %v1117_v54, %v1116_v31  ;;  %v1105_v16 = vadd.f32 %v6147_v39, %v1104_v29 }
 0x309   :  { %6150 = vtanh.f32 %v7395_v58  ;;  %v1109_v56 = vsel %vm1108_vm14, %v6147_v39, %v1105_v16  ;;  %v9555_v39 = vld [vmem:[#allocation20_spill] sm:$0xff] }
 0x30a   :  { %v1114_v42 = vsel %vm1111_vm15, %v1113_v19, %v1109_v56 }
 0x30f   :  { %v6151_v40 = vpop.eup %6150 }
 0x310   :  { %v7398_v12 = vmul.f32 %v6151_v40, %v1114_v42 }
 0x312   :  { %9554 = vst [vmem:[#allocation12_spill] sm:$0xff] %v7398_v12  ;;  %v1130_v18 = vpack.c.bf16 %v7398_v12, %v7398_v12 }
 0x314   :  { %1139 = vmatmul.bf16.vlgmr.msrb.gmra.mxu0 %v1130_v18  ;;  %1152 = vmatmul.bf16.vlgmr.msrb.gmra.mxu1 %v1130_v18 }
 0x315   :  { %1165 = vmatmul.bf16.vlgmr.msrb.gmra.mxu2 %v1130_v18  ;;  %1178 = vmatmul.bf16.vlgmr.msrb.gmra.mxu3 %v1130_v18 }
 0x316   :  { %1389 = vmatpush.bf16.msrb.mxu0 %v6816_v37  ;;  %1402 = vmatpush.bf16.msrb.mxu1 %v6827_v41 }
 0x317   :  { %1415 = vmatpush.bf16.msrb.mxu2 %v6844_v47  ;;  %1428 = vmatpush.bf16.msrb.mxu3 %v6847_v48 }
 0x31a   :  { %1390 = vmatpush.bf16.msrb.mxu0 %v6849_v49  ;;  %1403 = vmatpush.bf16.msrb.mxu1 %v6861_v53 }
 0x31b   :  { %1416 = vmatpush.bf16.msrb.mxu2 %v6879_v59  ;;  %1429 = vmatpush.bf16.msrb.mxu3 %v6883_v60 }
 0x31e   :  { %1391 = vmatpush.bf16.msrb.mxu0 %v6885_v61  ;;  %1404 = vmatpush.bf16.msrb.mxu1 %v6897_v1 }
 0x31f   :  { %1417 = vmatpush.bf16.msrb.mxu2 %v6915_v7  ;;  %1430 = vmatpush.bf16.msrb.mxu3 %v6919_v8 }
 0x322   :  { %1392 = vmatpush.bf16.msrb.mxu0 %v6921_v9  ;;  %1405 = vmatpush.bf16.msrb.mxu1 %v6933_v13 }
 0x323   :  { %1418 = vmatpush.bf16.msrb.mxu2 %v6954_v20  ;;  %1431 = vmatpush.bf16.msrb.mxu3 %v6958_v21 }
 0x326   :  { %1393 = vmatpush.bf16.msrb.mxu0 %v6960_v22  ;;  %1406 = vmatpush.bf16.msrb.mxu1 %v6972_v26 }
 0x327   :  { %1419 = vmatpush.bf16.msrb.mxu2 %v6990_v32  ;;  %1432 = vmatpush.bf16.msrb.mxu3 %v6994_v33 }
 0x32a   :  { %1394 = vmatpush.bf16.msrb.mxu0 %v6996_v34  ;;  %1407 = vmatpush.bf16.msrb.mxu1 %v6999_v35 }
 0x32b   :  { %1420 = vmatpush.bf16.msrb.mxu2 %v7035_v52  ;;  %1433 = vmatpush.bf16.msrb.mxu3 %v7019_v43 }
 0x32e   :  { %1395 = vmatpush.bf16.msrb.mxu0 %v7021_v44  ;;  %1408 = vmatpush.bf16.msrb.mxu1 %v7033_v51 }
 0x32f   :  { %1421 = vmatpush.bf16.msrb.mxu2 %v7068_v4  ;;  %1434 = vmatpush.bf16.msrb.mxu3 %v7064_v2 }
 0x332   :  { %1396 = vmatpush.bf16.msrb.mxu0 %v7066_v3  ;;  %1409 = vmatpush.bf16.msrb.mxu1 %v7077_v10 }
 0x333   :  { %1422 = vmatpush.bf16.msrb.mxu2 %v7086_v14  ;;  %1435 = vmatpush.bf16.msrb.mxu3 %v7090_v15 }
 0x391   :  { %v1140_v31 = vpop.f32.mrf.mxu0  ;;  %v1153_v57 = vpop.f32.mrf.mxu1 }
 0x392   :  { %v1183_v25 = vadd.f32 %v1140_v31, %v9555_v39  ;;  %v1184_v38 = vadd.f32 %v1153_v57, %v9556_v27  ;;  %v9558_v31 = vld [vmem:[#allocation22_spill] sm:$0xff] }
 0x394   :  { %v5176_v28 = vmul.f32 -1.442695, %v1183_v25  ;;  %v5177_v45 = vmul.f32 -1.442695, %v1184_v38 }
 0x396   :  { %6152 = vpow2.f32 %v5176_v28 }
 0x397   :  { %6154 = vpow2.f32 %v5177_v45 }
 0x398   :  { %v1166_v11 = vpop.f32.mrf.mxu2  ;;  %v1179_v5 = vpop.f32.mrf.mxu3 }
 0x399   :  { %v1186_v63 = vadd.f32 %v1179_v5, %v9557_v6  ;;  %v1142_v0 = vpop.f32.mrf.mxu0  ;;  %v1155_v55 = vpop.f32.mrf.mxu1  ;;  %v1185_v57 = vadd.f32 %v1166_v11, %v9558_v31 }
 0x39b   :  { %v5178_v54 = vmul.f32 -1.442695, %v1186_v63 }
 0x39c   :  { %v6153_v29 = vpop.eup %6152 }
 0x39d   :  { %v6155_v16 = vpop.eup %6154  ;;  %v1190_v17 = vadd.f32 1.0, %v6153_v29  ;;  %6156 = vpow2.f32 %v5178_v54 }
 0x39e   :  { %v1209_v24 = vadd.f32 1.0, %v6155_v16 }
 0x39f   :  { %6158 = vrcp.f32 %v1190_v17  ;;  %v1202_v45 = vand.u32 2147483648, %v1190_v17  ;;  %v1200_v63 = vand.u32 2147483647, %v1190_v17  ;;  %vm1196_vm2 = vweird.f32 %v1190_v17 }
 0x3a0   :  { %6160 = vrcp.f32 %v1209_v24  ;;  %v1168_v56 = vpop.f32.mrf.mxu2  ;;  %v1181_v19 = vpop.f32.mrf.mxu3  ;;  %v1221_v5 = vand.u32 2147483648, %v1209_v24  ;;  %v1219_v55 = vand.u32 2147483647, %v1209_v24  ;;  %vm1215_vm3 = vweird.f32 %v1209_v24 }
 0x3a1   :  { %v1203_v11 = vor.u32 1.1754944e-38, %v1202_v45  ;;  %vm1201_vm6 = vcmp.eq.f32.partialorder %v1200_v63, 8.507059e+37 }
 0x3a2   :  { %v1222_v19 = vor.u32 1.1754944e-38, %v1221_v5  ;;  %vm1220_vm7 = vcmp.eq.f32.partialorder %v1219_v55, 8.507059e+37 }
 0x3a3   :  { %v6157_v40 = vpop.eup %6156 }
 0x3a4   :  { %v1229_v42 = vadd.f32 1.0, %v6157_v40 }
 0x3a5   :  { %v6159_v18 = vpop.eup %6158 }
 0x3a6   :  { %v6161_v39 = vpop.eup %6160  ;;  %v1192_v25 = vmul.f32 %v6159_v18, %v1190_v17  ;;  %6162 = vrcp.f32 %v1229_v42  ;;  %vm1197_vm0 = vweird.f32 %v6159_v18  ;;  %v1241_v45 = vand.u32 2147483648, %v1229_v42 }
 0x3a7   :  { %v1211_v27 = vmul.f32 %v6161_v39, %v1209_v24  ;;  %6164 = vtanh.f32 %v1185_v57  ;;  %vm1216_vm1 = vweird.f32 %v6161_v39  ;;  %vm1198_vm4 = vmor %vm1196_vm2, %vm1197_vm0  ;;  %vm1235_vm9 = vweird.f32 %v1229_v42 }
 0x3a8   :  { %v1193_v38 = vsub.f32 1.0, %v1192_v25  ;;  %vm1217_vm5 = vmor %vm1215_vm3, %vm1216_vm1  ;;  %v1242_v63 = vor.u32 1.1754944e-38, %v1241_v45 }
 0x3a9   :  { %v1212_v28 = vsub.f32 1.0, %v1211_v27 }
 0x3aa   :  { %v1194_v6 = vmul.f32 %v6159_v18, %v1193_v38 }
 0x3ab   :  { %v1213_v0 = vmul.f32 %v6161_v39, %v1212_v28 }
 0x3ac   :  { %v6163_v54 = vpop.eup %6162  ;;  %v1195_v29 = vadd.f32 %v6159_v18, %v1194_v6 }
 0x3ad   :  { %v1214_v16 = vadd.f32 %v6161_v39, %v1213_v0  ;;  %v1231_v56 = vmul.f32 %v6163_v54, %v1229_v42  ;;  %v6165_v31 = vpop.eup %6164  ;;  %vm1236_vm8 = vweird.f32 %v6163_v54 }
 0x3ae   :  { %v1199_v40 = vsel %vm1198_vm4, %v6159_v18, %v1195_v29  ;;  %v1239_v18 = vand.u32 2147483647, %v1229_v42  ;;  %vm1237_vm10 = vmor %vm1235_vm9, %vm1236_vm8 }
 0x3af   :  { %v1204_v57 = vsel %vm1201_vm6, %v1203_v11, %v1199_v40  ;;  %v1218_v25 = vsel %vm1217_vm5, %v6161_v39, %v1214_v16  ;;  %v1232_v27 = vsub.f32 1.0, %v1231_v56 }
 0x3b0   :  { %v1223_v38 = vsel %vm1220_vm7, %v1222_v19, %v1218_v25  ;;  %v1246_v28 = vmul.f32 %v6165_v31, %v1204_v57  ;;  %vm1240_vm11 = vcmp.eq.f32.partialorder %v1239_v18, 8.507059e+37 }
 0x3b1   :  { %v1245_v12 = vmul.f32 %v1223_v38, %v7395_v58  ;;  %v1233_v6 = vmul.f32 %v6163_v54, %v1232_v27 }
 0x3b3   :  { %v7439_v17 = vadd.f32 %v1246_v28, %v1245_v12  ;;  %v1234_v24 = vadd.f32 %v6163_v54, %v1233_v6 }
 0x3b5   :  { %6166 = vtanh.f32 %v7439_v17  ;;  %v1238_v5 = vsel %vm1237_vm10, %v6163_v54, %v1234_v24 }
 0x3b6   :  { %v1243_v0 = vsel %vm1240_vm11, %v1242_v63, %v1238_v5 }
 0x3bb   :  { %v6167_v39 = vpop.eup %6166 }
 0x3bc   :  { %v7442_v55 = vmul.f32 %v6167_v39, %v1243_v0 }
 0x3be   :  { %v1259_v58 = vpack.c.bf16 %v7442_v55, %v7442_v55 }
 0x3c0   :  { %1268 = vmatmul.bf16.vlgmr.msra.gmra.mxu0 %v1259_v58  ;;  %1281 = vmatmul.bf16.vlgmr.msra.gmra.mxu1 %v1259_v58 }
 0x3c1   :  { %1294 = vmatmul.bf16.vlgmr.msra.gmra.mxu2 %v1259_v58  ;;  %1307 = vmatmul.bf16.vlgmr.msra.gmra.mxu3 %v1259_v58 }
 0x3c2   :  { %1518 = vmatpush.bf16.msra.mxu0 %v6816_v37  ;;  %1531 = vmatpush.bf16.msra.mxu1 %v6827_v41  ;;  %v9559_v37 = vld [vmem:[#allocation23_spill] sm:$0xff] }
 0x3c3   :  { %1544 = vmatpush.bf16.msra.mxu2 %v6844_v47  ;;  %1557 = vmatpush.bf16.msra.mxu3 %v6847_v48  ;;  %v291_v41 = vadd.f32 %v9559_v37, %v7178_v30  ;;  %v9560_v47 = vld [vmem:[#allocation25_spill] sm:$0xff] }
 0x3c4   :  { %v320_v48 = vadd.f32 %v9560_v47, %v7182_v36 }
 0x3c6   :  { %1519 = vmatpush.bf16.msra.mxu0 %v6849_v49  ;;  %1532 = vmatpush.bf16.msra.mxu1 %v6861_v53 }
 0x3c7   :  { %1545 = vmatpush.bf16.msra.mxu2 %v6879_v59  ;;  %1558 = vmatpush.bf16.msra.mxu3 %v6883_v60 }
 0x3ca   :  { %1520 = vmatpush.bf16.msra.mxu0 %v6885_v61  ;;  %1533 = vmatpush.bf16.msra.mxu1 %v6897_v1 }
 0x3cb   :  { %1546 = vmatpush.bf16.msra.mxu2 %v6915_v7  ;;  %1559 = vmatpush.bf16.msra.mxu3 %v6919_v8  ;;  %v9561_v7 = vld [vmem:[#allocation27_spill] sm:$0xff] }
 0x3cc   :  { %v378_v8 = vadd.f32 %v9561_v7, %v7194_v50  ;;  %v5975_v7 = vld [vmem:[%s9500_s3 + $0xec] sm:$0xf0] }
 0x3ce   :  { %1521 = vmatpush.bf16.msra.mxu0 %v6921_v9  ;;  %1534 = vmatpush.bf16.msra.mxu1 %v6933_v13 }
 0x3cf   :  { %1547 = vmatpush.bf16.msra.mxu2 %v6954_v20  ;;  %1560 = vmatpush.bf16.msra.mxu3 %v6958_v21 }
 0x3d2   :  { %1522 = vmatpush.bf16.msra.mxu0 %v6960_v22  ;;  %1535 = vmatpush.bf16.msra.mxu1 %v6972_v26 }
 0x3d3   :  { %1548 = vmatpush.bf16.msra.mxu2 %v6990_v32  ;;  %1561 = vmatpush.bf16.msra.mxu3 %v6994_v33 }
 0x3d6   :  { %1523 = vmatpush.bf16.msra.mxu0 %v6996_v34  ;;  %1536 = vmatpush.bf16.msra.mxu1 %v6999_v35 }
 0x3d7   :  { %1549 = vmatpush.bf16.msra.mxu2 %v7035_v52  ;;  %1562 = vmatpush.bf16.msra.mxu3 %v7019_v43  ;;  %v9562_v52 = vld [vmem:[#allocation26_spill] sm:$0xff] }
 0x3da   :  { %1524 = vmatpush.bf16.msra.mxu0 %v7021_v44  ;;  %1537 = vmatpush.bf16.msra.mxu1 %v7033_v51 }
 0x3db   :  { %1550 = vmatpush.bf16.msra.mxu2 %v7068_v4  ;;  %1563 = vmatpush.bf16.msra.mxu3 %v7064_v2  ;;  %v349_v2 = vadd.f32 %v9562_v52, %v7192_v46  ;;  %v9564_v52 = vld [vmem:[#allocation29_spill] sm:$0xff] }
 0x3de   :  { %1525 = vmatpush.bf16.msra.mxu0 %v7066_v3  ;;  %1538 = vmatpush.bf16.msra.mxu1 %v7077_v10 }
 0x3df   :  { %1551 = vmatpush.bf16.msra.mxu2 %v7086_v14  ;;  %1564 = vmatpush.bf16.msra.mxu3 %v7090_v15 }
 0x43d   :  { %v1269_v49 = vpop.f32.mrf.mxu0  ;;  %v1282_v53 = vpop.f32.mrf.mxu1 }
 0x43e   :  { %v1312_v59 = vadd.f32 %v1269_v49, %v291_v41  ;;  %v1313_v60 = vadd.f32 %v1282_v53, %v320_v48 }
 0x440   :  { %v5179_v61 = vmul.f32 -1.442695, %v1312_v59  ;;  %v5180_v1 = vmul.f32 -1.442695, %v1313_v60 }
 0x442   :  { %6168 = vpow2.f32 %v5179_v61 }
 0x443   :  { %6170 = vpow2.f32 %v5180_v1  ;;  %v5302_v1 = vld [vmem:[%s9500_s3 + $0xe0] sm:$0xf] }
 0x444   :  { %v1295_v9 = vpop.f32.mrf.mxu2  ;;  %v1308_v13 = vpop.f32.mrf.mxu3 }
 0x445   :  { %v1315_v20 = vadd.f32 %v1308_v13, %v378_v8  ;;  %v1271_v21 = vpop.f32.mrf.mxu0  ;;  %v1284_v22 = vpop.f32.mrf.mxu1  ;;  %v1314_v10 = vadd.f32 %v1295_v9, %v349_v2  ;;  %v5973_v8 = vld [vmem:[%s9500_s3 + $0xe4] sm:$0xf]  ;;  %v5303_v9 = vor.u32 %v5975_v7, %v5302_v1  ;;  %v5304_v13 = vld [vmem:[%s9500_s3 + $0xf0] sm:$0xf0]  ;;  %v5262_v1 = vld [vmem:[%s9500_s3 + $0x88] sm:$0xf] }
 0x446   :  { %v5976_v21 = vld [vmem:[%s9500_s3 + $0xf4] sm:$0xf0]  ;;  %v5307_v22 = vor.u32 %v5973_v8, %v5304_v13  ;;  %v5962_v13 = vld [vmem:[%s9500_s3 + $0x8c] sm:$0xf] }
 0x447   :  { %v5181_v26 = vmul.f32 -1.442695, %v1315_v20  ;;  %v5310_v20 = vld [vmem:[%s9500_s3 + $0xe8] sm:$0xf]  ;;  %v5964_v7 = vld [vmem:[%s9500_s3 + $0x94] sm:$0xf0] }
 0x448   :  { %v6169_v32 = vpop.eup %6168 }
 0x449   :  { %v6171_v33 = vpop.eup %6170  ;;  %v1319_v34 = vadd.f32 1.0, %v6169_v32  ;;  %6172 = vpow2.f32 %v5181_v26  ;;  %v5311_v26 = vor.u32 %v5976_v21, %v5310_v20  ;;  %v5974_v32 = vld [vmem:[%s9500_s3 + $0xec] sm:$0xf]  ;;  %v5264_v20 = vld [vmem:[%s9500_s3 + $0x98] sm:$0xf0] }
 0x44a   :  { %v1338_v35 = vadd.f32 1.0, %v6171_v33  ;;  %v5312_v33 = vld [vmem:[%s9500_s3 + $0xf8] sm:$0xf0] }
 0x44b   :  { %6174 = vrcp.f32 %v1319_v34  ;;  %v1331_v29 = vand.u32 2147483648, %v1319_v34  ;;  %v1329_v56 = vand.u32 2147483647, %v1319_v34  ;;  %vm1325_vm14 = vweird.f32 %v1319_v34 }
 0x44c   :  { %6176 = vrcp.f32 %v1338_v35  ;;  %v1297_v43 = vpop.f32.mrf.mxu2  ;;  %v1310_v44 = vpop.f32.mrf.mxu3  ;;  %v1350_v11 = vand.u32 2147483648, %v1338_v35  ;;  %v1348_v40 = vand.u32 2147483647, %v1338_v35  ;;  %vm1344_vm15 = vweird.f32 %v1338_v35 }
 0x44d   :  { %v1332_v25 = vor.u32 1.1754944e-38, %v1331_v29  ;;  %vm1330_vm2 = vcmp.eq.f32.partialorder %v1329_v56, 8.507059e+37  ;;  %v5315_v43 = vor.u32 %v5974_v32, %v5312_v33  ;;  %v9563_v44 = vld [vmem:[#allocation28_spill] sm:$0xff]  ;;  %v5970_v56 = vld [vmem:[%s9500_s3 + $0xcc] sm:$0xf] }
 0x44e   :  { %v1351_v28 = vor.u32 1.1754944e-38, %v1350_v11  ;;  %vm1349_vm3 = vcmp.eq.f32.partialorder %v1348_v40, 8.507059e+37  ;;  %v5270_v40 = vld [vmem:[%s9500_s3 + $0xa0] sm:$0xf] }
 0x44f   :  { %v6173_v51 = vpop.eup %6172 }
 0x450   :  { %v1358_v3 = vadd.f32 1.0, %v6173_v51 }
 0x451   :  { %v6175_v4 = vpop.eup %6174 }
 0x452   :  { %v6177_v14 = vpop.eup %6176  ;;  %v1321_v15 = vmul.f32 %v6175_v4, %v1319_v34  ;;  %6178 = vrcp.f32 %v1358_v3  ;;  %vm1326_vm12 = vweird.f32 %v6175_v4  ;;  %v1370_v47 = vand.u32 2147483648, %v1358_v3 }
 0x453   :  { %v1340_v12 = vmul.f32 %v6177_v14, %v1338_v35  ;;  %6180 = vtanh.f32 %v1314_v10  ;;  %vm1345_vm13 = vweird.f32 %v6177_v14  ;;  %vm1327_vm0 = vmor %vm1325_vm14, %vm1326_vm12  ;;  %vm1364_vm5 = vweird.f32 %v1358_v3  ;;  %v5969_v10 = vld [vmem:[%s9500_s3 + $0xc4] sm:$0xf] }
 0x454   :  { %v1322_v42 = vsub.f32 1.0, %v1321_v15  ;;  %vm1346_vm1 = vmor %vm1344_vm15, %vm1345_vm13  ;;  %v1368_v48 = vand.u32 2147483647, %v1358_v3  ;;  %v1371_v53 = vor.u32 1.1754944e-38, %v1370_v47  ;;  %v5288_v15 = vld [vmem:[%s9500_s3 + $0xd0] sm:$0xf0] }
 0x455   :  { %v1341_v54 = vsub.f32 1.0, %v1340_v12  ;;  %v5294_v12 = vld [vmem:[%s9500_s3 + $0xc8] sm:$0xf]  ;;  %v5291_v11 = vor.u32 %v5969_v10, %v5288_v15  ;;  %v5961_v47 = vld [vmem:[%s9500_s3 + $0x84] sm:$0xf] }
 0x456   :  { %v1323_v16 = vmul.f32 %v6175_v4, %v1322_v42  ;;  %vm1369_vm7 = vcmp.eq.f32.partialorder %v1368_v48, 8.507059e+37  ;;  %v5972_v42 = vld [vmem:[%s9500_s3 + $0xd4] sm:$0xf0]  ;;  %v9565_v48 = vld [vmem:[#allocation32_spill] sm:$0xff] }
 0x457   :  { %v1342_v19 = vmul.f32 %v6177_v14, %v1341_v54  ;;  %v5960_v15 = vld [vmem:[%s9500_s3 + $0x74] sm:$0xf0] }
 0x458   :  { %v6179_v31 = vpop.eup %6178  ;;  %v1324_v57 = vadd.f32 %v6175_v4, %v1323_v16  ;;  %v5295_v16 = vor.u32 %v5972_v42, %v5294_v12  ;;  %v9566_v42 = vld [vmem:[#allocation30_spill] sm:$0xff] }
 0x459   :  { %v1343_v27 = vadd.f32 %v6177_v14, %v1342_v19  ;;  %v1360_v38 = vmul.f32 %v6179_v31, %v1358_v3  ;;  %v6181_v24 = vpop.eup %6180  ;;  %vm1365_vm4 = vweird.f32 %v6179_v31  ;;  %v5286_v3 = vld [vmem:[%s9500_s3 + $0xc0] sm:$0xf]  ;;  %v5296_v19 = vld [vmem:[%s9500_s3 + $0xd8] sm:$0xf0] }
 0x45a   :  { %v1328_v6 = vsel %vm1327_vm0, %v6175_v4, %v1324_v57  ;;  %vm1366_vm6 = vmor %vm1364_vm5, %vm1365_vm4  ;;  %v5971_v4 = vld [vmem:[%s9500_s3 + $0xcc] sm:$0xf0]  ;;  %v5299_v57 = vor.u32 %v5970_v56, %v5296_v19  ;;  %v5222_v56 = vld [vmem:[%s9500_s3 + $0x40] sm:$0xf] }
 0x45b   :  { %v1333_v45 = vsel %vm1330_vm2, %v1332_v25, %v1328_v6  ;;  %v1347_v18 = vsel %vm1346_vm1, %v6177_v14, %v1343_v27  ;;  %v1361_v5 = vsub.f32 1.0, %v1360_v38  ;;  %v5287_v14 = vor.u32 %v5971_v4, %v5286_v3  ;;  %v5965_v27 = vld [vmem:[%s9500_s3 + $0xa4] sm:$0xf]  ;;  %v5272_v38 = vld [vmem:[%s9500_s3 + $0xb0] sm:$0xf0] }
 0x45c   :  { %v1352_v63 = vsel %vm1349_vm3, %v1351_v28, %v1347_v18  ;;  %v1375_v39 = vmul.f32 %v6181_v24, %v1333_v45  ;;  %v5278_v28 = vld [vmem:[%s9500_s3 + $0xa8] sm:$0xf]  ;;  %v5275_v6 = vor.u32 %v5965_v27, %v5272_v38  ;;  %v5968_v24 = vld [vmem:[%s9500_s3 + $0xb4] sm:$0xf0]  ;;  %v5966_v45 = vld [vmem:[%s9500_s3 + $0xac] sm:$0xf] }
 0x45d   :  { %v1374_v0 = vmul.f32 %v1352_v63, %v7439_v17  ;;  %v1362_v58 = vmul.f32 %v6179_v31, %v1361_v5  ;;  %v5280_v18 = vld [vmem:[%s9500_s3 + $0xb8] sm:$0xf0]  ;;  %v5240_v3 = vld [vmem:[%s9500_s3 + $0x70] sm:$0xf0] }
 0x45e   :  { %v5224_v38 = vld [vmem:[%s9500_s3 + $0x50] sm:$0xf0] }
 0x45f   :  { %v7487_v37 = vadd.f32 %v1375_v39, %v1374_v0  ;;  %v1363_v41 = vadd.f32 %v6179_v31, %v1362_v58  ;;  %v5279_v39 = vor.u32 %v5968_v24, %v5278_v28  ;;  %v5283_v0 = vor.u32 %v5966_v45, %v5280_v18  ;;  %v5254_v58 = vld [vmem:[%s9500_s3 + $0x80] sm:$0xf]  ;;  %v5230_v28 = vld [vmem:[%s9500_s3 + $0x48] sm:$0xf]  ;;  %v5954_v18 = vld [vmem:[%s9500_s3 + $0x4c] sm:$0xf] }
 0x461   :  { %6182 = vtanh.f32 %v7487_v37  ;;  %v1367_v49 = vsel %vm1366_vm6, %v6179_v31, %v1363_v41  ;;  %v5967_v31 = vld [vmem:[%s9500_s3 + $0xac] sm:$0xf0] }
 0x462   :  { %v1372_v60 = vsel %vm1369_vm7, %v1371_v53, %v1367_v49  ;;  %v5271_v25 = vor.u32 %v5967_v31, %v5270_v40  ;;  %v5963_v41 = vld [vmem:[%s9500_s3 + $0x8c] sm:$0xf0] }
 0x463   :  { %v5955_v31 = vld [vmem:[%s9500_s3 + $0x4c] sm:$0xf0] }
 0x464   :  { %v5223_v27 = vor.u32 %v5955_v31, %v5222_v56 }
 0x467   :  { %v6183_v59 = vpop.eup %6182 }
 0x468   :  { %v7490_v61 = vmul.f32 %v6183_v59, %v1372_v60  ;;  %v5255_v60 = vor.u32 %v5963_v41, %v5254_v58  ;;  %v5951_v41 = vld [vmem:[%s9500_s3 + $0x2c] sm:$0xf0] }
 0x46a   :  { %v1388_v17 = vpack.c.bf16 %v7490_v61, %v7490_v61 }
 0x46c   :  { %1397 = vmatmul.bf16.vlgmr.msrb.gmra.mxu0 %v1388_v17  ;;  %1410 = vmatmul.bf16.vlgmr.msrb.gmra.mxu1 %v1388_v17 }
 0x46d   :  { %1423 = vmatmul.bf16.vlgmr.msrb.gmra.mxu2 %v1388_v17  ;;  %1436 = vmatmul.bf16.vlgmr.msrb.gmra.mxu3 %v1388_v17  ;;  %v5256_v17 = vld [vmem:[%s9500_s3 + $0x90] sm:$0xf0] }
 0x46e   :  { %1855 = vmatpush.bf16.msrb.mxu0 %v5303_v9  ;;  %1884 = vmatpush.bf16.msrb.mxu1 %v5307_v22  ;;  %v5259_v8 = vor.u32 %v5961_v47, %v5256_v17  ;;  %v5263_v9 = vor.u32 %v5964_v7, %v5262_v1 }
 0x46f   :  { %1913 = vmatpush.bf16.msrb.mxu2 %v5311_v26  ;;  %1942 = vmatpush.bf16.msrb.mxu3 %v5315_v43  ;;  %v5267_v26 = vor.u32 %v5962_v13, %v5264_v20 }
 0x472   :  { %1856 = vmatpush.bf16.msrb.mxu0 %v5287_v14  ;;  %1885 = vmatpush.bf16.msrb.mxu1 %v5291_v11  ;;  %v5246_v14 = vld [vmem:[%s9500_s3 + $0x68] sm:$0xf]  ;;  %v5958_v11 = vld [vmem:[%s9500_s3 + $0x6c] sm:$0xf] }
 0x473   :  { %1914 = vmatpush.bf16.msrb.mxu2 %v5295_v16  ;;  %1943 = vmatpush.bf16.msrb.mxu3 %v5299_v57  ;;  %v5248_v16 = vld [vmem:[%s9500_s3 + $0x78] sm:$0xf0]  ;;  %v5953_v57 = vld [vmem:[%s9500_s3 + $0x44] sm:$0xf] }
 0x474   :  { %v5251_v40 = vor.u32 %v5958_v11, %v5248_v16  ;;  %v5946_v11 = vld [vmem:[%s9500_s3 + $0xc] sm:$0xf]  ;;  %v5200_v16 = vld [vmem:[%s9500_s3 + $0x18] sm:$0xf0] }
 0x476   :  { %1857 = vmatpush.bf16.msrb.mxu0 %v5271_v25  ;;  %1886 = vmatpush.bf16.msrb.mxu1 %v5275_v6  ;;  %v5956_v6 = vld [vmem:[%s9500_s3 + $0x54] sm:$0xf0] }
 0x477   :  { %1915 = vmatpush.bf16.msrb.mxu2 %v5279_v39  ;;  %1944 = vmatpush.bf16.msrb.mxu3 %v5283_v0 }
 0x47a   :  { %1858 = vmatpush.bf16.msrb.mxu0 %v5255_v60  ;;  %1887 = vmatpush.bf16.msrb.mxu1 %v5259_v8  ;;  %v5208_v60 = vld [vmem:[%s9500_s3 + $0x30] sm:$0xf0] }
 0x47b   :  { %1916 = vmatpush.bf16.msrb.mxu2 %v5263_v9  ;;  %1945 = vmatpush.bf16.msrb.mxu3 %v5267_v26  ;;  %v5214_v9 = vld [vmem:[%s9500_s3 + $0x28] sm:$0xf]  ;;  %v5216_v26 = vld [vmem:[%s9500_s3 + $0x38] sm:$0xf0] }
 0x47f   :  { %1946 = vmatpush.bf16.msrb.mxu3 %v5251_v40 }
 0x4e9   :  { %v1398_v34 = vpop.f32.mrf.mxu0  ;;  %v1411_v35 = vpop.f32.mrf.mxu1 }
 0x4ea   :  { %v1441_v51 = vadd.f32 %v1398_v34, %v9563_v44  ;;  %v1442_v2 = vadd.f32 %v1411_v35, %v9564_v52  ;;  %v5238_v35 = vld [vmem:[%s9500_s3 + $0x60] sm:$0xf] }
 0x4ec   :  { %v5182_v54 = vmul.f32 -1.442695, %v1441_v51  ;;  %v5183_v29 = vmul.f32 -1.442695, %v1442_v2  ;;  %v5959_v51 = vld [vmem:[%s9500_s3 + $0x6c] sm:$0xf0] }
 0x4ed   :  { %v5239_v52 = vor.u32 %v5959_v51, %v5238_v35  ;;  %v5957_v2 = vld [vmem:[%s9500_s3 + $0x64] sm:$0xf]  ;;  %v5947_v51 = vld [vmem:[%s9500_s3 + $0xc] sm:$0xf0] }
 0x4ee   :  { %6184 = vpow2.f32 %v5182_v54  ;;  %v5243_v10 = vor.u32 %v5957_v2, %v5240_v3 }
 0x4ef   :  { %6186 = vpow2.f32 %v5183_v29  ;;  %1859 = vmatpush.bf16.msrb.mxu0 %v5239_v52  ;;  %v5247_v29 = vor.u32 %v5960_v15, %v5246_v14  ;;  %v5945_v52 = vld [vmem:[%s9500_s3 + $0x4] sm:$0xf]  ;;  %v5198_v14 = vld [vmem:[%s9500_s3 + $0x8] sm:$0xf]  ;;  %v5948_v15 = vld [vmem:[%s9500_s3 + $0x14] sm:$0xf0] }
 0x4f0   :  { %v1424_v5 = vpop.f32.mrf.mxu2  ;;  %v1437_v63 = vpop.f32.mrf.mxu3  ;;  %1888 = vmatpush.bf16.msrb.mxu1 %v5243_v10  ;;  %v5192_v10 = vld [vmem:[%s9500_s3 + $0x10] sm:$0xf0]  ;;  %v5199_v31 = vor.u32 %v5948_v15, %v5198_v14 }
 0x4f1   :  { %v1444_v49 = vadd.f32 %v1437_v63, %v9565_v48  ;;  %v1400_v53 = vpop.f32.mrf.mxu0  ;;  %v1413_v59 = vpop.f32.mrf.mxu1  ;;  %v1443_v54 = vadd.f32 %v1424_v5, %v9566_v42  ;;  %1917 = vmatpush.bf16.msrb.mxu2 %v5247_v29  ;;  %v5232_v5 = vld [vmem:[%s9500_s3 + $0x58] sm:$0xf0]  ;;  %v5206_v63 = vld [vmem:[%s9500_s3 + $0x20] sm:$0xf]  ;;  %v5227_v48 = vor.u32 %v5953_v57, %v5224_v38  ;;  %v5195_v40 = vor.u32 %v5945_v52, %v5192_v10 }
 0x4f2   :  { %v5235_v53 = vor.u32 %v5954_v18, %v5232_v5  ;;  %v5949_v59 = vld [vmem:[%s9500_s3 + $0x24] sm:$0xf]  ;;  %v5207_v8 = vor.u32 %v5951_v41, %v5206_v63  ;;  %v5446_v52 = vld [vmem:[%s9501_s4 + $0x1c0] sm:$0xf]  ;;  %v5456_v10 = vld [vmem:[%s9501_s4 + $0x1d8] sm:$0xf0] }
 0x4f3   :  { %v5184_v21 = vmul.f32 -1.442695, %v1444_v49  ;;  %1860 = vmatpush.bf16.msrb.mxu0 %v5223_v27  ;;  %v5231_v49 = vor.u32 %v5956_v6, %v5230_v28  ;;  %v5211_v20 = vor.u32 %v5949_v59, %v5208_v60  ;;  %v5203_v28 = vor.u32 %v5946_v11, %v5200_v16  ;;  %v9569_v60 = vld [vmem:[#allocation11_spill] sm:$0xff]  ;;  %v5997_v11 = vld [vmem:[%s9501_s4 + $0x1a4] sm:$0xf] }
 0x4f4   :  { %v6185_v22 = vpop.eup %6184  ;;  %1889 = vmatpush.bf16.msrb.mxu1 %v5227_v48  ;;  %1947 = vmatpush.bf16.msrb.mxu3 %v5235_v53  ;;  %v1649_v48 = vpack.c.bf16 %v7306_v62, %v7258_v23  ;;  %v6005_v53 = vld [vmem:[%s9501_s4 + $0x1e4] sm:$0xf]  ;;  %v5464_v23 = vld [vmem:[%s9501_s4 + $0x1f0] sm:$0xf0] }
 0x4f5   :  { %v6187_v32 = vpop.eup %6186  ;;  %v7593_v33 = vadd.f32 1.0, %v6185_v22  ;;  %6188 = vpow2.f32 %v5184_v21  ;;  %1918 = vmatpush.bf16.msrb.mxu2 %v5231_v49  ;;  %v5952_v21 = vld [vmem:[%s9500_s3 + $0x34] sm:$0xf0]  ;;  %v5950_v22 = vld [vmem:[%s9500_s3 + $0x2c] sm:$0xf]  ;;  %v7761_v62 = vor.u32 %v6005_v53, %v5464_v23 }
 0x4f6   :  { %v7595_v34 = vadd.f32 1.0, %v6187_v32  ;;  %v5215_v35 = vor.u32 %v5952_v21, %v5214_v9  ;;  %v6007_v49 = vld [vmem:[%s9501_s4 + $0x1ec] sm:$0xf0]  ;;  %v5472_v9 = vld [vmem:[%s9501_s4 + $0x1f8] sm:$0xf0] }
 0x4f7   :  { %6190 = vrcp.f32 %v7593_v33  ;;  %v1458_v4 = vand.u32 2147483647, %v7593_v33  ;;  %v1460_v58 = vand.u32 2147483648, %v7593_v33  ;;  %1861 = vmatpush.bf16.msrb.mxu0 %v5207_v8  ;;  %vm1454_vm12 = vweird.f32 %v7593_v33  ;;  %v6006_v8 = vld [vmem:[%s9501_s4 + $0x1ec] sm:$0xf]  ;;  %v9571_v21 = vld [vmem:[#allocation31_spill] sm:$0xff] }
 0x4f8   :  { %6192 = vrcp.f32 %v7595_v34  ;;  %v1426_v43 = vpop.f32.mrf.mxu2  ;;  %v1439_v44 = vpop.f32.mrf.mxu3  ;;  %v1479_v0 = vand.u32 2147483648, %v7595_v34  ;;  %v1477_v7 = vand.u32 2147483647, %v7595_v34  ;;  %vm1473_vm11 = vweird.f32 %v7595_v34  ;;  %1890 = vmatpush.bf16.msrb.mxu1 %v5211_v20 }
 0x4f9   :  { %vm7674_vm8 = vcmp.eq.f32.partialorder %v1458_v4, 8.507059e+37  ;;  %v5219_v43 = vor.u32 %v5950_v22, %v5216_v26  ;;  %v5190_v44 = vld [vmem:[%s9500_s3] sm:$0xf]  ;;  %1919 = vmatpush.bf16.msrb.mxu2 %v5215_v35  ;;  %v296_v22 = vadd.f32 %v9571_v21, %v7178_v30  ;;  %v9572_v26 = vld [vmem:[#allocation33_spill] sm:$0xff]  ;;  %v6001_v30 = vld [vmem:[%s9501_s4 + $0x1c4] sm:$0xf] }
 0x4fa   :  { %v5191_v4 = vor.u32 %v5947_v51, %v5190_v44  ;;  %v1480_v42 = vor.u32 1.1754944e-38, %v1479_v0  ;;  %vm1478_vm15 = vcmp.eq.f32.partialorder %v1477_v7, 8.507059e+37  ;;  %v1651_v7 = vpack.c.bf16 %v7490_v61, %v7442_v55  ;;  %v5470_v55 = vld [vmem:[%s9501_s4 + $0x1e8] sm:$0xf]  ;;  %v6008_v61 = vld [vmem:[%s9501_s4 + $0x1f4] sm:$0xf0] }
 0x4fb   :  { %v6189_v12 = vpop.eup %6188  ;;  %1948 = vmatpush.bf16.msrb.mxu3 %v5219_v43  ;;  %v7784_v20 = vor.u32 %v6008_v61, %v5470_v55  ;;  %v5990_v55 = vld [vmem:[%s9501_s4 + $0x16c] sm:$0xf]  ;;  %v5408_v21 = vld [vmem:[%s9501_s4 + $0x178] sm:$0xf0] }
 0x4fc   :  { %v7628_v19 = vadd.f32 1.0, %v6189_v12  ;;  %1862 = vmatpush.bf16.msrb.mxu0 %v5191_v4  ;;  %1891 = vmatpush.bf16.msrb.mxu1 %v5195_v40  ;;  %v6002_v4 = vld [vmem:[%s9501_s4 + $0x1cc] sm:$0xf] }
 0x4fd   :  { %v7636_v25 = vpop.eup %6190  ;;  %1920 = vmatpush.bf16.msrb.mxu2 %v5199_v31  ;;  %v5998_v40 = vld [vmem:[%s9501_s4 + $0x1ac] sm:$0xf]  ;;  %v5440_v31 = vld [vmem:[%s9501_s4 + $0x1b8] sm:$0xf0] }
 0x4fe   :  { %v7647_v24 = vpop.eup %6192  ;;  %v1450_v45 = vmul.f32 %v7636_v25, %v7593_v33  ;;  %6194 = vrcp.f32 %v7628_v19  ;;  %vm1455_vm9 = vweird.f32 %v7636_v25  ;;  %vm1493_vm1 = vweird.f32 %v7628_v19 }
 0x4ff   :  { %v1469_v39 = vmul.f32 %v7647_v24, %v7595_v34  ;;  %6196 = vtanh.f32 %v1443_v54  ;;  %vm1474_vm10 = vweird.f32 %v7647_v24  ;;  %vm1456_vm13 = vmor %vm1454_vm12, %vm1455_vm9  ;;  %v1461_v54 = vor.u32 1.1754944e-38, %v1460_v58  ;;  %1949 = vmatpush.bf16.msrb.mxu3 %v5203_v28 }
 0x500   :  { %v1451_v47 = vsub.f32 1.0, %v1450_v45  ;;  %vm1475_vm14 = vmor %vm1473_vm11, %vm1474_vm10  ;;  %v1497_v63 = vand.u32 2147483647, %v7628_v19  ;;  %v7845_v28 = vor.u32 %v5998_v40, %v5440_v31 }
 0x501   :  { %v1470_v17 = vsub.f32 1.0, %v1469_v39 }
 0x502   :  { %v1452_v13 = vmul.f32 %v7636_v25, %v1451_v47  ;;  %vm1498_vm3 = vcmp.eq.f32.partialorder %v1497_v63, 8.507059e+37  ;;  %v5416_v63 = vld [vmem:[%s9501_s4 + $0x190] sm:$0xf0] }
 0x503   :  { %v1471_v32 = vmul.f32 %v7647_v24, %v1470_v17  ;;  %v9570_v17 = vld [vmem:[#allocation12_spill] sm:$0xff] }
 0x504   :  { %v6195_v2 = vpop.eup %6194  ;;  %v1453_v3 = vadd.f32 %v7636_v25, %v1452_v13  ;;  %v1650_v1 = vpack.c.bf16 %v9570_v17, %v9569_v60  ;;  %v7775_v13 = vor.u32 %v6006_v8, %v5472_v9  ;;  %v5398_v60 = vld [vmem:[%s9501_s4 + $0x160] sm:$0xf]  ;;  %v5991_v17 = vld [vmem:[%s9501_s4 + $0x16c] sm:$0xf0]  ;;  %v5400_v9 = vld [vmem:[%s9501_s4 + $0x170] sm:$0xf0] }
 0x505   :  { %v6197_v12 = vpop.eup %6196  ;;  %v1472_v33 = vadd.f32 %v7647_v24, %v1471_v32  ;;  %v1489_v29 = vmul.f32 %v6195_v2, %v7628_v19  ;;  %vm1494_vm0 = vweird.f32 %v6195_v2  ;;  %v325_v32 = vadd.f32 %v9572_v26, %v7182_v36  ;;  %v5448_v36 = vld [vmem:[%s9501_s4 + $0x1d0] sm:$0xf0]  ;;  %v5996_v26 = vld [vmem:[%s9501_s4 + $0x194] sm:$0xf0] }
 0x506   :  { %v1457_v56 = vsel %vm1456_vm13, %v7636_v25, %v1453_v3  ;;  %vm1495_vm2 = vmor %vm1493_vm1, %vm1494_vm0 }
 0x507   :  { %v1462_v57 = vsel %vm7674_vm8, %v1461_v54, %v1457_v56  ;;  %v1476_v27 = vsel %vm1475_vm14, %v7647_v24, %v1472_v33  ;;  %v1490_v38 = vsub.f32 1.0, %v1489_v29  ;;  %v1499_v24 = vand.u32 2147483648, %v7628_v19  ;;  %v5462_v19 = vld [vmem:[%s9501_s4 + $0x1e0] sm:$0xf]  ;;  %v5454_v54 = vld [vmem:[%s9501_s4 + $0x1c8] sm:$0xf] }
 0x508   :  { %v1481_v6 = vsel %vm1478_vm15, %v1480_v42, %v1476_v27  ;;  %v1504_v45 = vmul.f32 %v6197_v12, %v1462_v57  ;;  %v7756_v59 = vor.u32 %v6007_v49, %v5462_v19  ;;  %v7811_v12 = vor.u32 %v6001_v30, %v5448_v36  ;;  %v5430_v33 = vld [vmem:[%s9501_s4 + $0x1a0] sm:$0xf]  ;;  %v5999_v29 = vld [vmem:[%s9501_s4 + $0x1ac] sm:$0xf0]  ;;  %v5432_v56 = vld [vmem:[%s9501_s4 + $0x1b0] sm:$0xf0] }
 0x509   :  { %v1503_v34 = vmul.f32 %v1481_v6, %v7487_v37  ;;  %v1491_v18 = vmul.f32 %v6195_v2, %v1490_v38  ;;  %v1500_v0 = vor.u32 1.1754944e-38, %v1499_v24  ;;  %v7813_v42 = vor.u32 %v6002_v4, %v5456_v10  ;;  %v9573_v57 = vld [vmem:[#allocation35_spill] sm:$0xff]  ;;  %v5993_v24 = vld [vmem:[%s9501_s4 + $0x184] sm:$0xf]  ;;  %v5438_v19 = vld [vmem:[%s9501_s4 + $0x1a8] sm:$0xf] }
 0x50a   :  { %v7830_v16 = vor.u32 %v5999_v29, %v5430_v33  ;;  %v383_v27 = vadd.f32 %v9573_v57, %v7194_v50  ;;  %v7843_v38 = vor.u32 %v5997_v11, %v5432_v56  ;;  %v6004_v6 = vld [vmem:[%s9501_s4 + $0x1d4] sm:$0xf0]  ;;  %v7883_v53 = vor.u32 %v5993_v24, %v5416_v63  ;;  %v5987_v30 = vld [vmem:[%s9501_s4 + $0x14c] sm:$0xf0]  ;;  %v5985_v4 = vld [vmem:[%s9501_s4 + $0x144] sm:$0xf] }
 0x50b   :  { %v7735_v25 = vadd.f32 %v1504_v45, %v1503_v34  ;;  %v1492_v5 = vadd.f32 %v6195_v2, %v1491_v18  ;;  %v5414_v45 = vld [vmem:[%s9501_s4 + $0x180] sm:$0xf]  ;;  %v5995_v34 = vld [vmem:[%s9501_s4 + $0x18c] sm:$0xf0]  ;;  %v6000_v49 = vld [vmem:[%s9501_s4 + $0x1b4] sm:$0xf0] }
 0x50c   :  { %v7897_v8 = vor.u32 %v6000_v49, %v5438_v19  ;;  %v5384_v10 = vld [vmem:[%s9501_s4 + $0x150] sm:$0xf0]  ;;  %v5392_v33 = vld [vmem:[%s9501_s4 + $0x158] sm:$0xf0]  ;;  %v5406_v11 = vld [vmem:[%s9501_s4 + $0x168] sm:$0xf] }
 0x50d   :  { %6198 = vtanh.f32 %v7735_v25  ;;  %v1496_v39 = vsel %vm1495_vm2, %v6195_v2, %v1492_v5  ;;  %v6003_v2 = vld [vmem:[%s9501_s4 + $0x1cc] sm:$0xf0]  ;;  %v7858_v5 = vor.u32 %v6004_v6, %v5454_v54  ;;  %v5992_v56 = vld [vmem:[%s9501_s4 + $0x174] sm:$0xf0]  ;;  %v7961_v40 = vor.u32 %v5985_v4, %v5384_v10  ;;  %v5366_v57 = vld [vmem:[%s9501_s4 + $0x120] sm:$0xf] }
 0x50e   :  { %v1501_v58 = vsel %vm1498_vm3, %v1500_v0, %v1496_v39  ;;  %v7800_v3 = vor.u32 %v6003_v2, %v5446_v52  ;;  %v5994_v39 = vld [vmem:[%s9501_s4 + $0x18c] sm:$0xf]  ;;  %v7925_v52 = vor.u32 %v5990_v55, %v5408_v21  ;;  %v5382_v2 = vld [vmem:[%s9501_s4 + $0x140] sm:$0xf]  ;;  %v5981_v24 = vld [vmem:[%s9501_s4 + $0x124] sm:$0xf] }
 0x50f   :  { %v7951_v29 = vor.u32 %v5987_v30, %v5382_v2  ;;  %v5368_v63 = vld [vmem:[%s9501_s4 + $0x130] sm:$0xf0]  ;;  %v5982_v19 = vld [vmem:[%s9501_s4 + $0x12c] sm:$0xf]  ;;  %v5376_v49 = vld [vmem:[%s9501_s4 + $0x138] sm:$0xf0] }
 0x510   :  { %v8018_v21 = vor.u32 %v5982_v19, %v5376_v49  ;;  %v5350_v30 = vld [vmem:[%s9501_s4 + $0x100] sm:$0xf]  ;;  %v5979_v4 = vld [vmem:[%s9501_s4 + $0x10c] sm:$0xf0] }
 0x513   :  { %v6199_v37 = vpop.eup %6198 }
 0x514   :  { %v7741_v41 = vmul.f32 %v6199_v37, %v1501_v58 }
 0x516   :  { %v1517_v47 = vpack.c.bf16 %v7741_v41, %v7741_v41 }
 0x518   :  { %1526 = vmatmul.bf16.vlgmr.msra.gmra.mxu0 %v1517_v47  ;;  %1539 = vmatmul.bf16.vlgmr.msra.gmra.mxu1 %v1517_v47 }
 0x519   :  { %1552 = vmatmul.bf16.vlgmr.msra.gmra.mxu2 %v1517_v47  ;;  %1565 = vmatmul.bf16.vlgmr.msra.gmra.mxu3 %v1517_v47  ;;  %v7870_v47 = vor.u32 %v5995_v34, %v5414_v45  ;;  %v9574_v45 = vld [vmem:[#allocation34_spill] sm:$0xff] }
 0x51a   :  { %2200 = vmatpush.bf16.msra.mxu0 %v7756_v59  ;;  %2213 = vmatpush.bf16.msra.mxu1 %v7761_v62  ;;  %v354_v34 = vadd.f32 %v9574_v45, %v7192_v46  ;;  %v5988_v46 = vld [vmem:[%s9501_s4 + $0x154] sm:$0xf0] }
 0x51b   :  { %2239 = vmatpush.bf16.msra.mxu3 %v7775_v13  ;;  %2226 = vmatpush.bf16.msra.mxu2 %v7784_v20 }
 0x51e   :  { %2201 = vmatpush.bf16.msra.mxu0 %v7800_v3  ;;  %2214 = vmatpush.bf16.msra.mxu1 %v7811_v12 }
 0x51f   :  { %2240 = vmatpush.bf16.msra.mxu3 %v7813_v42  ;;  %2227 = vmatpush.bf16.msra.mxu2 %v7858_v5 }
 0x522   :  { %2202 = vmatpush.bf16.msra.mxu0 %v7830_v16  ;;  %2215 = vmatpush.bf16.msra.mxu1 %v7843_v38 }
 0x523   :  { %2241 = vmatpush.bf16.msra.mxu3 %v7845_v28  ;;  %2228 = vmatpush.bf16.msra.mxu2 %v7897_v8 }
 0x526   :  { %2203 = vmatpush.bf16.msra.mxu0 %v7870_v47  ;;  %2216 = vmatpush.bf16.msra.mxu1 %v7883_v53 }
 0x528   :  { %1863 = vmatmul.bf16.vlgmr.msrb.gmra.mxu0 %v1649_v48  ;;  %1892 = vmatmul.bf16.vlgmr.msrb.gmra.mxu1 %v1649_v48 }
 0x529   :  { %1921 = vmatmul.bf16.vlgmr.msrb.gmra.mxu2 %v1649_v48  ;;  %1950 = vmatmul.bf16.vlgmr.msrb.gmra.mxu3 %v1649_v48  ;;  %v5424_v48 = vld [vmem:[%s9501_s4 + $0x198] sm:$0xf0] }
 0x52a   :  { %v7885_v23 = vor.u32 %v5994_v39, %v5424_v48 }
 0x52c   :  { %2242 = vmatpush.bf16.msra.mxu3 %v7885_v23 }
 0x530   :  { %2243 = vmatpush.bf16.msra.mxu3 %v7925_v52 }
 0x538   :  { %1868 = vmatmul.bf16.gmra.mxu0 %v1650_v1  ;;  %1897 = vmatmul.bf16.gmra.mxu1 %v1650_v1 }
 0x539   :  { %1926 = vmatmul.bf16.gmra.mxu2 %v1650_v1  ;;  %1955 = vmatmul.bf16.gmra.mxu3 %v1650_v1  ;;  %v5989_v1 = vld [vmem:[%s9501_s4 + $0x164] sm:$0xf] }
 0x548   :  { %1873 = vmatmul.bf16.gmra.mxu0 %v1651_v7  ;;  %1902 = vmatmul.bf16.gmra.mxu1 %v1651_v7 }
 0x549   :  { %1931 = vmatmul.bf16.gmra.mxu2 %v1651_v7  ;;  %1960 = vmatmul.bf16.gmra.mxu3 %v1651_v7 }
 0x595   :  { %v1527_v35 = vpop.f32.mrf.mxu0  ;;  %v1540_v43 = vpop.f32.mrf.mxu1 }
 0x596   :  { %v1570_v44 = vadd.f32 %v1527_v35, %v296_v22  ;;  %v1571_v51 = vadd.f32 %v1540_v43, %v325_v32  ;;  %v5422_v22 = vld [vmem:[%s9501_s4 + $0x188] sm:$0xf]  ;;  %v7917_v43 = vor.u32 %v5991_v17, %v5398_v60 }
 0x597   :  { %v7935_v36 = vor.u32 %v5996_v26, %v5422_v22  ;;  %v5374_v22 = vld [vmem:[%s9501_s4 + $0x128] sm:$0xf]  ;;  %v5984_v26 = vld [vmem:[%s9501_s4 + $0x134] sm:$0xf0] }
 0x598   :  { %v5185_v14 = vmul.f32 -1.442695, %v1570_v44  ;;  %v5186_v15 = vmul.f32 -1.442695, %v1571_v51  ;;  %v7923_v51 = vor.u32 %v5989_v1, %v5400_v9  ;;  %2204 = vmatpush.bf16.msra.mxu0 %v7917_v43 }
 0x599   :  { %2229 = vmatpush.bf16.msra.mxu2 %v7935_v36 }
 0x59a   :  { %6200 = vpow2.f32 %v5185_v14  ;;  %v5986_v14 = vld [vmem:[%s9501_s4 + $0x14c] sm:$0xf]  ;;  %2217 = vmatpush.bf16.msra.mxu1 %v7923_v51 }
 0x59b   :  { %6202 = vpow2.f32 %v5186_v15  ;;  %v7963_v31 = vor.u32 %v5986_v14, %v5392_v33 }
 0x59c   :  { %v7856_v18 = vpop.f32.mrf.mxu2  ;;  %v1566_v50 = vpop.f32.mrf.mxu3  ;;  %2205 = vmatpush.bf16.msra.mxu0 %v7951_v29 }
 0x59d   :  { %v1573_v0 = vadd.f32 %v1566_v50, %v383_v27  ;;  %v1529_v37 = vpop.f32.mrf.mxu0  ;;  %v1542_v58 = vpop.f32.mrf.mxu1  ;;  %v5983_v27 = vld [vmem:[%s9501_s4 + $0x12c] sm:$0xf0]  ;;  %v7974_v50 = vor.u32 %v5992_v56, %v5406_v11  ;;  %2244 = vmatpush.bf16.msra.mxu3 %v7963_v31  ;;  %v8048_v11 = vor.u32 %v5979_v4, %v5350_v30 }
 0x59e   :  { %v1572_v58 = vadd.f32 %v7856_v18, %v354_v34  ;;  %v7994_v48 = vor.u32 %v5983_v27, %v5366_v57  ;;  %2218 = vmatpush.bf16.msra.mxu1 %v7961_v40  ;;  %v8009_v18 = vor.u32 %v5981_v24, %v5368_v63  ;;  %v8052_v57 = vor.u32 %v5984_v26, %v5374_v22  ;;  %v5978_v27 = vld [vmem:[%s9501_s4 + $0x10c] sm:$0xf]  ;;  %v5358_v34 = vld [vmem:[%s9501_s4 + $0x108] sm:$0xf]  ;;  %v5980_v24 = vld [vmem:[%s9501_s4 + $0x114] sm:$0xf0] }
 0x59f   :  { %v5187_v7 = vmul.f32 -1.442695, %v1573_v0  ;;  %v5390_v0 = vld [vmem:[%s9501_s4 + $0x148] sm:$0xf]  ;;  %2230 = vmatpush.bf16.msra.mxu2 %v7974_v50  ;;  %v5360_v63 = vld [vmem:[%s9501_s4 + $0x118] sm:$0xf0] }
 0x5a0   :  { %v6201_v61 = vpop.eup %6200  ;;  %v8015_v9 = vor.u32 %v5988_v46, %v5390_v0  ;;  %2206 = vmatpush.bf16.msra.mxu0 %v7994_v48  ;;  %v8074_v46 = vor.u32 %v5978_v27, %v5360_v63 }
 0x5a1   :  { %v6203_v32 = vpop.eup %6202  ;;  %v7914_v35 = vadd.f32 1.0, %v6201_v61  ;;  %6204 = vpow2.f32 %v5187_v7  ;;  %2245 = vmatpush.bf16.msra.mxu3 %v8018_v21 }
 0x5a2   :  { %v7919_v44 = vadd.f32 1.0, %v6203_v32  ;;  %2219 = vmatpush.bf16.msra.mxu1 %v8009_v18 }
 0x5a3   :  { %6206 = vrcp.f32 %v7914_v35  ;;  %v1587_v7 = vand.u32 2147483647, %v7914_v35  ;;  %v1589_v61 = vand.u32 2147483648, %v7914_v35  ;;  %2231 = vmatpush.bf16.msra.mxu2 %v8015_v9  ;;  %vm1583_vm7 = vweird.f32 %v7914_v35 }
 0x5a4   :  { %6208 = vrcp.f32 %v7919_v44  ;;  %v1555_v15 = vpop.f32.mrf.mxu2  ;;  %v1568_v54 = vpop.f32.mrf.mxu3  ;;  %v1608_v2 = vand.u32 2147483648, %v7919_v44  ;;  %v1606_v14 = vand.u32 2147483647, %v7919_v44  ;;  %vm1602_vm6 = vweird.f32 %v7919_v44  ;;  %2207 = vmatpush.bf16.msra.mxu0 %v8048_v11 }
 0x5a5   :  { %v5977_v15 = vld [vmem:[%s9501_s4 + $0x104] sm:$0xf]  ;;  %v5352_v54 = vld [vmem:[%s9501_s4 + $0x110] sm:$0xf0]  ;;  %vm1588_vm10 = vcmp.eq.f32.partialorder %v1587_v7, 8.507059e+37  ;;  %2246 = vmatpush.bf16.msra.mxu3 %v8074_v46 }
 0x5a6   :  { %v8050_v56 = vor.u32 %v5977_v15, %v5352_v54  ;;  %vm1607_vm11 = vcmp.eq.f32.partialorder %v1606_v14, 8.507059e+37  ;;  %v1864_v54 = vpop.f32.mrf.mxu0 }
 0x5a7   :  { %v6205_v6 = vpop.eup %6204  ;;  %2232 = vmatpush.bf16.msra.mxu2 %v8052_v57 }
 0x5a8   :  { %v7982_v39 = vadd.f32 1.0, %v6205_v6  ;;  %2220 = vmatpush.bf16.msra.mxu1 %v8050_v56  ;;  %2325 = vmatpush.bf16.msrb.mxu0 %v7756_v59 }
 0x5a9   :  { %v7990_v37 = vpop.eup %6206  ;;  %2364 = vmatpush.bf16.msrb.mxu3 %v7775_v13 }
 0x5aa   :  { %v8002_v60 = vpop.eup %6208  ;;  %v1579_v17 = vmul.f32 %v7990_v37, %v7914_v35  ;;  %6210 = vrcp.f32 %v7982_v39  ;;  %vm1584_vm5 = vweird.f32 %v7990_v37  ;;  %vm1622_vm13 = vweird.f32 %v7982_v39 }
 0x5ab   :  { %v1598_v1 = vmul.f32 %v8002_v60, %v7919_v44  ;;  %6212 = vtanh.f32 %v1572_v58  ;;  %vm1603_vm4 = vweird.f32 %v8002_v60  ;;  %vm1585_vm8 = vmor %vm1583_vm7, %vm1584_vm5  ;;  %v1590_v44 = vor.u32 1.1754944e-38, %v1589_v61 }
 0x5ac   :  { %v1580_v55 = vsub.f32 1.0, %v1579_v17  ;;  %vm1604_vm9 = vmor %vm1602_vm6, %vm1603_vm4  ;;  %v1609_v58 = vor.u32 1.1754944e-38, %v1608_v2  ;;  %v8083_v61 = vor.u32 %v5980_v24, %v5358_v34  ;;  %2338 = vmatpush.bf16.msrb.mxu1 %v7761_v62  ;;  %2326 = vmatpush.bf16.msrb.mxu0 %v7800_v3  ;;  %v1628_v2 = vand.u32 2147483648, %v7982_v39  ;;  %v1922_v27 = vpop.f32.mrf.mxu2 }
 0x5ad   :  { %v1599_v32 = vsub.f32 1.0, %v1598_v1  ;;  %2365 = vmatpush.bf16.msrb.mxu3 %v7813_v42 }
 0x5ae   :  { %v1581_v10 = vmul.f32 %v7990_v37, %v1580_v55  ;;  %2233 = vmatpush.bf16.msra.mxu2 %v8083_v61  ;;  %v1629_v4 = vor.u32 1.1754944e-38, %v1628_v2 }
 0x5af   :  { %v1600_v33 = vmul.f32 %v8002_v60, %v1599_v32 }
 0x5b0   :  { %v6211_v6 = vpop.eup %6210  ;;  %v1582_v45 = vadd.f32 %v7990_v37, %v1581_v10  ;;  %2339 = vmatpush.bf16.msrb.mxu1 %v7811_v12  ;;  %2327 = vmatpush.bf16.msrb.mxu0 %v7830_v16 }
 0x5b1   :  { %v1601_v0 = vadd.f32 %v8002_v60, %v1600_v33  ;;  %v1618_v35 = vmul.f32 %v6211_v6, %v7982_v39  ;;  %v6213_v49 = vpop.eup %6212  ;;  %vm1623_vm12 = vweird.f32 %v6211_v6  ;;  %2366 = vmatpush.bf16.msrb.mxu3 %v7845_v28  ;;  %v1893_v33 = vpop.f32.mrf.mxu1 }
 0x5b2   :  { %v1586_v19 = vsel %vm1585_vm8, %v7990_v37, %v1582_v45  ;;  %2351 = vmatpush.bf16.msrb.mxu2 %v7784_v20  ;;  %vm1624_vm14 = vmor %vm1622_vm13, %vm1623_vm12  ;;  %v8159_v45 = vpop.f32.mrf.mxu0 }
 0x5b3   :  { %v1591_v17 = vsel %vm1588_vm10, %v1590_v44, %v1586_v19  ;;  %v1605_v1 = vsel %vm1604_vm9, %v8002_v60, %v1601_v0  ;;  %v1619_v55 = vsub.f32 1.0, %v1618_v35 }
 0x5b4   :  { %v1610_v22 = vsel %vm1607_vm11, %v1609_v58, %v1605_v1  ;;  %v1633_v26 = vmul.f32 %v6213_v49, %v1591_v17  ;;  %2340 = vmatpush.bf16.msrb.mxu1 %v7843_v38  ;;  %2328 = vmatpush.bf16.msrb.mxu0 %v7870_v47  ;;  %v8163_v24 = vpop.f32.mrf.mxu2 }
 0x5b5   :  { %v1632_v37 = vmul.f32 %v1610_v22, %v7735_v25  ;;  %v1620_v7 = vmul.f32 %v6211_v6, %v1619_v55  ;;  %v1626_v25 = vand.u32 2147483647, %v7982_v39  ;;  %2367 = vmatpush.bf16.msrb.mxu3 %v7885_v23  ;;  %9576 = vst [vmem:[#allocation13_spill] sm:$0xff] %v8163_v24 }
 0x5b6   :  { %2352 = vmatpush.bf16.msrb.mxu2 %v7858_v5 }
 0x5b7   :  { %v1634_v32 = vadd.f32 %v1633_v26, %v1632_v37  ;;  %v1621_v60 = vadd.f32 %v6211_v6, %v1620_v7  ;;  %vm1627_vm15 = vcmp.eq.f32.partialorder %v1626_v25, 8.507059e+37 }
 0x5b8   :  { %2341 = vmatpush.bf16.msrb.mxu1 %v7883_v53  ;;  %2329 = vmatpush.bf16.msrb.mxu0 %v7917_v43 }
 0x5b9   :  { %6214 = vtanh.f32 %v1634_v32  ;;  %1640 = vst [vmem:[#allocation8] sm:$0xff] %v1634_v32  ;;  %v1625_v30 = vsel %vm1624_vm14, %v6211_v6, %v1621_v60  ;;  %2368 = vmatpush.bf16.msrb.mxu3 %v7925_v52  ;;  %v1951_v6 = vpop.f32.mrf.mxu3  ;;  %v8161_v34 = vpop.f32.mrf.mxu1 }
 0x5ba   :  { %v1630_v14 = vsel %vm1627_vm15, %v1629_v4, %v1625_v30  ;;  %2353 = vmatpush.bf16.msrb.mxu2 %v7897_v8  ;;  %v8167_v44 = vpop.f32.mrf.mxu0 }
 0x5bb   :  { %9577 = vst [vmem:[#allocation16_spill] sm:$0xff] %v8167_v44 }
 0x5bc   :  { %2342 = vmatpush.bf16.msrb.mxu1 %v7923_v51  ;;  %2330 = vmatpush.bf16.msrb.mxu0 %v7951_v29  ;;  %v8171_v35 = vpop.f32.mrf.mxu2 }
 0x5bd   :  { %2369 = vmatpush.bf16.msrb.mxu3 %v7963_v31  ;;  %9579 = vst [vmem:[#allocation15_spill] sm:$0xff] %v8171_v35 }
 0x5be   :  { %2354 = vmatpush.bf16.msrb.mxu2 %v7935_v36 }
 0x5bf   :  { %v6215_v10 = vpop.eup %6214 }
 0x5c0   :  { %v1636_v15 = vmul.f32 %v6215_v10, %v1630_v14  ;;  %2343 = vmatpush.bf16.msrb.mxu1 %v7961_v40  ;;  %2331 = vmatpush.bf16.msrb.mxu0 %v7994_v48  ;;  %v1685_v14 = vld [vmem:[%s9502_s5] sm:$0xf] }
 0x5c1   :  { %2370 = vmatpush.bf16.msrb.mxu3 %v8018_v21  ;;  %v8165_v63 = vpop.f32.mrf.mxu3  ;;  %v8169_v0 = vpop.f32.mrf.mxu1 }
 0x5c2   :  { %1639 = vst [vmem:[#allocation6] sm:$0xff] %v1636_v15  ;;  %v1652_v39 = vpack.c.bf16 %v1636_v15, %v7741_v41  ;;  %2355 = vmatpush.bf16.msrb.mxu2 %v7974_v50  ;;  %v9575_v41 = vmov 0   ;;  %v8175_v19 = vpop.f32.mrf.mxu0 }
 0x5c3   :  { %9578 = vst [vmem:[#allocation14_spill] sm:$0xff] %v8169_v0 }
 0x5c4   :  { %1878 = vmatmul.bf16.gmra.mxu0 %v1652_v39  ;;  %1907 = vmatmul.bf16.gmra.mxu1 %v1652_v39  ;;  %9581 = vst [vmem:[#allocation19_spill] sm:$0xff] %v8175_v19  ;;  %v8179_v17 = vpop.f32.mrf.mxu2 }
 0x5c5   :  { %1936 = vmatmul.bf16.gmra.mxu2 %v1652_v39  ;;  %1965 = vmatmul.bf16.gmra.mxu3 %v1652_v39  ;;  %9583 = vst [vmem:[#allocation20_spill] sm:$0xff] %v8179_v17 }
 0x5c6   :  { %2356 = vmatpush.bf16.msrb.mxu2 %v8015_v9  ;;  %2344 = vmatpush.bf16.msrb.mxu1 %v8009_v18 }
 0x5c7   :  { %2332 = vmatpush.bf16.msrb.mxu0 %v8048_v11  ;;  %2371 = vmatpush.bf16.msrb.mxu3 %v8074_v46 }
 0x5c9   :  { %v8173_v58 = vpop.f32.mrf.mxu3  ;;  %v8177_v49 = vpop.f32.mrf.mxu1 }
 0x5ca   :  { %2357 = vmatpush.bf16.msrb.mxu2 %v8052_v57  ;;  %2345 = vmatpush.bf16.msrb.mxu1 %v8050_v56  ;;  %9580 = vst [vmem:[#allocation17_spill] sm:$0xff] %v8173_v58  ;;  %v8183_v55 = vpop.f32.mrf.mxu0 }
 0x5cb   :  { %9582 = vst [vmem:[#allocation18_spill] sm:$0xff] %v8177_v49 }
 0x5cc   :  { %9585 = vst [vmem:[#allocation24_spill] sm:$0xff] %v8183_v55  ;;  %v8187_v26 = vpop.f32.mrf.mxu2 }
 0x5cd   :  { %9587 = vst [vmem:[#allocation23_spill] sm:$0xff] %v8187_v26 }
 0x5ce   :  { %2358 = vmatpush.bf16.msrb.mxu2 %v8083_v61 }
 0x5d1   :  { %v8181_v1 = vpop.f32.mrf.mxu3  ;;  %v8185_v22 = vpop.f32.mrf.mxu1 }
 0x5d2   :  { %9584 = vst [vmem:[#allocation21_spill] sm:$0xff] %v8181_v1  ;;  %v8191_v7 = vpop.f32.mrf.mxu0 }
 0x5d3   :  { %9586 = vst [vmem:[#allocation22_spill] sm:$0xff] %v8185_v22 }
 0x5d4   :  { %2208 = vmatmul.bf16.vlgmr.msra.gmra.mxu0 %v9575_v41  ;;  %2221 = vmatmul.bf16.vlgmr.msra.gmra.mxu1 %v9575_v41  ;;  %9589 = vst [vmem:[#allocation27_spill] sm:$0xff] %v8191_v7  ;;  %v8195_v60 = vpop.f32.mrf.mxu2 }
 0x5d5   :  { %2234 = vmatmul.bf16.vlgmr.msra.gmra.mxu2 %v9575_v41  ;;  %2247 = vmatmul.bf16.vlgmr.msra.gmra.mxu3 %v9575_v41  ;;  %9591 = vst [vmem:[#allocation28_spill] sm:$0xff] %v8195_v60  ;;  %v8214_v41 = vperm.slane %v1685_v14, 0  ;;  %v8216_v60 = vperm.slane %v1685_v14, 1 }
 0x5d6   :  { %2450 = vmatpush.bf16.msra.mxu0 %v7756_v59  ;;  %2463 = vmatpush.bf16.msra.mxu1 %v7761_v62 }
 0x5d7   :  { %2476 = vmatpush.bf16.msra.mxu2 %v7784_v20  ;;  %2489 = vmatpush.bf16.msra.mxu3 %v7775_v13 }
 0x5d9   :  { %v8189_v37 = vpop.f32.mrf.mxu3  ;;  %v8193_v32 = vpop.f32.mrf.mxu1 }
 0x5da   :  { %2451 = vmatpush.bf16.msra.mxu0 %v7800_v3  ;;  %2464 = vmatpush.bf16.msra.mxu1 %v7811_v12  ;;  %9588 = vst [vmem:[#allocation25_spill] sm:$0xff] %v8189_v37  ;;  %v8224_v37 = vperm.slane %v1685_v14, 3 }
 0x5db   :  { %2477 = vmatpush.bf16.msra.mxu2 %v7858_v5  ;;  %2490 = vmatpush.bf16.msra.mxu3 %v7813_v42  ;;  %9590 = vst [vmem:[#allocation26_spill] sm:$0xff] %v8193_v32 }
 0x5dc   :  { %v1952_v22 = vadd.f32 %v1951_v6, %v8224_v37 }
 0x5de   :  { %2452 = vmatpush.bf16.msra.mxu0 %v7830_v16  ;;  %2465 = vmatpush.bf16.msra.mxu1 %v7843_v38 }
 0x5df   :  { %2478 = vmatpush.bf16.msra.mxu2 %v7897_v8  ;;  %2491 = vmatpush.bf16.msra.mxu3 %v7845_v28 }
 0x5e1   :  { %v8197_v2 = vpop.f32.mrf.mxu3 }
 0x5e2   :  { %2453 = vmatpush.bf16.msra.mxu0 %v7870_v47  ;;  %2466 = vmatpush.bf16.msra.mxu1 %v7883_v53  ;;  %9592 = vst [vmem:[#allocation29_spill] sm:$0xff] %v8197_v2 }
 0x5e3   :  { %2479 = vmatpush.bf16.msra.mxu2 %v7935_v36  ;;  %2492 = vmatpush.bf16.msra.mxu3 %v7885_v23 }
 0x5e6   :  { %2454 = vmatpush.bf16.msra.mxu0 %v7917_v43  ;;  %2467 = vmatpush.bf16.msra.mxu1 %v7923_v51 }
 0x5e7   :  { %2480 = vmatpush.bf16.msra.mxu2 %v7974_v50  ;;  %2493 = vmatpush.bf16.msra.mxu3 %v7925_v52 }
 0x5ea   :  { %2455 = vmatpush.bf16.msra.mxu0 %v7951_v29  ;;  %2468 = vmatpush.bf16.msra.mxu1 %v7961_v40 }
 0x5eb   :  { %2481 = vmatpush.bf16.msra.mxu2 %v8015_v9  ;;  %2494 = vmatpush.bf16.msra.mxu3 %v7963_v31 }
 0x5ee   :  { %2456 = vmatpush.bf16.msra.mxu0 %v7994_v48  ;;  %2469 = vmatpush.bf16.msra.mxu1 %v8009_v18 }
 0x5ef   :  { %2482 = vmatpush.bf16.msra.mxu2 %v8052_v57  ;;  %2495 = vmatpush.bf16.msra.mxu3 %v8018_v21 }
 0x5f2   :  { %2457 = vmatpush.bf16.msra.mxu0 %v8048_v11  ;;  %2470 = vmatpush.bf16.msra.mxu1 %v8050_v56 }
 0x5f3   :  { %2483 = vmatpush.bf16.msra.mxu2 %v8083_v61  ;;  %2496 = vmatpush.bf16.msra.mxu3 %v8074_v46 }
 0x641   :  { %v8199_v25 = vpop.f32.mrf.mxu0  ;;  %v8201_v30 = vpop.f32.mrf.mxu1 }
 0x642   :  { %9593 = vst [vmem:[#allocation32_spill] sm:$0xff] %v8199_v25  ;;  %v1865_v25 = vadd.f32 %v1864_v54, %v8214_v41 }
 0x643   :  { %9594 = vst [vmem:[#allocation30_spill] sm:$0xff] %v8201_v30  ;;  %v1894_v30 = vadd.f32 %v1893_v33, %v8216_v60 }
 0x648   :  { %v8203_v4 = vpop.f32.mrf.mxu2  ;;  %v8205_v10 = vpop.f32.mrf.mxu3 }
 0x649   :  { %9595 = vst [vmem:[#allocation11_spill] sm:$0xff] %v8203_v4  ;;  %v8210_v15 = vpop.f32.mrf.mxu0  ;;  %v8212_v39 = vpop.f32.mrf.mxu1 }
 0x64a   :  { %9596 = vst [vmem:[#allocation12_spill] sm:$0xff] %v8205_v10 }
 0x64b   :  { %9597 = vst [vmem:[#allocation31_spill] sm:$0xff] %v8210_v15 }
 0x64c   :  { %9598 = vst [vmem:[#allocation33_spill] sm:$0xff] %v8212_v39 }
 0x650   :  { %v8220_v2 = vpop.f32.mrf.mxu2  ;;  %v8222_v4 = vpop.f32.mrf.mxu3 }
 0x651   :  { %9599 = vst [vmem:[#allocation35_spill] sm:$0xff] %v8220_v2  ;;  %v2209_v10 = vpop.f32.mrf.mxu0  ;;  %v2222_v32 = vpop.f32.mrf.mxu1 }
 0x652   :  { %9600 = vst [vmem:[#allocation34_spill] sm:$0xff] %v8222_v4  ;;  %v2252_v7 = vadd.f32 %v2209_v10, %v1865_v25  ;;  %v2253_v26 = vadd.f32 %v2222_v32, %v1894_v30  ;;  %v8227_v32 = vperm.slane %v1685_v14, 2 }
 0x654   :  { %v5476_v15 = vmul.f32 -1.442695, %v2252_v7  ;;  %v5477_v39 = vmul.f32 -1.442695, %v2253_v26  ;;  %9601 = vst [vmem:[#allocation36_spill] sm:$0xff] %v8227_v32  ;;  %v1923_v6 = vadd.f32 %v1922_v27, %v8227_v32 }
 0x656   :  { %6216 = vpow2.f32 %v5476_v15 }
 0x657   :  { %6218 = vpow2.f32 %v5477_v39 }
 0x658   :  { %v2235_v55 = vpop.f32.mrf.mxu2  ;;  %v2248_v54 = vpop.f32.mrf.mxu3 }
 0x659   :  { %v2255_v17 = vadd.f32 %v2248_v54, %v1952_v22  ;;  %v2211_v33 = vpop.f32.mrf.mxu0  ;;  %v2224_v1 = vpop.f32.mrf.mxu1  ;;  %v2254_v22 = vadd.f32 %v2235_v55, %v1923_v6 }
 0x65b   :  { %v5478_v2 = vmul.f32 -1.442695, %v2255_v17 }
 0x65c   :  { %v6217_v49 = vpop.eup %6216 }
 0x65d   :  { %v6219_v4 = vpop.eup %6218  ;;  %v2259_v19 = vadd.f32 1.0, %v6217_v49  ;;  %6220 = vpow2.f32 %v5478_v2 }
 0x65e   :  { %v2278_v25 = vadd.f32 1.0, %v6219_v4 }
 0x65f   :  { %6222 = vrcp.f32 %v2259_v19  ;;  %v2271_v2 = vand.u32 2147483648, %v2259_v19  ;;  %v2269_v33 = vand.u32 2147483647, %v2259_v19  ;;  %vm2265_vm2 = vweird.f32 %v2259_v19 }
 0x660   :  { %6224 = vrcp.f32 %v2278_v25  ;;  %v2250_v26 = vpop.f32.mrf.mxu3  ;;  %v2237_v7 = vpop.f32.mrf.mxu2  ;;  %v2290_v4 = vand.u32 2147483648, %v2278_v25  ;;  %vm2284_vm3 = vweird.f32 %v2278_v25 }
 0x661   :  { %v2288_v7 = vand.u32 2147483647, %v2278_v25  ;;  %v2272_v55 = vor.u32 1.1754944e-38, %v2271_v2  ;;  %vm2270_vm5 = vcmp.eq.f32.partialorder %v2269_v33, 8.507059e+37 }
 0x662   :  { %v2291_v58 = vor.u32 1.1754944e-38, %v2290_v4 }
 0x663   :  { %v6221_v30 = vpop.eup %6220  ;;  %vm2289_vm7 = vcmp.eq.f32.partialorder %v2288_v7, 8.507059e+37 }
 0x664   :  { %v2298_v10 = vadd.f32 1.0, %v6221_v30 }
 0x665   :  { %v6223_v15 = vpop.eup %6222 }
 0x666   :  { %v6225_v39 = vpop.eup %6224  ;;  %v2261_v1 = vmul.f32 %v6223_v15, %v2259_v19  ;;  %6226 = vrcp.f32 %v2298_v10  ;;  %vm2266_vm0 = vweird.f32 %v6223_v15  ;;  %vm2304_vm9 = vweird.f32 %v2298_v10 }
 0x667   :  { %v2280_v17 = vmul.f32 %v6225_v39, %v2278_v25  ;;  %6228 = vtanh.f32 %v2254_v22  ;;  %vm2285_vm1 = vweird.f32 %v6225_v39  ;;  %vm2267_vm4 = vmor %vm2265_vm2, %vm2266_vm0  ;;  %v2310_v25 = vand.u32 2147483648, %v2298_v10 }
 0x668   :  { %v2262_v54 = vsub.f32 1.0, %v2261_v1  ;;  %vm2286_vm6 = vmor %vm2284_vm3, %vm2285_vm1 }
 0x669   :  { %v2281_v49 = vsub.f32 1.0, %v2280_v17  ;;  %v2311_v4 = vor.u32 1.1754944e-38, %v2310_v25 }
 0x66a   :  { %v2263_v14 = vmul.f32 %v6223_v15, %v2262_v54 }
 0x66b   :  { %v2282_v26 = vmul.f32 %v6225_v39, %v2281_v49 }
 0x66c   :  { %v6227_v35 = vpop.eup %6226  ;;  %v2264_v27 = vadd.f32 %v6223_v15, %v2263_v14 }
 0x66d   :  { %v2283_v30 = vadd.f32 %v6225_v39, %v2282_v26  ;;  %v2300_v6 = vmul.f32 %v6227_v35, %v2298_v10  ;;  %v6229_v22 = vpop.eup %6228  ;;  %vm2305_vm8 = vweird.f32 %v6227_v35 }
 0x66e   :  { %v2268_v1 = vsel %vm2267_vm4, %v6223_v15, %v2264_v27  ;;  %v2308_v15 = vand.u32 2147483647, %v2298_v10  ;;  %vm2306_vm10 = vmor %vm2304_vm9, %vm2305_vm8 }
 0x66f   :  { %v2273_v17 = vsel %vm2270_vm5, %v2272_v55, %v2268_v1  ;;  %v2287_v54 = vsel %vm2286_vm6, %v6225_v39, %v2283_v30  ;;  %v2301_v0 = vsub.f32 1.0, %v2300_v6  ;;  %v1954_v55 = vadd.f32 %v8165_v63, %v8224_v37 }
 0x670   :  { %v2292_v49 = vsel %vm2289_vm7, %v2291_v58, %v2287_v54  ;;  %v2315_v44 = vmul.f32 %v6229_v22, %v2273_v17  ;;  %vm2309_vm11 = vcmp.eq.f32.partialorder %v2308_v15, 8.507059e+37 }
 0x671   :  { %v2314_v24 = vmul.f32 0.0, %v2292_v49  ;;  %v2302_v32 = vmul.f32 %v6227_v35, %v2301_v0 }
 0x673   :  { %v8230_v14 = vadd.f32 %v2315_v44, %v2314_v24  ;;  %v2303_v19 = vadd.f32 %v6227_v35, %v2302_v32  ;;  %v1867_v24 = vadd.f32 %v8159_v45, %v8214_v41  ;;  %v1896_v44 = vadd.f32 %v8161_v34, %v8216_v60 }
 0x675   :  { %6230 = vtanh.f32 %v8230_v14  ;;  %v2307_v2 = vsel %vm2306_vm10, %v6227_v35, %v2303_v19 }
 0x676   :  { %v2312_v33 = vsel %vm2309_vm11, %v2311_v4, %v2307_v2  ;;  %v9602_v4 = vld [vmem:[#allocation36_spill] sm:$0xff] }
 0x67b   :  { %v6231_v39 = vpop.eup %6230 }
 0x67c   :  { %v8233_v26 = vmul.f32 %v6231_v39, %v2312_v33  ;;  %v9603_v39 = vld [vmem:[#allocation13_spill] sm:$0xff] }
 0x67d   :  { %v1925_v63 = vadd.f32 %v9603_v39, %v9602_v4 }
 0x67e   :  { %v2324_v0 = vpack.c.bf16 %v8233_v26, %v8233_v26 }
 0x680   :  { %2333 = vmatmul.bf16.vlgmr.msrb.gmra.mxu0 %v2324_v0  ;;  %2346 = vmatmul.bf16.vlgmr.msrb.gmra.mxu1 %v2324_v0 }
 0x681   :  { %2359 = vmatmul.bf16.vlgmr.msrb.gmra.mxu2 %v2324_v0  ;;  %2372 = vmatmul.bf16.vlgmr.msrb.gmra.mxu3 %v2324_v0 }
 0x682   :  { %2575 = vmatpush.bf16.msrb.mxu0 %v7756_v59  ;;  %2588 = vmatpush.bf16.msrb.mxu1 %v7761_v62 }
 0x683   :  { %2601 = vmatpush.bf16.msrb.mxu2 %v7784_v20  ;;  %2614 = vmatpush.bf16.msrb.mxu3 %v7775_v13 }
 0x686   :  { %2576 = vmatpush.bf16.msrb.mxu0 %v7800_v3  ;;  %2589 = vmatpush.bf16.msrb.mxu1 %v7811_v12 }
 0x687   :  { %2602 = vmatpush.bf16.msrb.mxu2 %v7858_v5  ;;  %2615 = vmatpush.bf16.msrb.mxu3 %v7813_v42 }
 0x68a   :  { %2577 = vmatpush.bf16.msrb.mxu0 %v7830_v16  ;;  %2590 = vmatpush.bf16.msrb.mxu1 %v7843_v38 }
 0x68b   :  { %2603 = vmatpush.bf16.msrb.mxu2 %v7897_v8  ;;  %2616 = vmatpush.bf16.msrb.mxu3 %v7845_v28 }
 0x68e   :  { %2578 = vmatpush.bf16.msrb.mxu0 %v7870_v47  ;;  %2591 = vmatpush.bf16.msrb.mxu1 %v7883_v53 }
 0x68f   :  { %2604 = vmatpush.bf16.msrb.mxu2 %v7935_v36  ;;  %2617 = vmatpush.bf16.msrb.mxu3 %v7885_v23 }
 0x692   :  { %2579 = vmatpush.bf16.msrb.mxu0 %v7917_v43  ;;  %2592 = vmatpush.bf16.msrb.mxu1 %v7923_v51 }
 0x693   :  { %2605 = vmatpush.bf16.msrb.mxu2 %v7974_v50  ;;  %2618 = vmatpush.bf16.msrb.mxu3 %v7925_v52 }
 0x696   :  { %2580 = vmatpush.bf16.msrb.mxu0 %v7951_v29  ;;  %2593 = vmatpush.bf16.msrb.mxu1 %v7961_v40 }
 0x697   :  { %2606 = vmatpush.bf16.msrb.mxu2 %v8015_v9  ;;  %2619 = vmatpush.bf16.msrb.mxu3 %v7963_v31 }
 0x69a   :  { %2581 = vmatpush.bf16.msrb.mxu0 %v7994_v48  ;;  %2594 = vmatpush.bf16.msrb.mxu1 %v8009_v18 }
 0x69b   :  { %2607 = vmatpush.bf16.msrb.mxu2 %v8052_v57  ;;  %2620 = vmatpush.bf16.msrb.mxu3 %v8018_v21 }
 0x69e   :  { %2582 = vmatpush.bf16.msrb.mxu0 %v8048_v11  ;;  %2595 = vmatpush.bf16.msrb.mxu1 %v8050_v56 }
 0x69f   :  { %2608 = vmatpush.bf16.msrb.mxu2 %v8083_v61  ;;  %2621 = vmatpush.bf16.msrb.mxu3 %v8074_v46 }
 0x6fd   :  { %v2334_v35 = vpop.f32.mrf.mxu0  ;;  %v2347_v58 = vpop.f32.mrf.mxu1 }
 0x6fe   :  { %v2377_v32 = vadd.f32 %v2334_v35, %v1867_v24  ;;  %v2378_v10 = vadd.f32 %v2347_v58, %v1896_v44 }
 0x700   :  { %v5479_v7 = vmul.f32 -1.442695, %v2377_v32  ;;  %v5480_v27 = vmul.f32 -1.442695, %v2378_v10 }
 0x702   :  { %6232 = vpow2.f32 %v5479_v7 }
 0x703   :  { %6234 = vpow2.f32 %v5480_v27 }
 0x704   :  { %v2360_v30 = vpop.f32.mrf.mxu2  ;;  %v2373_v6 = vpop.f32.mrf.mxu3 }
 0x705   :  { %v2380_v1 = vadd.f32 %v2373_v6, %v1954_v55  ;;  %v2336_v22 = vpop.f32.mrf.mxu0  ;;  %v2349_v17 = vpop.f32.mrf.mxu1  ;;  %v2379_v24 = vadd.f32 %v2360_v30, %v1925_v63 }
 0x707   :  { %v5481_v45 = vmul.f32 -1.442695, %v2380_v1 }
 0x708   :  { %v6233_v54 = vpop.eup %6232 }
 0x709   :  { %v6235_v49 = vpop.eup %6234  ;;  %v2384_v34 = vadd.f32 1.0, %v6233_v54  ;;  %6236 = vpow2.f32 %v5481_v45 }
 0x70a   :  { %v2403_v19 = vadd.f32 1.0, %v6235_v49 }
 0x70b   :  { %6238 = vrcp.f32 %v2384_v34  ;;  %v2396_v7 = vand.u32 2147483648, %v2384_v34  ;;  %v2394_v6 = vand.u32 2147483647, %v2384_v34  ;;  %vm2390_vm14 = vweird.f32 %v2384_v34 }
 0x70c   :  { %6240 = vrcp.f32 %v2403_v19  ;;  %v2362_v25 = vpop.f32.mrf.mxu2  ;;  %v2375_v15 = vpop.f32.mrf.mxu3  ;;  %v2415_v27 = vand.u32 2147483648, %v2403_v19  ;;  %v2413_v22 = vand.u32 2147483647, %v2403_v19  ;;  %vm2409_vm15 = vweird.f32 %v2403_v19 }
 0x70d   :  { %v2397_v30 = vor.u32 1.1754944e-38, %v2396_v7  ;;  %vm2395_vm2 = vcmp.eq.f32.partialorder %v2394_v6, 8.507059e+37 }
 0x70e   :  { %v2416_v25 = vor.u32 1.1754944e-38, %v2415_v27  ;;  %vm2414_vm3 = vcmp.eq.f32.partialorder %v2413_v22, 8.507059e+37 }
 0x70f   :  { %v6237_v2 = vpop.eup %6236 }
 0x710   :  { %v2423_v33 = vadd.f32 1.0, %v6237_v2 }
 0x711   :  { %v6239_v0 = vpop.eup %6238 }
 0x712   :  { %v6241_v44 = vpop.eup %6240  ;;  %v2386_v35 = vmul.f32 %v6239_v0, %v2384_v34  ;;  %6242 = vrcp.f32 %v2423_v33  ;;  %vm2391_vm12 = vweird.f32 %v6239_v0  ;;  %v2435_v7 = vand.u32 2147483648, %v2423_v33 }
 0x713   :  { %v2405_v58 = vmul.f32 %v6241_v44, %v2403_v19  ;;  %6244 = vtanh.f32 %v2379_v24  ;;  %vm2410_vm13 = vweird.f32 %v6241_v44  ;;  %vm2392_vm0 = vmor %vm2390_vm14, %vm2391_vm12  ;;  %vm2429_vm5 = vweird.f32 %v2423_v33 }
 0x714   :  { %v2387_v32 = vsub.f32 1.0, %v2386_v35  ;;  %vm2411_vm1 = vmor %vm2409_vm15, %vm2410_vm13 }
 0x715   :  { %v2406_v10 = vsub.f32 1.0, %v2405_v58 }
 0x716   :  { %v2388_v55 = vmul.f32 %v6239_v0, %v2387_v32 }
 0x717   :  { %v2407_v1 = vmul.f32 %v6241_v44, %v2406_v10 }
 0x718   :  { %v6243_v17 = vpop.eup %6242  ;;  %v2389_v45 = vadd.f32 %v6239_v0, %v2388_v55  ;;  %v2436_v55 = vor.u32 1.1754944e-38, %v2435_v7 }
 0x719   :  { %v2408_v54 = vadd.f32 %v6241_v44, %v2407_v1  ;;  %v2425_v49 = vmul.f32 %v6243_v17, %v2423_v33  ;;  %v6245_v2 = vpop.eup %6244  ;;  %vm2430_vm4 = vweird.f32 %v6243_v17 }
 0x71a   :  { %v2393_v15 = vsel %vm2392_vm0, %v6239_v0, %v2389_v45  ;;  %v2433_v0 = vand.u32 2147483647, %v2423_v33  ;;  %vm2431_vm6 = vmor %vm2429_vm5, %vm2430_vm4  ;;  %v9604_v33 = vld [vmem:[#allocation16_spill] sm:$0xff] }
 0x71b   :  { %v2398_v39 = vsel %vm2395_vm2, %v2397_v30, %v2393_v15  ;;  %v2412_v63 = vsel %vm2411_vm1, %v6241_v44, %v2408_v54  ;;  %v2426_v24 = vsub.f32 1.0, %v2425_v49  ;;  %v1870_v22 = vadd.f32 %v9604_v33, %v8214_v41  ;;  %v9607_v33 = vld [vmem:[#allocation15_spill] sm:$0xff] }
 0x71c   :  { %v2417_v35 = vsel %vm2414_vm3, %v2416_v25, %v2412_v63  ;;  %v2440_v58 = vmul.f32 %v6245_v2, %v2398_v39  ;;  %vm2434_vm7 = vcmp.eq.f32.partialorder %v2433_v0, 8.507059e+37  ;;  %v9606_v39 = vld [vmem:[#allocation17_spill] sm:$0xff] }
 0x71d   :  { %v2439_v32 = vmul.f32 %v2417_v35, %v8230_v14  ;;  %v2427_v10 = vmul.f32 %v6243_v17, %v2426_v24  ;;  %v1957_v63 = vadd.f32 %v9606_v39, %v8224_v37 }
 0x71f   :  { %v8278_v34 = vadd.f32 %v2440_v58, %v2439_v32  ;;  %v2428_v19 = vadd.f32 %v6243_v17, %v2427_v10 }
 0x721   :  { %6246 = vtanh.f32 %v8278_v34  ;;  %v2432_v27 = vsel %vm2431_vm6, %v6243_v17, %v2428_v19  ;;  %v9605_v17 = vld [vmem:[#allocation14_spill] sm:$0xff] }
 0x722   :  { %v2437_v6 = vsel %vm2434_vm7, %v2436_v55, %v2432_v27  ;;  %v1899_v45 = vadd.f32 %v9605_v17, %v8216_v60 }
 0x727   :  { %v6247_v44 = vpop.eup %6246 }
 0x728   :  { %v8281_v1 = vmul.f32 %v6247_v44, %v2437_v6 }
 0x72a   :  { %v2449_v14 = vpack.c.bf16 %v8281_v1, %v8281_v1 }
 0x72c   :  { %2458 = vmatmul.bf16.vlgmr.msra.gmra.mxu0 %v2449_v14  ;;  %2471 = vmatmul.bf16.vlgmr.msra.gmra.mxu1 %v2449_v14 }
 0x72d   :  { %2484 = vmatmul.bf16.vlgmr.msra.gmra.mxu2 %v2449_v14  ;;  %2497 = vmatmul.bf16.vlgmr.msra.gmra.mxu3 %v2449_v14 }
 0x72e   :  { %2700 = vmatpush.bf16.msra.mxu0 %v7756_v59  ;;  %2713 = vmatpush.bf16.msra.mxu1 %v7761_v62 }
 0x72f   :  { %2726 = vmatpush.bf16.msra.mxu2 %v7784_v20  ;;  %2739 = vmatpush.bf16.msra.mxu3 %v7775_v13 }
 0x732   :  { %2701 = vmatpush.bf16.msra.mxu0 %v7800_v3  ;;  %2714 = vmatpush.bf16.msra.mxu1 %v7811_v12 }
 0x733   :  { %2727 = vmatpush.bf16.msra.mxu2 %v7858_v5  ;;  %2740 = vmatpush.bf16.msra.mxu3 %v7813_v42 }
 0x736   :  { %2702 = vmatpush.bf16.msra.mxu0 %v7830_v16  ;;  %2715 = vmatpush.bf16.msra.mxu1 %v7843_v38 }
 0x737   :  { %2728 = vmatpush.bf16.msra.mxu2 %v7897_v8  ;;  %2741 = vmatpush.bf16.msra.mxu3 %v7845_v28 }
 0x73a   :  { %2703 = vmatpush.bf16.msra.mxu0 %v7870_v47  ;;  %2716 = vmatpush.bf16.msra.mxu1 %v7883_v53 }
 0x73b   :  { %2729 = vmatpush.bf16.msra.mxu2 %v7935_v36  ;;  %2742 = vmatpush.bf16.msra.mxu3 %v7885_v23 }
 0x73e   :  { %2704 = vmatpush.bf16.msra.mxu0 %v7917_v43  ;;  %2717 = vmatpush.bf16.msra.mxu1 %v7923_v51 }
 0x73f   :  { %2730 = vmatpush.bf16.msra.mxu2 %v7974_v50  ;;  %2743 = vmatpush.bf16.msra.mxu3 %v7925_v52 }
 0x742   :  { %2705 = vmatpush.bf16.msra.mxu0 %v7951_v29  ;;  %2718 = vmatpush.bf16.msra.mxu1 %v7961_v40 }
 0x743   :  { %2731 = vmatpush.bf16.msra.mxu2 %v8015_v9  ;;  %2744 = vmatpush.bf16.msra.mxu3 %v7963_v31 }
 0x746   :  { %2706 = vmatpush.bf16.msra.mxu0 %v7994_v48  ;;  %2719 = vmatpush.bf16.msra.mxu1 %v8009_v18 }
 0x747   :  { %2732 = vmatpush.bf16.msra.mxu2 %v8052_v57  ;;  %2745 = vmatpush.bf16.msra.mxu3 %v8018_v21 }
 0x74a   :  { %2707 = vmatpush.bf16.msra.mxu0 %v8048_v11  ;;  %2720 = vmatpush.bf16.msra.mxu1 %v8050_v56 }
 0x74b   :  { %2733 = vmatpush.bf16.msra.mxu2 %v8083_v61  ;;  %2746 = vmatpush.bf16.msra.mxu3 %v8074_v46 }
 0x7a9   :  { %v2459_v30 = vpop.f32.mrf.mxu0  ;;  %v2472_v54 = vpop.f32.mrf.mxu1 }
 0x7aa   :  { %v2502_v49 = vadd.f32 %v2459_v30, %v1870_v22  ;;  %v2503_v25 = vadd.f32 %v2472_v54, %v1899_v45  ;;  %v1928_v22 = vadd.f32 %v9607_v33, %v9602_v4 }
 0x7ac   :  { %v5482_v15 = vmul.f32 -1.442695, %v2502_v49  ;;  %v5483_v2 = vmul.f32 -1.442695, %v2503_v25 }
 0x7ae   :  { %6248 = vpow2.f32 %v5482_v15 }
 0x7af   :  { %6250 = vpow2.f32 %v5483_v2 }
 0x7b0   :  { %v2485_v24 = vpop.f32.mrf.mxu2  ;;  %v2498_v35 = vpop.f32.mrf.mxu3 }
 0x7b1   :  { %v2505_v58 = vadd.f32 %v2498_v35, %v1957_v63  ;;  %v2461_v32 = vpop.f32.mrf.mxu0  ;;  %v2474_v10 = vpop.f32.mrf.mxu1  ;;  %v2504_v30 = vadd.f32 %v2485_v24, %v1928_v22 }
 0x7b3   :  { %v5484_v19 = vmul.f32 -1.442695, %v2505_v58 }
 0x7b4   :  { %v6249_v7 = vpop.eup %6248 }
 0x7b5   :  { %v6251_v0 = vpop.eup %6250  ;;  %v2509_v27 = vadd.f32 1.0, %v6249_v7  ;;  %6252 = vpow2.f32 %v5484_v19 }
 0x7b6   :  { %v2528_v55 = vadd.f32 1.0, %v6251_v0 }
 0x7b7   :  { %6254 = vrcp.f32 %v2509_v27  ;;  %v2521_v39 = vand.u32 2147483648, %v2509_v27  ;;  %v2519_v58 = vand.u32 2147483647, %v2509_v27  ;;  %vm2515_vm10 = vweird.f32 %v2509_v27 }
 0x7b8   :  { %6256 = vrcp.f32 %v2528_v55  ;;  %v2487_v44 = vpop.f32.mrf.mxu2  ;;  %v2500_v6 = vpop.f32.mrf.mxu3  ;;  %v2540_v63 = vand.u32 2147483648, %v2528_v55  ;;  %v2538_v10 = vand.u32 2147483647, %v2528_v55  ;;  %vm2534_vm11 = vweird.f32 %v2528_v55 }
 0x7b9   :  { %v2522_v24 = vor.u32 1.1754944e-38, %v2521_v39  ;;  %vm2520_vm14 = vcmp.eq.f32.partialorder %v2519_v58, 8.507059e+37 }
 0x7ba   :  { %v2541_v6 = vor.u32 1.1754944e-38, %v2540_v63  ;;  %vm2539_vm15 = vcmp.eq.f32.partialorder %v2538_v10, 8.507059e+37 }
 0x7bb   :  { %v6253_v14 = vpop.eup %6252 }
 0x7bc   :  { %v2548_v17 = vadd.f32 1.0, %v6253_v14 }
 0x7bd   :  { %v6255_v45 = vpop.eup %6254 }
 0x7be   :  { %v6257_v54 = vpop.eup %6256  ;;  %v2511_v49 = vmul.f32 %v6255_v45, %v2509_v27  ;;  %6258 = vrcp.f32 %v2548_v17  ;;  %vm2516_vm8 = vweird.f32 %v6255_v45  ;;  %v2560_v39 = vand.u32 2147483648, %v2548_v17 }
 0x7bf   :  { %v2530_v25 = vmul.f32 %v6257_v54, %v2528_v55  ;;  %6260 = vtanh.f32 %v2504_v30  ;;  %vm2535_vm9 = vweird.f32 %v6257_v54  ;;  %vm2517_vm12 = vmor %vm2515_vm10, %vm2516_vm8  ;;  %vm2554_vm1 = vweird.f32 %v2548_v17 }
 0x7c0   :  { %v2512_v15 = vsub.f32 1.0, %v2511_v49  ;;  %vm2536_vm13 = vmor %vm2534_vm11, %vm2535_vm9  ;;  %v2561_v58 = vor.u32 1.1754944e-38, %v2560_v39 }
 0x7c1   :  { %v2531_v2 = vsub.f32 1.0, %v2530_v25 }
 0x7c2   :  { %v2513_v35 = vmul.f32 %v6255_v45, %v2512_v15 }
 0x7c3   :  { %v2532_v32 = vmul.f32 %v6257_v54, %v2531_v2 }
 0x7c4   :  { %v6259_v19 = vpop.eup %6258  ;;  %v2514_v7 = vadd.f32 %v6255_v45, %v2513_v35 }
 0x7c5   :  { %v2533_v0 = vadd.f32 %v6257_v54, %v2532_v32  ;;  %v2550_v44 = vmul.f32 %v6259_v19, %v2548_v17  ;;  %v6261_v33 = vpop.eup %6260  ;;  %vm2555_vm0 = vweird.f32 %v6259_v19 }
 0x7c6   :  { %v2518_v14 = vsel %vm2517_vm12, %v6255_v45, %v2514_v7  ;;  %v2558_v45 = vand.u32 2147483647, %v2548_v17  ;;  %vm2556_vm2 = vmor %vm2554_vm1, %vm2555_vm0  ;;  %v9609_v17 = vld [vmem:[#allocation19_spill] sm:$0xff]  ;;  %v9610_v7 = vld [vmem:[#allocation18_spill] sm:$0xff] }
 0x7c7   :  { %v2523_v22 = vsel %vm2520_vm14, %v2522_v24, %v2518_v14  ;;  %v2537_v30 = vsel %vm2536_vm13, %v6257_v54, %v2533_v0  ;;  %v2551_v49 = vsub.f32 1.0, %v2550_v44  ;;  %v1901_v24 = vadd.f32 %v9610_v7, %v8216_v60 }
 0x7c8   :  { %v2542_v25 = vsel %vm2539_vm15, %v2541_v6, %v2537_v30  ;;  %v2565_v15 = vmul.f32 %v6261_v33, %v2523_v22  ;;  %vm2559_vm3 = vcmp.eq.f32.partialorder %v2558_v45, 8.507059e+37  ;;  %v9611_v30 = vld [vmem:[#allocation21_spill] sm:$0xff] }
 0x7c9   :  { %v2564_v2 = vmul.f32 %v2542_v25, %v8278_v34  ;;  %v2552_v35 = vmul.f32 %v6259_v19, %v2551_v49  ;;  %v1959_v49 = vadd.f32 %v9611_v30, %v8224_v37 }
 0x7cb   :  { %v8326_v27 = vadd.f32 %v2565_v15, %v2564_v2  ;;  %v2553_v55 = vadd.f32 %v6259_v19, %v2552_v35 }
 0x7cd   :  { %6262 = vtanh.f32 %v8326_v27  ;;  %v2557_v63 = vsel %vm2556_vm2, %v6259_v19, %v2553_v55  ;;  %v1872_v19 = vadd.f32 %v9609_v17, %v8214_v41 }
 0x7ce   :  { %v2562_v32 = vsel %vm2559_vm3, %v2561_v58, %v2557_v63 }
 0x7d3   :  { %v6263_v54 = vpop.eup %6262 }
 0x7d4   :  { %v8329_v10 = vmul.f32 %v6263_v54, %v2562_v32 }
 0x7d6   :  { %9608 = vst [vmem:[#allocation36_spill] sm:$0xff] %v8329_v10  ;;  %v2574_v34 = vpack.c.bf16 %v8329_v10, %v8329_v10 }
 0x7d8   :  { %2583 = vmatmul.bf16.vlgmr.msrb.gmra.mxu0 %v2574_v34  ;;  %2596 = vmatmul.bf16.vlgmr.msrb.gmra.mxu1 %v2574_v34 }
 0x7d9   :  { %2609 = vmatmul.bf16.vlgmr.msrb.gmra.mxu2 %v2574_v34  ;;  %2622 = vmatmul.bf16.vlgmr.msrb.gmra.mxu3 %v2574_v34 }
 0x7da   :  { %2825 = vmatpush.bf16.msrb.mxu0 %v7756_v59  ;;  %2838 = vmatpush.bf16.msrb.mxu1 %v7761_v62 }
 0x7db   :  { %2851 = vmatpush.bf16.msrb.mxu2 %v7784_v20  ;;  %2864 = vmatpush.bf16.msrb.mxu3 %v7775_v13 }
 0x7de   :  { %2826 = vmatpush.bf16.msrb.mxu0 %v7800_v3  ;;  %2839 = vmatpush.bf16.msrb.mxu1 %v7811_v12 }
 0x7df   :  { %2852 = vmatpush.bf16.msrb.mxu2 %v7858_v5  ;;  %2865 = vmatpush.bf16.msrb.mxu3 %v7813_v42 }
 0x7e2   :  { %2827 = vmatpush.bf16.msrb.mxu0 %v7830_v16  ;;  %2840 = vmatpush.bf16.msrb.mxu1 %v7843_v38 }
 0x7e3   :  { %2853 = vmatpush.bf16.msrb.mxu2 %v7897_v8  ;;  %2866 = vmatpush.bf16.msrb.mxu3 %v7845_v28 }
 0x7e6   :  { %2828 = vmatpush.bf16.msrb.mxu0 %v7870_v47  ;;  %2841 = vmatpush.bf16.msrb.mxu1 %v7883_v53 }
 0x7e7   :  { %2854 = vmatpush.bf16.msrb.mxu2 %v7935_v36  ;;  %2867 = vmatpush.bf16.msrb.mxu3 %v7885_v23 }
 0x7ea   :  { %2829 = vmatpush.bf16.msrb.mxu0 %v7917_v43  ;;  %2842 = vmatpush.bf16.msrb.mxu1 %v7923_v51 }
 0x7eb   :  { %2855 = vmatpush.bf16.msrb.mxu2 %v7974_v50  ;;  %2868 = vmatpush.bf16.msrb.mxu3 %v7925_v52 }
 0x7ee   :  { %2830 = vmatpush.bf16.msrb.mxu0 %v7951_v29  ;;  %2843 = vmatpush.bf16.msrb.mxu1 %v7961_v40 }
 0x7ef   :  { %2856 = vmatpush.bf16.msrb.mxu2 %v8015_v9  ;;  %2869 = vmatpush.bf16.msrb.mxu3 %v7963_v31 }
 0x7f2   :  { %2831 = vmatpush.bf16.msrb.mxu0 %v7994_v48  ;;  %2844 = vmatpush.bf16.msrb.mxu1 %v8009_v18 }
 0x7f3   :  { %2857 = vmatpush.bf16.msrb.mxu2 %v8052_v57  ;;  %2870 = vmatpush.bf16.msrb.mxu3 %v8018_v21 }
 0x7f6   :  { %2832 = vmatpush.bf16.msrb.mxu0 %v8048_v11  ;;  %2845 = vmatpush.bf16.msrb.mxu1 %v8050_v56 }
 0x7f7   :  { %2858 = vmatpush.bf16.msrb.mxu2 %v8083_v61  ;;  %2871 = vmatpush.bf16.msrb.mxu3 %v8074_v46 }
 0x855   :  { %v2584_v0 = vpop.f32.mrf.mxu0  ;;  %v2597_v44 = vpop.f32.mrf.mxu1 }
 0x856   :  { %v2627_v6 = vadd.f32 %v2584_v0, %v1872_v19  ;;  %v2628_v14 = vadd.f32 %v2597_v44, %v1901_v24  ;;  %v9612_v19 = vld [vmem:[#allocation20_spill] sm:$0xff] }
 0x857   :  { %v1930_v7 = vadd.f32 %v9612_v19, %v9602_v4 }
 0x858   :  { %v5485_v33 = vmul.f32 -1.442695, %v2627_v6  ;;  %v5486_v22 = vmul.f32 -1.442695, %v2628_v14 }
 0x85a   :  { %6264 = vpow2.f32 %v5485_v33 }
 0x85b   :  { %6266 = vpow2.f32 %v5486_v22 }
 0x85c   :  { %v2610_v25 = vpop.f32.mrf.mxu2  ;;  %v2623_v15 = vpop.f32.mrf.mxu3 }
 0x85d   :  { %v2630_v2 = vadd.f32 %v2623_v15, %v1959_v49  ;;  %v2586_v35 = vpop.f32.mrf.mxu0  ;;  %v2599_v55 = vpop.f32.mrf.mxu1  ;;  %v2629_v44 = vadd.f32 %v2610_v25, %v1930_v7 }
 0x85f   :  { %v5487_v39 = vmul.f32 -1.442695, %v2630_v2 }
 0x860   :  { %v6265_v45 = vpop.eup %6264 }
 0x861   :  { %v6267_v63 = vpop.eup %6266  ;;  %v2634_v58 = vadd.f32 1.0, %v6265_v45  ;;  %6268 = vpow2.f32 %v5487_v39 }
 0x862   :  { %v2653_v54 = vadd.f32 1.0, %v6267_v63 }
 0x863   :  { %6270 = vrcp.f32 %v2634_v58  ;;  %v2646_v49 = vand.u32 2147483648, %v2634_v58  ;;  %v2644_v35 = vand.u32 2147483647, %v2634_v58  ;;  %vm2640_vm6 = vweird.f32 %v2634_v58 }
 0x864   :  { %6272 = vrcp.f32 %v2653_v54  ;;  %v2612_v32 = vpop.f32.mrf.mxu2  ;;  %v2625_v34 = vpop.f32.mrf.mxu3  ;;  %v2665_v15 = vand.u32 2147483648, %v2653_v54  ;;  %v2663_v39 = vand.u32 2147483647, %v2653_v54  ;;  %vm2659_vm7 = vweird.f32 %v2653_v54 }
 0x865   :  { %v2647_v25 = vor.u32 1.1754944e-38, %v2646_v49  ;;  %vm2645_vm10 = vcmp.eq.f32.partialorder %v2644_v35, 8.507059e+37 }
 0x866   :  { %vm2664_vm11 = vcmp.eq.f32.partialorder %v2663_v39, 8.507059e+37 }
 0x867   :  { %v6269_v17 = vpop.eup %6268 }
 0x868   :  { %v2673_v24 = vadd.f32 1.0, %v6269_v17  ;;  %v2666_v17 = vor.u32 1.1754944e-38, %v2665_v15 }
 0x869   :  { %v6271_v0 = vpop.eup %6270 }
 0x86a   :  { %v6273_v6 = vpop.eup %6272  ;;  %v2636_v14 = vmul.f32 %v6271_v0, %v2634_v58  ;;  %6274 = vrcp.f32 %v2673_v24  ;;  %vm2641_vm4 = vweird.f32 %v6271_v0  ;;  %v2685_v49 = vand.u32 2147483648, %v2673_v24 }
 0x86b   :  { %v2655_v33 = vmul.f32 %v6273_v6, %v2653_v54  ;;  %6276 = vtanh.f32 %v2629_v44  ;;  %vm2660_vm5 = vweird.f32 %v6273_v6  ;;  %vm2642_vm8 = vmor %vm2640_vm6, %vm2641_vm4  ;;  %vm2679_vm13 = vweird.f32 %v2673_v24 }
 0x86c   :  { %v2637_v22 = vsub.f32 1.0, %v2636_v14  ;;  %vm2661_vm9 = vmor %vm2659_vm7, %vm2660_vm5  ;;  %v2686_v35 = vor.u32 1.1754944e-38, %v2685_v49 }
 0x86d   :  { %v2656_v30 = vsub.f32 1.0, %v2655_v33 }
 0x86e   :  { %v2638_v2 = vmul.f32 %v6271_v0, %v2637_v22 }
 0x86f   :  { %v2657_v55 = vmul.f32 %v6273_v6, %v2656_v30 }
 0x870   :  { %v6275_v45 = vpop.eup %6274  ;;  %v2639_v63 = vadd.f32 %v6271_v0, %v2638_v2 }
 0x871   :  { %v2658_v32 = vadd.f32 %v6273_v6, %v2657_v55  ;;  %v2675_v34 = vmul.f32 %v6275_v45, %v2673_v24  ;;  %v6277_v7 = vpop.eup %6276  ;;  %vm2680_vm12 = vweird.f32 %v6275_v45 }
 0x872   :  { %v2643_v19 = vsel %vm2642_vm8, %v6271_v0, %v2639_v63  ;;  %v2683_v0 = vand.u32 2147483647, %v2673_v24  ;;  %vm2681_vm14 = vmor %vm2679_vm13, %vm2680_vm12 }
 0x873   :  { %v2648_v44 = vsel %vm2645_vm10, %v2647_v25, %v2643_v19  ;;  %v2662_v14 = vsel %vm2661_vm9, %v6273_v6, %v2658_v32  ;;  %v2676_v33 = vsub.f32 1.0, %v2675_v34 }
 0x874   :  { %v2667_v22 = vsel %vm2664_vm11, %v2666_v17, %v2662_v14  ;;  %v2690_v30 = vmul.f32 %v6277_v7, %v2648_v44  ;;  %vm2684_vm15 = vcmp.eq.f32.partialorder %v2683_v0, 8.507059e+37  ;;  %v9616_v44 = vld [vmem:[#allocation25_spill] sm:$0xff] }
 0x875   :  { %v2689_v10 = vmul.f32 %v2667_v22, %v8326_v27  ;;  %v2677_v2 = vmul.f32 %v6275_v45, %v2676_v33  ;;  %v1962_v14 = vadd.f32 %v9616_v44, %v8224_v37 }
 0x877   :  { %v8374_v58 = vadd.f32 %v2690_v30, %v2689_v10  ;;  %v2678_v54 = vadd.f32 %v6275_v45, %v2677_v2  ;;  %v9614_v10 = vld [vmem:[#allocation24_spill] sm:$0xff] }
 0x878   :  { %v1875_v24 = vadd.f32 %v9614_v10, %v8214_v41 }
 0x879   :  { %6278 = vtanh.f32 %v8374_v58  ;;  %v2682_v15 = vsel %vm2681_vm14, %v6275_v45, %v2678_v54  ;;  %v9615_v45 = vld [vmem:[#allocation22_spill] sm:$0xff] }
 0x87a   :  { %v2687_v55 = vsel %vm2684_vm15, %v2686_v35, %v2682_v15  ;;  %v1904_v63 = vadd.f32 %v9615_v45, %v8216_v60 }
 0x87f   :  { %v6279_v6 = vpop.eup %6278 }
 0x880   :  { %v8377_v39 = vmul.f32 %v6279_v6, %v2687_v55 }
 0x882   :  { %9613 = vst [vmem:[#allocation13_spill] sm:$0xff] %v8377_v39  ;;  %v2699_v27 = vpack.c.bf16 %v8377_v39, %v8377_v39 }
 0x884   :  { %2708 = vmatmul.bf16.vlgmr.msra.gmra.mxu0 %v2699_v27  ;;  %2721 = vmatmul.bf16.vlgmr.msra.gmra.mxu1 %v2699_v27 }
 0x885   :  { %2734 = vmatmul.bf16.vlgmr.msra.gmra.mxu2 %v2699_v27  ;;  %2747 = vmatmul.bf16.vlgmr.msra.gmra.mxu3 %v2699_v27 }
 0x886   :  { %2950 = vmatpush.bf16.msra.mxu0 %v7756_v59  ;;  %2963 = vmatpush.bf16.msra.mxu1 %v7761_v62 }
 0x887   :  { %2976 = vmatpush.bf16.msra.mxu2 %v7784_v20  ;;  %2989 = vmatpush.bf16.msra.mxu3 %v7775_v13 }
 0x88a   :  { %2951 = vmatpush.bf16.msra.mxu0 %v7800_v3  ;;  %2964 = vmatpush.bf16.msra.mxu1 %v7811_v12 }
 0x88b   :  { %2977 = vmatpush.bf16.msra.mxu2 %v7858_v5  ;;  %2990 = vmatpush.bf16.msra.mxu3 %v7813_v42 }
 0x88e   :  { %2952 = vmatpush.bf16.msra.mxu0 %v7830_v16  ;;  %2965 = vmatpush.bf16.msra.mxu1 %v7843_v38 }
 0x88f   :  { %2978 = vmatpush.bf16.msra.mxu2 %v7897_v8  ;;  %2991 = vmatpush.bf16.msra.mxu3 %v7845_v28 }
 0x892   :  { %2953 = vmatpush.bf16.msra.mxu0 %v7870_v47  ;;  %2966 = vmatpush.bf16.msra.mxu1 %v7883_v53 }
 0x893   :  { %2979 = vmatpush.bf16.msra.mxu2 %v7935_v36  ;;  %2992 = vmatpush.bf16.msra.mxu3 %v7885_v23 }
 0x896   :  { %2954 = vmatpush.bf16.msra.mxu0 %v7917_v43  ;;  %2967 = vmatpush.bf16.msra.mxu1 %v7923_v51 }
 0x897   :  { %2980 = vmatpush.bf16.msra.mxu2 %v7974_v50  ;;  %2993 = vmatpush.bf16.msra.mxu3 %v7925_v52 }
 0x89a   :  { %2955 = vmatpush.bf16.msra.mxu0 %v7951_v29  ;;  %2968 = vmatpush.bf16.msra.mxu1 %v7961_v40 }
 0x89b   :  { %2981 = vmatpush.bf16.msra.mxu2 %v8015_v9  ;;  %2994 = vmatpush.bf16.msra.mxu3 %v7963_v31 }
 0x89e   :  { %2956 = vmatpush.bf16.msra.mxu0 %v7994_v48  ;;  %2969 = vmatpush.bf16.msra.mxu1 %v8009_v18 }
 0x89f   :  { %2982 = vmatpush.bf16.msra.mxu2 %v8052_v57  ;;  %2995 = vmatpush.bf16.msra.mxu3 %v8018_v21 }
 0x8a2   :  { %2957 = vmatpush.bf16.msra.mxu0 %v8048_v11  ;;  %2970 = vmatpush.bf16.msra.mxu1 %v8050_v56 }
 0x8a3   :  { %2983 = vmatpush.bf16.msra.mxu2 %v8083_v61  ;;  %2996 = vmatpush.bf16.msra.mxu3 %v8074_v46 }
 0x901   :  { %v2709_v25 = vpop.f32.mrf.mxu0  ;;  %v2722_v32 = vpop.f32.mrf.mxu1 }
 0x902   :  { %v2752_v34 = vadd.f32 %v2709_v25, %v1875_v24  ;;  %v2753_v17 = vadd.f32 %v2722_v32, %v1904_v63  ;;  %v9617_v24 = vld [vmem:[#allocation23_spill] sm:$0xff] }
 0x903   :  { %v1933_v45 = vadd.f32 %v9617_v24, %v9602_v4 }
 0x904   :  { %v5488_v19 = vmul.f32 -1.442695, %v2752_v34  ;;  %v5489_v7 = vmul.f32 -1.442695, %v2753_v17 }
 0x906   :  { %6280 = vpow2.f32 %v5488_v19 }
 0x907   :  { %6282 = vpow2.f32 %v5489_v7 }
 0x908   :  { %v2735_v33 = vpop.f32.mrf.mxu2  ;;  %v2748_v22 = vpop.f32.mrf.mxu3 }
 0x909   :  { %v2755_v30 = vadd.f32 %v2748_v22, %v1962_v14  ;;  %v2711_v2 = vpop.f32.mrf.mxu0  ;;  %v2724_v54 = vpop.f32.mrf.mxu1  ;;  %v2754_v32 = vadd.f32 %v2735_v33, %v1933_v45 }
 0x90b   :  { %v5490_v49 = vmul.f32 -1.442695, %v2755_v30 }
 0x90c   :  { %v6281_v0 = vpop.eup %6280 }
 0x90d   :  { %v6283_v15 = vpop.eup %6282  ;;  %v2759_v35 = vadd.f32 1.0, %v6281_v0  ;;  %6284 = vpow2.f32 %v5490_v49 }
 0x90e   :  { %v2778_v6 = vadd.f32 1.0, %v6283_v15 }
 0x90f   :  { %6286 = vrcp.f32 %v2759_v35  ;;  %v2771_v14 = vand.u32 2147483648, %v2759_v35  ;;  %v2769_v2 = vand.u32 2147483647, %v2759_v35  ;;  %vm2765_vm2 = vweird.f32 %v2759_v35 }
 0x910   :  { %6288 = vrcp.f32 %v2778_v6  ;;  %v2737_v55 = vpop.f32.mrf.mxu2  ;;  %v2750_v27 = vpop.f32.mrf.mxu3  ;;  %v2790_v22 = vand.u32 2147483648, %v2778_v6  ;;  %v2788_v49 = vand.u32 2147483647, %v2778_v6  ;;  %vm2784_vm3 = vweird.f32 %v2778_v6 }
 0x911   :  { %v2772_v33 = vor.u32 1.1754944e-38, %v2771_v14  ;;  %vm2770_vm6 = vcmp.eq.f32.partialorder %v2769_v2, 8.507059e+37 }
 0x912   :  { %vm2789_vm7 = vcmp.eq.f32.partialorder %v2788_v49, 8.507059e+37 }
 0x913   :  { %v6285_v10 = vpop.eup %6284 }
 0x914   :  { %v2798_v63 = vadd.f32 1.0, %v6285_v10  ;;  %v2791_v10 = vor.u32 1.1754944e-38, %v2790_v22 }
 0x915   :  { %v6287_v25 = vpop.eup %6286 }
 0x916   :  { %v6289_v34 = vpop.eup %6288  ;;  %v2761_v17 = vmul.f32 %v6287_v25, %v2759_v35  ;;  %6290 = vrcp.f32 %v2798_v63  ;;  %vm2766_vm0 = vweird.f32 %v6287_v25  ;;  %v2810_v14 = vand.u32 2147483648, %v2798_v63 }
 0x917   :  { %v2780_v19 = vmul.f32 %v6289_v34, %v2778_v6  ;;  %6292 = vtanh.f32 %v2754_v32  ;;  %vm2785_vm1 = vweird.f32 %v6289_v34  ;;  %vm2767_vm4 = vmor %vm2765_vm2, %vm2766_vm0  ;;  %vm2804_vm9 = vweird.f32 %v2798_v63 }
 0x918   :  { %v2762_v7 = vsub.f32 1.0, %v2761_v17  ;;  %vm2786_vm5 = vmor %vm2784_vm3, %vm2785_vm1  ;;  %v2811_v2 = vor.u32 1.1754944e-38, %v2810_v14 }
 0x919   :  { %v2781_v44 = vsub.f32 1.0, %v2780_v19 }
 0x91a   :  { %v2763_v30 = vmul.f32 %v6287_v25, %v2762_v7 }
 0x91b   :  { %v2782_v54 = vmul.f32 %v6289_v34, %v2781_v44 }
 0x91c   :  { %v6291_v0 = vpop.eup %6290  ;;  %v2764_v15 = vadd.f32 %v6287_v25, %v2763_v30 }
 0x91d   :  { %v2783_v55 = vadd.f32 %v6289_v34, %v2782_v54  ;;  %v2800_v27 = vmul.f32 %v6291_v0, %v2798_v63  ;;  %v6293_v45 = vpop.eup %6292  ;;  %vm2805_vm8 = vweird.f32 %v6291_v0 }
 0x91e   :  { %v2768_v24 = vsel %vm2767_vm4, %v6287_v25, %v2764_v15  ;;  %v2808_v25 = vand.u32 2147483647, %v2798_v63  ;;  %vm2806_vm10 = vmor %vm2804_vm9, %vm2805_vm8 }
 0x91f   :  { %v2773_v32 = vsel %vm2770_vm6, %v2772_v33, %v2768_v24  ;;  %v2787_v17 = vsel %vm2786_vm5, %v6289_v34, %v2783_v55  ;;  %v2801_v19 = vsub.f32 1.0, %v2800_v27 }
 0x920   :  { %v2792_v7 = vsel %vm2789_vm7, %v2791_v10, %v2787_v17  ;;  %v2815_v44 = vmul.f32 %v6293_v45, %v2773_v32  ;;  %vm2809_vm11 = vcmp.eq.f32.partialorder %v2808_v25, 8.507059e+37 }
 0x921   :  { %v2814_v39 = vmul.f32 %v2792_v7, %v8374_v58  ;;  %v2802_v30 = vmul.f32 %v6291_v0, %v2801_v19 }
 0x923   :  { %v8422_v35 = vadd.f32 %v2815_v44, %v2814_v39  ;;  %v2803_v6 = vadd.f32 %v6291_v0, %v2802_v30 }
 0x925   :  { %6294 = vtanh.f32 %v8422_v35  ;;  %v2807_v22 = vsel %vm2806_vm10, %v6291_v0, %v2803_v6 }
 0x926   :  { %v2812_v54 = vsel %vm2809_vm11, %v2811_v2, %v2807_v22 }
 0x92b   :  { %v6295_v34 = vpop.eup %6294 }
 0x92c   :  { %v8425_v49 = vmul.f32 %v6295_v34, %v2812_v54 }
 0x92e   :  { %v2824_v58 = vpack.c.bf16 %v8425_v49, %v8425_v49 }
 0x930   :  { %2833 = vmatmul.bf16.vlgmr.msrb.gmra.mxu0 %v2824_v58  ;;  %2846 = vmatmul.bf16.vlgmr.msrb.gmra.mxu1 %v2824_v58 }
 0x931   :  { %2859 = vmatmul.bf16.vlgmr.msrb.gmra.mxu2 %v2824_v58  ;;  %2872 = vmatmul.bf16.vlgmr.msrb.gmra.mxu3 %v2824_v58 }
 0x932   :  { %3075 = vmatpush.bf16.msrb.mxu0 %v7756_v59  ;;  %3088 = vmatpush.bf16.msrb.mxu1 %v7761_v62  ;;  %v9618_v59 = vld [vmem:[#allocation27_spill] sm:$0xff] }
 0x933   :  { %3101 = vmatpush.bf16.msrb.mxu2 %v7784_v20  ;;  %3114 = vmatpush.bf16.msrb.mxu3 %v7775_v13  ;;  %v1877_v62 = vadd.f32 %v9618_v59, %v8214_v41  ;;  %v9619_v13 = vld [vmem:[#allocation26_spill] sm:$0xff] }
 0x934   :  { %v1906_v20 = vadd.f32 %v9619_v13, %v8216_v60 }
 0x936   :  { %3076 = vmatpush.bf16.msrb.mxu0 %v7800_v3  ;;  %3089 = vmatpush.bf16.msrb.mxu1 %v7811_v12 }
 0x937   :  { %3102 = vmatpush.bf16.msrb.mxu2 %v7858_v5  ;;  %3115 = vmatpush.bf16.msrb.mxu3 %v7813_v42  ;;  %v9620_v5 = vld [vmem:[#allocation29_spill] sm:$0xff] }
 0x93a   :  { %3077 = vmatpush.bf16.msrb.mxu0 %v7830_v16  ;;  %3090 = vmatpush.bf16.msrb.mxu1 %v7843_v38 }
 0x93b   :  { %3103 = vmatpush.bf16.msrb.mxu2 %v7897_v8  ;;  %3116 = vmatpush.bf16.msrb.mxu3 %v7845_v28 }
 0x93e   :  { %3078 = vmatpush.bf16.msrb.mxu0 %v7870_v47  ;;  %3091 = vmatpush.bf16.msrb.mxu1 %v7883_v53  ;;  %v1964_v47 = vadd.f32 %v9620_v5, %v8224_v37  ;;  %v6039_v5 = vld [vmem:[%s9500_s3 + $0x1ec] sm:$0xf0] }
 0x93f   :  { %3104 = vmatpush.bf16.msrb.mxu2 %v7935_v36  ;;  %3117 = vmatpush.bf16.msrb.mxu3 %v7885_v23 }
 0x942   :  { %3079 = vmatpush.bf16.msrb.mxu0 %v7917_v43  ;;  %3092 = vmatpush.bf16.msrb.mxu1 %v7923_v51 }
 0x943   :  { %3105 = vmatpush.bf16.msrb.mxu2 %v7974_v50  ;;  %3118 = vmatpush.bf16.msrb.mxu3 %v7925_v52 }
 0x946   :  { %3080 = vmatpush.bf16.msrb.mxu0 %v7951_v29  ;;  %3093 = vmatpush.bf16.msrb.mxu1 %v7961_v40 }
 0x947   :  { %3106 = vmatpush.bf16.msrb.mxu2 %v8015_v9  ;;  %3119 = vmatpush.bf16.msrb.mxu3 %v7963_v31  ;;  %v9621_v9 = vld [vmem:[#allocation28_spill] sm:$0xff] }
 0x94a   :  { %3081 = vmatpush.bf16.msrb.mxu0 %v7994_v48  ;;  %3094 = vmatpush.bf16.msrb.mxu1 %v8009_v18 }
 0x94b   :  { %3107 = vmatpush.bf16.msrb.mxu2 %v8052_v57  ;;  %3120 = vmatpush.bf16.msrb.mxu3 %v8018_v21  ;;  %v1935_v21 = vadd.f32 %v9621_v9, %v9602_v4  ;;  %v5657_v9 = vld [vmem:[%s9500_s3 + $0x1f8] sm:$0xf0] }
 0x94e   :  { %3082 = vmatpush.bf16.msrb.mxu0 %v8048_v11  ;;  %3095 = vmatpush.bf16.msrb.mxu1 %v8050_v56 }
 0x94f   :  { %3108 = vmatpush.bf16.msrb.mxu2 %v8083_v61  ;;  %3121 = vmatpush.bf16.msrb.mxu3 %v8074_v46 }
 0x9ad   :  { %v2834_v3 = vpop.f32.mrf.mxu0  ;;  %v2847_v12 = vpop.f32.mrf.mxu1 }
 0x9ae   :  { %v2877_v42 = vadd.f32 %v2834_v3, %v1877_v62  ;;  %v2878_v16 = vadd.f32 %v2847_v12, %v1906_v20 }
 0x9b0   :  { %v5491_v38 = vmul.f32 -1.442695, %v2877_v42  ;;  %v5492_v28 = vmul.f32 -1.442695, %v2878_v16 }
 0x9b2   :  { %6296 = vpow2.f32 %v5491_v38 }
 0x9b3   :  { %6298 = vpow2.f32 %v5492_v28  ;;  %v5647_v28 = vld [vmem:[%s9500_s3 + $0x1e0] sm:$0xf] }
 0x9b4   :  { %v2860_v53 = vpop.f32.mrf.mxu2  ;;  %v2873_v23 = vpop.f32.mrf.mxu3 }
 0x9b5   :  { %v2880_v8 = vadd.f32 %v2873_v23, %v1964_v47  ;;  %v2836_v43 = vpop.f32.mrf.mxu0  ;;  %v2849_v51 = vpop.f32.mrf.mxu1  ;;  %v2879_v57 = vadd.f32 %v2860_v53, %v1935_v21  ;;  %v6037_v47 = vld [vmem:[%s9500_s3 + $0x1e4] sm:$0xf] }
 0x9b6   :  { %v9622_v53 = vld [vmem:[#allocation32_spill] sm:$0xff]  ;;  %v5648_v51 = vor.u32 %v6039_v5, %v5647_v28 }
 0x9b7   :  { %v5493_v52 = vmul.f32 -1.442695, %v2880_v8  ;;  %v1880_v23 = vadd.f32 %v9622_v53, %v8214_v41  ;;  %v9623_v8 = vld [vmem:[#allocation30_spill] sm:$0xff]  ;;  %v6025_v28 = vld [vmem:[%s9500_s3 + $0x184] sm:$0xf] }
 0x9b8   :  { %v6297_v36 = vpop.eup %6296  ;;  %v1909_v43 = vadd.f32 %v9623_v8, %v8216_v60  ;;  %v5607_v53 = vld [vmem:[%s9500_s3 + $0x188] sm:$0xf] }
 0x9b9   :  { %v6299_v29 = vpop.eup %6298  ;;  %v2884_v40 = vadd.f32 1.0, %v6297_v36  ;;  %6300 = vpow2.f32 %v5493_v52  ;;  %v5649_v52 = vld [vmem:[%s9500_s3 + $0x1f0] sm:$0xf0]  ;;  %v5655_v36 = vld [vmem:[%s9500_s3 + $0x1e8] sm:$0xf] }
 0x9ba   :  { %v2903_v31 = vadd.f32 1.0, %v6299_v29  ;;  %v6040_v29 = vld [vmem:[%s9500_s3 + $0x1f4] sm:$0xf0] }
 0x9bb   :  { %6302 = vrcp.f32 %v2884_v40  ;;  %v2896_v15 = vand.u32 2147483648, %v2884_v40  ;;  %v2894_v27 = vand.u32 2147483647, %v2884_v40  ;;  %vm2890_vm14 = vweird.f32 %v2884_v40 }
 0x9bc   :  { %6304 = vrcp.f32 %v2903_v31  ;;  %v2862_v50 = vpop.f32.mrf.mxu2  ;;  %v2875_v48 = vpop.f32.mrf.mxu3  ;;  %v2915_v33 = vand.u32 2147483648, %v2903_v31  ;;  %v2913_v24 = vand.u32 2147483647, %v2903_v31  ;;  %vm2909_vm15 = vweird.f32 %v2903_v31 }
 0x9bd   :  { %v2897_v17 = vor.u32 1.1754944e-38, %v2896_v15  ;;  %vm2895_vm2 = vcmp.eq.f32.partialorder %v2894_v27, 8.507059e+37  ;;  %v5652_v50 = vor.u32 %v6037_v47, %v5649_v52  ;;  %v5656_v48 = vor.u32 %v6040_v29, %v5655_v36  ;;  %v5633_v15 = vld [vmem:[%s9500_s3 + $0x1d0] sm:$0xf0]  ;;  %v6036_v27 = vld [vmem:[%s9500_s3 + $0x1d4] sm:$0xf0] }
 0x9be   :  { %v2916_v44 = vor.u32 1.1754944e-38, %v2915_v33  ;;  %vm2914_vm3 = vcmp.eq.f32.partialorder %v2913_v24, 8.507059e+37  ;;  %v5601_v47 = vld [vmem:[%s9500_s3 + $0x190] sm:$0xf0]  ;;  %v5609_v52 = vld [vmem:[%s9500_s3 + $0x198] sm:$0xf0] }
 0x9bf   :  { %v6301_v18 = vpop.eup %6300 }
 0x9c0   :  { %v2923_v11 = vadd.f32 1.0, %v6301_v18  ;;  %v6038_v18 = vld [vmem:[%s9500_s3 + $0x1ec] sm:$0xf] }
 0x9c1   :  { %v6303_v56 = vpop.eup %6302 }
 0x9c2   :  { %v6305_v46 = vpop.eup %6304  ;;  %v2886_v61 = vmul.f32 %v6303_v56, %v2884_v40  ;;  %6306 = vrcp.f32 %v2923_v11  ;;  %vm2891_vm12 = vweird.f32 %v6303_v56  ;;  %v2935_v13 = vand.u32 2147483648, %v2923_v11 }
 0x9c3   :  { %v2905_v39 = vmul.f32 %v6305_v46, %v2903_v31  ;;  %6308 = vtanh.f32 %v2879_v57  ;;  %vm2910_vm13 = vweird.f32 %v6305_v46  ;;  %vm2892_vm0 = vmor %vm2890_vm14, %vm2891_vm12  ;;  %vm2929_vm5 = vweird.f32 %v2923_v11  ;;  %v5631_v57 = vld [vmem:[%s9500_s3 + $0x1c0] sm:$0xf] }
 0x9c4   :  { %v2887_v63 = vsub.f32 1.0, %v2886_v61  ;;  %vm2911_vm1 = vmor %vm2909_vm15, %vm2910_vm13  ;;  %v2933_v20 = vand.u32 2147483647, %v2923_v11  ;;  %v2936_v12 = vor.u32 1.1754944e-38, %v2935_v13  ;;  %v6033_v61 = vld [vmem:[%s9500_s3 + $0x1c4] sm:$0xf] }
 0x9c5   :  { %v2906_v0 = vsub.f32 1.0, %v2905_v39  ;;  %v5636_v33 = vor.u32 %v6033_v61, %v5633_v15  ;;  %v6021_v61 = vld [vmem:[%s9500_s3 + $0x164] sm:$0xf]  ;;  %v5591_v15 = vld [vmem:[%s9500_s3 + $0x168] sm:$0xf] }
 0x9c6   :  { %v2888_v55 = vmul.f32 %v6303_v56, %v2887_v63  ;;  %vm2934_vm7 = vcmp.eq.f32.partialorder %v2933_v20, 8.507059e+37 }
 0x9c7   :  { %v2907_v10 = vmul.f32 %v6305_v46, %v2906_v0 }
 0x9c8   :  { %v6307_v45 = vpop.eup %6306  ;;  %v2889_v32 = vadd.f32 %v6303_v56, %v2888_v55  ;;  %v5639_v55 = vld [vmem:[%s9500_s3 + $0x1c8] sm:$0xf] }
 0x9c9   :  { %v2908_v19 = vadd.f32 %v6305_v46, %v2907_v10  ;;  %v2925_v7 = vmul.f32 %v6307_v45, %v2923_v11  ;;  %v6309_v6 = vpop.eup %6308  ;;  %vm2930_vm4 = vweird.f32 %v6307_v45  ;;  %v6034_v10 = vld [vmem:[%s9500_s3 + $0x1cc] sm:$0xf]  ;;  %v5640_v24 = vor.u32 %v6036_v27, %v5639_v55 }
 0x9ca   :  { %v2893_v30 = vsel %vm2892_vm0, %v6303_v56, %v2889_v32  ;;  %vm2931_vm6 = vmor %vm2929_vm5, %vm2930_vm4  ;;  %v5660_v56 = vor.u32 %v6038_v18, %v5657_v9  ;;  %v5615_v32 = vld [vmem:[%s9500_s3 + $0x1a0] sm:$0xf] }
 0x9cb   :  { %v2898_v14 = vsel %vm2895_vm2, %v2897_v17, %v2893_v30  ;;  %v2912_v25 = vsel %vm2911_vm1, %v6305_v46, %v2908_v19  ;;  %v2926_v22 = vsub.f32 1.0, %v2925_v7  ;;  %v6035_v46 = vld [vmem:[%s9500_s3 + $0x1cc] sm:$0xf0]  ;;  %v9624_v19 = vld [vmem:[#allocation12_spill] sm:$0xff] }
 0x9cc   :  { %v2917_v2 = vsel %vm2914_vm3, %v2916_v44, %v2912_v25  ;;  %v2940_v34 = vmul.f32 %v6309_v6, %v2898_v14  ;;  %v5632_v0 = vor.u32 %v6035_v46, %v5631_v57  ;;  %v6031_v17 = vld [vmem:[%s9500_s3 + $0x1ac] sm:$0xf0]  ;;  %v1967_v7 = vadd.f32 %v9624_v19, %v8224_v37  ;;  %v6029_v6 = vld [vmem:[%s9500_s3 + $0x1a4] sm:$0xf]  ;;  %v5617_v14 = vld [vmem:[%s9500_s3 + $0x1b0] sm:$0xf0] }
 0x9cd   :  { %v2939_v54 = vmul.f32 %v2917_v2, %v8422_v35  ;;  %v2927_v58 = vmul.f32 %v6307_v45, %v2926_v22  ;;  %v5616_v30 = vor.u32 %v6031_v17, %v5615_v32  ;;  %v5623_v25 = vld [vmem:[%s9500_s3 + $0x1a8] sm:$0xf]  ;;  %v5583_v18 = vld [vmem:[%s9500_s3 + $0x160] sm:$0xf] }
 0x9ce   :  { %v5567_v32 = vld [vmem:[%s9500_s3 + $0x140] sm:$0xf] }
 0x9cf   :  { %v8470_v59 = vadd.f32 %v2940_v34, %v2939_v54  ;;  %v2928_v62 = vadd.f32 %v6307_v45, %v2927_v58  ;;  %v5620_v34 = vor.u32 %v6029_v6, %v5617_v14  ;;  %v6032_v54 = vld [vmem:[%s9500_s3 + $0x1b4] sm:$0xf0]  ;;  %v6030_v58 = vld [vmem:[%s9500_s3 + $0x1ac] sm:$0xf]  ;;  %v5569_v14 = vld [vmem:[%s9500_s3 + $0x150] sm:$0xf0] }
 0x9d1   :  { %6310 = vtanh.f32 %v8470_v59  ;;  %v2932_v3 = vsel %vm2931_vm6, %v6307_v45, %v2928_v62  ;;  %v5641_v45 = vld [vmem:[%s9500_s3 + $0x1d8] sm:$0xf0] }
 0x9d2   :  { %v2937_v16 = vsel %vm2934_vm7, %v2936_v12, %v2932_v3  ;;  %v5644_v44 = vor.u32 %v6034_v10, %v5641_v45  ;;  %v5625_v62 = vld [vmem:[%s9500_s3 + $0x1b8] sm:$0xf0]  ;;  %v5624_v12 = vor.u32 %v6032_v54, %v5623_v25  ;;  %v5575_v25 = vld [vmem:[%s9500_s3 + $0x148] sm:$0xf]  ;;  %v6018_v54 = vld [vmem:[%s9500_s3 + $0x14c] sm:$0xf] }
 0x9d3   :  { %v5593_v45 = vld [vmem:[%s9500_s3 + $0x178] sm:$0xf0] }
 0x9d7   :  { %v6311_v42 = vpop.eup %6310 }
 0x9d8   :  { %v8473_v38 = vmul.f32 %v6311_v42, %v2937_v16  ;;  %v5628_v42 = vor.u32 %v6030_v58, %v5625_v62  ;;  %v5599_v16 = vld [vmem:[%s9500_s3 + $0x180] sm:$0xf]  ;;  %v5577_v58 = vld [vmem:[%s9500_s3 + $0x158] sm:$0xf0] }
 0x9d9   :  { %v5551_v62 = vld [vmem:[%s9500_s3 + $0x120] sm:$0xf] }
 0x9da   :  { %v2949_v35 = vpack.c.bf16 %v8473_v38, %v8473_v38 }
 0x9dc   :  { %2958 = vmatmul.bf16.vlgmr.msra.gmra.mxu0 %v2949_v35  ;;  %2971 = vmatmul.bf16.vlgmr.msra.gmra.mxu1 %v2949_v35 }
 0x9dd   :  { %2984 = vmatmul.bf16.vlgmr.msra.gmra.mxu2 %v2949_v35  ;;  %2997 = vmatmul.bf16.vlgmr.msra.gmra.mxu3 %v2949_v35  ;;  %v6027_v35 = vld [vmem:[%s9500_s3 + $0x18c] sm:$0xf0] }
 0x9de   :  { %3415 = vmatpush.bf16.msra.mxu0 %v5648_v51  ;;  %3444 = vmatpush.bf16.msra.mxu1 %v5652_v50  ;;  %v5600_v5 = vor.u32 %v6027_v35, %v5599_v16  ;;  %v6026_v51 = vld [vmem:[%s9500_s3 + $0x18c] sm:$0xf] }
 0x9df   :  { %3473 = vmatpush.bf16.msra.mxu2 %v5656_v48  ;;  %3502 = vmatpush.bf16.msra.mxu3 %v5660_v56  ;;  %v5612_v50 = vor.u32 %v6026_v51, %v5609_v52  ;;  %v9625_v56 = vld [vmem:[#allocation11_spill] sm:$0xff]  ;;  %v5559_v51 = vld [vmem:[%s9500_s3 + $0x128] sm:$0xf] }
 0x9e0   :  { %v1938_v57 = vadd.f32 %v9625_v56, %v9602_v4  ;;  %v6011_v56 = vld [vmem:[%s9500_s3 + $0x10c] sm:$0xf0] }
 0x9e2   :  { %3416 = vmatpush.bf16.msra.mxu0 %v5632_v0  ;;  %3445 = vmatpush.bf16.msra.mxu1 %v5636_v33  ;;  %v6024_v33 = vld [vmem:[%s9500_s3 + $0x174] sm:$0xf0] }
 0x9e3   :  { %3474 = vmatpush.bf16.msra.mxu2 %v5640_v24  ;;  %3503 = vmatpush.bf16.msra.mxu3 %v5644_v44  ;;  %v5592_v10 = vor.u32 %v6024_v33, %v5591_v15  ;;  %v6022_v24 = vld [vmem:[%s9500_s3 + $0x16c] sm:$0xf]  ;;  %v6017_v44 = vld [vmem:[%s9500_s3 + $0x144] sm:$0xf]  ;;  %v6012_v15 = vld [vmem:[%s9500_s3 + $0x114] sm:$0xf0] }
 0x9e4   :  { %v5596_v19 = vor.u32 %v6022_v24, %v5593_v45  ;;  %v5572_v16 = vor.u32 %v6017_v44, %v5569_v14  ;;  %v6010_v24 = vld [vmem:[%s9500_s3 + $0x10c] sm:$0xf]  ;;  %v5545_v45 = vld [vmem:[%s9500_s3 + $0x118] sm:$0xf0] }
 0x9e6   :  { %3417 = vmatpush.bf16.msra.mxu0 %v5616_v30  ;;  %3446 = vmatpush.bf16.msra.mxu1 %v5620_v34 }
 0x9e7   :  { %3475 = vmatpush.bf16.msra.mxu2 %v5624_v12  ;;  %3504 = vmatpush.bf16.msra.mxu3 %v5628_v42  ;;  %v6015_v12 = vld [vmem:[%s9500_s3 + $0x12c] sm:$0xf0] }
 0x9ea   :  { %3418 = vmatpush.bf16.msra.mxu0 %v5600_v5  ;;  %v6013_v5 = vld [vmem:[%s9500_s3 + $0x124] sm:$0xf] }
 0x9eb   :  { %3505 = vmatpush.bf16.msra.mxu3 %v5612_v50  ;;  %v5561_v50 = vld [vmem:[%s9500_s3 + $0x138] sm:$0xf0] }
 0x9ef   :  { %3506 = vmatpush.bf16.msra.mxu3 %v5596_v19 }
 0xa59   :  { %v2959_v40 = vpop.f32.mrf.mxu0  ;;  %v2972_v31 = vpop.f32.mrf.mxu1 }
 0xa5a   :  { %v3002_v21 = vadd.f32 %v2959_v40, %v1880_v23  ;;  %v3003_v11 = vadd.f32 %v2972_v31, %v1909_v43  ;;  %v6028_v23 = vld [vmem:[%s9500_s3 + $0x194] sm:$0xf0]  ;;  %v5604_v43 = vor.u32 %v6025_v28, %v5601_v47  ;;  %v5580_v28 = vor.u32 %v6018_v54, %v5577_v58  ;;  %v5553_v47 = vld [vmem:[%s9500_s3 + $0x130] sm:$0xf0] }
 0xa5b   :  { %v5608_v29 = vor.u32 %v6028_v23, %v5607_v53 }
 0xa5c   :  { %v5494_v39 = vmul.f32 -1.442695, %v3002_v21  ;;  %v5495_v63 = vmul.f32 -1.442695, %v3003_v11  ;;  %3447 = vmatpush.bf16.msra.mxu1 %v5604_v43  ;;  %v6023_v11 = vld [vmem:[%s9500_s3 + $0x16c] sm:$0xf0]  ;;  %v5552_v43 = vor.u32 %v6015_v12, %v5551_v62  ;;  %3507 = vmatpush.bf16.msra.mxu3 %v5580_v28 }
 0xa5d   :  { %3476 = vmatpush.bf16.msra.mxu2 %v5608_v29  ;;  %v5584_v46 = vor.u32 %v6023_v11, %v5583_v18  ;;  %v6016_v29 = vld [vmem:[%s9500_s3 + $0x134] sm:$0xf0]  ;;  %v5535_v11 = vld [vmem:[%s9500_s3 + $0x100] sm:$0xf]  ;;  %v6069_v28 = vld [vmem:[%s9501_s4 + $0x2e4] sm:$0xf] }
 0xa5e   :  { %6312 = vpow2.f32 %v5494_v39  ;;  %v5585_v39 = vld [vmem:[%s9500_s3 + $0x170] sm:$0xf0] }
 0xa5f   :  { %6314 = vpow2.f32 %v5495_v63  ;;  %v5588_v0 = vor.u32 %v6021_v61, %v5585_v39  ;;  %3419 = vmatpush.bf16.msra.mxu0 %v5584_v46  ;;  %v5536_v39 = vor.u32 %v6011_v56, %v5535_v11 }
 0xa60   :  { %v2985_v22 = vpop.f32.mrf.mxu2  ;;  %v2998_v2 = vpop.f32.mrf.mxu3 }
 0xa61   :  { %v3005_v13 = vadd.f32 %v2998_v2, %v1967_v7  ;;  %v2961_v20 = vpop.f32.mrf.mxu0  ;;  %v2974_v3 = vpop.f32.mrf.mxu1  ;;  %v3004_v27 = vadd.f32 %v2985_v22, %v1938_v57  ;;  %3448 = vmatpush.bf16.msra.mxu1 %v5588_v0  ;;  %v6019_v7 = vld [vmem:[%s9500_s3 + $0x14c] sm:$0xf0]  ;;  %3477 = vmatpush.bf16.msra.mxu2 %v5592_v10  ;;  %v6020_v22 = vld [vmem:[%s9500_s3 + $0x154] sm:$0xf0]  ;;  %v6009_v57 = vld [vmem:[%s9500_s3 + $0x104] sm:$0xf] }
 0xa62   :  { %v5568_v6 = vor.u32 %v6019_v7, %v5567_v32  ;;  %v5576_v35 = vor.u32 %v6020_v22, %v5575_v25  ;;  %v5543_v0 = vld [vmem:[%s9500_s3 + $0x108] sm:$0xf]  ;;  %v5548_v25 = vor.u32 %v6010_v24, %v5545_v45  ;;  %v6061_v24 = vld [vmem:[%s9501_s4 + $0x2a4] sm:$0xf] }
 0xa63   :  { %v5496_v8 = vmul.f32 -1.442695, %v3005_v13  ;;  %v5544_v7 = vor.u32 %v6012_v15, %v5543_v0 }
 0xa64   :  { %v6313_v36 = vpop.eup %6312  ;;  %3420 = vmatpush.bf16.msra.mxu0 %v5568_v6 }
 0xa65   :  { %v6315_v40 = vpop.eup %6314  ;;  %v8579_v31 = vadd.f32 1.0, %v6313_v36  ;;  %6316 = vpow2.f32 %v5496_v8  ;;  %3449 = vmatpush.bf16.msra.mxu1 %v5572_v16  ;;  %3478 = vmatpush.bf16.msra.mxu2 %v5576_v35  ;;  %v5556_v36 = vor.u32 %v6013_v5, %v5553_v47  ;;  %v3207_v16 = vpack.c.bf16 %v8281_v1, %v8233_v26  ;;  %v6071_v35 = vld [vmem:[%s9501_s4 + $0x2ec] sm:$0xf0]  ;;  %v5809_v26 = vld [vmem:[%s9501_s4 + $0x2f0] sm:$0xf0]  ;;  %v9628_v47 = vld [vmem:[#allocation36_spill] sm:$0xff] }
 0xa66   :  { %v8581_v48 = vadd.f32 1.0, %v6315_v40  ;;  %v6014_v40 = vld [vmem:[%s9500_s3 + $0x12c] sm:$0xf]  ;;  %v8748_v1 = vor.u32 %v6069_v28, %v5809_v26 }
 0xa67   :  { %6318 = vrcp.f32 %v8579_v31  ;;  %v3019_v63 = vand.u32 2147483647, %v8579_v31  ;;  %v3021_v3 = vand.u32 2147483648, %v8579_v31  ;;  %vm3015_vm12 = vweird.f32 %v8579_v31 }
 0xa68   :  { %6320 = vrcp.f32 %v8581_v48  ;;  %v2987_v9 = vpop.f32.mrf.mxu2  ;;  %v3000_v21 = vpop.f32.mrf.mxu3  ;;  %v3040_v20 = vand.u32 2147483648, %v8581_v48  ;;  %v3038_v8 = vand.u32 2147483647, %v8581_v48  ;;  %3421 = vmatpush.bf16.msra.mxu0 %v5552_v43  ;;  %vm3034_vm11 = vweird.f32 %v8581_v48  ;;  %v6070_v43 = vld [vmem:[%s9501_s4 + $0x2ec] sm:$0xf] }
 0xa69   :  { %vm8661_vm8 = vcmp.eq.f32.partialorder %v3019_v63, 8.507059e+37  ;;  %v5560_v9 = vor.u32 %v6016_v29, %v5559_v51  ;;  %v5564_v21 = vor.u32 %v6014_v40, %v5561_v50  ;;  %v5537_v63 = vld [vmem:[%s9500_s3 + $0x110] sm:$0xf0]  ;;  %3450 = vmatpush.bf16.msra.mxu1 %v5556_v36  ;;  %v5817_v51 = vld [vmem:[%s9501_s4 + $0x2f8] sm:$0xf0]  ;;  %v9631_v50 = vld [vmem:[#allocation33_spill] sm:$0xff] }
 0xa6a   :  { %vm3039_vm15 = vcmp.eq.f32.partialorder %v3038_v8, 8.507059e+37  ;;  %v5540_v19 = vor.u32 %v6009_v57, %v5537_v63  ;;  %v3209_v8 = vpack.c.bf16 %v8473_v38, %v8425_v49  ;;  %v5815_v49 = vld [vmem:[%s9501_s4 + $0x2e8] sm:$0xf]  ;;  %v6072_v38 = vld [vmem:[%s9501_s4 + $0x2f4] sm:$0xf0] }
 0xa6b   :  { %v6317_v55 = vpop.eup %6316  ;;  %3479 = vmatpush.bf16.msra.mxu2 %v5560_v9  ;;  %3508 = vmatpush.bf16.msra.mxu3 %v5564_v21  ;;  %v8771_v36 = vor.u32 %v6072_v38, %v5815_v49  ;;  %v9630_v29 = vld [vmem:[#allocation31_spill] sm:$0xff]  ;;  %v5791_v57 = vld [vmem:[%s9501_s4 + $0x2c0] sm:$0xf]  ;;  %v6054_v49 = vld [vmem:[%s9501_s4 + $0x26c] sm:$0xf] }
 0xa6c   :  { %v8615_v17 = vadd.f32 1.0, %v6317_v55  ;;  %v3041_v55 = vor.u32 1.1754944e-38, %v3040_v20  ;;  %3422 = vmatpush.bf16.msra.mxu0 %v5536_v39  ;;  %v1882_v40 = vadd.f32 %v9630_v29, %v8214_v41  ;;  %v6065_v41 = vld [vmem:[%s9501_s4 + $0x2c4] sm:$0xf]  ;;  %v6066_v39 = vld [vmem:[%s9501_s4 + $0x2cc] sm:$0xf] }
 0xa6d   :  { %v8623_v30 = vpop.eup %6318  ;;  %3451 = vmatpush.bf16.msra.mxu1 %v5540_v19  ;;  %v5801_v63 = vld [vmem:[%s9501_s4 + $0x2d8] sm:$0xf0]  ;;  %v6062_v19 = vld [vmem:[%s9501_s4 + $0x2ac] sm:$0xf] }
 0xa6e   :  { %v8634_v2 = vpop.eup %6320  ;;  %v3011_v34 = vmul.f32 %v8623_v30, %v8579_v31  ;;  %6322 = vrcp.f32 %v8615_v17  ;;  %vm3016_vm9 = vweird.f32 %v8623_v30  ;;  %vm3054_vm1 = vweird.f32 %v8615_v17  ;;  %v5753_v29 = vld [vmem:[%s9501_s4 + $0x278] sm:$0xf0] }
 0xa6f   :  { %v3030_v13 = vmul.f32 %v8634_v2, %v8581_v48  ;;  %6324 = vtanh.f32 %v3004_v27  ;;  %vm3035_vm10 = vweird.f32 %v8634_v2  ;;  %vm3017_vm13 = vmor %vm3015_vm12, %vm3016_vm9  ;;  %v3022_v27 = vor.u32 1.1754944e-38, %v3021_v3  ;;  %3480 = vmatpush.bf16.msra.mxu2 %v5544_v7  ;;  %3509 = vmatpush.bf16.msra.mxu3 %v5548_v25  ;;  %v5785_v7 = vld [vmem:[%s9501_s4 + $0x2b8] sm:$0xf0] }
 0xa70   :  { %v3012_v42 = vsub.f32 1.0, %v3011_v34  ;;  %vm3036_vm14 = vmor %vm3034_vm11, %vm3035_vm10  ;;  %v3058_v62 = vand.u32 2147483647, %v8615_v17  ;;  %v8832_v25 = vor.u32 %v6062_v19, %v5785_v7 }
 0xa71   :  { %v3031_v53 = vsub.f32 1.0, %v3030_v13 }
 0xa72   :  { %v3013_v52 = vmul.f32 %v8623_v30, %v3012_v42  ;;  %vm3059_vm3 = vcmp.eq.f32.partialorder %v3058_v62, 8.507059e+37  ;;  %v5761_v62 = vld [vmem:[%s9501_s4 + $0x290] sm:$0xf0] }
 0xa73   :  { %v3032_v18 = vmul.f32 %v8634_v2, %v3031_v53  ;;  %v9629_v53 = vld [vmem:[#allocation13_spill] sm:$0xff] }
 0xa74   :  { %v6323_v46 = vpop.eup %6322  ;;  %v3014_v61 = vadd.f32 %v8623_v30, %v3013_v52  ;;  %v3208_v23 = vpack.c.bf16 %v9629_v53, %v9628_v47  ;;  %v8762_v52 = vor.u32 %v6070_v43, %v5817_v51  ;;  %v5743_v47 = vld [vmem:[%s9501_s4 + $0x260] sm:$0xf]  ;;  %v6055_v53 = vld [vmem:[%s9501_s4 + $0x26c] sm:$0xf0]  ;;  %v5745_v51 = vld [vmem:[%s9501_s4 + $0x270] sm:$0xf0] }
 0xa75   :  { %v6325_v33 = vpop.eup %6324  ;;  %v3033_v31 = vadd.f32 %v8634_v2, %v3032_v18  ;;  %v3050_v10 = vmul.f32 %v6323_v46, %v8615_v17  ;;  %vm3055_vm0 = vweird.f32 %v6323_v46  ;;  %v1911_v18 = vadd.f32 %v9631_v50, %v8216_v60  ;;  %v5793_v60 = vld [vmem:[%s9501_s4 + $0x2d0] sm:$0xf0]  ;;  %v6060_v50 = vld [vmem:[%s9501_s4 + $0x294] sm:$0xf0] }
 0xa76   :  { %v3018_v32 = vsel %vm3017_vm13, %v8623_v30, %v3014_v61  ;;  %vm3056_vm2 = vmor %vm3054_vm1, %vm3055_vm0 }
 0xa77   :  { %v3023_v44 = vsel %vm8661_vm8, %v3022_v27, %v3018_v32  ;;  %v3037_v6 = vsel %vm3036_vm14, %v8634_v2, %v3033_v31  ;;  %v3051_v14 = vsub.f32 1.0, %v3050_v10  ;;  %v3060_v2 = vand.u32 2147483648, %v8615_v17  ;;  %v5807_v17 = vld [vmem:[%s9501_s4 + $0x2e0] sm:$0xf]  ;;  %v5799_v27 = vld [vmem:[%s9501_s4 + $0x2c8] sm:$0xf] }
 0xa78   :  { %v3042_v22 = vsel %vm3039_vm15, %v3041_v55, %v3037_v6  ;;  %v3065_v34 = vmul.f32 %v6325_v33, %v3023_v44  ;;  %v8743_v5 = vor.u32 %v6071_v35, %v5807_v17  ;;  %v8798_v33 = vor.u32 %v6065_v41, %v5793_v60  ;;  %v5775_v31 = vld [vmem:[%s9501_s4 + $0x2a0] sm:$0xf]  ;;  %v6063_v10 = vld [vmem:[%s9501_s4 + $0x2ac] sm:$0xf0]  ;;  %v5777_v32 = vld [vmem:[%s9501_s4 + $0x2b0] sm:$0xf0] }
 0xa79   :  { %v3064_v48 = vmul.f32 %v3042_v22, %v8470_v59  ;;  %v3052_v54 = vmul.f32 %v6323_v46, %v3051_v14  ;;  %v3061_v20 = vor.u32 1.1754944e-38, %v3060_v2  ;;  %v8800_v55 = vor.u32 %v6066_v39, %v5801_v63  ;;  %v9632_v44 = vld [vmem:[#allocation34_spill] sm:$0xff]  ;;  %v6068_v22 = vld [vmem:[%s9501_s4 + $0x2d4] sm:$0xf0]  ;;  %v6057_v2 = vld [vmem:[%s9501_s4 + $0x284] sm:$0xf] }
 0xa7a   :  { %v8817_v45 = vor.u32 %v6063_v10, %v5775_v31  ;;  %v1969_v6 = vadd.f32 %v9632_v44, %v8224_v37  ;;  %v8830_v14 = vor.u32 %v6061_v24, %v5777_v32  ;;  %v5783_v17 = vld [vmem:[%s9501_s4 + $0x2a8] sm:$0xf]  ;;  %v6064_v35 = vld [vmem:[%s9501_s4 + $0x2b4] sm:$0xf0]  ;;  %v8870_v28 = vor.u32 %v6057_v2, %v5761_v62  ;;  %v6051_v41 = vld [vmem:[%s9501_s4 + $0x24c] sm:$0xf0] }
 0xa7b   :  { %v8722_v30 = vadd.f32 %v3065_v34, %v3064_v48  ;;  %v3053_v58 = vadd.f32 %v6323_v46, %v3052_v54  ;;  %v5759_v34 = vld [vmem:[%s9501_s4 + $0x280] sm:$0xf]  ;;  %v6059_v48 = vld [vmem:[%s9501_s4 + $0x28c] sm:$0xf0]  ;;  %v8884_v43 = vor.u32 %v6064_v35, %v5783_v17  ;;  %v6049_v39 = vld [vmem:[%s9501_s4 + $0x244] sm:$0xf] }
 0xa7c   :  { %v5729_v63 = vld [vmem:[%s9501_s4 + $0x250] sm:$0xf0]  ;;  %v5737_v31 = vld [vmem:[%s9501_s4 + $0x258] sm:$0xf0]  ;;  %v5751_v24 = vld [vmem:[%s9501_s4 + $0x268] sm:$0xf] }
 0xa7d   :  { %6326 = vtanh.f32 %v8722_v30  ;;  %v3057_v13 = vsel %vm3056_vm2, %v6323_v46, %v3053_v58  ;;  %v6067_v46 = vld [vmem:[%s9501_s4 + $0x2cc] sm:$0xf0]  ;;  %v8845_v58 = vor.u32 %v6068_v22, %v5799_v27  ;;  %v6056_v32 = vld [vmem:[%s9501_s4 + $0x274] sm:$0xf0]  ;;  %v8948_v19 = vor.u32 %v6049_v39, %v5729_v63  ;;  %v5711_v44 = vld [vmem:[%s9501_s4 + $0x220] sm:$0xf] }
 0xa7e   :  { %v3062_v3 = vsel %vm3059_vm3, %v3061_v20, %v3057_v13  ;;  %v8787_v61 = vor.u32 %v6067_v46, %v5791_v57  ;;  %v6058_v13 = vld [vmem:[%s9501_s4 + $0x28c] sm:$0xf]  ;;  %v8912_v57 = vor.u32 %v6054_v49, %v5753_v29  ;;  %v5727_v46 = vld [vmem:[%s9501_s4 + $0x240] sm:$0xf]  ;;  %v6045_v2 = vld [vmem:[%s9501_s4 + $0x224] sm:$0xf] }
 0xa7f   :  { %v8938_v10 = vor.u32 %v6051_v41, %v5727_v46  ;;  %v5713_v62 = vld [vmem:[%s9501_s4 + $0x230] sm:$0xf0]  ;;  %v6046_v17 = vld [vmem:[%s9501_s4 + $0x22c] sm:$0xf]  ;;  %v5721_v35 = vld [vmem:[%s9501_s4 + $0x238] sm:$0xf0] }
 0xa80   :  { %v9005_v29 = vor.u32 %v6046_v17, %v5721_v35  ;;  %v5695_v41 = vld [vmem:[%s9501_s4 + $0x200] sm:$0xf]  ;;  %v6043_v39 = vld [vmem:[%s9501_s4 + $0x20c] sm:$0xf0] }
 0xa83   :  { %v6327_v59 = vpop.eup %6326 }
 0xa84   :  { %v8728_v12 = vmul.f32 %v6327_v59, %v3062_v3 }
 0xa86   :  { %v3074_v42 = vpack.c.bf16 %v8728_v12, %v8728_v12 }
 0xa88   :  { %3083 = vmatmul.bf16.vlgmr.msrb.gmra.mxu0 %v3074_v42  ;;  %3096 = vmatmul.bf16.vlgmr.msrb.gmra.mxu1 %v3074_v42 }
 0xa89   :  { %3109 = vmatmul.bf16.vlgmr.msrb.gmra.mxu2 %v3074_v42  ;;  %3122 = vmatmul.bf16.vlgmr.msrb.gmra.mxu3 %v3074_v42  ;;  %v8857_v42 = vor.u32 %v6059_v48, %v5759_v34  ;;  %v9633_v34 = vld [vmem:[#allocation35_spill] sm:$0xff] }
 0xa8a   :  { %3760 = vmatpush.bf16.msrb.mxu0 %v8743_v5  ;;  %3773 = vmatpush.bf16.msrb.mxu1 %v8748_v1  ;;  %v1940_v48 = vadd.f32 %v9633_v34, %v9602_v4  ;;  %v6052_v4 = vld [vmem:[%s9501_s4 + $0x254] sm:$0xf0] }
 0xa8b   :  { %3799 = vmatpush.bf16.msrb.mxu3 %v8762_v52  ;;  %3786 = vmatpush.bf16.msrb.mxu2 %v8771_v36 }
 0xa8e   :  { %3761 = vmatpush.bf16.msrb.mxu0 %v8787_v61  ;;  %3774 = vmatpush.bf16.msrb.mxu1 %v8798_v33 }
 0xa8f   :  { %3800 = vmatpush.bf16.msrb.mxu3 %v8800_v55  ;;  %3787 = vmatpush.bf16.msrb.mxu2 %v8845_v58 }
 0xa92   :  { %3762 = vmatpush.bf16.msrb.mxu0 %v8817_v45  ;;  %3775 = vmatpush.bf16.msrb.mxu1 %v8830_v14 }
 0xa93   :  { %3801 = vmatpush.bf16.msrb.mxu3 %v8832_v25  ;;  %3788 = vmatpush.bf16.msrb.mxu2 %v8884_v43 }
 0xa96   :  { %3763 = vmatpush.bf16.msrb.mxu0 %v8857_v42  ;;  %3776 = vmatpush.bf16.msrb.mxu1 %v8870_v28 }
 0xa98   :  { %3423 = vmatmul.bf16.vlgmr.msra.gmra.mxu0 %v3207_v16  ;;  %3452 = vmatmul.bf16.vlgmr.msra.gmra.mxu1 %v3207_v16 }
 0xa99   :  { %3481 = vmatmul.bf16.vlgmr.msra.gmra.mxu2 %v3207_v16  ;;  %3510 = vmatmul.bf16.vlgmr.msra.gmra.mxu3 %v3207_v16  ;;  %v5769_v16 = vld [vmem:[%s9501_s4 + $0x298] sm:$0xf0] }
 0xa9a   :  { %v8872_v26 = vor.u32 %v6058_v13, %v5769_v16 }
 0xa9c   :  { %3802 = vmatpush.bf16.msrb.mxu3 %v8872_v26 }
 0xaa0   :  { %3803 = vmatpush.bf16.msrb.mxu3 %v8912_v57 }
 0xaa8   :  { %3428 = vmatmul.bf16.gmra.mxu0 %v3208_v23  ;;  %3457 = vmatmul.bf16.gmra.mxu1 %v3208_v23 }
 0xaa9   :  { %3486 = vmatmul.bf16.gmra.mxu2 %v3208_v23  ;;  %3515 = vmatmul.bf16.gmra.mxu3 %v3208_v23  ;;  %v6053_v23 = vld [vmem:[%s9501_s4 + $0x264] sm:$0xf] }
 0xab8   :  { %3433 = vmatmul.bf16.gmra.mxu0 %v3209_v8  ;;  %3462 = vmatmul.bf16.gmra.mxu1 %v3209_v8 }
 0xab9   :  { %3491 = vmatmul.bf16.gmra.mxu2 %v3209_v8  ;;  %3520 = vmatmul.bf16.gmra.mxu3 %v3209_v8 }
 0xb05   :  { %v3084_v9 = vpop.f32.mrf.mxu0  ;;  %v3097_v21 = vpop.f32.mrf.mxu1 }
 0xb06   :  { %v3127_v11 = vadd.f32 %v3084_v9, %v1882_v40  ;;  %v3128_v56 = vadd.f32 %v3097_v21, %v1911_v18  ;;  %v5767_v40 = vld [vmem:[%s9501_s4 + $0x288] sm:$0xf]  ;;  %v8904_v21 = vor.u32 %v6055_v53, %v5743_v47 }
 0xb07   :  { %v8922_v60 = vor.u32 %v6060_v50, %v5767_v40  ;;  %v5719_v40 = vld [vmem:[%s9501_s4 + $0x228] sm:$0xf]  ;;  %v6048_v50 = vld [vmem:[%s9501_s4 + $0x234] sm:$0xf0] }
 0xb08   :  { %v5497_v0 = vmul.f32 -1.442695, %v3127_v11  ;;  %v5498_v15 = vmul.f32 -1.442695, %v3128_v56  ;;  %v8910_v56 = vor.u32 %v6053_v23, %v5745_v51  ;;  %3764 = vmatpush.bf16.msrb.mxu0 %v8904_v21 }
 0xb09   :  { %3789 = vmatpush.bf16.msrb.mxu2 %v8922_v60 }
 0xb0a   :  { %6328 = vpow2.f32 %v5497_v0  ;;  %v6050_v0 = vld [vmem:[%s9501_s4 + $0x24c] sm:$0xf]  ;;  %3777 = vmatpush.bf16.msrb.mxu1 %v8910_v56 }
 0xb0b   :  { %6330 = vpow2.f32 %v5498_v15  ;;  %v8950_v7 = vor.u32 %v6050_v0, %v5737_v31 }
 0xb0c   :  { %v8843_v54 = vpop.f32.mrf.mxu2  ;;  %v3123_v37 = vpop.f32.mrf.mxu3  ;;  %3765 = vmatpush.bf16.msrb.mxu0 %v8938_v10 }
 0xb0d   :  { %v3130_v20 = vadd.f32 %v3123_v37, %v1969_v6  ;;  %v3086_v59 = vpop.f32.mrf.mxu0  ;;  %v3099_v3 = vpop.f32.mrf.mxu1  ;;  %v6047_v6 = vld [vmem:[%s9501_s4 + $0x22c] sm:$0xf0]  ;;  %v8961_v37 = vor.u32 %v6056_v32, %v5751_v24  ;;  %3804 = vmatpush.bf16.msrb.mxu3 %v8950_v7  ;;  %v9035_v24 = vor.u32 %v6043_v39, %v5695_v41 }
 0xb0e   :  { %v3129_v3 = vadd.f32 %v8843_v54, %v1940_v48  ;;  %v8981_v16 = vor.u32 %v6047_v6, %v5711_v44  ;;  %3778 = vmatpush.bf16.msrb.mxu1 %v8948_v19  ;;  %v8996_v54 = vor.u32 %v6045_v2, %v5713_v62  ;;  %v9039_v44 = vor.u32 %v6048_v50, %v5719_v40  ;;  %v6042_v6 = vld [vmem:[%s9501_s4 + $0x20c] sm:$0xf]  ;;  %v5703_v48 = vld [vmem:[%s9501_s4 + $0x208] sm:$0xf]  ;;  %v6044_v2 = vld [vmem:[%s9501_s4 + $0x214] sm:$0xf0] }
 0xb0f   :  { %v5499_v8 = vmul.f32 -1.442695, %v3130_v20  ;;  %v5735_v20 = vld [vmem:[%s9501_s4 + $0x248] sm:$0xf]  ;;  %3790 = vmatpush.bf16.msrb.mxu2 %v8961_v37  ;;  %v5705_v62 = vld [vmem:[%s9501_s4 + $0x218] sm:$0xf0] }
 0xb10   :  { %v6329_v38 = vpop.eup %6328  ;;  %v9002_v51 = vor.u32 %v6052_v4, %v5735_v20  ;;  %3766 = vmatpush.bf16.msrb.mxu0 %v8981_v16  ;;  %v9061_v4 = vor.u32 %v6042_v6, %v5705_v62 }
 0xb11   :  { %v6331_v18 = vpop.eup %6330  ;;  %v8901_v9 = vadd.f32 1.0, %v6329_v38  ;;  %6332 = vpow2.f32 %v5499_v8  ;;  %3805 = vmatpush.bf16.msrb.mxu3 %v9005_v29 }
 0xb12   :  { %v8906_v11 = vadd.f32 1.0, %v6331_v18  ;;  %3779 = vmatpush.bf16.msrb.mxu1 %v8996_v54 }
 0xb13   :  { %6334 = vrcp.f32 %v8901_v9  ;;  %v3144_v8 = vand.u32 2147483647, %v8901_v9  ;;  %v3146_v38 = vand.u32 2147483648, %v8901_v9  ;;  %3791 = vmatpush.bf16.msrb.mxu2 %v9002_v51  ;;  %vm3140_vm7 = vweird.f32 %v8901_v9 }
 0xb14   :  { %6336 = vrcp.f32 %v8906_v11  ;;  %v3112_v15 = vpop.f32.mrf.mxu2  ;;  %v3125_v27 = vpop.f32.mrf.mxu3  ;;  %v3165_v46 = vand.u32 2147483648, %v8906_v11  ;;  %v3163_v0 = vand.u32 2147483647, %v8906_v11  ;;  %vm3159_vm6 = vweird.f32 %v8906_v11  ;;  %3767 = vmatpush.bf16.msrb.mxu0 %v9035_v24 }
 0xb15   :  { %v6041_v15 = vld [vmem:[%s9501_s4 + $0x204] sm:$0xf]  ;;  %v5697_v27 = vld [vmem:[%s9501_s4 + $0x210] sm:$0xf0]  ;;  %vm3145_vm10 = vcmp.eq.f32.partialorder %v3144_v8, 8.507059e+37  ;;  %3806 = vmatpush.bf16.msrb.mxu3 %v9061_v4  ;;  %s4864_s4 = sshll.u32 %s9507_s10, 4  ;;  %s4865_s4 = int_to_ptr.hbm [resolvable:$true] %s4864_s4 }
 0xb16   :  { %v9037_v32 = vor.u32 %v6041_v15, %v5697_v27  ;;  %vm3164_vm11 = vcmp.eq.f32.partialorder %v3163_v0, 8.507059e+37  ;;  %v3424_v27 = vpop.f32.mrf.mxu0 }
 0xb17   :  { %v6333_v22 = vpop.eup %6332  ;;  %3792 = vmatpush.bf16.msrb.mxu2 %v9039_v44 }
 0xb18   :  { %v8969_v13 = vadd.f32 1.0, %v6333_v22  ;;  %3780 = vmatpush.bf16.msrb.mxu1 %v9037_v32  ;;  %3884 = vmatpush.bf16.msra.mxu0 %v8743_v5 }
 0xb19   :  { %v8977_v59 = vpop.eup %6334  ;;  %3923 = vmatpush.bf16.msra.mxu3 %v8762_v52 }
 0xb1a   :  { %v8989_v47 = vpop.eup %6336  ;;  %v3136_v53 = vmul.f32 %v8977_v59, %v8901_v9  ;;  %6338 = vrcp.f32 %v8969_v13  ;;  %vm3141_vm5 = vweird.f32 %v8977_v59  ;;  %vm3179_vm13 = vweird.f32 %v8969_v13 }
 0xb1b   :  { %v3155_v23 = vmul.f32 %v8989_v47, %v8906_v11  ;;  %6340 = vtanh.f32 %v3129_v3  ;;  %vm3160_vm4 = vweird.f32 %v8989_v47  ;;  %vm3142_vm8 = vmor %vm3140_vm7, %vm3141_vm5  ;;  %v3147_v11 = vor.u32 1.1754944e-38, %v3146_v38 }
 0xb1c   :  { %v3137_v49 = vsub.f32 1.0, %v3136_v53  ;;  %vm3161_vm9 = vmor %vm3159_vm6, %vm3160_vm4  ;;  %v3166_v3 = vor.u32 1.1754944e-38, %v3165_v46  ;;  %v9070_v38 = vor.u32 %v6044_v2, %v5703_v48  ;;  %3897 = vmatpush.bf16.msra.mxu1 %v8748_v1  ;;  %3885 = vmatpush.bf16.msra.mxu0 %v8787_v61  ;;  %v3185_v46 = vand.u32 2147483648, %v8969_v13  ;;  %v3482_v6 = vpop.f32.mrf.mxu2 }
 0xb1d   :  { %v3156_v18 = vsub.f32 1.0, %v3155_v23  ;;  %3924 = vmatpush.bf16.msra.mxu3 %v8800_v55 }
 0xb1e   :  { %v3138_v63 = vmul.f32 %v8977_v59, %v3137_v49  ;;  %3793 = vmatpush.bf16.msrb.mxu2 %v9070_v38  ;;  %v3186_v39 = vor.u32 1.1754944e-38, %v3185_v46 }
 0xb1f   :  { %v3157_v31 = vmul.f32 %v8989_v47, %v3156_v18 }
 0xb20   :  { %v6339_v22 = vpop.eup %6338  ;;  %v3139_v34 = vadd.f32 %v8977_v59, %v3138_v63  ;;  %3898 = vmatpush.bf16.msra.mxu1 %v8798_v33  ;;  %3886 = vmatpush.bf16.msra.mxu0 %v8817_v45 }
 0xb21   :  { %v3158_v20 = vadd.f32 %v8989_v47, %v3157_v31  ;;  %v3175_v9 = vmul.f32 %v6339_v22, %v8969_v13  ;;  %v6341_v35 = vpop.eup %6340  ;;  %vm3180_vm12 = vweird.f32 %v6339_v22  ;;  %3925 = vmatpush.bf16.msra.mxu3 %v8832_v25  ;;  %v3453_v31 = vpop.f32.mrf.mxu1 }
 0xb22   :  { %v3143_v17 = vsel %vm3142_vm8, %v8977_v59, %v3139_v34  ;;  %3910 = vmatpush.bf16.msra.mxu2 %v8771_v36  ;;  %vm3181_vm14 = vmor %vm3179_vm13, %vm3180_vm12  ;;  %v9146_v34 = vpop.f32.mrf.mxu0 }
 0xb23   :  { %v3148_v53 = vsel %vm3145_vm10, %v3147_v11, %v3143_v17  ;;  %v3162_v23 = vsel %vm3161_vm9, %v8989_v47, %v3158_v20  ;;  %v3176_v49 = vsub.f32 1.0, %v3175_v9 }
 0xb24   :  { %v3167_v40 = vsel %vm3164_vm11, %v3166_v3, %v3162_v23  ;;  %v3190_v50 = vmul.f32 %v6341_v35, %v3148_v53  ;;  %3899 = vmatpush.bf16.msra.mxu1 %v8830_v14  ;;  %3887 = vmatpush.bf16.msra.mxu0 %v8857_v42  ;;  %v9150_v2 = vpop.f32.mrf.mxu2 }
 0xb25   :  { %v3189_v59 = vmul.f32 %v3167_v40, %v8722_v30  ;;  %v3177_v8 = vmul.f32 %v6339_v22, %v3176_v49  ;;  %v3183_v30 = vand.u32 2147483647, %v8969_v13  ;;  %3926 = vmatpush.bf16.msra.mxu3 %v8872_v26  ;;  %9635 = vst [vmem:[#allocation16_spill] sm:$0xff] %v9150_v2 }
 0xb26   :  { %3911 = vmatpush.bf16.msra.mxu2 %v8845_v58 }
 0xb27   :  { %v3191_v18 = vadd.f32 %v3190_v50, %v3189_v59  ;;  %v3178_v47 = vadd.f32 %v6339_v22, %v3177_v8  ;;  %vm3184_vm15 = vcmp.eq.f32.partialorder %v3183_v30, 8.507059e+37 }
 0xb28   :  { %3900 = vmatpush.bf16.msra.mxu1 %v8870_v28  ;;  %3888 = vmatpush.bf16.msra.mxu0 %v8904_v21 }
 0xb29   :  { %6342 = vtanh.f32 %v3191_v18  ;;  %3198 = vst [vmem:[#allocation8 + $0x8] sm:$0xff] %v3191_v18  ;;  %v3182_v41 = vsel %vm3181_vm14, %v6339_v22, %v3178_v47  ;;  %3927 = vmatpush.bf16.msra.mxu3 %v8912_v57  ;;  %v3511_v22 = vpop.f32.mrf.mxu3  ;;  %v9148_v48 = vpop.f32.mrf.mxu1 }
 0xb2a   :  { %v3187_v0 = vsel %vm3184_vm15, %v3186_v39, %v3182_v41  ;;  %3912 = vmatpush.bf16.msra.mxu2 %v8884_v43  ;;  %v9154_v11 = vpop.f32.mrf.mxu0 }
 0xb2b   :  { %9636 = vst [vmem:[#allocation14_spill] sm:$0xff] %v9154_v11 }
 0xb2c   :  { %3901 = vmatpush.bf16.msra.mxu1 %v8910_v56  ;;  %3889 = vmatpush.bf16.msra.mxu0 %v8938_v10  ;;  %v9158_v9 = vpop.f32.mrf.mxu2 }
 0xb2d   :  { %3928 = vmatpush.bf16.msra.mxu3 %v8950_v7  ;;  %9638 = vst [vmem:[#allocation15_spill] sm:$0xff] %v9158_v9 }
 0xb2e   :  { %3913 = vmatpush.bf16.msra.mxu2 %v8922_v60 }
 0xb2f   :  { %v6343_v63 = vpop.eup %6342 }
 0xb30   :  { %v3193_v15 = vmul.f32 %v6343_v63, %v3187_v0  ;;  %3902 = vmatpush.bf16.msra.mxu1 %v8948_v19  ;;  %3890 = vmatpush.bf16.msra.mxu0 %v8981_v16  ;;  %v5532_v0 = vld [vmem:[%s9502_s5 + $0x4] sm:$0xf]  ;;  %s4862_s5 = sshll.u32 %s6552_s12, 4  ;;  %s4863_s5 = int_to_ptr.vmem [resolvable:$true] %s4862_s5 }
 0xb31   :  { %3929 = vmatpush.bf16.msra.mxu3 %v9005_v29  ;;  %v9152_v62 = vpop.f32.mrf.mxu3  ;;  %v9156_v20 = vpop.f32.mrf.mxu1 }
 0xb32   :  { %3196 = vst [vmem:[#allocation6 + $0x8] sm:$0xff] %v3193_v15  ;;  %v3210_v13 = vpack.c.bf16 %v3193_v15, %v8728_v12  ;;  %3914 = vmatpush.bf16.msra.mxu2 %v8961_v37  ;;  %v9634_v12 = vmov 0   ;;  %v9162_v17 = vpop.f32.mrf.mxu0 }
 0xb33   :  { %9637 = vst [vmem:[#allocation17_spill] sm:$0xff] %v9156_v20 }
 0xb34   :  { %3438 = vmatmul.bf16.gmra.mxu0 %v3210_v13  ;;  %3467 = vmatmul.bf16.gmra.mxu1 %v3210_v13  ;;  %9640 = vst [vmem:[#allocation18_spill] sm:$0xff] %v9162_v17  ;;  %v9166_v53 = vpop.f32.mrf.mxu2 }
 0xb35   :  { %3496 = vmatmul.bf16.gmra.mxu2 %v3210_v13  ;;  %3525 = vmatmul.bf16.gmra.mxu3 %v3210_v13  ;;  %9642 = vst [vmem:[#allocation20_spill] sm:$0xff] %v9166_v53 }
 0xb36   :  { %3915 = vmatpush.bf16.msra.mxu2 %v9002_v51  ;;  %3903 = vmatpush.bf16.msra.mxu1 %v8996_v54 }
 0xb37   :  { %3891 = vmatpush.bf16.msra.mxu0 %v9035_v24  ;;  %3930 = vmatpush.bf16.msra.mxu3 %v9061_v4 }
 0xb39   :  { %v9160_v3 = vpop.f32.mrf.mxu3  ;;  %v9164_v35 = vpop.f32.mrf.mxu1 }
 0xb3a   :  { %3916 = vmatpush.bf16.msra.mxu2 %v9039_v44  ;;  %3904 = vmatpush.bf16.msra.mxu1 %v9037_v32  ;;  %9639 = vst [vmem:[#allocation19_spill] sm:$0xff] %v9160_v3  ;;  %v9170_v49 = vpop.f32.mrf.mxu0 }
 0xb3b   :  { %9641 = vst [vmem:[#allocation21_spill] sm:$0xff] %v9164_v35 }
 0xb3c   :  { %9644 = vst [vmem:[#allocation22_spill] sm:$0xff] %v9170_v49  ;;  %v9174_v50 = vpop.f32.mrf.mxu2 }
 0xb3d   :  { %9646 = vst [vmem:[#allocation23_spill] sm:$0xff] %v9174_v50 }
 0xb3e   :  { %3917 = vmatpush.bf16.msra.mxu2 %v9070_v38 }
 0xb41   :  { %v9168_v23 = vpop.f32.mrf.mxu3  ;;  %v9172_v40 = vpop.f32.mrf.mxu1 }
 0xb42   :  { %9643 = vst [vmem:[#allocation24_spill] sm:$0xff] %v9168_v23  ;;  %v9178_v8 = vpop.f32.mrf.mxu0 }
 0xb43   :  { %9645 = vst [vmem:[#allocation25_spill] sm:$0xff] %v9172_v40 }
 0xb44   :  { %3768 = vmatmul.bf16.vlgmr.msrb.gmra.mxu0 %v9634_v12  ;;  %3781 = vmatmul.bf16.vlgmr.msrb.gmra.mxu1 %v9634_v12  ;;  %9648 = vst [vmem:[#allocation26_spill] sm:$0xff] %v9178_v8  ;;  %v9182_v47 = vpop.f32.mrf.mxu2 }
 0xb45   :  { %3794 = vmatmul.bf16.vlgmr.msrb.gmra.mxu2 %v9634_v12  ;;  %3807 = vmatmul.bf16.vlgmr.msrb.gmra.mxu3 %v9634_v12  ;;  %9650 = vst [vmem:[#allocation28_spill] sm:$0xff] %v9182_v47  ;;  %v9201_v12 = vperm.slane %v5532_v0, 0  ;;  %v9203_v47 = vperm.slane %v5532_v0, 1 }
 0xb46   :  { %4008 = vmatpush.bf16.msrb.mxu0 %v8743_v5  ;;  %4021 = vmatpush.bf16.msrb.mxu1 %v8748_v1 }
 0xb47   :  { %4034 = vmatpush.bf16.msrb.mxu2 %v8771_v36  ;;  %4047 = vmatpush.bf16.msrb.mxu3 %v8762_v52 }
 0xb49   :  { %v9176_v59 = vpop.f32.mrf.mxu3  ;;  %v9180_v18 = vpop.f32.mrf.mxu1 }
 0xb4a   :  { %4009 = vmatpush.bf16.msrb.mxu0 %v8787_v61  ;;  %4022 = vmatpush.bf16.msrb.mxu1 %v8798_v33  ;;  %9647 = vst [vmem:[#allocation27_spill] sm:$0xff] %v9176_v59  ;;  %v9211_v59 = vperm.slane %v5532_v0, 3 }
 0xb4b   :  { %4035 = vmatpush.bf16.msrb.mxu2 %v8845_v58  ;;  %4048 = vmatpush.bf16.msrb.mxu3 %v8800_v55  ;;  %9649 = vst [vmem:[#allocation29_spill] sm:$0xff] %v9180_v18 }
 0xb4c   :  { %v3512_v40 = vadd.f32 %v3511_v22, %v9211_v59 }
 0xb4e   :  { %4010 = vmatpush.bf16.msrb.mxu0 %v8817_v45  ;;  %4023 = vmatpush.bf16.msrb.mxu1 %v8830_v14 }
 0xb4f   :  { %4036 = vmatpush.bf16.msrb.mxu2 %v8884_v43  ;;  %4049 = vmatpush.bf16.msrb.mxu3 %v8832_v25 }
 0xb51   :  { %v9184_v46 = vpop.f32.mrf.mxu3 }
 0xb52   :  { %4011 = vmatpush.bf16.msrb.mxu0 %v8857_v42  ;;  %4024 = vmatpush.bf16.msrb.mxu1 %v8870_v28  ;;  %9651 = vst [vmem:[#allocation32_spill] sm:$0xff] %v9184_v46 }
 0xb53   :  { %4037 = vmatpush.bf16.msrb.mxu2 %v8922_v60  ;;  %4050 = vmatpush.bf16.msrb.mxu3 %v8872_v26 }
 0xb56   :  { %4012 = vmatpush.bf16.msrb.mxu0 %v8904_v21  ;;  %4025 = vmatpush.bf16.msrb.mxu1 %v8910_v56 }
 0xb57   :  { %4038 = vmatpush.bf16.msrb.mxu2 %v8961_v37  ;;  %4051 = vmatpush.bf16.msrb.mxu3 %v8912_v57 }
 0xb5a   :  { %4013 = vmatpush.bf16.msrb.mxu0 %v8938_v10  ;;  %4026 = vmatpush.bf16.msrb.mxu1 %v8948_v19 }
 0xb5b   :  { %4039 = vmatpush.bf16.msrb.mxu2 %v9002_v51  ;;  %4052 = vmatpush.bf16.msrb.mxu3 %v8950_v7 }
 0xb5e   :  { %4014 = vmatpush.bf16.msrb.mxu0 %v8981_v16  ;;  %4027 = vmatpush.bf16.msrb.mxu1 %v8996_v54 }
 0xb5f   :  { %4040 = vmatpush.bf16.msrb.mxu2 %v9039_v44  ;;  %4053 = vmatpush.bf16.msrb.mxu3 %v9005_v29 }
 0xb62   :  { %4015 = vmatpush.bf16.msrb.mxu0 %v9035_v24  ;;  %4028 = vmatpush.bf16.msrb.mxu1 %v9037_v32 }
 0xb63   :  { %4041 = vmatpush.bf16.msrb.mxu2 %v9070_v38  ;;  %4054 = vmatpush.bf16.msrb.mxu3 %v9061_v4 }
 0xbb1   :  { %v9186_v30 = vpop.f32.mrf.mxu0  ;;  %v9188_v41 = vpop.f32.mrf.mxu1 }
 0xbb2   :  { %9652 = vst [vmem:[#allocation30_spill] sm:$0xff] %v9186_v30  ;;  %v3425_v30 = vadd.f32 %v3424_v27, %v9201_v12 }
 0xbb3   :  { %9653 = vst [vmem:[#allocation12_spill] sm:$0xff] %v9188_v41  ;;  %v3454_v41 = vadd.f32 %v3453_v31, %v9203_v47 }
 0xbb8   :  { %v9190_v39 = vpop.f32.mrf.mxu2  ;;  %v9192_v63 = vpop.f32.mrf.mxu3 }
 0xbb9   :  { %9654 = vst [vmem:[#allocation11_spill] sm:$0xff] %v9190_v39  ;;  %v9197_v15 = vpop.f32.mrf.mxu0  ;;  %v9199_v13 = vpop.f32.mrf.mxu1 }
 0xbba   :  { %9655 = vst [vmem:[#allocation36_spill] sm:$0xff] %v9192_v63 }
 0xbbb   :  { %9656 = vst [vmem:[#allocation13_spill] sm:$0xff] %v9197_v15 }
 0xbbc   :  { %9657 = vst [vmem:[#allocation31_spill] sm:$0xff] %v9199_v13 }
 0xbc0   :  { %v9207_v46 = vpop.f32.mrf.mxu2  ;;  %v9209_v39 = vpop.f32.mrf.mxu3 }
 0xbc1   :  { %9658 = vst [vmem:[#allocation33_spill] sm:$0xff] %v9207_v46  ;;  %v3769_v63 = vpop.f32.mrf.mxu0  ;;  %v3782_v18 = vpop.f32.mrf.mxu1 }
 0xbc2   :  { %9659 = vst [vmem:[#allocation34_spill] sm:$0xff] %v9209_v39  ;;  %v3812_v8 = vadd.f32 %v3769_v63, %v3425_v30  ;;  %v3813_v50 = vadd.f32 %v3782_v18, %v3454_v41  ;;  %v9214_v18 = vperm.slane %v5532_v0, 2 }
 0xbc4   :  { %v5821_v15 = vmul.f32 -1.442695, %v3812_v8  ;;  %v5822_v13 = vmul.f32 -1.442695, %v3813_v50  ;;  %9660 = vst [vmem:[#allocation35_spill] sm:$0xff] %v9214_v18  ;;  %v3483_v22 = vadd.f32 %v3482_v6, %v9214_v18 }
 0xbc6   :  { %6344 = vpow2.f32 %v5821_v15 }
 0xbc7   :  { %6346 = vpow2.f32 %v5822_v13 }
 0xbc8   :  { %v3795_v49 = vpop.f32.mrf.mxu2  ;;  %v3808_v27 = vpop.f32.mrf.mxu3 }
 0xbc9   :  { %v3815_v53 = vadd.f32 %v3808_v27, %v3512_v40  ;;  %v3771_v31 = vpop.f32.mrf.mxu0  ;;  %v3784_v23 = vpop.f32.mrf.mxu1  ;;  %v3814_v40 = vadd.f32 %v3795_v49, %v3483_v22 }
 0xbcb   :  { %v5823_v46 = vmul.f32 -1.442695, %v3815_v53 }
 0xbcc   :  { %v6345_v35 = vpop.eup %6344 }
 0xbcd   :  { %v6347_v39 = vpop.eup %6346  ;;  %v3819_v17 = vadd.f32 1.0, %v6345_v35  ;;  %6348 = vpow2.f32 %v5823_v46 }
 0xbce   :  { %v3838_v30 = vadd.f32 1.0, %v6347_v39 }
 0xbcf   :  { %6350 = vrcp.f32 %v3819_v17  ;;  %v3831_v46 = vand.u32 2147483648, %v3819_v17  ;;  %v3829_v31 = vand.u32 2147483647, %v3819_v17  ;;  %vm3825_vm2 = vweird.f32 %v3819_v17 }
 0xbd0   :  { %6352 = vrcp.f32 %v3838_v30  ;;  %v3810_v50 = vpop.f32.mrf.mxu3  ;;  %v3797_v8 = vpop.f32.mrf.mxu2  ;;  %v3850_v39 = vand.u32 2147483648, %v3838_v30  ;;  %vm3844_vm3 = vweird.f32 %v3838_v30 }
 0xbd1   :  { %v3848_v8 = vand.u32 2147483647, %v3838_v30  ;;  %v3832_v49 = vor.u32 1.1754944e-38, %v3831_v46  ;;  %vm3830_vm5 = vcmp.eq.f32.partialorder %v3829_v31, 8.507059e+37 }
 0xbd2   :  { %v3851_v3 = vor.u32 1.1754944e-38, %v3850_v39 }
 0xbd3   :  { %v6349_v41 = vpop.eup %6348  ;;  %vm3849_vm7 = vcmp.eq.f32.partialorder %v3848_v8, 8.507059e+37 }
 0xbd4   :  { %v3858_v63 = vadd.f32 1.0, %v6349_v41 }
 0xbd5   :  { %v6351_v15 = vpop.eup %6350 }
 0xbd6   :  { %v6353_v13 = vpop.eup %6352  ;;  %v3821_v23 = vmul.f32 %v6351_v15, %v3819_v17  ;;  %6354 = vrcp.f32 %v3858_v63  ;;  %vm3826_vm0 = vweird.f32 %v6351_v15  ;;  %vm3864_vm9 = vweird.f32 %v3858_v63 }
 0xbd7   :  { %v3840_v53 = vmul.f32 %v6353_v13, %v3838_v30  ;;  %6356 = vtanh.f32 %v3814_v40  ;;  %vm3845_vm1 = vweird.f32 %v6353_v13  ;;  %vm3827_vm4 = vmor %vm3825_vm2, %vm3826_vm0  ;;  %v3870_v30 = vand.u32 2147483648, %v3858_v63 }
 0xbd8   :  { %v3822_v27 = vsub.f32 1.0, %v3821_v23  ;;  %vm3846_vm6 = vmor %vm3844_vm3, %vm3845_vm1 }
 0xbd9   :  { %v3841_v35 = vsub.f32 1.0, %v3840_v53  ;;  %v3871_v39 = vor.u32 1.1754944e-38, %v3870_v30 }
 0xbda   :  { %v3823_v0 = vmul.f32 %v6351_v15, %v3822_v27 }
 0xbdb   :  { %v3842_v50 = vmul.f32 %v6353_v13, %v3841_v35 }
 0xbdc   :  { %v6355_v9 = vpop.eup %6354  ;;  %v3824_v6 = vadd.f32 %v6351_v15, %v3823_v0 }
 0xbdd   :  { %v3843_v41 = vadd.f32 %v6353_v13, %v3842_v50  ;;  %v3860_v22 = vmul.f32 %v6355_v9, %v3858_v63  ;;  %v6357_v40 = vpop.eup %6356  ;;  %vm3865_vm8 = vweird.f32 %v6355_v9 }
 0xbde   :  { %v3828_v23 = vsel %vm3827_vm4, %v6351_v15, %v3824_v6  ;;  %v3868_v15 = vand.u32 2147483647, %v3858_v63  ;;  %vm3866_vm10 = vmor %vm3864_vm9, %vm3865_vm8 }
 0xbdf   :  { %v3833_v53 = vsel %vm3830_vm5, %v3832_v49, %v3828_v23  ;;  %v3847_v27 = vsel %vm3846_vm6, %v6353_v13, %v3843_v41  ;;  %v3861_v20 = vsub.f32 1.0, %v3860_v22  ;;  %v3514_v49 = vadd.f32 %v9152_v62, %v9211_v59 }
 0xbe0   :  { %v3852_v35 = vsel %vm3849_vm7, %v3851_v3, %v3847_v27  ;;  %v3875_v11 = vmul.f32 %v6357_v40, %v3833_v53  ;;  %vm3869_vm11 = vcmp.eq.f32.partialorder %v3868_v15, 8.507059e+37 }
 0xbe1   :  { %v3874_v2 = vmul.f32 0.0, %v3852_v35  ;;  %v3862_v18 = vmul.f32 %v6355_v9, %v3861_v20 }
 0xbe3   :  { %v9217_v0 = vadd.f32 %v3875_v11, %v3874_v2  ;;  %v3863_v17 = vadd.f32 %v6355_v9, %v3862_v18  ;;  %v3427_v2 = vadd.f32 %v9146_v34, %v9201_v12  ;;  %v3456_v11 = vadd.f32 %v9148_v48, %v9203_v47 }
 0xbe5   :  { %6358 = vtanh.f32 %v9217_v0  ;;  %v3867_v46 = vsel %vm3866_vm10, %v6355_v9, %v3863_v17 }
 0xbe6   :  { %v3872_v31 = vsel %vm3869_vm11, %v3871_v39, %v3867_v46  ;;  %v9661_v39 = vld [vmem:[#allocation35_spill] sm:$0xff] }
 0xbeb   :  { %v6359_v13 = vpop.eup %6358 }
 0xbec   :  { %v3878_v50 = vmul.f32 %v6359_v13, %v3872_v31  ;;  %v9662_v13 = vld [vmem:[#allocation16_spill] sm:$0xff] }
 0xbed   :  { %v3485_v62 = vadd.f32 %v9662_v13, %v9661_v39 }
 0xbee   :  { %v3883_v3 = vpack.c.bf16 %v3878_v50, %v3878_v50 }
 0xbf0   :  { %3892 = vmatmul.bf16.vlgmr.msra.gmra.mxu0 %v3883_v3  ;;  %3905 = vmatmul.bf16.vlgmr.msra.gmra.mxu1 %v3883_v3 }
 0xbf1   :  { %3918 = vmatmul.bf16.vlgmr.msra.gmra.mxu2 %v3883_v3  ;;  %3931 = vmatmul.bf16.vlgmr.msra.gmra.mxu3 %v3883_v3 }
 0xbf2   :  { %4132 = vmatpush.bf16.msra.mxu0 %v8743_v5  ;;  %4145 = vmatpush.bf16.msra.mxu1 %v8748_v1 }
 0xbf3   :  { %4158 = vmatpush.bf16.msra.mxu2 %v8771_v36  ;;  %4171 = vmatpush.bf16.msra.mxu3 %v8762_v52 }
 0xbf6   :  { %4133 = vmatpush.bf16.msra.mxu0 %v8787_v61  ;;  %4146 = vmatpush.bf16.msra.mxu1 %v8798_v33 }
 0xbf7   :  { %4159 = vmatpush.bf16.msra.mxu2 %v8845_v58  ;;  %4172 = vmatpush.bf16.msra.mxu3 %v8800_v55 }
 0xbfa   :  { %4134 = vmatpush.bf16.msra.mxu0 %v8817_v45  ;;  %4147 = vmatpush.bf16.msra.mxu1 %v8830_v14 }
 0xbfb   :  { %4160 = vmatpush.bf16.msra.mxu2 %v8884_v43  ;;  %4173 = vmatpush.bf16.msra.mxu3 %v8832_v25 }
 0xbfe   :  { %4135 = vmatpush.bf16.msra.mxu0 %v8857_v42  ;;  %4148 = vmatpush.bf16.msra.mxu1 %v8870_v28 }
 0xbff   :  { %4161 = vmatpush.bf16.msra.mxu2 %v8922_v60  ;;  %4174 = vmatpush.bf16.msra.mxu3 %v8872_v26 }
 0xc02   :  { %4136 = vmatpush.bf16.msra.mxu0 %v8904_v21  ;;  %4149 = vmatpush.bf16.msra.mxu1 %v8910_v56 }
 0xc03   :  { %4162 = vmatpush.bf16.msra.mxu2 %v8961_v37  ;;  %4175 = vmatpush.bf16.msra.mxu3 %v8912_v57 }
 0xc06   :  { %4137 = vmatpush.bf16.msra.mxu0 %v8938_v10  ;;  %4150 = vmatpush.bf16.msra.mxu1 %v8948_v19 }
 0xc07   :  { %4163 = vmatpush.bf16.msra.mxu2 %v9002_v51  ;;  %4176 = vmatpush.bf16.msra.mxu3 %v8950_v7 }
 0xc0a   :  { %4138 = vmatpush.bf16.msra.mxu0 %v8981_v16  ;;  %4151 = vmatpush.bf16.msra.mxu1 %v8996_v54 }
 0xc0b   :  { %4164 = vmatpush.bf16.msra.mxu2 %v9039_v44  ;;  %4177 = vmatpush.bf16.msra.mxu3 %v9005_v29 }
 0xc0e   :  { %4139 = vmatpush.bf16.msra.mxu0 %v9035_v24  ;;  %4152 = vmatpush.bf16.msra.mxu1 %v9037_v32 }
 0xc0f   :  { %4165 = vmatpush.bf16.msra.mxu2 %v9070_v38  ;;  %4178 = vmatpush.bf16.msra.mxu3 %v9061_v4 }
 0xc6d   :  { %v3893_v20 = vpop.f32.mrf.mxu0  ;;  %v3906_v9 = vpop.f32.mrf.mxu1 }
 0xc6e   :  { %v3936_v18 = vadd.f32 %v3893_v20, %v3427_v2  ;;  %v3937_v63 = vadd.f32 %v3906_v9, %v3456_v11 }
 0xc70   :  { %v5824_v8 = vmul.f32 -1.442695, %v3936_v18  ;;  %v5825_v6 = vmul.f32 -1.442695, %v3937_v63 }
 0xc72   :  { %6360 = vpow2.f32 %v5824_v8 }
 0xc73   :  { %6362 = vpow2.f32 %v5825_v6 }
 0xc74   :  { %v3919_v41 = vpop.f32.mrf.mxu2  ;;  %v3932_v22 = vpop.f32.mrf.mxu3 }
 0xc75   :  { %v3939_v23 = vadd.f32 %v3932_v22, %v3514_v49  ;;  %v3895_v40 = vpop.f32.mrf.mxu0  ;;  %v3908_v53 = vpop.f32.mrf.mxu1  ;;  %v3938_v3 = vadd.f32 %v3919_v41, %v3485_v62 }
 0xc77   :  { %v5826_v34 = vmul.f32 -1.442695, %v3939_v23 }
 0xc78   :  { %v6361_v27 = vpop.eup %6360 }
 0xc79   :  { %v6363_v35 = vpop.eup %6362  ;;  %v3943_v48 = vadd.f32 1.0, %v6361_v27  ;;  %6364 = vpow2.f32 %v5826_v34 }
 0xc7a   :  { %v3962_v17 = vadd.f32 1.0, %v6363_v35 }
 0xc7b   :  { %6366 = vrcp.f32 %v3943_v48  ;;  %v3955_v63 = vand.u32 2147483648, %v3943_v48  ;;  %v3953_v49 = vand.u32 2147483647, %v3943_v48  ;;  %vm3949_vm14 = vweird.f32 %v3943_v48 }
 0xc7c   :  { %6368 = vrcp.f32 %v3962_v17  ;;  %v3921_v30 = vpop.f32.mrf.mxu2  ;;  %v3934_v15 = vpop.f32.mrf.mxu3  ;;  %v3974_v8 = vand.u32 2147483648, %v3962_v17  ;;  %v3972_v23 = vand.u32 2147483647, %v3962_v17  ;;  %vm3968_vm15 = vweird.f32 %v3962_v17 }
 0xc7d   :  { %v3956_v41 = vor.u32 1.1754944e-38, %v3955_v63  ;;  %vm3954_vm2 = vcmp.eq.f32.partialorder %v3953_v49, 8.507059e+37 }
 0xc7e   :  { %v3975_v35 = vor.u32 1.1754944e-38, %v3974_v8  ;;  %vm3973_vm3 = vcmp.eq.f32.partialorder %v3972_v23, 8.507059e+37  ;;  %v9664_v23 = vld [vmem:[#allocation17_spill] sm:$0xff] }
 0xc7f   :  { %v6365_v46 = vpop.eup %6364 }
 0xc80   :  { %v3982_v31 = vadd.f32 1.0, %v6365_v46 }
 0xc81   :  { %v6367_v50 = vpop.eup %6366 }
 0xc82   :  { %v6369_v2 = vpop.eup %6368  ;;  %v3945_v11 = vmul.f32 %v6367_v50, %v3943_v48  ;;  %6370 = vrcp.f32 %v3982_v31  ;;  %vm3950_vm12 = vweird.f32 %v6367_v50  ;;  %vm3988_vm5 = vweird.f32 %v3982_v31 }
 0xc83   :  { %v3964_v20 = vmul.f32 %v6369_v2, %v3962_v17  ;;  %6372 = vtanh.f32 %v3938_v3  ;;  %vm3969_vm13 = vweird.f32 %v6369_v2  ;;  %vm3951_vm0 = vmor %vm3949_vm14, %vm3950_vm12 }
 0xc84   :  { %v3946_v9 = vsub.f32 1.0, %v3945_v11  ;;  %vm3970_vm1 = vmor %vm3968_vm15, %vm3969_vm13 }
 0xc85   :  { %v3965_v18 = vsub.f32 1.0, %v3964_v20 }
 0xc86   :  { %v3947_v6 = vmul.f32 %v6367_v50, %v3946_v9 }
 0xc87   :  { %v3966_v22 = vmul.f32 %v6369_v2, %v3965_v18  ;;  %v3994_v18 = vand.u32 2147483648, %v3982_v31 }
 0xc88   :  { %v6371_v40 = vpop.eup %6370  ;;  %v3948_v53 = vadd.f32 %v6367_v50, %v3947_v6 }
 0xc89   :  { %v3967_v34 = vadd.f32 %v6369_v2, %v3966_v22  ;;  %v3984_v27 = vmul.f32 %v6371_v40, %v3982_v31  ;;  %v6373_v15 = vpop.eup %6372  ;;  %vm3989_vm4 = vweird.f32 %v6371_v40  ;;  %v3995_v8 = vor.u32 1.1754944e-38, %v3994_v18 }
 0xc8a   :  { %v3952_v30 = vsel %vm3951_vm0, %v6367_v50, %v3948_v53  ;;  %v3992_v50 = vand.u32 2147483647, %v3982_v31  ;;  %vm3990_vm6 = vmor %vm3988_vm5, %vm3989_vm4 }
 0xc8b   :  { %v3957_v46 = vsel %vm3954_vm2, %v3956_v41, %v3952_v30  ;;  %v3971_v13 = vsel %vm3970_vm1, %v6369_v2, %v3967_v34  ;;  %v3985_v62 = vsub.f32 1.0, %v3984_v27 }
 0xc8c   :  { %v3976_v3 = vsel %vm3973_vm3, %v3975_v35, %v3971_v13  ;;  %v3999_v11 = vmul.f32 %v6373_v15, %v3957_v46  ;;  %vm3993_vm7 = vcmp.eq.f32.partialorder %v3992_v50, 8.507059e+37  ;;  %v9665_v15 = vld [vmem:[#allocation19_spill] sm:$0xff] }
 0xc8d   :  { %v3998_v20 = vmul.f32 %v3976_v3, %v9217_v0  ;;  %v3986_v9 = vmul.f32 %v6371_v40, %v3985_v62  ;;  %v9663_v0 = vld [vmem:[#allocation14_spill] sm:$0xff]  ;;  %v3517_v46 = vadd.f32 %v9665_v15, %v9211_v59 }
 0xc8e   :  { %v3430_v31 = vadd.f32 %v9663_v0, %v9201_v12 }
 0xc8f   :  { %v9261_v48 = vadd.f32 %v3999_v11, %v3998_v20  ;;  %v3987_v17 = vadd.f32 %v6371_v40, %v3986_v9 }
 0xc91   :  { %6374 = vtanh.f32 %v9261_v48  ;;  %v3991_v63 = vsel %vm3990_vm6, %v6371_v40, %v3987_v17  ;;  %v3459_v40 = vadd.f32 %v9664_v23, %v9203_v47 }
 0xc92   :  { %v3996_v6 = vsel %vm3993_vm7, %v3995_v8, %v3991_v63 }
 0xc97   :  { %v6375_v2 = vpop.eup %6374 }
 0xc98   :  { %v4002_v49 = vmul.f32 %v6375_v2, %v3996_v6 }
 0xc9a   :  { %v4007_v22 = vpack.c.bf16 %v4002_v49, %v4002_v49  ;;  %v9666_v49 = vld [vmem:[#allocation15_spill] sm:$0xff] }
 0xc9c   :  { %4016 = vmatmul.bf16.vlgmr.msrb.gmra.mxu0 %v4007_v22  ;;  %4029 = vmatmul.bf16.vlgmr.msrb.gmra.mxu1 %v4007_v22 }
 0xc9d   :  { %4042 = vmatmul.bf16.vlgmr.msrb.gmra.mxu2 %v4007_v22  ;;  %4055 = vmatmul.bf16.vlgmr.msrb.gmra.mxu3 %v4007_v22  ;;  %v3488_v22 = vadd.f32 %v9666_v49, %v9661_v39 }
 0xc9e   :  { %4256 = vmatpush.bf16.msrb.mxu0 %v8743_v5  ;;  %4269 = vmatpush.bf16.msrb.mxu1 %v8748_v1 }
 0xc9f   :  { %4282 = vmatpush.bf16.msrb.mxu2 %v8771_v36  ;;  %4295 = vmatpush.bf16.msrb.mxu3 %v8762_v52 }
 0xca2   :  { %4257 = vmatpush.bf16.msrb.mxu0 %v8787_v61  ;;  %4270 = vmatpush.bf16.msrb.mxu1 %v8798_v33 }
 0xca3   :  { %4283 = vmatpush.bf16.msrb.mxu2 %v8845_v58  ;;  %4296 = vmatpush.bf16.msrb.mxu3 %v8800_v55 }
 0xca6   :  { %4258 = vmatpush.bf16.msrb.mxu0 %v8817_v45  ;;  %4271 = vmatpush.bf16.msrb.mxu1 %v8830_v14 }
 0xca7   :  { %4284 = vmatpush.bf16.msrb.mxu2 %v8884_v43  ;;  %4297 = vmatpush.bf16.msrb.mxu3 %v8832_v25 }
 0xcaa   :  { %4259 = vmatpush.bf16.msrb.mxu0 %v8857_v42  ;;  %4272 = vmatpush.bf16.msrb.mxu1 %v8870_v28 }
 0xcab   :  { %4285 = vmatpush.bf16.msrb.mxu2 %v8922_v60  ;;  %4298 = vmatpush.bf16.msrb.mxu3 %v8872_v26 }
 0xcae   :  { %4260 = vmatpush.bf16.msrb.mxu0 %v8904_v21  ;;  %4273 = vmatpush.bf16.msrb.mxu1 %v8910_v56 }
 0xcaf   :  { %4286 = vmatpush.bf16.msrb.mxu2 %v8961_v37  ;;  %4299 = vmatpush.bf16.msrb.mxu3 %v8912_v57 }
 0xcb2   :  { %4261 = vmatpush.bf16.msrb.mxu0 %v8938_v10  ;;  %4274 = vmatpush.bf16.msrb.mxu1 %v8948_v19 }
 0xcb3   :  { %4287 = vmatpush.bf16.msrb.mxu2 %v9002_v51  ;;  %4300 = vmatpush.bf16.msrb.mxu3 %v8950_v7 }
 0xcb6   :  { %4262 = vmatpush.bf16.msrb.mxu0 %v8981_v16  ;;  %4275 = vmatpush.bf16.msrb.mxu1 %v8996_v54 }
 0xcb7   :  { %4288 = vmatpush.bf16.msrb.mxu2 %v9039_v44  ;;  %4301 = vmatpush.bf16.msrb.mxu3 %v9005_v29 }
 0xcba   :  { %4263 = vmatpush.bf16.msrb.mxu0 %v9035_v24  ;;  %4276 = vmatpush.bf16.msrb.mxu1 %v9037_v32 }
 0xcbb   :  { %4289 = vmatpush.bf16.msrb.mxu2 %v9070_v38  ;;  %4302 = vmatpush.bf16.msrb.mxu3 %v9061_v4 }
 0xd19   :  { %v4017_v53 = vpop.f32.mrf.mxu0  ;;  %v4030_v41 = vpop.f32.mrf.mxu1 }
 0xd1a   :  { %v4060_v34 = vadd.f32 %v4017_v53, %v3430_v31  ;;  %v4061_v27 = vadd.f32 %v4030_v41, %v3459_v40 }
 0xd1c   :  { %v5827_v35 = vmul.f32 -1.442695, %v4060_v34  ;;  %v5828_v30 = vmul.f32 -1.442695, %v4061_v27 }
 0xd1e   :  { %6376 = vpow2.f32 %v5827_v35 }
 0xd1f   :  { %6378 = vpow2.f32 %v5828_v30 }
 0xd20   :  { %v4043_v13 = vpop.f32.mrf.mxu2  ;;  %v4056_v62 = vpop.f32.mrf.mxu3 }
 0xd21   :  { %v4063_v3 = vadd.f32 %v4056_v62, %v3517_v46  ;;  %v4019_v11 = vpop.f32.mrf.mxu0  ;;  %v4032_v20 = vpop.f32.mrf.mxu1  ;;  %v4062_v23 = vadd.f32 %v4043_v13, %v3488_v22 }
 0xd23   :  { %v5829_v9 = vmul.f32 -1.442695, %v4063_v3 }
 0xd24   :  { %v6377_v17 = vpop.eup %6376 }
 0xd25   :  { %v6379_v18 = vpop.eup %6378  ;;  %v4067_v50 = vadd.f32 1.0, %v6377_v17  ;;  %6380 = vpow2.f32 %v5829_v9 }
 0xd26   :  { %v4086_v63 = vadd.f32 1.0, %v6379_v18 }
 0xd27   :  { %6382 = vrcp.f32 %v4067_v50  ;;  %v4079_v35 = vand.u32 2147483648, %v4067_v50  ;;  %v4077_v46 = vand.u32 2147483647, %v4067_v50  ;;  %vm4073_vm10 = vweird.f32 %v4067_v50 }
 0xd28   :  { %6384 = vrcp.f32 %v4086_v63  ;;  %v4045_v8 = vpop.f32.mrf.mxu2  ;;  %v4058_v2 = vpop.f32.mrf.mxu3  ;;  %v4098_v30 = vand.u32 2147483648, %v4086_v63  ;;  %v4096_v3 = vand.u32 2147483647, %v4086_v63  ;;  %vm4092_vm11 = vweird.f32 %v4086_v63 }
 0xd29   :  { %v4080_v13 = vor.u32 1.1754944e-38, %v4079_v35  ;;  %vm4078_vm14 = vcmp.eq.f32.partialorder %v4077_v46, 8.507059e+37 }
 0xd2a   :  { %v4099_v18 = vor.u32 1.1754944e-38, %v4098_v30  ;;  %vm4097_vm15 = vcmp.eq.f32.partialorder %v4096_v3, 8.507059e+37  ;;  %v9668_v3 = vld [vmem:[#allocation21_spill] sm:$0xff] }
 0xd2b   :  { %v6381_v6 = vpop.eup %6380 }
 0xd2c   :  { %v4106_v0 = vadd.f32 1.0, %v6381_v6 }
 0xd2d   :  { %v6383_v31 = vpop.eup %6382 }
 0xd2e   :  { %v6385_v40 = vpop.eup %6384  ;;  %v4069_v53 = vmul.f32 %v6383_v31, %v4067_v50  ;;  %6386 = vrcp.f32 %v4106_v0  ;;  %vm4074_vm8 = vweird.f32 %v6383_v31  ;;  %vm4112_vm1 = vweird.f32 %v4106_v0 }
 0xd2f   :  { %v4088_v41 = vmul.f32 %v6385_v40, %v4086_v63  ;;  %6388 = vtanh.f32 %v4062_v23  ;;  %vm4093_vm9 = vweird.f32 %v6385_v40  ;;  %vm4075_vm12 = vmor %vm4073_vm10, %vm4074_vm8 }
 0xd30   :  { %v4070_v34 = vsub.f32 1.0, %v4069_v53  ;;  %vm4094_vm13 = vmor %vm4092_vm11, %vm4093_vm9 }
 0xd31   :  { %v4089_v27 = vsub.f32 1.0, %v4088_v41 }
 0xd32   :  { %v4071_v15 = vmul.f32 %v6383_v31, %v4070_v34 }
 0xd33   :  { %v4090_v62 = vmul.f32 %v6385_v40, %v4089_v27  ;;  %v4118_v27 = vand.u32 2147483648, %v4106_v0 }
 0xd34   :  { %v6387_v11 = vpop.eup %6386  ;;  %v4072_v20 = vadd.f32 %v6383_v31, %v4071_v15 }
 0xd35   :  { %v4091_v9 = vadd.f32 %v6385_v40, %v4090_v62  ;;  %v4108_v17 = vmul.f32 %v6387_v11, %v4106_v0  ;;  %v6389_v2 = vpop.eup %6388  ;;  %vm4113_vm0 = vweird.f32 %v6387_v11  ;;  %v4119_v30 = vor.u32 1.1754944e-38, %v4118_v27 }
 0xd36   :  { %v4076_v8 = vsel %vm4075_vm12, %v6383_v31, %v4072_v20  ;;  %v4116_v31 = vand.u32 2147483647, %v4106_v0  ;;  %vm4114_vm2 = vmor %vm4112_vm1, %vm4113_vm0 }
 0xd37   :  { %v4081_v6 = vsel %vm4078_vm14, %v4080_v13, %v4076_v8  ;;  %v4095_v49 = vsel %vm4094_vm13, %v6385_v40, %v4091_v9  ;;  %v4109_v22 = vsub.f32 1.0, %v4108_v17 }
 0xd38   :  { %v4100_v23 = vsel %vm4097_vm15, %v4099_v18, %v4095_v49  ;;  %v4123_v53 = vmul.f32 %v6389_v2, %v4081_v6  ;;  %vm4117_vm3 = vcmp.eq.f32.partialorder %v4116_v31, 8.507059e+37  ;;  %v9669_v2 = vld [vmem:[#allocation24_spill] sm:$0xff] }
 0xd39   :  { %v4122_v41 = vmul.f32 %v4100_v23, %v9261_v48  ;;  %v4110_v34 = vmul.f32 %v6387_v11, %v4109_v22  ;;  %v9667_v48 = vld [vmem:[#allocation18_spill] sm:$0xff]  ;;  %v3519_v6 = vadd.f32 %v9669_v2, %v9211_v59 }
 0xd3a   :  { %v3432_v0 = vadd.f32 %v9667_v48, %v9201_v12 }
 0xd3b   :  { %v9305_v50 = vadd.f32 %v4123_v53, %v4122_v41  ;;  %v4111_v63 = vadd.f32 %v6387_v11, %v4110_v34 }
 0xd3d   :  { %6390 = vtanh.f32 %v9305_v50  ;;  %v4115_v35 = vsel %vm4114_vm2, %v6387_v11, %v4111_v63  ;;  %v3461_v11 = vadd.f32 %v9668_v3, %v9203_v47 }
 0xd3e   :  { %v4120_v15 = vsel %vm4117_vm3, %v4119_v30, %v4115_v35 }
 0xd43   :  { %v6391_v40 = vpop.eup %6390 }
 0xd44   :  { %v4126_v46 = vmul.f32 %v6391_v40, %v4120_v15 }
 0xd46   :  { %v4131_v62 = vpack.c.bf16 %v4126_v46, %v4126_v46  ;;  %v9670_v46 = vld [vmem:[#allocation20_spill] sm:$0xff] }
 0xd48   :  { %4140 = vmatmul.bf16.vlgmr.msra.gmra.mxu0 %v4131_v62  ;;  %4153 = vmatmul.bf16.vlgmr.msra.gmra.mxu1 %v4131_v62 }
 0xd49   :  { %4166 = vmatmul.bf16.vlgmr.msra.gmra.mxu2 %v4131_v62  ;;  %4179 = vmatmul.bf16.vlgmr.msra.gmra.mxu3 %v4131_v62  ;;  %v3490_v62 = vadd.f32 %v9670_v46, %v9661_v39 }
 0xd4a   :  { %4380 = vmatpush.bf16.msra.mxu0 %v8743_v5  ;;  %4393 = vmatpush.bf16.msra.mxu1 %v8748_v1 }
 0xd4b   :  { %4406 = vmatpush.bf16.msra.mxu2 %v8771_v36  ;;  %4419 = vmatpush.bf16.msra.mxu3 %v8762_v52 }
 0xd4e   :  { %4381 = vmatpush.bf16.msra.mxu0 %v8787_v61  ;;  %4394 = vmatpush.bf16.msra.mxu1 %v8798_v33 }
 0xd4f   :  { %4407 = vmatpush.bf16.msra.mxu2 %v8845_v58  ;;  %4420 = vmatpush.bf16.msra.mxu3 %v8800_v55 }
 0xd52   :  { %4382 = vmatpush.bf16.msra.mxu0 %v8817_v45  ;;  %4395 = vmatpush.bf16.msra.mxu1 %v8830_v14 }
 0xd53   :  { %4408 = vmatpush.bf16.msra.mxu2 %v8884_v43  ;;  %4421 = vmatpush.bf16.msra.mxu3 %v8832_v25 }
 0xd56   :  { %4383 = vmatpush.bf16.msra.mxu0 %v8857_v42  ;;  %4396 = vmatpush.bf16.msra.mxu1 %v8870_v28 }
 0xd57   :  { %4409 = vmatpush.bf16.msra.mxu2 %v8922_v60  ;;  %4422 = vmatpush.bf16.msra.mxu3 %v8872_v26 }
 0xd5a   :  { %4384 = vmatpush.bf16.msra.mxu0 %v8904_v21  ;;  %4397 = vmatpush.bf16.msra.mxu1 %v8910_v56 }
 0xd5b   :  { %4410 = vmatpush.bf16.msra.mxu2 %v8961_v37  ;;  %4423 = vmatpush.bf16.msra.mxu3 %v8912_v57 }
 0xd5e   :  { %4385 = vmatpush.bf16.msra.mxu0 %v8938_v10  ;;  %4398 = vmatpush.bf16.msra.mxu1 %v8948_v19 }
 0xd5f   :  { %4411 = vmatpush.bf16.msra.mxu2 %v9002_v51  ;;  %4424 = vmatpush.bf16.msra.mxu3 %v8950_v7 }
 0xd62   :  { %4386 = vmatpush.bf16.msra.mxu0 %v8981_v16  ;;  %4399 = vmatpush.bf16.msra.mxu1 %v8996_v54 }
 0xd63   :  { %4412 = vmatpush.bf16.msra.mxu2 %v9039_v44  ;;  %4425 = vmatpush.bf16.msra.mxu3 %v9005_v29 }
 0xd66   :  { %4387 = vmatpush.bf16.msra.mxu0 %v9035_v24  ;;  %4400 = vmatpush.bf16.msra.mxu1 %v9037_v32 }
 0xd67   :  { %4413 = vmatpush.bf16.msra.mxu2 %v9070_v38  ;;  %4426 = vmatpush.bf16.msra.mxu3 %v9061_v4 }
 0xdc5   :  { %v4141_v20 = vpop.f32.mrf.mxu0  ;;  %v4154_v13 = vpop.f32.mrf.mxu1 }
 0xdc6   :  { %v4184_v9 = vadd.f32 %v4141_v20, %v3432_v0  ;;  %v4185_v17 = vadd.f32 %v4154_v13, %v3461_v11 }
 0xdc8   :  { %v5830_v18 = vmul.f32 -1.442695, %v4184_v9  ;;  %v5831_v8 = vmul.f32 -1.442695, %v4185_v17 }
 0xdca   :  { %6392 = vpow2.f32 %v5830_v18 }
 0xdcb   :  { %6394 = vpow2.f32 %v5831_v8 }
 0xdcc   :  { %v4167_v49 = vpop.f32.mrf.mxu2  ;;  %v4180_v22 = vpop.f32.mrf.mxu3 }
 0xdcd   :  { %v4187_v23 = vadd.f32 %v4180_v22, %v3519_v6  ;;  %v4143_v53 = vpop.f32.mrf.mxu0  ;;  %v4156_v41 = vpop.f32.mrf.mxu1  ;;  %v4186_v3 = vadd.f32 %v4167_v49, %v3490_v62 }
 0xdcf   :  { %v5832_v34 = vmul.f32 -1.442695, %v4187_v23 }
 0xdd0   :  { %v6393_v63 = vpop.eup %6392 }
 0xdd1   :  { %v6395_v27 = vpop.eup %6394  ;;  %v4191_v31 = vadd.f32 1.0, %v6393_v63  ;;  %6396 = vpow2.f32 %v5832_v34 }
 0xdd2   :  { %v4210_v35 = vadd.f32 1.0, %v6395_v27 }
 0xdd3   :  { %6398 = vrcp.f32 %v4191_v31  ;;  %v4203_v18 = vand.u32 2147483648, %v4191_v31  ;;  %v4201_v6 = vand.u32 2147483647, %v4191_v31  ;;  %vm4197_vm6 = vweird.f32 %v4191_v31 }
 0xdd4   :  { %6400 = vrcp.f32 %v4210_v35  ;;  %v4169_v30 = vpop.f32.mrf.mxu2  ;;  %v4182_v40 = vpop.f32.mrf.mxu3  ;;  %v4222_v8 = vand.u32 2147483648, %v4210_v35  ;;  %v4220_v23 = vand.u32 2147483647, %v4210_v35  ;;  %vm4216_vm7 = vweird.f32 %v4210_v35 }
 0xdd5   :  { %v4204_v49 = vor.u32 1.1754944e-38, %v4203_v18  ;;  %vm4202_vm10 = vcmp.eq.f32.partialorder %v4201_v6, 8.507059e+37 }
 0xdd6   :  { %v4223_v27 = vor.u32 1.1754944e-38, %v4222_v8  ;;  %vm4221_vm11 = vcmp.eq.f32.partialorder %v4220_v23, 8.507059e+37  ;;  %v9672_v23 = vld [vmem:[#allocation25_spill] sm:$0xff] }
 0xdd7   :  { %v6397_v15 = vpop.eup %6396 }
 0xdd8   :  { %v4230_v48 = vadd.f32 1.0, %v6397_v15 }
 0xdd9   :  { %v6399_v0 = vpop.eup %6398 }
 0xdda   :  { %v6401_v11 = vpop.eup %6400  ;;  %v4193_v20 = vmul.f32 %v6399_v0, %v4191_v31  ;;  %6402 = vrcp.f32 %v4230_v48  ;;  %vm4198_vm4 = vweird.f32 %v6399_v0  ;;  %vm4236_vm13 = vweird.f32 %v4230_v48 }
 0xddb   :  { %v4212_v13 = vmul.f32 %v6401_v11, %v4210_v35  ;;  %6404 = vtanh.f32 %v4186_v3  ;;  %vm4217_vm5 = vweird.f32 %v6401_v11  ;;  %vm4199_vm8 = vmor %vm4197_vm6, %vm4198_vm4 }
 0xddc   :  { %v4194_v9 = vsub.f32 1.0, %v4193_v20  ;;  %vm4218_vm9 = vmor %vm4216_vm7, %vm4217_vm5 }
 0xddd   :  { %v4213_v17 = vsub.f32 1.0, %v4212_v13 }
 0xdde   :  { %v4195_v2 = vmul.f32 %v6399_v0, %v4194_v9 }
 0xddf   :  { %v4214_v22 = vmul.f32 %v6401_v11, %v4213_v17  ;;  %v4242_v17 = vand.u32 2147483648, %v4230_v48 }
 0xde0   :  { %v6403_v53 = vpop.eup %6402  ;;  %v4196_v41 = vadd.f32 %v6399_v0, %v4195_v2 }
 0xde1   :  { %v4215_v34 = vadd.f32 %v6401_v11, %v4214_v22  ;;  %v4232_v63 = vmul.f32 %v6403_v53, %v4230_v48  ;;  %v6405_v40 = vpop.eup %6404  ;;  %vm4237_vm12 = vweird.f32 %v6403_v53  ;;  %v4243_v8 = vor.u32 1.1754944e-38, %v4242_v17 }
 0xde2   :  { %v4200_v30 = vsel %vm4199_vm8, %v6399_v0, %v4196_v41  ;;  %v4240_v0 = vand.u32 2147483647, %v4230_v48  ;;  %vm4238_vm14 = vmor %vm4236_vm13, %vm4237_vm12 }
 0xde3   :  { %v4205_v15 = vsel %vm4202_vm10, %v4204_v49, %v4200_v30  ;;  %v4219_v46 = vsel %vm4218_vm9, %v6401_v11, %v4215_v34  ;;  %v4233_v62 = vsub.f32 1.0, %v4232_v63 }
 0xde4   :  { %v4224_v3 = vsel %vm4221_vm11, %v4223_v27, %v4219_v46  ;;  %v4247_v20 = vmul.f32 %v6405_v40, %v4205_v15  ;;  %vm4241_vm15 = vcmp.eq.f32.partialorder %v4240_v0, 8.507059e+37  ;;  %v9673_v40 = vld [vmem:[#allocation27_spill] sm:$0xff] }
 0xde5   :  { %v4246_v13 = vmul.f32 %v4224_v3, %v9305_v50  ;;  %v4234_v9 = vmul.f32 %v6403_v53, %v4233_v62  ;;  %v9671_v50 = vld [vmem:[#allocation22_spill] sm:$0xff]  ;;  %v3522_v15 = vadd.f32 %v9673_v40, %v9211_v59 }
 0xde6   :  { %v3435_v48 = vadd.f32 %v9671_v50, %v9201_v12 }
 0xde7   :  { %v9349_v31 = vadd.f32 %v4247_v20, %v4246_v13  ;;  %v4235_v35 = vadd.f32 %v6403_v53, %v4234_v9 }
 0xde9   :  { %6406 = vtanh.f32 %v9349_v31  ;;  %v4239_v18 = vsel %vm4238_vm14, %v6403_v53, %v4235_v35  ;;  %v3464_v53 = vadd.f32 %v9672_v23, %v9203_v47 }
 0xdea   :  { %v4244_v2 = vsel %vm4241_vm15, %v4243_v8, %v4239_v18 }
 0xdef   :  { %v6407_v11 = vpop.eup %6406 }
 0xdf0   :  { %v4250_v6 = vmul.f32 %v6407_v11, %v4244_v2 }
 0xdf2   :  { %v4255_v22 = vpack.c.bf16 %v4250_v6, %v4250_v6  ;;  %v9674_v6 = vld [vmem:[#allocation23_spill] sm:$0xff] }
 0xdf4   :  { %4264 = vmatmul.bf16.vlgmr.msrb.gmra.mxu0 %v4255_v22  ;;  %4277 = vmatmul.bf16.vlgmr.msrb.gmra.mxu1 %v4255_v22 }
 0xdf5   :  { %4290 = vmatmul.bf16.vlgmr.msrb.gmra.mxu2 %v4255_v22  ;;  %4303 = vmatmul.bf16.vlgmr.msrb.gmra.mxu3 %v4255_v22  ;;  %v3493_v22 = vadd.f32 %v9674_v6, %v9661_v39 }
 0xdf6   :  { %4504 = vmatpush.bf16.msrb.mxu0 %v8743_v5  ;;  %4517 = vmatpush.bf16.msrb.mxu1 %v8748_v1 }
 0xdf7   :  { %4530 = vmatpush.bf16.msrb.mxu2 %v8771_v36  ;;  %4543 = vmatpush.bf16.msrb.mxu3 %v8762_v52 }
 0xdfa   :  { %4505 = vmatpush.bf16.msrb.mxu0 %v8787_v61  ;;  %4518 = vmatpush.bf16.msrb.mxu1 %v8798_v33 }
 0xdfb   :  { %4531 = vmatpush.bf16.msrb.mxu2 %v8845_v58  ;;  %4544 = vmatpush.bf16.msrb.mxu3 %v8800_v55 }
 0xdfe   :  { %4506 = vmatpush.bf16.msrb.mxu0 %v8817_v45  ;;  %4519 = vmatpush.bf16.msrb.mxu1 %v8830_v14 }
 0xdff   :  { %4532 = vmatpush.bf16.msrb.mxu2 %v8884_v43  ;;  %4545 = vmatpush.bf16.msrb.mxu3 %v8832_v25 }
 0xe02   :  { %4507 = vmatpush.bf16.msrb.mxu0 %v8857_v42  ;;  %4520 = vmatpush.bf16.msrb.mxu1 %v8870_v28 }
 0xe03   :  { %4533 = vmatpush.bf16.msrb.mxu2 %v8922_v60  ;;  %4546 = vmatpush.bf16.msrb.mxu3 %v8872_v26 }
 0xe06   :  { %4508 = vmatpush.bf16.msrb.mxu0 %v8904_v21  ;;  %4521 = vmatpush.bf16.msrb.mxu1 %v8910_v56 }
 0xe07   :  { %4534 = vmatpush.bf16.msrb.mxu2 %v8961_v37  ;;  %4547 = vmatpush.bf16.msrb.mxu3 %v8912_v57 }
 0xe0a   :  { %4509 = vmatpush.bf16.msrb.mxu0 %v8938_v10  ;;  %4522 = vmatpush.bf16.msrb.mxu1 %v8948_v19 }
 0xe0b   :  { %4535 = vmatpush.bf16.msrb.mxu2 %v9002_v51  ;;  %4548 = vmatpush.bf16.msrb.mxu3 %v8950_v7 }
 0xe0e   :  { %4510 = vmatpush.bf16.msrb.mxu0 %v8981_v16  ;;  %4523 = vmatpush.bf16.msrb.mxu1 %v8996_v54 }
 0xe0f   :  { %4536 = vmatpush.bf16.msrb.mxu2 %v9039_v44  ;;  %4549 = vmatpush.bf16.msrb.mxu3 %v9005_v29 }
 0xe12   :  { %4511 = vmatpush.bf16.msrb.mxu0 %v9035_v24  ;;  %4524 = vmatpush.bf16.msrb.mxu1 %v9037_v32 }
 0xe13   :  { %4537 = vmatpush.bf16.msrb.mxu2 %v9070_v38  ;;  %4550 = vmatpush.bf16.msrb.mxu3 %v9061_v4 }
 0xe71   :  { %v4265_v41 = vpop.f32.mrf.mxu0  ;;  %v4278_v49 = vpop.f32.mrf.mxu1 }
 0xe72   :  { %v4308_v34 = vadd.f32 %v4265_v41, %v3435_v48  ;;  %v4309_v63 = vadd.f32 %v4278_v49, %v3464_v53 }
 0xe74   :  { %v5833_v27 = vmul.f32 -1.442695, %v4308_v34  ;;  %v5834_v30 = vmul.f32 -1.442695, %v4309_v63 }
 0xe76   :  { %6408 = vpow2.f32 %v5833_v27 }
 0xe77   :  { %6410 = vpow2.f32 %v5834_v30 }
 0xe78   :  { %v4291_v46 = vpop.f32.mrf.mxu2  ;;  %v4304_v62 = vpop.f32.mrf.mxu3 }
 0xe79   :  { %v4311_v3 = vadd.f32 %v4304_v62, %v3522_v15  ;;  %v4267_v20 = vpop.f32.mrf.mxu0  ;;  %v4280_v13 = vpop.f32.mrf.mxu1  ;;  %v4310_v23 = vadd.f32 %v4291_v46, %v3493_v22 }
 0xe7b   :  { %v5835_v9 = vmul.f32 -1.442695, %v4311_v3 }
 0xe7c   :  { %v6409_v35 = vpop.eup %6408 }
 0xe7d   :  { %v6411_v17 = vpop.eup %6410  ;;  %v4315_v0 = vadd.f32 1.0, %v6409_v35  ;;  %6412 = vpow2.f32 %v5835_v9 }
 0xe7e   :  { %v4334_v18 = vadd.f32 1.0, %v6411_v17 }
 0xe7f   :  { %6414 = vrcp.f32 %v4315_v0  ;;  %v4327_v27 = vand.u32 2147483648, %v4315_v0  ;;  %v4325_v15 = vand.u32 2147483647, %v4315_v0  ;;  %vm4321_vm2 = vweird.f32 %v4315_v0 }
 0xe80   :  { %6416 = vrcp.f32 %v4334_v18  ;;  %v4293_v8 = vpop.f32.mrf.mxu2  ;;  %v4306_v11 = vpop.f32.mrf.mxu3  ;;  %v4346_v30 = vand.u32 2147483648, %v4334_v18  ;;  %v4344_v3 = vand.u32 2147483647, %v4334_v18  ;;  %vm4340_vm3 = vweird.f32 %v4334_v18 }
 0xe81   :  { %v4328_v46 = vor.u32 1.1754944e-38, %v4327_v27  ;;  %vm4326_vm6 = vcmp.eq.f32.partialorder %v4325_v15, 8.507059e+37 }
 0xe82   :  { %v4347_v17 = vor.u32 1.1754944e-38, %v4346_v30  ;;  %vm4345_vm7 = vcmp.eq.f32.partialorder %v4344_v3, 8.507059e+37 }
 0xe83   :  { %v6413_v2 = vpop.eup %6412 }
 0xe84   :  { %v4354_v50 = vadd.f32 1.0, %v6413_v2 }
 0xe85   :  { %v6415_v48 = vpop.eup %6414 }
 0xe86   :  { %v6417_v53 = vpop.eup %6416  ;;  %v4317_v41 = vmul.f32 %v6415_v48, %v4315_v0  ;;  %6418 = vrcp.f32 %v4354_v50  ;;  %vm4322_vm0 = vweird.f32 %v6415_v48  ;;  %vm4360_vm9 = vweird.f32 %v4354_v50 }
 0xe87   :  { %v4336_v49 = vmul.f32 %v6417_v53, %v4334_v18  ;;  %6420 = vtanh.f32 %v4310_v23  ;;  %vm4341_vm1 = vweird.f32 %v6417_v53  ;;  %vm4323_vm4 = vmor %vm4321_vm2, %vm4322_vm0 }
 0xe88   :  { %v4318_v34 = vsub.f32 1.0, %v4317_v41  ;;  %vm4342_vm5 = vmor %vm4340_vm3, %vm4341_vm1 }
 0xe89   :  { %v4337_v63 = vsub.f32 1.0, %v4336_v49 }
 0xe8a   :  { %v4319_v40 = vmul.f32 %v6415_v48, %v4318_v34 }
 0xe8b   :  { %v4338_v62 = vmul.f32 %v6417_v53, %v4337_v63  ;;  %v4366_v63 = vand.u32 2147483648, %v4354_v50 }
 0xe8c   :  { %v6419_v20 = vpop.eup %6418  ;;  %v4320_v13 = vadd.f32 %v6415_v48, %v4319_v40 }
 0xe8d   :  { %v4339_v9 = vadd.f32 %v6417_v53, %v4338_v62  ;;  %v4356_v35 = vmul.f32 %v6419_v20, %v4354_v50  ;;  %v6421_v11 = vpop.eup %6420  ;;  %vm4361_vm8 = vweird.f32 %v6419_v20  ;;  %v4367_v30 = vor.u32 1.1754944e-38, %v4366_v63 }
 0xe8e   :  { %v4324_v8 = vsel %vm4323_vm4, %v6415_v48, %v4320_v13  ;;  %v4364_v48 = vand.u32 2147483647, %v4354_v50  ;;  %vm4362_vm10 = vmor %vm4360_vm9, %vm4361_vm8 }
 0xe8f   :  { %v4329_v2 = vsel %vm4326_vm6, %v4328_v46, %v4324_v8  ;;  %v4343_v6 = vsel %vm4342_vm5, %v6417_v53, %v4339_v9  ;;  %v4357_v22 = vsub.f32 1.0, %v4356_v35 }
 0xe90   :  { %v4348_v23 = vsel %vm4345_vm7, %v4347_v17, %v4343_v6  ;;  %v4371_v41 = vmul.f32 %v6421_v11, %v4329_v2  ;;  %vm4365_vm11 = vcmp.eq.f32.partialorder %v4364_v48, 8.507059e+37 }
 0xe91   :  { %v4370_v49 = vmul.f32 %v4348_v23, %v9349_v31  ;;  %v4358_v34 = vmul.f32 %v6419_v20, %v4357_v22 }
 0xe93   :  { %v9393_v0 = vadd.f32 %v4371_v41, %v4370_v49  ;;  %v4359_v18 = vadd.f32 %v6419_v20, %v4358_v34 }
 0xe95   :  { %6422 = vtanh.f32 %v9393_v0  ;;  %v4363_v27 = vsel %vm4362_vm10, %v6419_v20, %v4359_v18 }
 0xe96   :  { %v4368_v40 = vsel %vm4365_vm11, %v4367_v30, %v4363_v27 }
 0xe9b   :  { %v6423_v53 = vpop.eup %6422 }
 0xe9c   :  { %v4374_v15 = vmul.f32 %v6423_v53, %v4368_v40 }
 0xe9e   :  { %v4379_v62 = vpack.c.bf16 %v4374_v15, %v4374_v15 }
 0xea0   :  { %4388 = vmatmul.bf16.vlgmr.msra.gmra.mxu0 %v4379_v62  ;;  %4401 = vmatmul.bf16.vlgmr.msra.gmra.mxu1 %v4379_v62 }
 0xea1   :  { %4414 = vmatmul.bf16.vlgmr.msra.gmra.mxu2 %v4379_v62  ;;  %4427 = vmatmul.bf16.vlgmr.msra.gmra.mxu3 %v4379_v62 }
 0xea2   :  { %4628 = vmatpush.bf16.msra.mxu0 %v8743_v5  ;;  %4641 = vmatpush.bf16.msra.mxu1 %v8748_v1  ;;  %v9675_v5 = vld [vmem:[#allocation26_spill] sm:$0xff] }
 0xea3   :  { %4654 = vmatpush.bf16.msra.mxu2 %v8771_v36  ;;  %4667 = vmatpush.bf16.msra.mxu3 %v8762_v52  ;;  %v3437_v1 = vadd.f32 %v9675_v5, %v9201_v12  ;;  %v9676_v52 = vld [vmem:[#allocation29_spill] sm:$0xff] }
 0xea4   :  { %v3466_v36 = vadd.f32 %v9676_v52, %v9203_v47 }
 0xea6   :  { %4629 = vmatpush.bf16.msra.mxu0 %v8787_v61  ;;  %4642 = vmatpush.bf16.msra.mxu1 %v8798_v33 }
 0xea7   :  { %4655 = vmatpush.bf16.msra.mxu2 %v8845_v58  ;;  %4668 = vmatpush.bf16.msra.mxu3 %v8800_v55  ;;  %v9677_v58 = vld [vmem:[#allocation32_spill] sm:$0xff] }
 0xeaa   :  { %4630 = vmatpush.bf16.msra.mxu0 %v8817_v45  ;;  %4643 = vmatpush.bf16.msra.mxu1 %v8830_v14 }
 0xeab   :  { %4656 = vmatpush.bf16.msra.mxu2 %v8884_v43  ;;  %4669 = vmatpush.bf16.msra.mxu3 %v8832_v25 }
 0xeae   :  { %4631 = vmatpush.bf16.msra.mxu0 %v8857_v42  ;;  %4644 = vmatpush.bf16.msra.mxu1 %v8870_v28  ;;  %v3524_v42 = vadd.f32 %v9677_v58, %v9211_v59 }
 0xeaf   :  { %4657 = vmatpush.bf16.msra.mxu2 %v8922_v60  ;;  %4670 = vmatpush.bf16.msra.mxu3 %v8872_v26 }
 0xeb2   :  { %4632 = vmatpush.bf16.msra.mxu0 %v8904_v21  ;;  %4645 = vmatpush.bf16.msra.mxu1 %v8910_v56 }
 0xeb3   :  { %4658 = vmatpush.bf16.msra.mxu2 %v8961_v37  ;;  %4671 = vmatpush.bf16.msra.mxu3 %v8912_v57 }
 0xeb6   :  { %4633 = vmatpush.bf16.msra.mxu0 %v8938_v10  ;;  %4646 = vmatpush.bf16.msra.mxu1 %v8948_v19 }
 0xeb7   :  { %4659 = vmatpush.bf16.msra.mxu2 %v9002_v51  ;;  %4672 = vmatpush.bf16.msra.mxu3 %v8950_v7  ;;  %v9678_v51 = vld [vmem:[#allocation28_spill] sm:$0xff] }
 0xeba   :  { %4634 = vmatpush.bf16.msra.mxu0 %v8981_v16  ;;  %4647 = vmatpush.bf16.msra.mxu1 %v8996_v54 }
 0xebb   :  { %4660 = vmatpush.bf16.msra.mxu2 %v9039_v44  ;;  %4673 = vmatpush.bf16.msra.mxu3 %v9005_v29  ;;  %v3495_v29 = vadd.f32 %v9678_v51, %v9661_v39 }
 0xebe   :  { %4635 = vmatpush.bf16.msra.mxu0 %v9035_v24  ;;  %4648 = vmatpush.bf16.msra.mxu1 %v9037_v32 }
 0xebf   :  { %4661 = vmatpush.bf16.msra.mxu2 %v9070_v38  ;;  %4674 = vmatpush.bf16.msra.mxu3 %v9061_v4 }
 0xf1d   :  { %v4389_v61 = vpop.f32.mrf.mxu0  ;;  %v4402_v33 = vpop.f32.mrf.mxu1 }
 0xf1e   :  { %v4432_v55 = vadd.f32 %v4389_v61, %v3437_v1  ;;  %v4433_v45 = vadd.f32 %v4402_v33, %v3466_v36 }
 0xf20   :  { %v5836_v14 = vmul.f32 -1.442695, %v4432_v55  ;;  %v5837_v25 = vmul.f32 -1.442695, %v4433_v45 }
 0xf22   :  { %6424 = vpow2.f32 %v5836_v14  ;;  %v9680_v14 = vld [vmem:[#allocation12_spill] sm:$0xff] }
 0xf23   :  { %6426 = vpow2.f32 %v5837_v25  ;;  %v3469_v25 = vadd.f32 %v9680_v14, %v9203_v47 }
 0xf24   :  { %v4415_v28 = vpop.f32.mrf.mxu2  ;;  %v4428_v26 = vpop.f32.mrf.mxu3 }
 0xf25   :  { %v4435_v43 = vadd.f32 %v4428_v26, %v3524_v42  ;;  %v4391_v21 = vpop.f32.mrf.mxu0  ;;  %v4404_v56 = vpop.f32.mrf.mxu1  ;;  %v4434_v44 = vadd.f32 %v4415_v28, %v3495_v29 }
 0xf26   :  { %v9681_v56 = vld [vmem:[#allocation36_spill] sm:$0xff] }
 0xf27   :  { %v5838_v57 = vmul.f32 -1.442695, %v4435_v43 }
 0xf28   :  { %v6425_v60 = vpop.eup %6424 }
 0xf29   :  { %v6427_v10 = vpop.eup %6426  ;;  %v4439_v19 = vadd.f32 1.0, %v6425_v60  ;;  %6428 = vpow2.f32 %v5838_v57  ;;  %v3527_v57 = vadd.f32 %v9681_v56, %v9211_v59  ;;  %v9683_v56 = vld [vmem:[#allocation13_spill] sm:$0xff] }
 0xf2a   :  { %v4458_v7 = vadd.f32 1.0, %v6427_v10 }
 0xf2b   :  { %6430 = vrcp.f32 %v4439_v19  ;;  %v4451_v20 = vand.u32 2147483648, %v4439_v19  ;;  %v4449_v9 = vand.u32 2147483647, %v4439_v19  ;;  %vm4445_vm14 = vweird.f32 %v4439_v19 }
 0xf2c   :  { %6432 = vrcp.f32 %v4458_v7  ;;  %v4417_v37 = vpop.f32.mrf.mxu2  ;;  %v4430_v16 = vpop.f32.mrf.mxu3  ;;  %v4470_v13 = vand.u32 2147483648, %v4458_v7  ;;  %v4468_v17 = vand.u32 2147483647, %v4458_v7  ;;  %vm4464_vm15 = vweird.f32 %v4458_v7 }
 0xf2d   :  { %v4452_v2 = vor.u32 1.1754944e-38, %v4451_v20  ;;  %vm4450_vm2 = vcmp.eq.f32.partialorder %v4449_v9, 8.507059e+37 }
 0xf2e   :  { %v4471_v23 = vor.u32 1.1754944e-38, %v4470_v13  ;;  %vm4469_vm3 = vcmp.eq.f32.partialorder %v4468_v17, 8.507059e+37 }
 0xf2f   :  { %v6429_v54 = vpop.eup %6428 }
 0xf30   :  { %v4478_v24 = vadd.f32 1.0, %v6429_v54 }
 0xf31   :  { %v6431_v32 = vpop.eup %6430 }
 0xf32   :  { %v6433_v4 = vpop.eup %6432  ;;  %v4441_v38 = vmul.f32 %v6431_v32, %v4439_v19  ;;  %6434 = vrcp.f32 %v4478_v24  ;;  %vm4446_vm12 = vweird.f32 %v6431_v32  ;;  %v4490_v62 = vand.u32 2147483648, %v4478_v24 }
 0xf33   :  { %v4460_v31 = vmul.f32 %v6433_v4, %v4458_v7  ;;  %6436 = vtanh.f32 %v4434_v44  ;;  %vm4465_vm13 = vweird.f32 %v6433_v4  ;;  %vm4447_vm0 = vmor %vm4445_vm14, %vm4446_vm12  ;;  %vm4484_vm5 = vweird.f32 %v4478_v24 }
 0xf34   :  { %v4442_v50 = vsub.f32 1.0, %v4441_v38  ;;  %vm4466_vm1 = vmor %vm4464_vm15, %vm4465_vm13  ;;  %v4488_v5 = vand.u32 2147483647, %v4478_v24  ;;  %v4491_v52 = vor.u32 1.1754944e-38, %v4490_v62  ;;  %v9682_v38 = vld [vmem:[#allocation11_spill] sm:$0xff] }
 0xf35   :  { %v4461_v3 = vsub.f32 1.0, %v4460_v31  ;;  %v3498_v31 = vadd.f32 %v9682_v38, %v9661_v39 }
 0xf36   :  { %v4443_v46 = vmul.f32 %v6431_v32, %v4442_v50  ;;  %vm4489_vm7 = vcmp.eq.f32.partialorder %v4488_v5, 8.507059e+37 }
 0xf37   :  { %v4462_v35 = vmul.f32 %v6433_v4, %v4461_v3 }
 0xf38   :  { %v6435_v8 = vpop.eup %6434  ;;  %v4444_v11 = vadd.f32 %v6431_v32, %v4443_v46 }
 0xf39   :  { %v4463_v6 = vadd.f32 %v6433_v4, %v4462_v35  ;;  %v4480_v22 = vmul.f32 %v6435_v8, %v4478_v24  ;;  %v6437_v49 = vpop.eup %6436  ;;  %vm4485_vm4 = vweird.f32 %v6435_v8 }
 0xf3a   :  { %v4448_v41 = vsel %vm4447_vm0, %v6431_v32, %v4444_v11  ;;  %vm4486_vm6 = vmor %vm4484_vm5, %vm4485_vm4 }
 0xf3b   :  { %v4453_v34 = vsel %vm4450_vm2, %v4452_v2, %v4448_v41  ;;  %v4467_v18 = vsel %vm4466_vm1, %v6433_v4, %v4463_v6  ;;  %v4481_v63 = vsub.f32 1.0, %v4480_v22 }
 0xf3c   :  { %v4472_v48 = vsel %vm4469_vm3, %v4471_v23, %v4467_v18  ;;  %v4495_v27 = vmul.f32 %v6437_v49, %v4453_v34 }
 0xf3d   :  { %v4494_v30 = vmul.f32 %v4472_v48, %v9393_v0  ;;  %v4482_v53 = vmul.f32 %v6435_v8, %v4481_v63  ;;  %v9679_v0 = vld [vmem:[#allocation30_spill] sm:$0xff] }
 0xf3e   :  { %v3440_v45 = vadd.f32 %v9679_v0, %v9201_v12 }
 0xf3f   :  { %v9437_v40 = vadd.f32 %v4495_v27, %v4494_v30  ;;  %v4483_v15 = vadd.f32 %v6435_v8, %v4482_v53 }
 0xf41   :  { %6438 = vtanh.f32 %v9437_v40  ;;  %v4487_v1 = vsel %vm4486_vm6, %v6435_v8, %v4483_v15 }
 0xf42   :  { %v4492_v61 = vsel %vm4489_vm7, %v4491_v52, %v4487_v1 }
 0xf47   :  { %v6439_v36 = vpop.eup %6438 }
 0xf48   :  { %v4498_v33 = vmul.f32 %v6439_v36, %v4492_v61 }
 0xf4a   :  { %v4503_v55 = vpack.c.bf16 %v4498_v33, %v4498_v33 }
 0xf4c   :  { %4512 = vmatmul.bf16.vlgmr.msrb.gmra.mxu0 %v4503_v55  ;;  %4525 = vmatmul.bf16.vlgmr.msrb.gmra.mxu1 %v4503_v55 }
 0xf4d   :  { %4538 = vmatmul.bf16.vlgmr.msrb.gmra.mxu2 %v4503_v55  ;;  %4551 = vmatmul.bf16.vlgmr.msrb.gmra.mxu3 %v4503_v55 }
 0xfc9   :  { %v4513_v58 = vpop.f32.mrf.mxu0  ;;  %v4526_v42 = vpop.f32.mrf.mxu1 }
 0xfca   :  { %v4556_v28 = vadd.f32 %v4513_v58, %v3440_v45  ;;  %v4557_v26 = vadd.f32 %v4526_v42, %v3469_v25 }
 0xfcc   :  { %v5839_v43 = vmul.f32 -1.442695, %v4556_v28  ;;  %v5840_v21 = vmul.f32 -1.442695, %v4557_v26  ;;  %v6079_v26 = vld [vmem:[%s9503_s6 + $0x30] sm:$0xff] }
 0xfce   :  { %6440 = vpow2.f32 %v5839_v43  ;;  %v6078_v43 = vld [vmem:[%s9503_s6 + $0x28] sm:$0xff] }
 0xfcf   :  { %6442 = vpow2.f32 %v5840_v21  ;;  %v6077_v21 = vld [vmem:[%s9503_s6 + $0x20] sm:$0xff] }
 0xfd0   :  { %v4539_v60 = vpop.f32.mrf.mxu2  ;;  %v4552_v10 = vpop.f32.mrf.mxu3 }
 0xfd1   :  { %v4559_v19 = vadd.f32 %v4552_v10, %v3527_v57  ;;  %v4515_v7 = vpop.f32.mrf.mxu0  ;;  %v4528_v37 = vpop.f32.mrf.mxu1  ;;  %v4558_v20 = vadd.f32 %v4539_v60, %v3498_v31  ;;  %v3442_v57 = vadd.f32 %v9683_v56, %v9201_v12  ;;  %v9684_v60 = vld [vmem:[#allocation31_spill] sm:$0xff]  ;;  %v9685_v12 = vld [vmem:[#allocation34_spill] sm:$0xff] }
 0xfd2   :  { %v3471_v10 = vadd.f32 %v9684_v60, %v9203_v47  ;;  %v6074_v47 = vld [vmem:[%s9503_s6 + $0x8] sm:$0xff] }
 0xfd3   :  { %v5841_v16 = vmul.f32 -1.442695, %v4559_v19  ;;  %v6076_v19 = vld [vmem:[%s9503_s6 + $0x18] sm:$0xff] }
 0xfd4   :  { %v6441_v54 = vpop.eup %6440 }
 0xfd5   :  { %v6443_v51 = vpop.eup %6442  ;;  %v4563_v29 = vadd.f32 1.0, %v6441_v54  ;;  %6444 = vpow2.f32 %v5841_v16 }
 0xfd6   :  { %v4582_v24 = vadd.f32 1.0, %v6443_v51 }
 0xfd7   :  { %6446 = vrcp.f32 %v4563_v29  ;;  %v4575_v8 = vand.u32 2147483648, %v4563_v29  ;;  %v4573_v6 = vand.u32 2147483647, %v4563_v29  ;;  %vm4569_vm10 = vweird.f32 %v4563_v29 }
 0xfd8   :  { %6448 = vrcp.f32 %v4582_v24  ;;  %v4541_v32 = vpop.f32.mrf.mxu2  ;;  %v4554_v44 = vpop.f32.mrf.mxu3  ;;  %v4594_v11 = vand.u32 2147483648, %v4582_v24  ;;  %v4592_v23 = vand.u32 2147483647, %v4582_v24  ;;  %vm4588_vm11 = vweird.f32 %v4582_v24 }
 0xfd9   :  { %v4576_v34 = vor.u32 1.1754944e-38, %v4575_v8  ;;  %vm4574_vm14 = vcmp.eq.f32.partialorder %v4573_v6, 8.507059e+37  ;;  %v3529_v32 = vadd.f32 %v9685_v12, %v9211_v59 }
 0xfda   :  { %v4595_v48 = vor.u32 1.1754944e-38, %v4594_v11  ;;  %vm4593_vm15 = vcmp.eq.f32.partialorder %v4592_v23, 8.507059e+37  ;;  %v9686_v11 = vld [vmem:[#allocation33_spill] sm:$0xff] }
 0xfdb   :  { %v6445_v4 = vpop.eup %6444 }
 0xfdc   :  { %v4602_v50 = vadd.f32 1.0, %v6445_v4 }
 0xfdd   :  { %v6447_v3 = vpop.eup %6446 }
 0xfde   :  { %v6449_v13 = vpop.eup %6448  ;;  %v4565_v46 = vmul.f32 %v6447_v3, %v4563_v29  ;;  %6450 = vrcp.f32 %v4602_v50  ;;  %vm4570_vm8 = vweird.f32 %v6447_v3  ;;  %v4614_v55 = vand.u32 2147483648, %v4602_v50 }
 0xfdf   :  { %v4584_v9 = vmul.f32 %v6449_v13, %v4582_v24  ;;  %6452 = vtanh.f32 %v4558_v20  ;;  %vm4589_vm9 = vweird.f32 %v6449_v13  ;;  %vm4571_vm12 = vmor %vm4569_vm10, %vm4570_vm8  ;;  %vm4608_vm1 = vweird.f32 %v4602_v50  ;;  %v6075_v24 = vld [vmem:[%s9503_s6 + $0x10] sm:$0xff] }
 0xfe0   :  { %v4566_v35 = vsub.f32 1.0, %v4565_v46  ;;  %vm4590_vm13 = vmor %vm4588_vm11, %vm4589_vm9  ;;  %v4612_v0 = vand.u32 2147483647, %v4602_v50  ;;  %v4615_v14 = vor.u32 1.1754944e-38, %v4614_v55 }
 0xfe1   :  { %v4585_v17 = vsub.f32 1.0, %v4584_v9 }
 0xfe2   :  { %v4567_v2 = vmul.f32 %v6447_v3, %v4566_v35  ;;  %vm4613_vm3 = vcmp.eq.f32.partialorder %v4612_v0, 8.507059e+37 }
 0xfe3   :  { %v4586_v22 = vmul.f32 %v6449_v13, %v4585_v17 }
 0xfe4   :  { %v6451_v41 = vpop.eup %6450  ;;  %v4568_v49 = vadd.f32 %v6447_v3, %v4567_v2  ;;  %v3500_v2 = vadd.f32 %v9686_v11, %v9661_v39 }
 0xfe5   :  { %v4587_v18 = vadd.f32 %v6449_v13, %v4586_v22  ;;  %v4604_v63 = vmul.f32 %v6451_v41, %v4602_v50  ;;  %v6453_v30 = vpop.eup %6452  ;;  %vm4609_vm0 = vweird.f32 %v6451_v41 }
 0xfe6   :  { %v4572_v27 = vsel %vm4571_vm12, %v6447_v3, %v4568_v49  ;;  %vm4610_vm2 = vmor %vm4608_vm1, %vm4609_vm0  ;;  %v6073_v3 = vld [vmem:[%s9503_s6] sm:$0xff] }
 0xfe7   :  { %v4577_v53 = vsel %vm4574_vm14, %v4576_v34, %v4572_v27  ;;  %v4591_v15 = vsel %vm4590_vm13, %v6449_v13, %v4587_v18  ;;  %v4605_v62 = vsub.f32 1.0, %v4604_v63 }
 0xfe8   :  { %v4596_v5 = vsel %vm4593_vm15, %v4595_v48, %v4591_v15  ;;  %v4619_v1 = vmul.f32 %v6453_v30, %v4577_v53 }
 0xfe9   :  { %v4618_v52 = vmul.f32 %v4596_v5, %v9437_v40  ;;  %v4606_v36 = vmul.f32 %v6451_v41, %v4605_v62  ;;  %v6080_v40 = vld [vmem:[%s9503_s6 + $0x38] sm:$0xff] }
 0xfea   :  { %4820 = vmatpush.bf16.msrb.mxu0 %v6080_v40 }
 0xfeb   :  { %v9449_v61 = vadd.f32 %v4619_v1, %v4618_v52  ;;  %v4607_v33 = vadd.f32 %v6451_v41, %v4606_v36 }
 0xfed   :  { %6454 = vtanh.f32 %v9449_v61  ;;  %v4611_v45 = vsel %vm4610_vm2, %v6451_v41, %v4607_v33 }
 0xfee   :  { %v4616_v58 = vsel %vm4613_vm3, %v4615_v14, %v4611_v45  ;;  %4821 = vmatpush.bf16.msrb.mxu0 %v6079_v26 }
 0xff2   :  { %4822 = vmatpush.bf16.msrb.mxu0 %v6078_v43 }
 0xff3   :  { %v6455_v25 = vpop.eup %6454 }
 0xff4   :  { %v4622_v42 = vmul.f32 %v6455_v25, %v4616_v58 }
 0xff6   :  { %v4627_v28 = vpack.c.bf16 %v4622_v42, %v4622_v42  ;;  %4823 = vmatpush.bf16.msrb.mxu0 %v6077_v21 }
 0xff8   :  { %4636 = vmatmul.bf16.vlgmr.msra.gmra.mxu0 %v4627_v28  ;;  %4649 = vmatmul.bf16.vlgmr.msra.gmra.mxu1 %v4627_v28 }
 0xff9   :  { %4662 = vmatmul.bf16.vlgmr.msra.gmra.mxu2 %v4627_v28  ;;  %4675 = vmatmul.bf16.vlgmr.msra.gmra.mxu3 %v4627_v28 }
 0xffa   :  { %4824 = vmatpush.bf16.msrb.mxu0 %v6076_v19 }
 0xffe   :  { %4825 = vmatpush.bf16.msrb.mxu0 %v6075_v24 }
0x1002   :  { %4826 = vmatpush.bf16.msrb.mxu0 %v6074_v47 }
0x1006   :  { %4827 = vmatpush.bf16.msrb.mxu0 %v6073_v3 }
0x1075   :  { %v4637_v7 = vpop.f32.mrf.mxu0  ;;  %v4650_v37 = vpop.f32.mrf.mxu1 }
0x1076   :  { %v4680_v16 = vadd.f32 %v4637_v7, %v3442_v57  ;;  %v4681_v54 = vadd.f32 %v4650_v37, %v3471_v10 }
0x1078   :  { %v5842_v51 = vmul.f32 -1.442695, %v4680_v16  ;;  %v5843_v29 = vmul.f32 -1.442695, %v4681_v54 }
0x107a   :  { %6456 = vpow2.f32 %v5842_v51 }
0x107b   :  { %6458 = vpow2.f32 %v5843_v29 }
0x107c   :  { %v4663_v44 = vpop.f32.mrf.mxu2  ;;  %v4676_v4 = vpop.f32.mrf.mxu3 }
0x107d   :  { %v4683_v38 = vadd.f32 %v4676_v4, %v3529_v32  ;;  %v4639_v31 = vpop.f32.mrf.mxu0  ;;  %v4652_v50 = vpop.f32.mrf.mxu1  ;;  %v4682_v23 = vadd.f32 %v4663_v44, %v3500_v2 }
0x107f   :  { %v5844_v20 = vmul.f32 -1.442695, %v4683_v38 }
0x1080   :  { %v6457_v13 = vpop.eup %6456 }
0x1081   :  { %v6459_v46 = vpop.eup %6458  ;;  %v4687_v9 = vadd.f32 1.0, %v6457_v13  ;;  %6460 = vpow2.f32 %v5844_v20 }
0x1082   :  { %v4706_v35 = vadd.f32 1.0, %v6459_v46 }
0x1083   :  { %6462 = vrcp.f32 %v4687_v9  ;;  %v4699_v48 = vand.u32 2147483648, %v4687_v9  ;;  %v4697_v53 = vand.u32 2147483647, %v4687_v9  ;;  %vm4693_vm6 = vweird.f32 %v4687_v9 }
0x1084   :  { %6464 = vrcp.f32 %v4706_v35  ;;  %v4665_v59 = vpop.f32.mrf.mxu2  ;;  %v4678_v17 = vpop.f32.mrf.mxu3  ;;  %v4718_v27 = vand.u32 2147483648, %v4706_v35  ;;  %v4716_v62 = vand.u32 2147483647, %v4706_v35  ;;  %vm4712_vm7 = vweird.f32 %v4706_v35 }
0x1085   :  { %v4700_v1 = vor.u32 1.1754944e-38, %v4699_v48  ;;  %vm4698_vm10 = vcmp.eq.f32.partialorder %v4697_v53, 8.507059e+37 }
0x1086   :  { %v4719_v33 = vor.u32 1.1754944e-38, %v4718_v27  ;;  %vm4717_vm11 = vcmp.eq.f32.partialorder %v4716_v62, 8.507059e+37 }
0x1087   :  { %v6461_v8 = vpop.eup %6460 }
0x1088   :  { %v4726_v6 = vadd.f32 1.0, %v6461_v8 }
0x1089   :  { %v6463_v22 = vpop.eup %6462 }
0x108a   :  { %v6465_v41 = vpop.eup %6464  ;;  %v4689_v49 = vmul.f32 %v6463_v22, %v4687_v9  ;;  %6466 = vrcp.f32 %v4726_v6  ;;  %vm4694_vm4 = vweird.f32 %v6463_v22  ;;  %v4738_v21 = vand.u32 2147483648, %v4726_v6 }
0x108b   :  { %v4708_v34 = vmul.f32 %v6465_v41, %v4706_v35  ;;  %6468 = vtanh.f32 %v4682_v23  ;;  %vm4713_vm5 = vweird.f32 %v6465_v41  ;;  %vm4695_vm8 = vmor %vm4693_vm6, %vm4694_vm4  ;;  %vm4732_vm13 = vweird.f32 %v4726_v6 }
0x108c   :  { %v4690_v18 = vsub.f32 1.0, %v4689_v49  ;;  %vm4714_vm9 = vmor %vm4712_vm7, %vm4713_vm5  ;;  %v4736_v56 = vand.u32 2147483647, %v4726_v6  ;;  %v4739_v60 = vor.u32 1.1754944e-38, %v4738_v21 }
0x108d   :  { %v4709_v63 = vsub.f32 1.0, %v4708_v34 }
0x108e   :  { %v4691_v30 = vmul.f32 %v6463_v22, %v4690_v18  ;;  %vm4737_vm15 = vcmp.eq.f32.partialorder %v4736_v56, 8.507059e+37 }
0x108f   :  { %v4710_v15 = vmul.f32 %v6465_v41, %v4709_v63 }
0x1090   :  { %v6467_v5 = vpop.eup %6466  ;;  %v4692_v39 = vadd.f32 %v6463_v22, %v4691_v30 }
0x1091   :  { %v4711_v52 = vadd.f32 %v6465_v41, %v4710_v15  ;;  %v4728_v36 = vmul.f32 %v6467_v5, %v4726_v6  ;;  %v6469_v0 = vpop.eup %6468  ;;  %vm4733_vm12 = vweird.f32 %v6467_v5 }
0x1092   :  { %v4696_v55 = vsel %vm4695_vm8, %v6463_v22, %v4692_v39  ;;  %vm4734_vm14 = vmor %vm4732_vm13, %vm4733_vm12 }
0x1093   :  { %v4701_v45 = vsel %vm4698_vm10, %v4700_v1, %v4696_v55  ;;  %v4715_v14 = vsel %vm4714_vm9, %v6465_v41, %v4711_v52  ;;  %v4729_v25 = vsub.f32 1.0, %v4728_v36 }
0x1094   :  { %v4720_v58 = vsel %vm4717_vm11, %v4719_v33, %v4715_v14  ;;  %v4743_v42 = vmul.f32 %v6469_v0, %v4701_v45 }
0x1095   :  { %v4742_v28 = vmul.f32 %v4720_v58, %v9449_v61  ;;  %v4730_v40 = vmul.f32 %v6467_v5, %v4729_v25  ;;  %v6087_v61 = vld [vmem:[%s9504_s7] ss:$0 sm:$0xff] }
0x1097   :  { %v4744_v26 = vadd.f32 %v4743_v42, %v4742_v28  ;;  %v4731_v43 = vadd.f32 %v6467_v5, %v4730_v40 }
0x1099   :  { %6470 = vtanh.f32 %v4744_v26  ;;  %4750 = vst [vmem:[#allocation8 + $0x10] sm:$0xff] %v4744_v26  ;;  %v4735_v57 = vsel %vm4734_vm14, %v6467_v5, %v4731_v43 }
0x109a   :  { %v4740_v19 = vsel %vm4737_vm15, %v4739_v60, %v4735_v57 }
0x109f   :  { %v6471_v10 = vpop.eup %6470 }
0x10a0   :  { %v4746_v7 = vmul.f32 %v6471_v10, %v4740_v19 }
0x10a2   :  { %v4751_v37 = vpack.c.bf16 %v4746_v7, %v4746_v7  ;;  %4748 = vst [vmem:[#allocation6 + $0x10] sm:$0xff] %v4746_v7 }
0x10a3   :  { %4857 = dma.vmem_to_hbm [thread:$0]  %s4850_s29, 384, %s4852_s28, [#allocation7], %s6550_s0, %s6550_s0, %s6551_s30  }
0x10a4   :  { %4828 = vmatmul.bf16.vlgmr.msrb.gmra.mxu0 %v4751_v37  ;;  %4870 = dma.vmem_to_hbm [thread:$0]  %s4863_s5, 384, %s4865_s4, [#allocation7], %s6550_s0, %s6550_s0, %s6551_s30  }
0x1121   :  { %v4829_v16 = vpop.f32.mrf.mxu0 }
0x1122   :  { %v4830_v54 = vadd.f32 %v6087_v61, %v4829_v16 }
0x1124   :  { %4833 = vst [vmem:[#allocation4] sm:$0xff] %v4830_v54 }
0x1125   :  { %4844 = dma.vmem_to_hbm [thread:$0]  %s4840_s15, 128, %s4842_s18, [#allocation5]  }
0x1129   :  { %v4831_v51 = vpop.f32.mrf.mxu0 }
0x112a   :  { %6544 = dma.done.wait [#allocation5], 128  }
0x112b   :  { %6545 = vsyncadd [#allocation5], 4294967168 }
0x112c   :  { %6546 = dma.done.wait [#allocation7], 768  }
0x112d   :  { %6547 = vsyncadd [#allocation7], 4294966528 }
0x112e   :  { %4883 = vsyncpa [#allocation5], 1 }
0x112f   :  { %4884 = vsyncpa [#allocation7], 1 }

</bundles_post_ra>
